<compile_context>
chip_gen: v7x
topology: tpu7x:2x2x1
jax: 0.10.0
libtpu: 0.0.40
codegen_flags: <defaults>
</compile_context>

<pallas_src>
import numpy as np
import jax
import jax.numpy as jnp
from jax import lax
from jax.experimental import pallas as pl
from jax.experimental.pallas import tpu as pltpu


# Fits every generation's scoped budget (v5e default 16 MiB raised here; v6e/v7x
# default 32 MiB).  Raise together with block_rows_max on v5e/v6e.
_VMEM_LIMIT = 32 * 1024 * 1024


def _round_up(n, m):
    return ((n + m - 1) // m) * m


def _pad_leading(a, multiple):
    n = a.shape[0]
    pad = _round_up(n, multiple) - n
    if pad:
        a = jnp.pad(a, [(0, pad)] + [(0, 0)] * (a.ndim - 1))
    return a


# ----------------------------------------------------------------------------
# Fused kernel: masked BiLSTM + tanh attention (+ optional linear classifier).
# ----------------------------------------------------------------------------
def _make_level_kernel(Tp, Hh, with_classifier):
    H = 2 * Hh

    def kernel(*refs):
        if with_classifier:
            (x_ref, len_ref, wi_ref, whf_ref, whb_ref, b_ref, wa_ref, ctx_ref,
             ow_ref, ob_ref,
             ctxv_ref, w_ref, logits_ref,
             hf_scr, hb_scr) = refs
        else:
            (x_ref, len_ref, wi_ref, whf_ref, whb_ref, b_ref, wa_ref, ctx_ref,
             ctxv_ref, w_ref,
             hf_scr, hb_scr) = refs

        TB, _, D = x_ref.shape
        lengths = len_ref[...]                                  # (TB, 1) int32

        # Validity mask hoisted once (JAX does not CSE broadcast_in_dim).
        t_idx = lax.broadcasted_iota(jnp.int32, (TB, Tp), 1)
        valid = t_idx < lengths                                 # (TB, Tp) bool
        mask_f = valid.astype(jnp.float32)
        keep_f = 1.0 - mask_f

        # Input projection for BOTH directions in one MXU matmul: bf16 operands,
        # f32 accumulate.  (TB*Tp, D) @ (D, 8*Hh).
        x2 = x_ref[...].reshape(TB * Tp, D)
        gxx = (jnp.dot(x2, wi_ref[...], preferred_element_type=jnp.float32)
               + b_ref[...]).reshape(TB, Tp, 8 * Hh)
        gx_f = gxx[:, :, :4 * Hh]
        gx_b = gxx[:, :, 4 * Hh:]

        def cell(gates_x, h, c, wh_ref):
            gates = gates_x + jnp.dot(h.astype(jnp.bfloat16), wh_ref[...],
                                      preferred_element_type=jnp.float32)
            # PyTorch gate order: i, f, g, o.  Elementwise math stays f32
            # (v5e VPU/EUP have no bf16 datapath).
            i = jax.nn.sigmoid(gates[:, 0 * Hh:1 * Hh])
            f = jax.nn.sigmoid(gates[:, 1 * Hh:2 * Hh])
            g = jnp.tanh(gates[:, 2 * Hh:3 * Hh])
            o = jax.nn.sigmoid(gates[:, 3 * Hh:4 * Hh])
            c_new = f * c + i * g
            return o * jnp.tanh(c_new), c_new

        # Time loops statically unrolled: Tp is small & static here.
        # TODO(synk): for long sequences (T >= ~32) chunk the recurrence with
        # lax.fori_loop(..., unroll=k) to bound vreg live ranges.
        h = c = jnp.zeros((TB, Hh), jnp.float32)
        for t in range(Tp):                                     # forward
            m, km = mask_f[:, t:t + 1], keep_f[:, t:t + 1]
            h_new, c_new = cell(gx_f[:, t, :], h, c, whf_ref)
            hf_scr[:, t:t + 1, :] = (h_new * m)[:, None, :]     # unpack() pads 0
            h = m * h_new + km * h
            c = m * c_new + km * c

        h = c = jnp.zeros((TB, Hh), jnp.float32)
        for t in range(Tp - 1, -1, -1):                         # backward
            m, km = mask_f[:, t:t + 1], keep_f[:, t:t + 1]
            h_new, c_new = cell(gx_b[:, t, :], h, c, whb_ref)
            hb_scr[:, t:t + 1, :] = (h_new * m)[:, None, :]
            # State stays zero across padding -> the reverse pass starts at each
            # sequence's true last token: exact PackedSequence behaviour.
            h = m * h_new + km * h
            c = m * c_new + km * c

        # -------- attention epilogue: hidden states never leave VMEM --------
        h_all = jnp.concatenate([hf_scr[...], hb_scr[...]], axis=-1)  # (TB,Tp,H)
        u = jnp.tanh(jnp.dot(h_all.reshape(TB * Tp, H).astype(jnp.bfloat16),
                             wa_ref[...], preferred_element_type=jnp.float32))
        s = jnp.sum(u.reshape(TB, Tp, -1) * ctx_ref[...], axis=-1)    # (TB, Tp)
        # -1e30 (not -inf): zero-length padding rows stay finite (no NaN/Inf).
        s = jnp.where(valid, s, -1e30)
        mx = jnp.max(s, axis=-1, keepdims=True)
        e = jnp.exp(s - mx)
        denom = jnp.sum(e, axis=-1, keepdims=True)
        w = e * pl.reciprocal(denom, approx=True)               # EUP reciprocal
        w_ref[...] = w
        ctxv = jnp.sum(w[:, :, None] * h_all, axis=1)           # (TB, H)
        ctxv_ref[...] = ctxv

        if with_classifier:                                     # fused nn.Linear
            logits_ref[...] = (jnp.dot(ctxv.astype(jnp.bfloat16), ow_ref[...],
                                       preferred_element_type=jnp.float32)
                               + ob_ref[...])

    return kernel


def han_level(x, lengths, wi_f, wh_f, b_f, wi_b, wh_b, b_b, w_attn, ctx_row,
              out_w=None, out_b=None, *, block_rows_max=128):
    """One HAN level in a single pallas_call.
    x: (N, T, D) f32, lengths: (N,) int -> (context (N, H), weights (N, T)
    [, logits (N, C)])."""
    N, T, D = x.shape
    Hh = wh_f.shape[0]
    H = 2 * Hh
    A = w_attn.shape[1]
    with_classifier = out_w is not None

    # Pad time to a sublane multiple so in-kernel reshapes stay tile aligned.
    Tp = _round_up(T, 8)
    if Tp != T:
        x = jnp.pad(x, ((0, 0), (0, Tp - T), (0, 0)))

    # Large row-blocks amortize the ~0.35us/grid-step overhead and give the MXU
    # a real M dim; capped so (x + gates + h scratch), double-buffered, stays
    # well inside v7x's 64 MiB VMEM.
    block_rows = min(block_rows_max, _round_up(N, 8))
    x_p = _pad_leading(x, block_rows).astype(jnp.bfloat16)   # bf16 MXU operand
    len_p = _pad_leading(lengths.astype(jnp.int32).reshape(N, 1), block_rows)
    n_pad = x_p.shape[0]

    # Combined fwd/bwd input-projection weight + bias: one matmul in-kernel.
    wi = jnp.concatenate([wi_f, wi_b], axis=1).astype(jnp.bfloat16)  # (D, 8Hh)
    bias = jnp.concatenate([b_f, b_b]).reshape(1, -1).astype(jnp.float32)

    const = lambda i: (0, 0)
    row2 = lambda i: (i, 0)
    row3 = lambda i: (i, 0, 0)

    in_specs = [
        pl.BlockSpec((block_rows, Tp, D), row3),      # streamed activations
        pl.BlockSpec((block_rows, 1), row2),          # lengths
        pl.BlockSpec((D, 8 * Hh), const),             # resident weights (DMA'd
        pl.BlockSpec((Hh, 4 * Hh), const),            #  once, reused by every
        pl.BlockSpec((Hh, 4 * Hh), const),            #  grid step)
        pl.BlockSpec((1, 8 * Hh), const),
        pl.BlockSpec((H, A), const),
        pl.BlockSpec((1, A), const),
    ]
    args = [x_p, len_p, wi,
            wh_f.astype(jnp.bfloat16), wh_b.astype(jnp.bfloat16), bias,
            w_attn.astype(jnp.bfloat16), ctx_row.astype(jnp.float32)]

    out_shape = [jax.ShapeDtypeStruct((n_pad, H), jnp.float32),
                 jax.ShapeDtypeStruct((n_pad, Tp), jnp.float32)]
    out_specs = [pl.BlockSpec((block_rows, H), row2),
                 pl.BlockSpec((block_rows, Tp), row2)]

    if with_classifier:
        C = out_w.shape[0]
        c_pad = _round_up(max(C, 128), 128)           # lane-dense logits store
        ow = (jnp.zeros((H, c_pad), jnp.float32).at[:, :C].set(out_w.T)
              .astype(jnp.bfloat16))
        ob = jnp.zeros((1, c_pad), jnp.float32).at[:, :C].set(out_b)
        in_specs += [pl.BlockSpec((H, c_pad), const),
                     pl.BlockSpec((1, c_pad), const)]
        args += [ow, ob]
        out_shape.append(jax.ShapeDtypeStruct((n_pad, c_pad), jnp.float32))
        out_specs.append(pl.BlockSpec((block_rows, c_pad), row2))

    outs = pl.pallas_call(
        _make_level_kernel(Tp, Hh, with_classifier),
        out_shape=tuple(out_shape),
        grid=(n_pad // block_rows,),
        in_specs=in_specs,
        out_specs=tuple(out_specs),
        scratch_shapes=[pltpu.VMEM((block_rows, Tp, Hh), jnp.float32),  # h fwd
                        pltpu.VMEM((block_rows, Tp, Hh), jnp.float32)], # h bwd
        compiler_params=pltpu.CompilerParams(
            dimension_semantics=("parallel",),
            vmem_limit_bytes=_VMEM_LIMIT),
    )(*args)

    ctxv = outs[0][:N]
    w = outs[1][:N, :T]
    if with_classifier:
        return ctxv, w, outs[2][:N, :C]
    return ctxv, w


# ----------------------------------------------------------------------------
# Full HAN forward (post-BERT part).
# ----------------------------------------------------------------------------
def han_forward(embedded_doc, word_per_sentence, sentence_per_document, p):
    """embedded_doc: (S_total, T, E) f32 (BERT last_hidden_state);
    word_per_sentence: (S_total,) int; sentence_per_document: python ints
    (sorted descending, as pack_sequence requires), sum == S_total.
    Returns (logits, doc_vecs, sentence_weights, word_weights)."""
    spd_np = np.asarray(sentence_per_document, dtype=np.int32)
    spd = jnp.asarray(spd_np)

    # word level: fused masked BiLSTM + attention -> one vector per sentence
    sent_vecs, word_weights = han_level(
        embedded_doc, word_per_sentence,
        p["w_wi_f"], p["w_wh_f"], p["w_b_f"],
        p["w_wi_b"], p["w_wh_b"], p["w_b_b"],
        p["w_attn"], p["w_ctx"])

    # Regroup sentence vectors per document (replaces PackedSequence plumbing;
    # word_weights are in document-contiguous sentence order, a permutation of
    # PyTorch's packed order).
    s_max = int(spd_np.max())
    offsets = np.concatenate([[0], np.cumsum(spd_np)[:-1]]).astype(np.int32)
    gather_idx = offsets[:, None] + np.arange(s_max, dtype=np.int32)[None, :]
    valid = np.arange(s_max)[None, :] < spd_np[:, None]
    gather_idx = np.where(valid, gather_idx, 0)
    sent_seq = jnp.take(sent_vecs, jnp.asarray(gather_idx), axis=0)
    sent_seq = sent_seq * jnp.asarray(valid, np.float32)[:, :, None]

    # sentence level: fused BiLSTM + attention + final nn.Linear in one kernel
    doc_vecs, sent_weights, logits = han_level(
        sent_seq, spd,
        p["s_wi_f"], p["s_wh_f"], p["s_b_f"],
        p["s_wi_b"], p["s_wh_b"], p["s_b_b"],
        p["s_attn"], p["s_ctx"],
        out_w=p["out_w"], out_b=p["out_b"])

    # LogSoftmax is never applied in the reference forward -> raw logits.
    return logits, doc_vecs, sent_weights, word_weights


# ----------------------------------------------------------------------------
# Pure-JAX reference (mirrors the PyTorch math exactly, f32 HIGHEST precision).
# ----------------------------------------------------------------------------
_HI = jax.lax.Precision.HIGHEST


def _lstm_dir_ref(x, lengths, w_i, w_h, b, reverse):
    N, T, D = x.shape
    Hh = w_h.shape[0]
    h = jnp.zeros((N, Hh), jnp.float32)
    c = jnp.zeros((N, Hh), jnp.float32)
    outs = [None] * T
    order = range(T - 1, -1, -1) if reverse else range(T)
    for t in order:
        m = (t < lengths).astype(jnp.float32)[:, None]
        gates = (jnp.dot(x[:, t], w_i, precision=_HI)
                 + jnp.dot(h, w_h, precision=_HI) + b)
        i = jax.nn.sigmoid(gates[:, :Hh])
        f = jax.nn.sigmoid(gates[:, Hh:2 * Hh])
        g = jnp.tanh(gates[:, 2 * Hh:3 * Hh])
        o = jax.nn.sigmoid(gates[:, 3 * Hh:])
        c_new = f * c + i * g
        h_new = o * jnp.tanh(c_new)
        outs[t] = h_new * m
        h = m * h_new + (1.0 - m) * h
        c = m * c_new + (1.0 - m) * c
    return jnp.stack(outs, axis=1)


def _bilstm_ref(x, lengths, wi_f, wh_f, b_f, wi_b, wh_b, b_b):
    return jnp.concatenate(
        [_lstm_dir_ref(x, lengths, wi_f, wh_f, b_f, False),
         _lstm_dir_ref(x, lengths, wi_b, wh_b, b_b, True)], axis=-1)


def _attention_ref(h, lengths, w_a_t, ctx_row):
    N, T, H = h.shape
    u = jnp.tanh(jnp.dot(h.reshape(N * T, H), w_a_t, precision=_HI))
    s = jnp.sum(u * ctx_row, axis=-1).reshape(N, T)
    mask = jnp.arange(T)[None, :] < lengths[:, None]
    s = jnp.where(mask, s, -jnp.inf)
    w = jax.nn.softmax(s, axis=-1)
    return jnp.einsum("nt,nth->nh", w, h, precision=_HI), w


def han_reference(embedded_doc, word_per_sentence, sentence_per_document, p):
    spd_np = np.asarray(sentence_per_document, dtype=np.int32)
    spd = jnp.asarray(spd_np)
    h_words = _bilstm_ref(embedded_doc, word_per_sentence,
                          p["w_wi_f"], p["w_wh_f"], p["w_b_f"],
                          p["w_wi_b"], p["w_wh_b"], p["w_b_b"])
    sent_vecs, word_weights = _attention_ref(h_words, word_per_sentence,
                                             p["w_attn"], p["w_ctx"])
    s_max = int(spd_np.max())
    offsets = np.concatenate([[0], np.cumsum(spd_np)[:-1]]).astype(np.int32)
    gather_idx = offsets[:, None] + np.arange(s_max, dtype=np.int32)[None, :]
    valid = np.arange(s_max)[None, :] < spd_np[:, None]
    gather_idx = np.where(valid, gather_idx, 0)
    sent_seq = jnp.take(sent_vecs, jnp.asarray(gather_idx), axis=0)
    sent_seq = sent_seq * jnp.asarray(valid, np.float32)[:, :, None]
    h_sents = _bilstm_ref(sent_seq, spd,
                          p["s_wi_f"], p["s_wh_f"], p["s_b_f"],
                          p["s_wi_b"], p["s_wh_b"], p["s_b_b"])
    doc_vecs, sent_weights = _attention_ref(h_sents, spd,
                                            p["s_attn"], p["s_ctx"])
    logits = jnp.dot(doc_vecs, p["out_w"].T, precision=_HI) + p["out_b"]
    return logits, doc_vecs, sent_weights, word_weights


if __name__ == "__main__":
    # Small shapes consistent with the module.
    E = 32      # embedding_size (stand-in for the BERT hidden size)
    H = 32      # hidden_size (BiLSTM output = 2 * H/2)
    A = 32      # attention_size
    C = 8       # num_class
    T = 8       # max words per sentence
    Hh = H // 2
    sentence_per_document = [3, 2]            # B = 2 documents (sorted desc)
    S_total = sum(sentence_per_document)      # 5 sentences in the batch

    key = jax.random.PRNGKey(0)
    ks = jax.random.split(key, 19)

    def unif(k, shape, bound):
        return jax.random.uniform(k, shape, jnp.float32, -bound, bound)

    # TODO(synk): the frozen pretrained BERT encoder (document ->
    # last_hidden_state) has no in-script Pallas equivalent; its padded output
    # is generated randomly here and used as the kernel input.
    embedded_doc = jax.random.normal(ks[0], (S_total, T, E), jnp.float32)
    word_per_sentence = jnp.array([8, 5, 6, 7, 4], jnp.int32)  # sum(attn_mask)

    bl = 1.0 / (Hh ** 0.5)
    bh = 1.0 / (H ** 0.5)
    params = {
        # word-level BiLSTM (PyTorch gate order i,f,g,o; weights pre-transposed)
        "w_wi_f": unif(ks[1], (E, 4 * Hh), bl),
        "w_wh_f": unif(ks[2], (Hh, 4 * Hh), bl),
        "w_b_f": unif(ks[3], (4 * Hh,), bl),
        "w_wi_b": unif(ks[4], (E, 4 * Hh), bl),
        "w_wh_b": unif(ks[5], (Hh, 4 * Hh), bl),
        "w_b_b": unif(ks[6], (4 * Hh,), bl),
        # word-level attention (linear weight pre-transposed to (H, A))
        "w_attn": unif(ks[7], (H, A), bh),
        "w_ctx": 0.02 * jax.random.normal(ks[8], (1, A), jnp.float32),
        # sentence-level BiLSTM
        "s_wi_f": unif(ks[9], (H, 4 * Hh), bl),
        "s_wh_f": unif(ks[10], (Hh, 4 * Hh), bl),
        "s_b_f": unif(ks[11], (4 * Hh,), bl),
        "s_wi_b": unif(ks[12], (H, 4 * Hh), bl),
        "s_wh_b": unif(ks[13], (Hh, 4 * Hh), bl),
        "s_b_b": unif(ks[14], (4 * Hh,), bl),
        # sentence-level attention
        "s_attn": unif(ks[15], (H, A), bh),
        "s_ctx": 0.02 * jax.random.normal(ks[16], (1, A), jnp.float32),
        # output classifier nn.Linear(H, C)
        "out_w": unif(ks[17], (C, H), bh),
        "out_b": unif(ks[18], (C,), bh),
    }

    outs = han_forward(embedded_doc, word_per_sentence,
                       sentence_per_document, params)
    outs = jax.block_until_ready(outs)
    logits, doc_vecs, sent_w, word_w = outs

    refs = han_reference(embedded_doc, word_per_sentence,
                         sentence_per_document, params)

    # bf16 MXU operands in the kernels vs f32-HIGHEST reference -> 2e-2 tol.
    names = ["logits", "doc_vecs", "sentence_weights", "word_weights"]
    for name, got, want in zip(names, outs, refs):
        assert got.shape == want.shape, (name, got.shape, want.shape)
        err = float(jnp.max(jnp.abs(got - want)))
        assert jnp.allclose(got, want, atol=2e-2, rtol=2e-2), (name, err)

    assert logits.shape == (len(sentence_per_document), C)
    print("KERNEL_OK")
</pallas_src>

<mosaic_0001>
module attributes {stable_mosaic.version = 11 : i64} {
  func.func @kernel(%arg0: i32, %arg1: memref<8x8x32xbf16, #tpu.memory_space<vmem>>, %arg2: memref<8x1xi32, #tpu.memory_space<vmem>>, %arg3: memref<32x128xbf16, #tpu.memory_space<vmem>>, %arg4: memref<16x64xbf16, #tpu.memory_space<vmem>>, %arg5: memref<16x64xbf16, #tpu.memory_space<vmem>>, %arg6: memref<1x128xf32, #tpu.memory_space<vmem>>, %arg7: memref<32x32xbf16, #tpu.memory_space<vmem>>, %arg8: memref<1x32xf32, #tpu.memory_space<vmem>>, %arg9: memref<8x32xf32, #tpu.memory_space<vmem>>, %arg10: memref<8x8xf32, #tpu.memory_space<vmem>>, %arg11: memref<8x8x16xf32, #tpu.memory_space<vmem>>, %arg12: memref<8x8x16xf32, #tpu.memory_space<vmem>>) attributes {dimension_semantics = [#tpu.dimension_semantics<parallel>], iteration_bounds = array<i64: 1>, scalar_prefetch = 0 : i64, scratch_operands = 2 : i64, tpu.core_type = #tpu.core_type<tc>, window_params = [{transform_indices = @transform_0, window_bounds = array<i64: 8, 8, 32>}, {transform_indices = @transform_1, window_bounds = array<i64: 8, 1>}, {pipeline_mode = #tpu.pipeline_mode<synchronous>, transform_indices = @transform_2, window_bounds = array<i64: 32, 128>}, {pipeline_mode = #tpu.pipeline_mode<synchronous>, transform_indices = @transform_3, window_bounds = array<i64: 16, 64>}, {pipeline_mode = #tpu.pipeline_mode<synchronous>, transform_indices = @transform_4, window_bounds = array<i64: 16, 64>}, {pipeline_mode = #tpu.pipeline_mode<synchronous>, transform_indices = @transform_5, window_bounds = array<i64: 1, 128>}, {pipeline_mode = #tpu.pipeline_mode<synchronous>, transform_indices = @transform_6, window_bounds = array<i64: 32, 32>}, {pipeline_mode = #tpu.pipeline_mode<synchronous>, transform_indices = @transform_7, window_bounds = array<i64: 1, 32>}, {transform_indices = @transform_8, window_bounds = array<i64: 8, 32>}, {transform_indices = @transform_9, window_bounds = array<i64: 8, 8>}]} {
    %c0 = arith.constant 0 : index
    %c0_0 = arith.constant 0 : index
    %0 = vector.load %arg2[%c0, %c0_0] : memref<8x1xi32, #tpu.memory_space<vmem>>, vector<8x1xi32>
    %1 = tpu.iota {dimensions = array<i32: 1>} : vector<8x8xi32>
    %2 = vector.broadcast %0 : vector<8x1xi32> to vector<8x8xi32>
    %3 = arith.cmpi slt, %1, %2 : vector<8x8xi32>
    %4 = arith.extui %3 : vector<8x8xi1> to vector<8x8xi32>
    %5 = arith.sitofp %4 : vector<8x8xi32> to vector<8x8xf32>
    %cst = arith.constant 1.000000e+00 : f32
    %6 = vector.broadcast %cst : f32 to vector<8x8xf32>
    %7 = arith.subf %6, %5 : vector<8x8xf32>
    %c0_1 = arith.constant 0 : index
    %c0_2 = arith.constant 0 : index
    %c0_3 = arith.constant 0 : index
    %8 = vector.load %arg1[%c0_1, %c0_2, %c0_3] : memref<8x8x32xbf16, #tpu.memory_space<vmem>>, vector<8x8x32xbf16>
    %9 = vector.shape_cast %8 : vector<8x8x32xbf16> to vector<64x32xbf16>
    %c0_4 = arith.constant 0 : index
    %c0_5 = arith.constant 0 : index
    %10 = vector.load %arg3[%c0_4, %c0_5] : memref<32x128xbf16, #tpu.memory_space<vmem>>, vector<32x128xbf16>
    %cst_6 = arith.constant dense<0.000000e+00> : vector<64x128xf32>
    %11 = tpu.matmul %9, %10, %cst_6 {dimension_numbers = #tpu.dot_dimension_numbers<[1], [0], [0], [1], [0, 0, 1, 1], [], []>} : vector<64x32xbf16>, vector<32x128xbf16>, vector<64x128xf32> -> vector<64x128xf32>
    %c0_7 = arith.constant 0 : index
    %c0_8 = arith.constant 0 : index
    %12 = vector.load %arg6[%c0_7, %c0_8] : memref<1x128xf32, #tpu.memory_space<vmem>>, vector<1x128xf32>
    %13 = vector.broadcast %12 : vector<1x128xf32> to vector<64x128xf32>
    %14 = arith.addf %11, %13 : vector<64x128xf32>
    %15 = vector.shape_cast %14 : vector<64x128xf32> to vector<8x8x128xf32>
    %16 = vector.extract_strided_slice %15 {offsets = [0, 0, 0], sizes = [8, 8, 64], strides = [1, 1, 1]} : vector<8x8x128xf32> to vector<8x8x64xf32>
    %17 = vector.extract_strided_slice %15 {offsets = [0, 0, 64], sizes = [8, 8, 64], strides = [1, 1, 1]} : vector<8x8x128xf32> to vector<8x8x64xf32>
    %cst_9 = arith.constant 0.000000e+00 : f32
    %18 = vector.broadcast %cst_9 : f32 to vector<8x16xf32>
    %19 = vector.extract_strided_slice %5 {offsets = [0, 0], sizes = [8, 1], strides = [1, 1]} : vector<8x8xf32> to vector<8x1xf32>
    %20 = vector.extract_strided_slice %7 {offsets = [0, 0], sizes = [8, 1], strides = [1, 1]} : vector<8x8xf32> to vector<8x1xf32>
    %21 = vector.extract_strided_slice %16 {offsets = [0, 0, 0], sizes = [8, 1, 64], strides = [1, 1, 1]} : vector<8x8x64xf32> to vector<8x1x64xf32>
    %22 = vector.shape_cast %21 : vector<8x1x64xf32> to vector<8x64xf32>
    %23 = arith.truncf %18 : vector<8x16xf32> to vector<8x16xbf16>
    %c0_10 = arith.constant 0 : index
    %c0_11 = arith.constant 0 : index
    %24 = vector.load %arg4[%c0_10, %c0_11] : memref<16x64xbf16, #tpu.memory_space<vmem>>, vector<16x64xbf16>
    %cst_12 = arith.constant dense<0.000000e+00> : vector<8x64xf32>
    %25 = tpu.matmul %23, %24, %cst_12 {dimension_numbers = #tpu.dot_dimension_numbers<[1], [0], [0], [1], [0, 0, 1, 1], [], []>} : vector<8x16xbf16>, vector<16x64xbf16>, vector<8x64xf32> -> vector<8x64xf32>
    %26 = arith.addf %22, %25 : vector<8x64xf32>
    %27 = vector.extract_strided_slice %26 {offsets = [0, 0], sizes = [8, 16], strides = [1, 1]} : vector<8x64xf32> to vector<8x16xf32>
    %28 = arith.negf %27 : vector<8x16xf32>
    %29 = math.exp %28 : vector<8x16xf32>
    %cst_13 = arith.constant 1.000000e+00 : f32
    %30 = vector.broadcast %cst_13 : f32 to vector<8x16xf32>
    %31 = arith.addf %30, %29 : vector<8x16xf32>
    %32 = arith.divf %30, %31 : vector<8x16xf32>
    %33 = vector.extract_strided_slice %26 {offsets = [0, 16], sizes = [8, 16], strides = [1, 1]} : vector<8x64xf32> to vector<8x16xf32>
    %34 = arith.negf %33 : vector<8x16xf32>
    %35 = math.exp %34 : vector<8x16xf32>
    %cst_14 = arith.constant 1.000000e+00 : f32
    %36 = vector.broadcast %cst_14 : f32 to vector<8x16xf32>
    %37 = arith.addf %36, %35 : vector<8x16xf32>
    %38 = arith.divf %36, %37 : vector<8x16xf32>
    %39 = vector.extract_strided_slice %26 {offsets = [0, 32], sizes = [8, 16], strides = [1, 1]} : vector<8x64xf32> to vector<8x16xf32>
    %40 = math.tanh %39 : vector<8x16xf32>
    %41 = vector.extract_strided_slice %26 {offsets = [0, 48], sizes = [8, 16], strides = [1, 1]} : vector<8x64xf32> to vector<8x16xf32>
    %42 = arith.negf %41 : vector<8x16xf32>
    %43 = math.exp %42 : vector<8x16xf32>
    %cst_15 = arith.constant 1.000000e+00 : f32
    %44 = vector.broadcast %cst_15 : f32 to vector<8x16xf32>
    %45 = arith.addf %44, %43 : vector<8x16xf32>
    %46 = arith.divf %44, %45 : vector<8x16xf32>
    %47 = arith.mulf %38, %18 : vector<8x16xf32>
    %48 = arith.mulf %32, %40 : vector<8x16xf32>
    %49 = arith.addf %47, %48 : vector<8x16xf32>
    %50 = math.tanh %49 : vector<8x16xf32>
    %51 = arith.mulf %46, %50 : vector<8x16xf32>
    %52 = vector.broadcast %19 : vector<8x1xf32> to vector<8x16xf32>
    %53 = arith.mulf %51, %52 : vector<8x16xf32>
    %54 = vector.shape_cast %53 : vector<8x16xf32> to vector<8x1x16xf32>
    %c0_16 = arith.constant 0 : index
    %c0_17 = arith.constant 0 : index
    %c0_18 = arith.constant 0 : index
    %55 = vector.load %arg11[%c0_16, %c0_17, %c0_18] : memref<8x8x16xf32, #tpu.memory_space<vmem>>, vector<8x1x16xf32>
    tpu.vector_store %arg11[%c0_16, %c0_17, %c0_18], %54 {strides = array<i32>} : memref<8x8x16xf32, #tpu.memory_space<vmem>>, vector<8x1x16xf32>,
    %56 = vector.broadcast %19 : vector<8x1xf32> to vector<8x16xf32>
    %57 = arith.mulf %56, %51 : vector<8x16xf32>
    %58 = vector.broadcast %20 : vector<8x1xf32> to vector<8x16xf32>
    %59 = arith.mulf %58, %18 : vector<8x16xf32>
    %60 = arith.addf %57, %59 : vector<8x16xf32>
    %61 = vector.broadcast %19 : vector<8x1xf32> to vector<8x16xf32>
    %62 = arith.mulf %61, %49 : vector<8x16xf32>
    %63 = vector.broadcast %20 : vector<8x1xf32> to vector<8x16xf32>
    %64 = arith.mulf %63, %18 : vector<8x16xf32>
    %65 = arith.addf %62, %64 : vector<8x16xf32>
    %66 = vector.extract_strided_slice %5 {offsets = [0, 1], sizes = [8, 1], strides = [1, 1]} : vector<8x8xf32> to vector<8x1xf32>
    %67 = vector.extract_strided_slice %7 {offsets = [0, 1], sizes = [8, 1], strides = [1, 1]} : vector<8x8xf32> to vector<8x1xf32>
    %68 = vector.extract_strided_slice %16 {offsets = [0, 1, 0], sizes = [8, 1, 64], strides = [1, 1, 1]} : vector<8x8x64xf32> to vector<8x1x64xf32>
    %69 = vector.shape_cast %68 : vector<8x1x64xf32> to vector<8x64xf32>
    %70 = arith.truncf %60 : vector<8x16xf32> to vector<8x16xbf16>
    %c0_19 = arith.constant 0 : index
    %c0_20 = arith.constant 0 : index
    %71 = vector.load %arg4[%c0_19, %c0_20] : memref<16x64xbf16, #tpu.memory_space<vmem>>, vector<16x64xbf16>
    %cst_21 = arith.constant dense<0.000000e+00> : vector<8x64xf32>
    %72 = tpu.matmul %70, %71, %cst_21 {dimension_numbers = #tpu.dot_dimension_numbers<[1], [0], [0], [1], [0, 0, 1, 1], [], []>} : vector<8x16xbf16>, vector<16x64xbf16>, vector<8x64xf32> -> vector<8x64xf32>
    %73 = arith.addf %69, %72 : vector<8x64xf32>
    %74 = vector.extract_strided_slice %73 {offsets = [0, 0], sizes = [8, 16], strides = [1, 1]} : vector<8x64xf32> to vector<8x16xf32>
    %75 = arith.negf %74 : vector<8x16xf32>
    %76 = math.exp %75 : vector<8x16xf32>
    %cst_22 = arith.constant 1.000000e+00 : f32
    %77 = vector.broadcast %cst_22 : f32 to vector<8x16xf32>
    %78 = arith.addf %77, %76 : vector<8x16xf32>
    %79 = arith.divf %77, %78 : vector<8x16xf32>
    %80 = vector.extract_strided_slice %73 {offsets = [0, 16], sizes = [8, 16], strides = [1, 1]} : vector<8x64xf32> to vector<8x16xf32>
    %81 = arith.negf %80 : vector<8x16xf32>
    %82 = math.exp %81 : vector<8x16xf32>
    %cst_23 = arith.constant 1.000000e+00 : f32
    %83 = vector.broadcast %cst_23 : f32 to vector<8x16xf32>
    %84 = arith.addf %83, %82 : vector<8x16xf32>
    %85 = arith.divf %83, %84 : vector<8x16xf32>
    %86 = vector.extract_strided_slice %73 {offsets = [0, 32], sizes = [8, 16], strides = [1, 1]} : vector<8x64xf32> to vector<8x16xf32>
    %87 = math.tanh %86 : vector<8x16xf32>
    %88 = vector.extract_strided_slice %73 {offsets = [0, 48], sizes = [8, 16], strides = [1, 1]} : vector<8x64xf32> to vector<8x16xf32>
    %89 = arith.negf %88 : vector<8x16xf32>
    %90 = math.exp %89 : vector<8x16xf32>
    %cst_24 = arith.constant 1.000000e+00 : f32
    %91 = vector.broadcast %cst_24 : f32 to vector<8x16xf32>
    %92 = arith.addf %91, %90 : vector<8x16xf32>
    %93 = arith.divf %91, %92 : vector<8x16xf32>
    %94 = arith.mulf %85, %65 : vector<8x16xf32>
    %95 = arith.mulf %79, %87 : vector<8x16xf32>
    %96 = arith.addf %94, %95 : vector<8x16xf32>
    %97 = math.tanh %96 : vector<8x16xf32>
    %98 = arith.mulf %93, %97 : vector<8x16xf32>
    %99 = vector.broadcast %66 : vector<8x1xf32> to vector<8x16xf32>
    %100 = arith.mulf %98, %99 : vector<8x16xf32>
    %101 = vector.shape_cast %100 : vector<8x16xf32> to vector<8x1x16xf32>
    %c0_25 = arith.constant 0 : index
    %c1 = arith.constant 1 : index
    %c0_26 = arith.constant 0 : index
    %102 = vector.load %arg11[%c0_25, %c1, %c0_26] : memref<8x8x16xf32, #tpu.memory_space<vmem>>, vector<8x1x16xf32>
    tpu.vector_store %arg11[%c0_25, %c1, %c0_26], %101 {strides = array<i32>} : memref<8x8x16xf32, #tpu.memory_space<vmem>>, vector<8x1x16xf32>,
    %103 = vector.broadcast %66 : vector<8x1xf32> to vector<8x16xf32>
    %104 = arith.mulf %103, %98 : vector<8x16xf32>
    %105 = vector.broadcast %67 : vector<8x1xf32> to vector<8x16xf32>
    %106 = arith.mulf %105, %60 : vector<8x16xf32>
    %107 = arith.addf %104, %106 : vector<8x16xf32>
    %108 = vector.broadcast %66 : vector<8x1xf32> to vector<8x16xf32>
    %109 = arith.mulf %108, %96 : vector<8x16xf32>
    %110 = vector.broadcast %67 : vector<8x1xf32> to vector<8x16xf32>
    %111 = arith.mulf %110, %65 : vector<8x16xf32>
    %112 = arith.addf %109, %111 : vector<8x16xf32>
    %113 = vector.extract_strided_slice %5 {offsets = [0, 2], sizes = [8, 1], strides = [1, 1]} : vector<8x8xf32> to vector<8x1xf32>
    %114 = vector.extract_strided_slice %7 {offsets = [0, 2], sizes = [8, 1], strides = [1, 1]} : vector<8x8xf32> to vector<8x1xf32>
    %115 = vector.extract_strided_slice %16 {offsets = [0, 2, 0], sizes = [8, 1, 64], strides = [1, 1, 1]} : vector<8x8x64xf32> to vector<8x1x64xf32>
    %116 = vector.shape_cast %115 : vector<8x1x64xf32> to vector<8x64xf32>
    %117 = arith.truncf %107 : vector<8x16xf32> to vector<8x16xbf16>
    %c0_27 = arith.constant 0 : index
    %c0_28 = arith.constant 0 : index
    %118 = vector.load %arg4[%c0_27, %c0_28] : memref<16x64xbf16, #tpu.memory_space<vmem>>, vector<16x64xbf16>
    %cst_29 = arith.constant dense<0.000000e+00> : vector<8x64xf32>
    %119 = tpu.matmul %117, %118, %cst_29 {dimension_numbers = #tpu.dot_dimension_numbers<[1], [0], [0], [1], [0, 0, 1, 1], [], []>} : vector<8x16xbf16>, vector<16x64xbf16>, vector<8x64xf32> -> vector<8x64xf32>
    %120 = arith.addf %116, %119 : vector<8x64xf32>
    %121 = vector.extract_strided_slice %120 {offsets = [0, 0], sizes = [8, 16], strides = [1, 1]} : vector<8x64xf32> to vector<8x16xf32>
    %122 = arith.negf %121 : vector<8x16xf32>
    %123 = math.exp %122 : vector<8x16xf32>
    %cst_30 = arith.constant 1.000000e+00 : f32
    %124 = vector.broadcast %cst_30 : f32 to vector<8x16xf32>
    %125 = arith.addf %124, %123 : vector<8x16xf32>
    %126 = arith.divf %124, %125 : vector<8x16xf32>
    %127 = vector.extract_strided_slice %120 {offsets = [0, 16], sizes = [8, 16], strides = [1, 1]} : vector<8x64xf32> to vector<8x16xf32>
    %128 = arith.negf %127 : vector<8x16xf32>
    %129 = math.exp %128 : vector<8x16xf32>
    %cst_31 = arith.constant 1.000000e+00 : f32
    %130 = vector.broadcast %cst_31 : f32 to vector<8x16xf32>
    %131 = arith.addf %130, %129 : vector<8x16xf32>
    %132 = arith.divf %130, %131 : vector<8x16xf32>
    %133 = vector.extract_strided_slice %120 {offsets = [0, 32], sizes = [8, 16], strides = [1, 1]} : vector<8x64xf32> to vector<8x16xf32>
    %134 = math.tanh %133 : vector<8x16xf32>
    %135 = vector.extract_strided_slice %120 {offsets = [0, 48], sizes = [8, 16], strides = [1, 1]} : vector<8x64xf32> to vector<8x16xf32>
    %136 = arith.negf %135 : vector<8x16xf32>
    %137 = math.exp %136 : vector<8x16xf32>
    %cst_32 = arith.constant 1.000000e+00 : f32
    %138 = vector.broadcast %cst_32 : f32 to vector<8x16xf32>
    %139 = arith.addf %138, %137 : vector<8x16xf32>
    %140 = arith.divf %138, %139 : vector<8x16xf32>
    %141 = arith.mulf %132, %112 : vector<8x16xf32>
    %142 = arith.mulf %126, %134 : vector<8x16xf32>
    %143 = arith.addf %141, %142 : vector<8x16xf32>
    %144 = math.tanh %143 : vector<8x16xf32>
    %145 = arith.mulf %140, %144 : vector<8x16xf32>
    %146 = vector.broadcast %113 : vector<8x1xf32> to vector<8x16xf32>
    %147 = arith.mulf %145, %146 : vector<8x16xf32>
    %148 = vector.shape_cast %147 : vector<8x16xf32> to vector<8x1x16xf32>
    %c0_33 = arith.constant 0 : index
    %c2 = arith.constant 2 : index
    %c0_34 = arith.constant 0 : index
    %149 = vector.load %arg11[%c0_33, %c2, %c0_34] : memref<8x8x16xf32, #tpu.memory_space<vmem>>, vector<8x1x16xf32>
    tpu.vector_store %arg11[%c0_33, %c2, %c0_34], %148 {strides = array<i32>} : memref<8x8x16xf32, #tpu.memory_space<vmem>>, vector<8x1x16xf32>,
    %150 = vector.broadcast %113 : vector<8x1xf32> to vector<8x16xf32>
    %151 = arith.mulf %150, %145 : vector<8x16xf32>
    %152 = vector.broadcast %114 : vector<8x1xf32> to vector<8x16xf32>
    %153 = arith.mulf %152, %107 : vector<8x16xf32>
    %154 = arith.addf %151, %153 : vector<8x16xf32>
    %155 = vector.broadcast %113 : vector<8x1xf32> to vector<8x16xf32>
    %156 = arith.mulf %155, %143 : vector<8x16xf32>
    %157 = vector.broadcast %114 : vector<8x1xf32> to vector<8x16xf32>
    %158 = arith.mulf %157, %112 : vector<8x16xf32>
    %159 = arith.addf %156, %158 : vector<8x16xf32>
    %160 = vector.extract_strided_slice %5 {offsets = [0, 3], sizes = [8, 1], strides = [1, 1]} : vector<8x8xf32> to vector<8x1xf32>
    %161 = vector.extract_strided_slice %7 {offsets = [0, 3], sizes = [8, 1], strides = [1, 1]} : vector<8x8xf32> to vector<8x1xf32>
    %162 = vector.extract_strided_slice %16 {offsets = [0, 3, 0], sizes = [8, 1, 64], strides = [1, 1, 1]} : vector<8x8x64xf32> to vector<8x1x64xf32>
    %163 = vector.shape_cast %162 : vector<8x1x64xf32> to vector<8x64xf32>
    %164 = arith.truncf %154 : vector<8x16xf32> to vector<8x16xbf16>
    %c0_35 = arith.constant 0 : index
    %c0_36 = arith.constant 0 : index
    %165 = vector.load %arg4[%c0_35, %c0_36] : memref<16x64xbf16, #tpu.memory_space<vmem>>, vector<16x64xbf16>
    %cst_37 = arith.constant dense<0.000000e+00> : vector<8x64xf32>
    %166 = tpu.matmul %164, %165, %cst_37 {dimension_numbers = #tpu.dot_dimension_numbers<[1], [0], [0], [1], [0, 0, 1, 1], [], []>} : vector<8x16xbf16>, vector<16x64xbf16>, vector<8x64xf32> -> vector<8x64xf32>
    %167 = arith.addf %163, %166 : vector<8x64xf32>
    %168 = vector.extract_strided_slice %167 {offsets = [0, 0], sizes = [8, 16], strides = [1, 1]} : vector<8x64xf32> to vector<8x16xf32>
    %169 = arith.negf %168 : vector<8x16xf32>
    %170 = math.exp %169 : vector<8x16xf32>
    %cst_38 = arith.constant 1.000000e+00 : f32
    %171 = vector.broadcast %cst_38 : f32 to vector<8x16xf32>
    %172 = arith.addf %171, %170 : vector<8x16xf32>
    %173 = arith.divf %171, %172 : vector<8x16xf32>
    %174 = vector.extract_strided_slice %167 {offsets = [0, 16], sizes = [8, 16], strides = [1, 1]} : vector<8x64xf32> to vector<8x16xf32>
    %175 = arith.negf %174 : vector<8x16xf32>
    %176 = math.exp %175 : vector<8x16xf32>
    %cst_39 = arith.constant 1.000000e+00 : f32
    %177 = vector.broadcast %cst_39 : f32 to vector<8x16xf32>
    %178 = arith.addf %177, %176 : vector<8x16xf32>
    %179 = arith.divf %177, %178 : vector<8x16xf32>
    %180 = vector.extract_strided_slice %167 {offsets = [0, 32], sizes = [8, 16], strides = [1, 1]} : vector<8x64xf32> to vector<8x16xf32>
    %181 = math.tanh %180 : vector<8x16xf32>
    %182 = vector.extract_strided_slice %167 {offsets = [0, 48], sizes = [8, 16], strides = [1, 1]} : vector<8x64xf32> to vector<8x16xf32>
    %183 = arith.negf %182 : vector<8x16xf32>
    %184 = math.exp %183 : vector<8x16xf32>
    %cst_40 = arith.constant 1.000000e+00 : f32
    %185 = vector.broadcast %cst_40 : f32 to vector<8x16xf32>
    %186 = arith.addf %185, %184 : vector<8x16xf32>
    %187 = arith.divf %185, %186 : vector<8x16xf32>
    %188 = arith.mulf %179, %159 : vector<8x16xf32>
    %189 = arith.mulf %173, %181 : vector<8x16xf32>
    %190 = arith.addf %188, %189 : vector<8x16xf32>
    %191 = math.tanh %190 : vector<8x16xf32>
    %192 = arith.mulf %187, %191 : vector<8x16xf32>
    %193 = vector.broadcast %160 : vector<8x1xf32> to vector<8x16xf32>
    %194 = arith.mulf %192, %193 : vector<8x16xf32>
    %195 = vector.shape_cast %194 : vector<8x16xf32> to vector<8x1x16xf32>
    %c0_41 = arith.constant 0 : index
    %c3 = arith.constant 3 : index
    %c0_42 = arith.constant 0 : index
    %196 = vector.load %arg11[%c0_41, %c3, %c0_42] : memref<8x8x16xf32, #tpu.memory_space<vmem>>, vector<8x1x16xf32>
    tpu.vector_store %arg11[%c0_41, %c3, %c0_42], %195 {strides = array<i32>} : memref<8x8x16xf32, #tpu.memory_space<vmem>>, vector<8x1x16xf32>,
    %197 = vector.broadcast %160 : vector<8x1xf32> to vector<8x16xf32>
    %198 = arith.mulf %197, %192 : vector<8x16xf32>
    %199 = vector.broadcast %161 : vector<8x1xf32> to vector<8x16xf32>
    %200 = arith.mulf %199, %154 : vector<8x16xf32>
    %201 = arith.addf %198, %200 : vector<8x16xf32>
    %202 = vector.broadcast %160 : vector<8x1xf32> to vector<8x16xf32>
    %203 = arith.mulf %202, %190 : vector<8x16xf32>
    %204 = vector.broadcast %161 : vector<8x1xf32> to vector<8x16xf32>
    %205 = arith.mulf %204, %159 : vector<8x16xf32>
    %206 = arith.addf %203, %205 : vector<8x16xf32>
    %207 = vector.extract_strided_slice %5 {offsets = [0, 4], sizes = [8, 1], strides = [1, 1]} : vector<8x8xf32> to vector<8x1xf32>
    %208 = vector.extract_strided_slice %7 {offsets = [0, 4], sizes = [8, 1], strides = [1, 1]} : vector<8x8xf32> to vector<8x1xf32>
    %209 = vector.extract_strided_slice %16 {offsets = [0, 4, 0], sizes = [8, 1, 64], strides = [1, 1, 1]} : vector<8x8x64xf32> to vector<8x1x64xf32>
    %210 = vector.shape_cast %209 : vector<8x1x64xf32> to vector<8x64xf32>
    %211 = arith.truncf %201 : vector<8x16xf32> to vector<8x16xbf16>
    %c0_43 = arith.constant 0 : index
    %c0_44 = arith.constant 0 : index
    %212 = vector.load %arg4[%c0_43, %c0_44] : memref<16x64xbf16, #tpu.memory_space<vmem>>, vector<16x64xbf16>
    %cst_45 = arith.constant dense<0.000000e+00> : vector<8x64xf32>
    %213 = tpu.matmul %211, %212, %cst_45 {dimension_numbers = #tpu.dot_dimension_numbers<[1], [0], [0], [1], [0, 0, 1, 1], [], []>} : vector<8x16xbf16>, vector<16x64xbf16>, vector<8x64xf32> -> vector<8x64xf32>
    %214 = arith.addf %210, %213 : vector<8x64xf32>
    %215 = vector.extract_strided_slice %214 {offsets = [0, 0], sizes = [8, 16], strides = [1, 1]} : vector<8x64xf32> to vector<8x16xf32>
    %216 = arith.negf %215 : vector<8x16xf32>
    %217 = math.exp %216 : vector<8x16xf32>
    %cst_46 = arith.constant 1.000000e+00 : f32
    %218 = vector.broadcast %cst_46 : f32 to vector<8x16xf32>
    %219 = arith.addf %218, %217 : vector<8x16xf32>
    %220 = arith.divf %218, %219 : vector<8x16xf32>
    %221 = vector.extract_strided_slice %214 {offsets = [0, 16], sizes = [8, 16], strides = [1, 1]} : vector<8x64xf32> to vector<8x16xf32>
    %222 = arith.negf %221 : vector<8x16xf32>
    %223 = math.exp %222 : vector<8x16xf32>
    %cst_47 = arith.constant 1.000000e+00 : f32
    %224 = vector.broadcast %cst_47 : f32 to vector<8x16xf32>
    %225 = arith.addf %224, %223 : vector<8x16xf32>
    %226 = arith.divf %224, %225 : vector<8x16xf32>
    %227 = vector.extract_strided_slice %214 {offsets = [0, 32], sizes = [8, 16], strides = [1, 1]} : vector<8x64xf32> to vector<8x16xf32>
    %228 = math.tanh %227 : vector<8x16xf32>
    %229 = vector.extract_strided_slice %214 {offsets = [0, 48], sizes = [8, 16], strides = [1, 1]} : vector<8x64xf32> to vector<8x16xf32>
    %230 = arith.negf %229 : vector<8x16xf32>
    %231 = math.exp %230 : vector<8x16xf32>
    %cst_48 = arith.constant 1.000000e+00 : f32
    %232 = vector.broadcast %cst_48 : f32 to vector<8x16xf32>
    %233 = arith.addf %232, %231 : vector<8x16xf32>
    %234 = arith.divf %232, %233 : vector<8x16xf32>
    %235 = arith.mulf %226, %206 : vector<8x16xf32>
    %236 = arith.mulf %220, %228 : vector<8x16xf32>
    %237 = arith.addf %235, %236 : vector<8x16xf32>
    %238 = math.tanh %237 : vector<8x16xf32>
    %239 = arith.mulf %234, %238 : vector<8x16xf32>
    %240 = vector.broadcast %207 : vector<8x1xf32> to vector<8x16xf32>
    %241 = arith.mulf %239, %240 : vector<8x16xf32>
    %242 = vector.shape_cast %241 : vector<8x16xf32> to vector<8x1x16xf32>
    %c0_49 = arith.constant 0 : index
    %c4 = arith.constant 4 : index
    %c0_50 = arith.constant 0 : index
    %243 = vector.load %arg11[%c0_49, %c4, %c0_50] : memref<8x8x16xf32, #tpu.memory_space<vmem>>, vector<8x1x16xf32>
    tpu.vector_store %arg11[%c0_49, %c4, %c0_50], %242 {strides = array<i32>} : memref<8x8x16xf32, #tpu.memory_space<vmem>>, vector<8x1x16xf32>,
    %244 = vector.broadcast %207 : vector<8x1xf32> to vector<8x16xf32>
    %245 = arith.mulf %244, %239 : vector<8x16xf32>
    %246 = vector.broadcast %208 : vector<8x1xf32> to vector<8x16xf32>
    %247 = arith.mulf %246, %201 : vector<8x16xf32>
    %248 = arith.addf %245, %247 : vector<8x16xf32>
    %249 = vector.broadcast %207 : vector<8x1xf32> to vector<8x16xf32>
    %250 = arith.mulf %249, %237 : vector<8x16xf32>
    %251 = vector.broadcast %208 : vector<8x1xf32> to vector<8x16xf32>
    %252 = arith.mulf %251, %206 : vector<8x16xf32>
    %253 = arith.addf %250, %252 : vector<8x16xf32>
    %254 = vector.extract_strided_slice %5 {offsets = [0, 5], sizes = [8, 1], strides = [1, 1]} : vector<8x8xf32> to vector<8x1xf32>
    %255 = vector.extract_strided_slice %7 {offsets = [0, 5], sizes = [8, 1], strides = [1, 1]} : vector<8x8xf32> to vector<8x1xf32>
    %256 = vector.extract_strided_slice %16 {offsets = [0, 5, 0], sizes = [8, 1, 64], strides = [1, 1, 1]} : vector<8x8x64xf32> to vector<8x1x64xf32>
    %257 = vector.shape_cast %256 : vector<8x1x64xf32> to vector<8x64xf32>
    %258 = arith.truncf %248 : vector<8x16xf32> to vector<8x16xbf16>
    %c0_51 = arith.constant 0 : index
    %c0_52 = arith.constant 0 : index
    %259 = vector.load %arg4[%c0_51, %c0_52] : memref<16x64xbf16, #tpu.memory_space<vmem>>, vector<16x64xbf16>
    %cst_53 = arith.constant dense<0.000000e+00> : vector<8x64xf32>
    %260 = tpu.matmul %258, %259, %cst_53 {dimension_numbers = #tpu.dot_dimension_numbers<[1], [0], [0], [1], [0, 0, 1, 1], [], []>} : vector<8x16xbf16>, vector<16x64xbf16>, vector<8x64xf32> -> vector<8x64xf32>
    %261 = arith.addf %257, %260 : vector<8x64xf32>
    %262 = vector.extract_strided_slice %261 {offsets = [0, 0], sizes = [8, 16], strides = [1, 1]} : vector<8x64xf32> to vector<8x16xf32>
    %263 = arith.negf %262 : vector<8x16xf32>
    %264 = math.exp %263 : vector<8x16xf32>
    %cst_54 = arith.constant 1.000000e+00 : f32
    %265 = vector.broadcast %cst_54 : f32 to vector<8x16xf32>
    %266 = arith.addf %265, %264 : vector<8x16xf32>
    %267 = arith.divf %265, %266 : vector<8x16xf32>
    %268 = vector.extract_strided_slice %261 {offsets = [0, 16], sizes = [8, 16], strides = [1, 1]} : vector<8x64xf32> to vector<8x16xf32>
    %269 = arith.negf %268 : vector<8x16xf32>
    %270 = math.exp %269 : vector<8x16xf32>
    %cst_55 = arith.constant 1.000000e+00 : f32
    %271 = vector.broadcast %cst_55 : f32 to vector<8x16xf32>
    %272 = arith.addf %271, %270 : vector<8x16xf32>
    %273 = arith.divf %271, %272 : vector<8x16xf32>
    %274 = vector.extract_strided_slice %261 {offsets = [0, 32], sizes = [8, 16], strides = [1, 1]} : vector<8x64xf32> to vector<8x16xf32>
    %275 = math.tanh %274 : vector<8x16xf32>
    %276 = vector.extract_strided_slice %261 {offsets = [0, 48], sizes = [8, 16], strides = [1, 1]} : vector<8x64xf32> to vector<8x16xf32>
    %277 = arith.negf %276 : vector<8x16xf32>
    %278 = math.exp %277 : vector<8x16xf32>
    %cst_56 = arith.constant 1.000000e+00 : f32
    %279 = vector.broadcast %cst_56 : f32 to vector<8x16xf32>
    %280 = arith.addf %279, %278 : vector<8x16xf32>
    %281 = arith.divf %279, %280 : vector<8x16xf32>
    %282 = arith.mulf %273, %253 : vector<8x16xf32>
    %283 = arith.mulf %267, %275 : vector<8x16xf32>
    %284 = arith.addf %282, %283 : vector<8x16xf32>
    %285 = math.tanh %284 : vector<8x16xf32>
    %286 = arith.mulf %281, %285 : vector<8x16xf32>
    %287 = vector.broadcast %254 : vector<8x1xf32> to vector<8x16xf32>
    %288 = arith.mulf %286, %287 : vector<8x16xf32>
    %289 = vector.shape_cast %288 : vector<8x16xf32> to vector<8x1x16xf32>
    %c0_57 = arith.constant 0 : index
    %c5 = arith.constant 5 : index
    %c0_58 = arith.constant 0 : index
    %290 = vector.load %arg11[%c0_57, %c5, %c0_58] : memref<8x8x16xf32, #tpu.memory_space<vmem>>, vector<8x1x16xf32>
    tpu.vector_store %arg11[%c0_57, %c5, %c0_58], %289 {strides = array<i32>} : memref<8x8x16xf32, #tpu.memory_space<vmem>>, vector<8x1x16xf32>,
    %291 = vector.broadcast %254 : vector<8x1xf32> to vector<8x16xf32>
    %292 = arith.mulf %291, %286 : vector<8x16xf32>
    %293 = vector.broadcast %255 : vector<8x1xf32> to vector<8x16xf32>
    %294 = arith.mulf %293, %248 : vector<8x16xf32>
    %295 = arith.addf %292, %294 : vector<8x16xf32>
    %296 = vector.broadcast %254 : vector<8x1xf32> to vector<8x16xf32>
    %297 = arith.mulf %296, %284 : vector<8x16xf32>
    %298 = vector.broadcast %255 : vector<8x1xf32> to vector<8x16xf32>
    %299 = arith.mulf %298, %253 : vector<8x16xf32>
    %300 = arith.addf %297, %299 : vector<8x16xf32>
    %301 = vector.extract_strided_slice %5 {offsets = [0, 6], sizes = [8, 1], strides = [1, 1]} : vector<8x8xf32> to vector<8x1xf32>
    %302 = vector.extract_strided_slice %7 {offsets = [0, 6], sizes = [8, 1], strides = [1, 1]} : vector<8x8xf32> to vector<8x1xf32>
    %303 = vector.extract_strided_slice %16 {offsets = [0, 6, 0], sizes = [8, 1, 64], strides = [1, 1, 1]} : vector<8x8x64xf32> to vector<8x1x64xf32>
    %304 = vector.shape_cast %303 : vector<8x1x64xf32> to vector<8x64xf32>
    %305 = arith.truncf %295 : vector<8x16xf32> to vector<8x16xbf16>
    %c0_59 = arith.constant 0 : index
    %c0_60 = arith.constant 0 : index
    %306 = vector.load %arg4[%c0_59, %c0_60] : memref<16x64xbf16, #tpu.memory_space<vmem>>, vector<16x64xbf16>
    %cst_61 = arith.constant dense<0.000000e+00> : vector<8x64xf32>
    %307 = tpu.matmul %305, %306, %cst_61 {dimension_numbers = #tpu.dot_dimension_numbers<[1], [0], [0], [1], [0, 0, 1, 1], [], []>} : vector<8x16xbf16>, vector<16x64xbf16>, vector<8x64xf32> -> vector<8x64xf32>
    %308 = arith.addf %304, %307 : vector<8x64xf32>
    %309 = vector.extract_strided_slice %308 {offsets = [0, 0], sizes = [8, 16], strides = [1, 1]} : vector<8x64xf32> to vector<8x16xf32>
    %310 = arith.negf %309 : vector<8x16xf32>
    %311 = math.exp %310 : vector<8x16xf32>
    %cst_62 = arith.constant 1.000000e+00 : f32
    %312 = vector.broadcast %cst_62 : f32 to vector<8x16xf32>
    %313 = arith.addf %312, %311 : vector<8x16xf32>
    %314 = arith.divf %312, %313 : vector<8x16xf32>
    %315 = vector.extract_strided_slice %308 {offsets = [0, 16], sizes = [8, 16], strides = [1, 1]} : vector<8x64xf32> to vector<8x16xf32>
    %316 = arith.negf %315 : vector<8x16xf32>
    %317 = math.exp %316 : vector<8x16xf32>
    %cst_63 = arith.constant 1.000000e+00 : f32
    %318 = vector.broadcast %cst_63 : f32 to vector<8x16xf32>
    %319 = arith.addf %318, %317 : vector<8x16xf32>
    %320 = arith.divf %318, %319 : vector<8x16xf32>
    %321 = vector.extract_strided_slice %308 {offsets = [0, 32], sizes = [8, 16], strides = [1, 1]} : vector<8x64xf32> to vector<8x16xf32>
    %322 = math.tanh %321 : vector<8x16xf32>
    %323 = vector.extract_strided_slice %308 {offsets = [0, 48], sizes = [8, 16], strides = [1, 1]} : vector<8x64xf32> to vector<8x16xf32>
    %324 = arith.negf %323 : vector<8x16xf32>
    %325 = math.exp %324 : vector<8x16xf32>
    %cst_64 = arith.constant 1.000000e+00 : f32
    %326 = vector.broadcast %cst_64 : f32 to vector<8x16xf32>
    %327 = arith.addf %326, %325 : vector<8x16xf32>
    %328 = arith.divf %326, %327 : vector<8x16xf32>
    %329 = arith.mulf %320, %300 : vector<8x16xf32>
    %330 = arith.mulf %314, %322 : vector<8x16xf32>
    %331 = arith.addf %329, %330 : vector<8x16xf32>
    %332 = math.tanh %331 : vector<8x16xf32>
    %333 = arith.mulf %328, %332 : vector<8x16xf32>
    %334 = vector.broadcast %301 : vector<8x1xf32> to vector<8x16xf32>
    %335 = arith.mulf %333, %334 : vector<8x16xf32>
    %336 = vector.shape_cast %335 : vector<8x16xf32> to vector<8x1x16xf32>
    %c0_65 = arith.constant 0 : index
    %c6 = arith.constant 6 : index
    %c0_66 = arith.constant 0 : index
    %337 = vector.load %arg11[%c0_65, %c6, %c0_66] : memref<8x8x16xf32, #tpu.memory_space<vmem>>, vector<8x1x16xf32>
    tpu.vector_store %arg11[%c0_65, %c6, %c0_66], %336 {strides = array<i32>} : memref<8x8x16xf32, #tpu.memory_space<vmem>>, vector<8x1x16xf32>,
    %338 = vector.broadcast %301 : vector<8x1xf32> to vector<8x16xf32>
    %339 = arith.mulf %338, %333 : vector<8x16xf32>
    %340 = vector.broadcast %302 : vector<8x1xf32> to vector<8x16xf32>
    %341 = arith.mulf %340, %295 : vector<8x16xf32>
    %342 = arith.addf %339, %341 : vector<8x16xf32>
    %343 = vector.broadcast %301 : vector<8x1xf32> to vector<8x16xf32>
    %344 = arith.mulf %343, %331 : vector<8x16xf32>
    %345 = vector.broadcast %302 : vector<8x1xf32> to vector<8x16xf32>
    %346 = arith.mulf %345, %300 : vector<8x16xf32>
    %347 = arith.addf %344, %346 : vector<8x16xf32>
    %348 = vector.extract_strided_slice %5 {offsets = [0, 7], sizes = [8, 1], strides = [1, 1]} : vector<8x8xf32> to vector<8x1xf32>
    %349 = vector.extract_strided_slice %16 {offsets = [0, 7, 0], sizes = [8, 1, 64], strides = [1, 1, 1]} : vector<8x8x64xf32> to vector<8x1x64xf32>
    %350 = vector.shape_cast %349 : vector<8x1x64xf32> to vector<8x64xf32>
    %351 = arith.truncf %342 : vector<8x16xf32> to vector<8x16xbf16>
    %c0_67 = arith.constant 0 : index
    %c0_68 = arith.constant 0 : index
    %352 = vector.load %arg4[%c0_67, %c0_68] : memref<16x64xbf16, #tpu.memory_space<vmem>>, vector<16x64xbf16>
    %cst_69 = arith.constant dense<0.000000e+00> : vector<8x64xf32>
    %353 = tpu.matmul %351, %352, %cst_69 {dimension_numbers = #tpu.dot_dimension_numbers<[1], [0], [0], [1], [0, 0, 1, 1], [], []>} : vector<8x16xbf16>, vector<16x64xbf16>, vector<8x64xf32> -> vector<8x64xf32>
    %354 = arith.addf %350, %353 : vector<8x64xf32>
    %355 = vector.extract_strided_slice %354 {offsets = [0, 0], sizes = [8, 16], strides = [1, 1]} : vector<8x64xf32> to vector<8x16xf32>
    %356 = arith.negf %355 : vector<8x16xf32>
    %357 = math.exp %356 : vector<8x16xf32>
    %cst_70 = arith.constant 1.000000e+00 : f32
    %358 = vector.broadcast %cst_70 : f32 to vector<8x16xf32>
    %359 = arith.addf %358, %357 : vector<8x16xf32>
    %360 = arith.divf %358, %359 : vector<8x16xf32>
    %361 = vector.extract_strided_slice %354 {offsets = [0, 16], sizes = [8, 16], strides = [1, 1]} : vector<8x64xf32> to vector<8x16xf32>
    %362 = arith.negf %361 : vector<8x16xf32>
    %363 = math.exp %362 : vector<8x16xf32>
    %cst_71 = arith.constant 1.000000e+00 : f32
    %364 = vector.broadcast %cst_71 : f32 to vector<8x16xf32>
    %365 = arith.addf %364, %363 : vector<8x16xf32>
    %366 = arith.divf %364, %365 : vector<8x16xf32>
    %367 = vector.extract_strided_slice %354 {offsets = [0, 32], sizes = [8, 16], strides = [1, 1]} : vector<8x64xf32> to vector<8x16xf32>
    %368 = math.tanh %367 : vector<8x16xf32>
    %369 = vector.extract_strided_slice %354 {offsets = [0, 48], sizes = [8, 16], strides = [1, 1]} : vector<8x64xf32> to vector<8x16xf32>
    %370 = arith.negf %369 : vector<8x16xf32>
    %371 = math.exp %370 : vector<8x16xf32>
    %cst_72 = arith.constant 1.000000e+00 : f32
    %372 = vector.broadcast %cst_72 : f32 to vector<8x16xf32>
    %373 = arith.addf %372, %371 : vector<8x16xf32>
    %374 = arith.divf %372, %373 : vector<8x16xf32>
    %375 = arith.mulf %366, %347 : vector<8x16xf32>
    %376 = arith.mulf %360, %368 : vector<8x16xf32>
    %377 = arith.addf %375, %376 : vector<8x16xf32>
    %378 = math.tanh %377 : vector<8x16xf32>
    %379 = arith.mulf %374, %378 : vector<8x16xf32>
    %380 = vector.broadcast %348 : vector<8x1xf32> to vector<8x16xf32>
    %381 = arith.mulf %379, %380 : vector<8x16xf32>
    %382 = vector.shape_cast %381 : vector<8x16xf32> to vector<8x1x16xf32>
    %c0_73 = arith.constant 0 : index
    %c7 = arith.constant 7 : index
    %c0_74 = arith.constant 0 : index
    %383 = vector.load %arg11[%c0_73, %c7, %c0_74] : memref<8x8x16xf32, #tpu.memory_space<vmem>>, vector<8x1x16xf32>
    tpu.vector_store %arg11[%c0_73, %c7, %c0_74], %382 {strides = array<i32>} : memref<8x8x16xf32, #tpu.memory_space<vmem>>, vector<8x1x16xf32>,
    %cst_75 = arith.constant 0.000000e+00 : f32
    %384 = vector.broadcast %cst_75 : f32 to vector<8x16xf32>
    %385 = vector.extract_strided_slice %5 {offsets = [0, 7], sizes = [8, 1], strides = [1, 1]} : vector<8x8xf32> to vector<8x1xf32>
    %386 = vector.extract_strided_slice %7 {offsets = [0, 7], sizes = [8, 1], strides = [1, 1]} : vector<8x8xf32> to vector<8x1xf32>
    %387 = vector.extract_strided_slice %17 {offsets = [0, 7, 0], sizes = [8, 1, 64], strides = [1, 1, 1]} : vector<8x8x64xf32> to vector<8x1x64xf32>
    %388 = vector.shape_cast %387 : vector<8x1x64xf32> to vector<8x64xf32>
    %389 = arith.truncf %384 : vector<8x16xf32> to vector<8x16xbf16>
    %c0_76 = arith.constant 0 : index
    %c0_77 = arith.constant 0 : index
    %390 = vector.load %arg5[%c0_76, %c0_77] : memref<16x64xbf16, #tpu.memory_space<vmem>>, vector<16x64xbf16>
    %cst_78 = arith.constant dense<0.000000e+00> : vector<8x64xf32>
    %391 = tpu.matmul %389, %390, %cst_78 {dimension_numbers = #tpu.dot_dimension_numbers<[1], [0], [0], [1], [0, 0, 1, 1], [], []>} : vector<8x16xbf16>, vector<16x64xbf16>, vector<8x64xf32> -> vector<8x64xf32>
    %392 = arith.addf %388, %391 : vector<8x64xf32>
    %393 = vector.extract_strided_slice %392 {offsets = [0, 0], sizes = [8, 16], strides = [1, 1]} : vector<8x64xf32> to vector<8x16xf32>
    %394 = arith.negf %393 : vector<8x16xf32>
    %395 = math.exp %394 : vector<8x16xf32>
    %cst_79 = arith.constant 1.000000e+00 : f32
    %396 = vector.broadcast %cst_79 : f32 to vector<8x16xf32>
    %397 = arith.addf %396, %395 : vector<8x16xf32>
    %398 = arith.divf %396, %397 : vector<8x16xf32>
    %399 = vector.extract_strided_slice %392 {offsets = [0, 16], sizes = [8, 16], strides = [1, 1]} : vector<8x64xf32> to vector<8x16xf32>
    %400 = arith.negf %399 : vector<8x16xf32>
    %401 = math.exp %400 : vector<8x16xf32>
    %cst_80 = arith.constant 1.000000e+00 : f32
    %402 = vector.broadcast %cst_80 : f32 to vector<8x16xf32>
    %403 = arith.addf %402, %401 : vector<8x16xf32>
    %404 = arith.divf %402, %403 : vector<8x16xf32>
    %405 = vector.extract_strided_slice %392 {offsets = [0, 32], sizes = [8, 16], strides = [1, 1]} : vector<8x64xf32> to vector<8x16xf32>
    %406 = math.tanh %405 : vector<8x16xf32>
    %407 = vector.extract_strided_slice %392 {offsets = [0, 48], sizes = [8, 16], strides = [1, 1]} : vector<8x64xf32> to vector<8x16xf32>
    %408 = arith.negf %407 : vector<8x16xf32>
    %409 = math.exp %408 : vector<8x16xf32>
    %cst_81 = arith.constant 1.000000e+00 : f32
    %410 = vector.broadcast %cst_81 : f32 to vector<8x16xf32>
    %411 = arith.addf %410, %409 : vector<8x16xf32>
    %412 = arith.divf %410, %411 : vector<8x16xf32>
    %413 = arith.mulf %404, %384 : vector<8x16xf32>
    %414 = arith.mulf %398, %406 : vector<8x16xf32>
    %415 = arith.addf %413, %414 : vector<8x16xf32>
    %416 = math.tanh %415 : vector<8x16xf32>
    %417 = arith.mulf %412, %416 : vector<8x16xf32>
    %418 = vector.broadcast %385 : vector<8x1xf32> to vector<8x16xf32>
    %419 = arith.mulf %417, %418 : vector<8x16xf32>
    %420 = vector.shape_cast %419 : vector<8x16xf32> to vector<8x1x16xf32>
    %c0_82 = arith.constant 0 : index
    %c7_83 = arith.constant 7 : index
    %c0_84 = arith.constant 0 : index
    %421 = vector.load %arg12[%c0_82, %c7_83, %c0_84] : memref<8x8x16xf32, #tpu.memory_space<vmem>>, vector<8x1x16xf32>
    tpu.vector_store %arg12[%c0_82, %c7_83, %c0_84], %420 {strides = array<i32>} : memref<8x8x16xf32, #tpu.memory_space<vmem>>, vector<8x1x16xf32>,
    %422 = vector.broadcast %385 : vector<8x1xf32> to vector<8x16xf32>
    %423 = arith.mulf %422, %417 : vector<8x16xf32>
    %424 = vector.broadcast %386 : vector<8x1xf32> to vector<8x16xf32>
    %425 = arith.mulf %424, %384 : vector<8x16xf32>
    %426 = arith.addf %423, %425 : vector<8x16xf32>
    %427 = vector.broadcast %385 : vector<8x1xf32> to vector<8x16xf32>
    %428 = arith.mulf %427, %415 : vector<8x16xf32>
    %429 = vector.broadcast %386 : vector<8x1xf32> to vector<8x16xf32>
    %430 = arith.mulf %429, %384 : vector<8x16xf32>
    %431 = arith.addf %428, %430 : vector<8x16xf32>
    %432 = vector.extract_strided_slice %5 {offsets = [0, 6], sizes = [8, 1], strides = [1, 1]} : vector<8x8xf32> to vector<8x1xf32>
    %433 = vector.extract_strided_slice %7 {offsets = [0, 6], sizes = [8, 1], strides = [1, 1]} : vector<8x8xf32> to vector<8x1xf32>
    %434 = vector.extract_strided_slice %17 {offsets = [0, 6, 0], sizes = [8, 1, 64], strides = [1, 1, 1]} : vector<8x8x64xf32> to vector<8x1x64xf32>
    %435 = vector.shape_cast %434 : vector<8x1x64xf32> to vector<8x64xf32>
    %436 = arith.truncf %426 : vector<8x16xf32> to vector<8x16xbf16>
    %c0_85 = arith.constant 0 : index
    %c0_86 = arith.constant 0 : index
    %437 = vector.load %arg5[%c0_85, %c0_86] : memref<16x64xbf16, #tpu.memory_space<vmem>>, vector<16x64xbf16>
    %cst_87 = arith.constant dense<0.000000e+00> : vector<8x64xf32>
    %438 = tpu.matmul %436, %437, %cst_87 {dimension_numbers = #tpu.dot_dimension_numbers<[1], [0], [0], [1], [0, 0, 1, 1], [], []>} : vector<8x16xbf16>, vector<16x64xbf16>, vector<8x64xf32> -> vector<8x64xf32>
    %439 = arith.addf %435, %438 : vector<8x64xf32>
    %440 = vector.extract_strided_slice %439 {offsets = [0, 0], sizes = [8, 16], strides = [1, 1]} : vector<8x64xf32> to vector<8x16xf32>
    %441 = arith.negf %440 : vector<8x16xf32>
    %442 = math.exp %441 : vector<8x16xf32>
    %cst_88 = arith.constant 1.000000e+00 : f32
    %443 = vector.broadcast %cst_88 : f32 to vector<8x16xf32>
    %444 = arith.addf %443, %442 : vector<8x16xf32>
    %445 = arith.divf %443, %444 : vector<8x16xf32>
    %446 = vector.extract_strided_slice %439 {offsets = [0, 16], sizes = [8, 16], strides = [1, 1]} : vector<8x64xf32> to vector<8x16xf32>
    %447 = arith.negf %446 : vector<8x16xf32>
    %448 = math.exp %447 : vector<8x16xf32>
    %cst_89 = arith.constant 1.000000e+00 : f32
    %449 = vector.broadcast %cst_89 : f32 to vector<8x16xf32>
    %450 = arith.addf %449, %448 : vector<8x16xf32>
    %451 = arith.divf %449, %450 : vector<8x16xf32>
    %452 = vector.extract_strided_slice %439 {offsets = [0, 32], sizes = [8, 16], strides = [1, 1]} : vector<8x64xf32> to vector<8x16xf32>
    %453 = math.tanh %452 : vector<8x16xf32>
    %454 = vector.extract_strided_slice %439 {offsets = [0, 48], sizes = [8, 16], strides = [1, 1]} : vector<8x64xf32> to vector<8x16xf32>
    %455 = arith.negf %454 : vector<8x16xf32>
    %456 = math.exp %455 : vector<8x16xf32>
    %cst_90 = arith.constant 1.000000e+00 : f32
    %457 = vector.broadcast %cst_90 : f32 to vector<8x16xf32>
    %458 = arith.addf %457, %456 : vector<8x16xf32>
    %459 = arith.divf %457, %458 : vector<8x16xf32>
    %460 = arith.mulf %451, %431 : vector<8x16xf32>
    %461 = arith.mulf %445, %453 : vector<8x16xf32>
    %462 = arith.addf %460, %461 : vector<8x16xf32>
    %463 = math.tanh %462 : vector<8x16xf32>
    %464 = arith.mulf %459, %463 : vector<8x16xf32>
    %465 = vector.broadcast %432 : vector<8x1xf32> to vector<8x16xf32>
    %466 = arith.mulf %464, %465 : vector<8x16xf32>
    %467 = vector.shape_cast %466 : vector<8x16xf32> to vector<8x1x16xf32>
    %c0_91 = arith.constant 0 : index
    %c6_92 = arith.constant 6 : index
    %c0_93 = arith.constant 0 : index
    %468 = vector.load %arg12[%c0_91, %c6_92, %c0_93] : memref<8x8x16xf32, #tpu.memory_space<vmem>>, vector<8x1x16xf32>
    tpu.vector_store %arg12[%c0_91, %c6_92, %c0_93], %467 {strides = array<i32>} : memref<8x8x16xf32, #tpu.memory_space<vmem>>, vector<8x1x16xf32>,
    %469 = vector.broadcast %432 : vector<8x1xf32> to vector<8x16xf32>
    %470 = arith.mulf %469, %464 : vector<8x16xf32>
    %471 = vector.broadcast %433 : vector<8x1xf32> to vector<8x16xf32>
    %472 = arith.mulf %471, %426 : vector<8x16xf32>
    %473 = arith.addf %470, %472 : vector<8x16xf32>
    %474 = vector.broadcast %432 : vector<8x1xf32> to vector<8x16xf32>
    %475 = arith.mulf %474, %462 : vector<8x16xf32>
    %476 = vector.broadcast %433 : vector<8x1xf32> to vector<8x16xf32>
    %477 = arith.mulf %476, %431 : vector<8x16xf32>
    %478 = arith.addf %475, %477 : vector<8x16xf32>
    %479 = vector.extract_strided_slice %5 {offsets = [0, 5], sizes = [8, 1], strides = [1, 1]} : vector<8x8xf32> to vector<8x1xf32>
    %480 = vector.extract_strided_slice %7 {offsets = [0, 5], sizes = [8, 1], strides = [1, 1]} : vector<8x8xf32> to vector<8x1xf32>
    %481 = vector.extract_strided_slice %17 {offsets = [0, 5, 0], sizes = [8, 1, 64], strides = [1, 1, 1]} : vector<8x8x64xf32> to vector<8x1x64xf32>
    %482 = vector.shape_cast %481 : vector<8x1x64xf32> to vector<8x64xf32>
    %483 = arith.truncf %473 : vector<8x16xf32> to vector<8x16xbf16>
    %c0_94 = arith.constant 0 : index
    %c0_95 = arith.constant 0 : index
    %484 = vector.load %arg5[%c0_94, %c0_95] : memref<16x64xbf16, #tpu.memory_space<vmem>>, vector<16x64xbf16>
    %cst_96 = arith.constant dense<0.000000e+00> : vector<8x64xf32>
    %485 = tpu.matmul %483, %484, %cst_96 {dimension_numbers = #tpu.dot_dimension_numbers<[1], [0], [0], [1], [0, 0, 1, 1], [], []>} : vector<8x16xbf16>, vector<16x64xbf16>, vector<8x64xf32> -> vector<8x64xf32>
    %486 = arith.addf %482, %485 : vector<8x64xf32>
    %487 = vector.extract_strided_slice %486 {offsets = [0, 0], sizes = [8, 16], strides = [1, 1]} : vector<8x64xf32> to vector<8x16xf32>
    %488 = arith.negf %487 : vector<8x16xf32>
    %489 = math.exp %488 : vector<8x16xf32>
    %cst_97 = arith.constant 1.000000e+00 : f32
    %490 = vector.broadcast %cst_97 : f32 to vector<8x16xf32>
    %491 = arith.addf %490, %489 : vector<8x16xf32>
    %492 = arith.divf %490, %491 : vector<8x16xf32>
    %493 = vector.extract_strided_slice %486 {offsets = [0, 16], sizes = [8, 16], strides = [1, 1]} : vector<8x64xf32> to vector<8x16xf32>
    %494 = arith.negf %493 : vector<8x16xf32>
    %495 = math.exp %494 : vector<8x16xf32>
    %cst_98 = arith.constant 1.000000e+00 : f32
    %496 = vector.broadcast %cst_98 : f32 to vector<8x16xf32>
    %497 = arith.addf %496, %495 : vector<8x16xf32>
    %498 = arith.divf %496, %497 : vector<8x16xf32>
    %499 = vector.extract_strided_slice %486 {offsets = [0, 32], sizes = [8, 16], strides = [1, 1]} : vector<8x64xf32> to vector<8x16xf32>
    %500 = math.tanh %499 : vector<8x16xf32>
    %501 = vector.extract_strided_slice %486 {offsets = [0, 48], sizes = [8, 16], strides = [1, 1]} : vector<8x64xf32> to vector<8x16xf32>
    %502 = arith.negf %501 : vector<8x16xf32>
    %503 = math.exp %502 : vector<8x16xf32>
    %cst_99 = arith.constant 1.000000e+00 : f32
    %504 = vector.broadcast %cst_99 : f32 to vector<8x16xf32>
    %505 = arith.addf %504, %503 : vector<8x16xf32>
    %506 = arith.divf %504, %505 : vector<8x16xf32>
    %507 = arith.mulf %498, %478 : vector<8x16xf32>
    %508 = arith.mulf %492, %500 : vector<8x16xf32>
    %509 = arith.addf %507, %508 : vector<8x16xf32>
    %510 = math.tanh %509 : vector<8x16xf32>
    %511 = arith.mulf %506, %510 : vector<8x16xf32>
    %512 = vector.broadcast %479 : vector<8x1xf32> to vector<8x16xf32>
    %513 = arith.mulf %511, %512 : vector<8x16xf32>
    %514 = vector.shape_cast %513 : vector<8x16xf32> to vector<8x1x16xf32>
    %c0_100 = arith.constant 0 : index
    %c5_101 = arith.constant 5 : index
    %c0_102 = arith.constant 0 : index
    %515 = vector.load %arg12[%c0_100, %c5_101, %c0_102] : memref<8x8x16xf32, #tpu.memory_space<vmem>>, vector<8x1x16xf32>
    tpu.vector_store %arg12[%c0_100, %c5_101, %c0_102], %514 {strides = array<i32>} : memref<8x8x16xf32, #tpu.memory_space<vmem>>, vector<8x1x16xf32>,
    %516 = vector.broadcast %479 : vector<8x1xf32> to vector<8x16xf32>
    %517 = arith.mulf %516, %511 : vector<8x16xf32>
    %518 = vector.broadcast %480 : vector<8x1xf32> to vector<8x16xf32>
    %519 = arith.mulf %518, %473 : vector<8x16xf32>
    %520 = arith.addf %517, %519 : vector<8x16xf32>
    %521 = vector.broadcast %479 : vector<8x1xf32> to vector<8x16xf32>
    %522 = arith.mulf %521, %509 : vector<8x16xf32>
    %523 = vector.broadcast %480 : vector<8x1xf32> to vector<8x16xf32>
    %524 = arith.mulf %523, %478 : vector<8x16xf32>
    %525 = arith.addf %522, %524 : vector<8x16xf32>
    %526 = vector.extract_strided_slice %5 {offsets = [0, 4], sizes = [8, 1], strides = [1, 1]} : vector<8x8xf32> to vector<8x1xf32>
    %527 = vector.extract_strided_slice %7 {offsets = [0, 4], sizes = [8, 1], strides = [1, 1]} : vector<8x8xf32> to vector<8x1xf32>
    %528 = vector.extract_strided_slice %17 {offsets = [0, 4, 0], sizes = [8, 1, 64], strides = [1, 1, 1]} : vector<8x8x64xf32> to vector<8x1x64xf32>
    %529 = vector.shape_cast %528 : vector<8x1x64xf32> to vector<8x64xf32>
    %530 = arith.truncf %520 : vector<8x16xf32> to vector<8x16xbf16>
    %c0_103 = arith.constant 0 : index
    %c0_104 = arith.constant 0 : index
    %531 = vector.load %arg5[%c0_103, %c0_104] : memref<16x64xbf16, #tpu.memory_space<vmem>>, vector<16x64xbf16>
    %cst_105 = arith.constant dense<0.000000e+00> : vector<8x64xf32>
    %532 = tpu.matmul %530, %531, %cst_105 {dimension_numbers = #tpu.dot_dimension_numbers<[1], [0], [0], [1], [0, 0, 1, 1], [], []>} : vector<8x16xbf16>, vector<16x64xbf16>, vector<8x64xf32> -> vector<8x64xf32>
    %533 = arith.addf %529, %532 : vector<8x64xf32>
    %534 = vector.extract_strided_slice %533 {offsets = [0, 0], sizes = [8, 16], strides = [1, 1]} : vector<8x64xf32> to vector<8x16xf32>
    %535 = arith.negf %534 : vector<8x16xf32>
    %536 = math.exp %535 : vector<8x16xf32>
    %cst_106 = arith.constant 1.000000e+00 : f32
    %537 = vector.broadcast %cst_106 : f32 to vector<8x16xf32>
    %538 = arith.addf %537, %536 : vector<8x16xf32>
    %539 = arith.divf %537, %538 : vector<8x16xf32>
    %540 = vector.extract_strided_slice %533 {offsets = [0, 16], sizes = [8, 16], strides = [1, 1]} : vector<8x64xf32> to vector<8x16xf32>
    %541 = arith.negf %540 : vector<8x16xf32>
    %542 = math.exp %541 : vector<8x16xf32>
    %cst_107 = arith.constant 1.000000e+00 : f32
    %543 = vector.broadcast %cst_107 : f32 to vector<8x16xf32>
    %544 = arith.addf %543, %542 : vector<8x16xf32>
    %545 = arith.divf %543, %544 : vector<8x16xf32>
    %546 = vector.extract_strided_slice %533 {offsets = [0, 32], sizes = [8, 16], strides = [1, 1]} : vector<8x64xf32> to vector<8x16xf32>
    %547 = math.tanh %546 : vector<8x16xf32>
    %548 = vector.extract_strided_slice %533 {offsets = [0, 48], sizes = [8, 16], strides = [1, 1]} : vector<8x64xf32> to vector<8x16xf32>
    %549 = arith.negf %548 : vector<8x16xf32>
    %550 = math.exp %549 : vector<8x16xf32>
    %cst_108 = arith.constant 1.000000e+00 : f32
    %551 = vector.broadcast %cst_108 : f32 to vector<8x16xf32>
    %552 = arith.addf %551, %550 : vector<8x16xf32>
    %553 = arith.divf %551, %552 : vector<8x16xf32>
    %554 = arith.mulf %545, %525 : vector<8x16xf32>
    %555 = arith.mulf %539, %547 : vector<8x16xf32>
    %556 = arith.addf %554, %555 : vector<8x16xf32>
    %557 = math.tanh %556 : vector<8x16xf32>
    %558 = arith.mulf %553, %557 : vector<8x16xf32>
    %559 = vector.broadcast %526 : vector<8x1xf32> to vector<8x16xf32>
    %560 = arith.mulf %558, %559 : vector<8x16xf32>
    %561 = vector.shape_cast %560 : vector<8x16xf32> to vector<8x1x16xf32>
    %c0_109 = arith.constant 0 : index
    %c4_110 = arith.constant 4 : index
    %c0_111 = arith.constant 0 : index
    %562 = vector.load %arg12[%c0_109, %c4_110, %c0_111] : memref<8x8x16xf32, #tpu.memory_space<vmem>>, vector<8x1x16xf32>
    tpu.vector_store %arg12[%c0_109, %c4_110, %c0_111], %561 {strides = array<i32>} : memref<8x8x16xf32, #tpu.memory_space<vmem>>, vector<8x1x16xf32>,
    %563 = vector.broadcast %526 : vector<8x1xf32> to vector<8x16xf32>
    %564 = arith.mulf %563, %558 : vector<8x16xf32>
    %565 = vector.broadcast %527 : vector<8x1xf32> to vector<8x16xf32>
    %566 = arith.mulf %565, %520 : vector<8x16xf32>
    %567 = arith.addf %564, %566 : vector<8x16xf32>
    %568 = vector.broadcast %526 : vector<8x1xf32> to vector<8x16xf32>
    %569 = arith.mulf %568, %556 : vector<8x16xf32>
    %570 = vector.broadcast %527 : vector<8x1xf32> to vector<8x16xf32>
    %571 = arith.mulf %570, %525 : vector<8x16xf32>
    %572 = arith.addf %569, %571 : vector<8x16xf32>
    %573 = vector.extract_strided_slice %5 {offsets = [0, 3], sizes = [8, 1], strides = [1, 1]} : vector<8x8xf32> to vector<8x1xf32>
    %574 = vector.extract_strided_slice %7 {offsets = [0, 3], sizes = [8, 1], strides = [1, 1]} : vector<8x8xf32> to vector<8x1xf32>
    %575 = vector.extract_strided_slice %17 {offsets = [0, 3, 0], sizes = [8, 1, 64], strides = [1, 1, 1]} : vector<8x8x64xf32> to vector<8x1x64xf32>
    %576 = vector.shape_cast %575 : vector<8x1x64xf32> to vector<8x64xf32>
    %577 = arith.truncf %567 : vector<8x16xf32> to vector<8x16xbf16>
    %c0_112 = arith.constant 0 : index
    %c0_113 = arith.constant 0 : index
    %578 = vector.load %arg5[%c0_112, %c0_113] : memref<16x64xbf16, #tpu.memory_space<vmem>>, vector<16x64xbf16>
    %cst_114 = arith.constant dense<0.000000e+00> : vector<8x64xf32>
    %579 = tpu.matmul %577, %578, %cst_114 {dimension_numbers = #tpu.dot_dimension_numbers<[1], [0], [0], [1], [0, 0, 1, 1], [], []>} : vector<8x16xbf16>, vector<16x64xbf16>, vector<8x64xf32> -> vector<8x64xf32>
    %580 = arith.addf %576, %579 : vector<8x64xf32>
    %581 = vector.extract_strided_slice %580 {offsets = [0, 0], sizes = [8, 16], strides = [1, 1]} : vector<8x64xf32> to vector<8x16xf32>
    %582 = arith.negf %581 : vector<8x16xf32>
    %583 = math.exp %582 : vector<8x16xf32>
    %cst_115 = arith.constant 1.000000e+00 : f32
    %584 = vector.broadcast %cst_115 : f32 to vector<8x16xf32>
    %585 = arith.addf %584, %583 : vector<8x16xf32>
    %586 = arith.divf %584, %585 : vector<8x16xf32>
    %587 = vector.extract_strided_slice %580 {offsets = [0, 16], sizes = [8, 16], strides = [1, 1]} : vector<8x64xf32> to vector<8x16xf32>
    %588 = arith.negf %587 : vector<8x16xf32>
    %589 = math.exp %588 : vector<8x16xf32>
    %cst_116 = arith.constant 1.000000e+00 : f32
    %590 = vector.broadcast %cst_116 : f32 to vector<8x16xf32>
    %591 = arith.addf %590, %589 : vector<8x16xf32>
    %592 = arith.divf %590, %591 : vector<8x16xf32>
    %593 = vector.extract_strided_slice %580 {offsets = [0, 32], sizes = [8, 16], strides = [1, 1]} : vector<8x64xf32> to vector<8x16xf32>
    %594 = math.tanh %593 : vector<8x16xf32>
    %595 = vector.extract_strided_slice %580 {offsets = [0, 48], sizes = [8, 16], strides = [1, 1]} : vector<8x64xf32> to vector<8x16xf32>
    %596 = arith.negf %595 : vector<8x16xf32>
    %597 = math.exp %596 : vector<8x16xf32>
    %cst_117 = arith.constant 1.000000e+00 : f32
    %598 = vector.broadcast %cst_117 : f32 to vector<8x16xf32>
    %599 = arith.addf %598, %597 : vector<8x16xf32>
    %600 = arith.divf %598, %599 : vector<8x16xf32>
    %601 = arith.mulf %592, %572 : vector<8x16xf32>
    %602 = arith.mulf %586, %594 : vector<8x16xf32>
    %603 = arith.addf %601, %602 : vector<8x16xf32>
    %604 = math.tanh %603 : vector<8x16xf32>
    %605 = arith.mulf %600, %604 : vector<8x16xf32>
    %606 = vector.broadcast %573 : vector<8x1xf32> to vector<8x16xf32>
    %607 = arith.mulf %605, %606 : vector<8x16xf32>
    %608 = vector.shape_cast %607 : vector<8x16xf32> to vector<8x1x16xf32>
    %c0_118 = arith.constant 0 : index
    %c3_119 = arith.constant 3 : index
    %c0_120 = arith.constant 0 : index
    %609 = vector.load %arg12[%c0_118, %c3_119, %c0_120] : memref<8x8x16xf32, #tpu.memory_space<vmem>>, vector<8x1x16xf32>
    tpu.vector_store %arg12[%c0_118, %c3_119, %c0_120], %608 {strides = array<i32>} : memref<8x8x16xf32, #tpu.memory_space<vmem>>, vector<8x1x16xf32>,
    %610 = vector.broadcast %573 : vector<8x1xf32> to vector<8x16xf32>
    %611 = arith.mulf %610, %605 : vector<8x16xf32>
    %612 = vector.broadcast %574 : vector<8x1xf32> to vector<8x16xf32>
    %613 = arith.mulf %612, %567 : vector<8x16xf32>
    %614 = arith.addf %611, %613 : vector<8x16xf32>
    %615 = vector.broadcast %573 : vector<8x1xf32> to vector<8x16xf32>
    %616 = arith.mulf %615, %603 : vector<8x16xf32>
    %617 = vector.broadcast %574 : vector<8x1xf32> to vector<8x16xf32>
    %618 = arith.mulf %617, %572 : vector<8x16xf32>
    %619 = arith.addf %616, %618 : vector<8x16xf32>
    %620 = vector.extract_strided_slice %5 {offsets = [0, 2], sizes = [8, 1], strides = [1, 1]} : vector<8x8xf32> to vector<8x1xf32>
    %621 = vector.extract_strided_slice %7 {offsets = [0, 2], sizes = [8, 1], strides = [1, 1]} : vector<8x8xf32> to vector<8x1xf32>
    %622 = vector.extract_strided_slice %17 {offsets = [0, 2, 0], sizes = [8, 1, 64], strides = [1, 1, 1]} : vector<8x8x64xf32> to vector<8x1x64xf32>
    %623 = vector.shape_cast %622 : vector<8x1x64xf32> to vector<8x64xf32>
    %624 = arith.truncf %614 : vector<8x16xf32> to vector<8x16xbf16>
    %c0_121 = arith.constant 0 : index
    %c0_122 = arith.constant 0 : index
    %625 = vector.load %arg5[%c0_121, %c0_122] : memref<16x64xbf16, #tpu.memory_space<vmem>>, vector<16x64xbf16>
    %cst_123 = arith.constant dense<0.000000e+00> : vector<8x64xf32>
    %626 = tpu.matmul %624, %625, %cst_123 {dimension_numbers = #tpu.dot_dimension_numbers<[1], [0], [0], [1], [0, 0, 1, 1], [], []>} : vector<8x16xbf16>, vector<16x64xbf16>, vector<8x64xf32> -> vector<8x64xf32>
    %627 = arith.addf %623, %626 : vector<8x64xf32>
    %628 = vector.extract_strided_slice %627 {offsets = [0, 0], sizes = [8, 16], strides = [1, 1]} : vector<8x64xf32> to vector<8x16xf32>
    %629 = arith.negf %628 : vector<8x16xf32>
    %630 = math.exp %629 : vector<8x16xf32>
    %cst_124 = arith.constant 1.000000e+00 : f32
    %631 = vector.broadcast %cst_124 : f32 to vector<8x16xf32>
    %632 = arith.addf %631, %630 : vector<8x16xf32>
    %633 = arith.divf %631, %632 : vector<8x16xf32>
    %634 = vector.extract_strided_slice %627 {offsets = [0, 16], sizes = [8, 16], strides = [1, 1]} : vector<8x64xf32> to vector<8x16xf32>
    %635 = arith.negf %634 : vector<8x16xf32>
    %636 = math.exp %635 : vector<8x16xf32>
    %cst_125 = arith.constant 1.000000e+00 : f32
    %637 = vector.broadcast %cst_125 : f32 to vector<8x16xf32>
    %638 = arith.addf %637, %636 : vector<8x16xf32>
    %639 = arith.divf %637, %638 : vector<8x16xf32>
    %640 = vector.extract_strided_slice %627 {offsets = [0, 32], sizes = [8, 16], strides = [1, 1]} : vector<8x64xf32> to vector<8x16xf32>
    %641 = math.tanh %640 : vector<8x16xf32>
    %642 = vector.extract_strided_slice %627 {offsets = [0, 48], sizes = [8, 16], strides = [1, 1]} : vector<8x64xf32> to vector<8x16xf32>
    %643 = arith.negf %642 : vector<8x16xf32>
    %644 = math.exp %643 : vector<8x16xf32>
    %cst_126 = arith.constant 1.000000e+00 : f32
    %645 = vector.broadcast %cst_126 : f32 to vector<8x16xf32>
    %646 = arith.addf %645, %644 : vector<8x16xf32>
    %647 = arith.divf %645, %646 : vector<8x16xf32>
    %648 = arith.mulf %639, %619 : vector<8x16xf32>
    %649 = arith.mulf %633, %641 : vector<8x16xf32>
    %650 = arith.addf %648, %649 : vector<8x16xf32>
    %651 = math.tanh %650 : vector<8x16xf32>
    %652 = arith.mulf %647, %651 : vector<8x16xf32>
    %653 = vector.broadcast %620 : vector<8x1xf32> to vector<8x16xf32>
    %654 = arith.mulf %652, %653 : vector<8x16xf32>
    %655 = vector.shape_cast %654 : vector<8x16xf32> to vector<8x1x16xf32>
    %c0_127 = arith.constant 0 : index
    %c2_128 = arith.constant 2 : index
    %c0_129 = arith.constant 0 : index
    %656 = vector.load %arg12[%c0_127, %c2_128, %c0_129] : memref<8x8x16xf32, #tpu.memory_space<vmem>>, vector<8x1x16xf32>
    tpu.vector_store %arg12[%c0_127, %c2_128, %c0_129], %655 {strides = array<i32>} : memref<8x8x16xf32, #tpu.memory_space<vmem>>, vector<8x1x16xf32>,
    %657 = vector.broadcast %620 : vector<8x1xf32> to vector<8x16xf32>
    %658 = arith.mulf %657, %652 : vector<8x16xf32>
    %659 = vector.broadcast %621 : vector<8x1xf32> to vector<8x16xf32>
    %660 = arith.mulf %659, %614 : vector<8x16xf32>
    %661 = arith.addf %658, %660 : vector<8x16xf32>
    %662 = vector.broadcast %620 : vector<8x1xf32> to vector<8x16xf32>
    %663 = arith.mulf %662, %650 : vector<8x16xf32>
    %664 = vector.broadcast %621 : vector<8x1xf32> to vector<8x16xf32>
    %665 = arith.mulf %664, %619 : vector<8x16xf32>
    %666 = arith.addf %663, %665 : vector<8x16xf32>
    %667 = vector.extract_strided_slice %5 {offsets = [0, 1], sizes = [8, 1], strides = [1, 1]} : vector<8x8xf32> to vector<8x1xf32>
    %668 = vector.extract_strided_slice %7 {offsets = [0, 1], sizes = [8, 1], strides = [1, 1]} : vector<8x8xf32> to vector<8x1xf32>
    %669 = vector.extract_strided_slice %17 {offsets = [0, 1, 0], sizes = [8, 1, 64], strides = [1, 1, 1]} : vector<8x8x64xf32> to vector<8x1x64xf32>
    %670 = vector.shape_cast %669 : vector<8x1x64xf32> to vector<8x64xf32>
    %671 = arith.truncf %661 : vector<8x16xf32> to vector<8x16xbf16>
    %c0_130 = arith.constant 0 : index
    %c0_131 = arith.constant 0 : index
    %672 = vector.load %arg5[%c0_130, %c0_131] : memref<16x64xbf16, #tpu.memory_space<vmem>>, vector<16x64xbf16>
    %cst_132 = arith.constant dense<0.000000e+00> : vector<8x64xf32>
    %673 = tpu.matmul %671, %672, %cst_132 {dimension_numbers = #tpu.dot_dimension_numbers<[1], [0], [0], [1], [0, 0, 1, 1], [], []>} : vector<8x16xbf16>, vector<16x64xbf16>, vector<8x64xf32> -> vector<8x64xf32>
    %674 = arith.addf %670, %673 : vector<8x64xf32>
    %675 = vector.extract_strided_slice %674 {offsets = [0, 0], sizes = [8, 16], strides = [1, 1]} : vector<8x64xf32> to vector<8x16xf32>
    %676 = arith.negf %675 : vector<8x16xf32>
    %677 = math.exp %676 : vector<8x16xf32>
    %cst_133 = arith.constant 1.000000e+00 : f32
    %678 = vector.broadcast %cst_133 : f32 to vector<8x16xf32>
    %679 = arith.addf %678, %677 : vector<8x16xf32>
    %680 = arith.divf %678, %679 : vector<8x16xf32>
    %681 = vector.extract_strided_slice %674 {offsets = [0, 16], sizes = [8, 16], strides = [1, 1]} : vector<8x64xf32> to vector<8x16xf32>
    %682 = arith.negf %681 : vector<8x16xf32>
    %683 = math.exp %682 : vector<8x16xf32>
    %cst_134 = arith.constant 1.000000e+00 : f32
    %684 = vector.broadcast %cst_134 : f32 to vector<8x16xf32>
    %685 = arith.addf %684, %683 : vector<8x16xf32>
    %686 = arith.divf %684, %685 : vector<8x16xf32>
    %687 = vector.extract_strided_slice %674 {offsets = [0, 32], sizes = [8, 16], strides = [1, 1]} : vector<8x64xf32> to vector<8x16xf32>
    %688 = math.tanh %687 : vector<8x16xf32>
    %689 = vector.extract_strided_slice %674 {offsets = [0, 48], sizes = [8, 16], strides = [1, 1]} : vector<8x64xf32> to vector<8x16xf32>
    %690 = arith.negf %689 : vector<8x16xf32>
    %691 = math.exp %690 : vector<8x16xf32>
    %cst_135 = arith.constant 1.000000e+00 : f32
    %692 = vector.broadcast %cst_135 : f32 to vector<8x16xf32>
    %693 = arith.addf %692, %691 : vector<8x16xf32>
    %694 = arith.divf %692, %693 : vector<8x16xf32>
    %695 = arith.mulf %686, %666 : vector<8x16xf32>
    %696 = arith.mulf %680, %688 : vector<8x16xf32>
    %697 = arith.addf %695, %696 : vector<8x16xf32>
    %698 = math.tanh %697 : vector<8x16xf32>
    %699 = arith.mulf %694, %698 : vector<8x16xf32>
    %700 = vector.broadcast %667 : vector<8x1xf32> to vector<8x16xf32>
    %701 = arith.mulf %699, %700 : vector<8x16xf32>
    %702 = vector.shape_cast %701 : vector<8x16xf32> to vector<8x1x16xf32>
    %c0_136 = arith.constant 0 : index
    %c1_137 = arith.constant 1 : index
    %c0_138 = arith.constant 0 : index
    %703 = vector.load %arg12[%c0_136, %c1_137, %c0_138] : memref<8x8x16xf32, #tpu.memory_space<vmem>>, vector<8x1x16xf32>
    tpu.vector_store %arg12[%c0_136, %c1_137, %c0_138], %702 {strides = array<i32>} : memref<8x8x16xf32, #tpu.memory_space<vmem>>, vector<8x1x16xf32>,
    %704 = vector.broadcast %667 : vector<8x1xf32> to vector<8x16xf32>
    %705 = arith.mulf %704, %699 : vector<8x16xf32>
    %706 = vector.broadcast %668 : vector<8x1xf32> to vector<8x16xf32>
    %707 = arith.mulf %706, %661 : vector<8x16xf32>
    %708 = arith.addf %705, %707 : vector<8x16xf32>
    %709 = vector.broadcast %667 : vector<8x1xf32> to vector<8x16xf32>
    %710 = arith.mulf %709, %697 : vector<8x16xf32>
    %711 = vector.broadcast %668 : vector<8x1xf32> to vector<8x16xf32>
    %712 = arith.mulf %711, %666 : vector<8x16xf32>
    %713 = arith.addf %710, %712 : vector<8x16xf32>
    %714 = vector.extract_strided_slice %5 {offsets = [0, 0], sizes = [8, 1], strides = [1, 1]} : vector<8x8xf32> to vector<8x1xf32>
    %715 = vector.extract_strided_slice %17 {offsets = [0, 0, 0], sizes = [8, 1, 64], strides = [1, 1, 1]} : vector<8x8x64xf32> to vector<8x1x64xf32>
    %716 = vector.shape_cast %715 : vector<8x1x64xf32> to vector<8x64xf32>
    %717 = arith.truncf %708 : vector<8x16xf32> to vector<8x16xbf16>
    %c0_139 = arith.constant 0 : index
    %c0_140 = arith.constant 0 : index
    %718 = vector.load %arg5[%c0_139, %c0_140] : memref<16x64xbf16, #tpu.memory_space<vmem>>, vector<16x64xbf16>
    %cst_141 = arith.constant dense<0.000000e+00> : vector<8x64xf32>
    %719 = tpu.matmul %717, %718, %cst_141 {dimension_numbers = #tpu.dot_dimension_numbers<[1], [0], [0], [1], [0, 0, 1, 1], [], []>} : vector<8x16xbf16>, vector<16x64xbf16>, vector<8x64xf32> -> vector<8x64xf32>
    %720 = arith.addf %716, %719 : vector<8x64xf32>
    %721 = vector.extract_strided_slice %720 {offsets = [0, 0], sizes = [8, 16], strides = [1, 1]} : vector<8x64xf32> to vector<8x16xf32>
    %722 = arith.negf %721 : vector<8x16xf32>
    %723 = math.exp %722 : vector<8x16xf32>
    %cst_142 = arith.constant 1.000000e+00 : f32
    %724 = vector.broadcast %cst_142 : f32 to vector<8x16xf32>
    %725 = arith.addf %724, %723 : vector<8x16xf32>
    %726 = arith.divf %724, %725 : vector<8x16xf32>
    %727 = vector.extract_strided_slice %720 {offsets = [0, 16], sizes = [8, 16], strides = [1, 1]} : vector<8x64xf32> to vector<8x16xf32>
    %728 = arith.negf %727 : vector<8x16xf32>
    %729 = math.exp %728 : vector<8x16xf32>
    %cst_143 = arith.constant 1.000000e+00 : f32
    %730 = vector.broadcast %cst_143 : f32 to vector<8x16xf32>
    %731 = arith.addf %730, %729 : vector<8x16xf32>
    %732 = arith.divf %730, %731 : vector<8x16xf32>
    %733 = vector.extract_strided_slice %720 {offsets = [0, 32], sizes = [8, 16], strides = [1, 1]} : vector<8x64xf32> to vector<8x16xf32>
    %734 = math.tanh %733 : vector<8x16xf32>
    %735 = vector.extract_strided_slice %720 {offsets = [0, 48], sizes = [8, 16], strides = [1, 1]} : vector<8x64xf32> to vector<8x16xf32>
    %736 = arith.negf %735 : vector<8x16xf32>
    %737 = math.exp %736 : vector<8x16xf32>
    %cst_144 = arith.constant 1.000000e+00 : f32
    %738 = vector.broadcast %cst_144 : f32 to vector<8x16xf32>
    %739 = arith.addf %738, %737 : vector<8x16xf32>
    %740 = arith.divf %738, %739 : vector<8x16xf32>
    %741 = arith.mulf %732, %713 : vector<8x16xf32>
    %742 = arith.mulf %726, %734 : vector<8x16xf32>
    %743 = arith.addf %741, %742 : vector<8x16xf32>
    %744 = math.tanh %743 : vector<8x16xf32>
    %745 = arith.mulf %740, %744 : vector<8x16xf32>
    %746 = vector.broadcast %714 : vector<8x1xf32> to vector<8x16xf32>
    %747 = arith.mulf %745, %746 : vector<8x16xf32>
    %748 = vector.shape_cast %747 : vector<8x16xf32> to vector<8x1x16xf32>
    %c0_145 = arith.constant 0 : index
    %c0_146 = arith.constant 0 : index
    %c0_147 = arith.constant 0 : index
    %749 = vector.load %arg12[%c0_145, %c0_146, %c0_147] : memref<8x8x16xf32, #tpu.memory_space<vmem>>, vector<8x1x16xf32>
    tpu.vector_store %arg12[%c0_145, %c0_146, %c0_147], %748 {strides = array<i32>} : memref<8x8x16xf32, #tpu.memory_space<vmem>>, vector<8x1x16xf32>,
    %c0_148 = arith.constant 0 : index
    %c0_149 = arith.constant 0 : index
    %c0_150 = arith.constant 0 : index
    %750 = vector.load %arg11[%c0_148, %c0_149, %c0_150] : memref<8x8x16xf32, #tpu.memory_space<vmem>>, vector<8x8x16xf32>
    %c0_151 = arith.constant 0 : index
    %c0_152 = arith.constant 0 : index
    %c0_153 = arith.constant 0 : index
    %751 = vector.load %arg12[%c0_151, %c0_152, %c0_153] : memref<8x8x16xf32, #tpu.memory_space<vmem>>, vector<8x8x16xf32>
    %752 = tpu.concatenate %750, %751 in 2 : vector<8x8x16xf32>, vector<8x8x16xf32> -> vector<8x8x32xf32>
    %753 = vector.shape_cast %752 : vector<8x8x32xf32> to vector<64x32xf32>
    %754 = arith.truncf %753 : vector<64x32xf32> to vector<64x32xbf16>
    %c0_154 = arith.constant 0 : index
    %c0_155 = arith.constant 0 : index
    %755 = vector.load %arg7[%c0_154, %c0_155] : memref<32x32xbf16, #tpu.memory_space<vmem>>, vector<32x32xbf16>
    %cst_156 = arith.constant dense<0.000000e+00> : vector<64x32xf32>
    %756 = tpu.matmul %754, %755, %cst_156 {dimension_numbers = #tpu.dot_dimension_numbers<[1], [0], [0], [1], [0, 0, 1, 1], [], []>} : vector<64x32xbf16>, vector<32x32xbf16>, vector<64x32xf32> -> vector<64x32xf32>
    %757 = math.tanh %756 : vector<64x32xf32>
    %758 = vector.shape_cast %757 : vector<64x32xf32> to vector<8x8x32xf32>
    %c0_157 = arith.constant 0 : index
    %c0_158 = arith.constant 0 : index
    %759 = vector.load %arg8[%c0_157, %c0_158] : memref<1x32xf32, #tpu.memory_space<vmem>>, vector<1x32xf32>
    %760 = vector.shape_cast %759 : vector<1x32xf32> to vector<1x1x32xf32>
    %761 = vector.broadcast %760 : vector<1x1x32xf32> to vector<8x8x32xf32>
    %762 = arith.mulf %758, %761 : vector<8x8x32xf32>
    %cst_159 = arith.constant dense<0.000000e+00> : vector<8x8xf32>
    %763 = vector.multi_reduction <add>, %762, %cst_159 [2] : vector<8x8x32xf32> to vector<8x8xf32>
    %cst_160 = arith.constant -1.000000e+30 : f32
    %764 = vector.broadcast %cst_160 : f32 to vector<8x8xf32>
    %765 = arith.select %3, %763, %764 : vector<8x8xi1>, vector<8x8xf32>
    %cst_161 = arith.constant dense<0xFF800000> : vector<8xf32>
    %766 = vector.multi_reduction <maximumf>, %765, %cst_161 [1] : vector<8x8xf32> to vector<8xf32>
    %767 = vector.shape_cast %766 : vector<8xf32> to vector<8x1xf32>
    %768 = vector.broadcast %767 : vector<8x1xf32> to vector<8x8xf32>
    %769 = arith.subf %765, %768 : vector<8x8xf32>
    %770 = math.exp %769 : vector<8x8xf32>
    %cst_162 = arith.constant dense<0.000000e+00> : vector<8xf32>
    %771 = vector.multi_reduction <add>, %770, %cst_162 [1] : vector<8x8xf32> to vector<8xf32>
    %772 = vector.shape_cast %771 : vector<8xf32> to vector<8x1xf32>
    %773 = tpu.reciprocal %772 {approx = true} : vector<8x1xf32> -> vector<8x1xf32>
    %774 = vector.broadcast %773 : vector<8x1xf32> to vector<8x8xf32>
    %775 = arith.mulf %770, %774 : vector<8x8xf32>
    %c0_163 = arith.constant 0 : index
    %c0_164 = arith.constant 0 : index
    %776 = vector.load %arg10[%c0_163, %c0_164] : memref<8x8xf32, #tpu.memory_space<vmem>>, vector<8x8xf32>
    tpu.vector_store %arg10[%c0_163, %c0_164], %775 {strides = array<i32>} : memref<8x8xf32, #tpu.memory_space<vmem>>, vector<8x8xf32>,
    %777 = vector.shape_cast %775 : vector<8x8xf32> to vector<8x8x1xf32>
    %778 = vector.broadcast %777 : vector<8x8x1xf32> to vector<8x8x32xf32>
    %779 = arith.mulf %778, %752 : vector<8x8x32xf32>
    %cst_165 = arith.constant dense<0.000000e+00> : vector<8x32xf32>
    %780 = vector.multi_reduction <add>, %779, %cst_165 [1] : vector<8x8x32xf32> to vector<8x32xf32>
    %c0_166 = arith.constant 0 : index
    %c0_167 = arith.constant 0 : index
    %781 = vector.load %arg9[%c0_166, %c0_167] : memref<8x32xf32, #tpu.memory_space<vmem>>, vector<8x32xf32>
    tpu.vector_store %arg9[%c0_166, %c0_167], %780 {strides = array<i32>} : memref<8x32xf32, #tpu.memory_space<vmem>>, vector<8x32xf32>,
    return
  }
  func.func @transform_0(%arg0: i32) -> (i32, i32, i32) {
    %c0_i32 = arith.constant 0 : i32
    %c0_i32_0 = arith.constant 0 : i32
    %c0_i32_1 = arith.constant 0 : i32
    return %arg0, %c0_i32, %c0_i32_0 : i32, i32, i32
  }
  func.func @transform_1(%arg0: i32) -> (i32, i32) {
    %c0_i32 = arith.constant 0 : i32
    %c0_i32_0 = arith.constant 0 : i32
    return %arg0, %c0_i32 : i32, i32
  }
  func.func @transform_2(%arg0: i32) -> (i32, i32) {
    %c0_i32 = arith.constant 0 : i32
    %c0_i32_0 = arith.constant 0 : i32
    %c0_i32_1 = arith.constant 0 : i32
    return %c0_i32, %c0_i32_0 : i32, i32
  }
  func.func @transform_3(%arg0: i32) -> (i32, i32) {
    %c0_i32 = arith.constant 0 : i32
    %c0_i32_0 = arith.constant 0 : i32
    %c0_i32_1 = arith.constant 0 : i32
    return %c0_i32, %c0_i32_0 : i32, i32
  }
  func.func @transform_4(%arg0: i32) -> (i32, i32) {
    %c0_i32 = arith.constant 0 : i32
    %c0_i32_0 = arith.constant 0 : i32
    %c0_i32_1 = arith.constant 0 : i32
    return %c0_i32, %c0_i32_0 : i32, i32
  }
  func.func @transform_5(%arg0: i32) -> (i32, i32) {
    %c0_i32 = arith.constant 0 : i32
    %c0_i32_0 = arith.constant 0 : i32
    %c0_i32_1 = arith.constant 0 : i32
    return %c0_i32, %c0_i32_0 : i32, i32
  }
  func.func @transform_6(%arg0: i32) -> (i32, i32) {
    %c0_i32 = arith.constant 0 : i32
    %c0_i32_0 = arith.constant 0 : i32
    %c0_i32_1 = arith.constant 0 : i32
    return %c0_i32, %c0_i32_0 : i32, i32
  }
  func.func @transform_7(%arg0: i32) -> (i32, i32) {
    %c0_i32 = arith.constant 0 : i32
    %c0_i32_0 = arith.constant 0 : i32
    %c0_i32_1 = arith.constant 0 : i32
    return %c0_i32, %c0_i32_0 : i32, i32
  }
  func.func @transform_8(%arg0: i32) -> (i32, i32) {
    %c0_i32 = arith.constant 0 : i32
    %c0_i32_0 = arith.constant 0 : i32
    return %arg0, %c0_i32 : i32, i32
  }
  func.func @transform_9(%arg0: i32) -> (i32, i32) {
    %c0_i32 = arith.constant 0 : i32
    %c0_i32_0 = arith.constant 0 : i32
    return %arg0, %c0_i32 : i32, i32
  }
}

</mosaic_0001>

<bundles_post_ra>
// kernel: tpu_custom_call.1
= control target key start
LH: loop header
LB: loop body
LE: loop exit
PB: predicated region body
PF: predicated region fallthrough
CT: control target
= control target key end

     0   :  { %15 = vsyncpa [#allocation5], 0  ;;  %s13504_s0 = inlined_call_operand.hbm [shape: bf16[8,8,32], index: 0, kind: input, shape index: {}]   ;;  %s13505_s1 = inlined_call_operand.vmem [shape: s32[8,1], index: 1, kind: input, shape index: {}]   ;;  %s13506_s2 = inlined_call_operand.vmem [shape: bf16[32,128], index: 2, kind: input, shape index: {}]   ;;  %s13507_s3 = inlined_call_operand.hbm [shape: bf16[16,64], index: 3, kind: input, shape index: {}]   ;;  %s13508_s4 = inlined_call_operand.vmem [shape: bf16[16,64], index: 4, kind: input, shape index: {}]   ;;  %s13509_s5 = inlined_call_operand.vmem [shape: f32[1,128], index: 5, kind: input, shape index: {}]   ;;  %s13510_s6 = inlined_call_operand.hbm [shape: bf16[32,32], index: 6, kind: input, shape index: {}]   ;;  %s13511_s7 = inlined_call_operand.vmem [shape: f32[1,32], index: 7, kind: input, shape index: {}]   ;;  %s13512_s8 = inlined_call_operand.hbm [shape: f32[8,32], index: 8, kind: output, shape index: {0}]   ;;  %s13513_s9 = inlined_call_operand.hbm [shape: f32[8,8], index: 9, kind: output, shape index: {1}]  }
   0x1   :  { %16 = vsyncpa [#allocation8], 0 }
   0x2   :  { %17 = vsyncpa [#allocation6], 0 }
   0x3   :  { %18 = vsyncpa [#allocation12], 0  ;;  %s9822_s30 = smov [#allocation7]   ;;  %s9823_s11 = smov [#allocation4]  }
   0x4   :  { %s40_s10 = sshll.u32 %s9822_s30, 4  ;;  %s24_s12 = sshll.u32 %s9823_s11, 4  ;;  %s41_s10 = int_to_ptr.vmem [resolvable:$true] %s40_s10  ;;  %s9895_s12 = int_to_ptr.vmem [resolvable:$true] %s24_s12 }
   0x5   :  { %s9704_s15 = scalar_lea.hbm %s13507_s3, 128 }
   0x6   :  { %p9705_p0 = scmp.ne.s32.totalorder %s13507_s3, %s9704_s15  ;;  %p9708_p1 = scmp.lt.u32.totalorder %s9704_s15, %s13507_s3 }
   0x8   :  { %p9710_p2 = pnand %p9708_p1, %p9705_p0 }
   0xa   :  { %9713 = shalt.err (!%p9710_p2)
}
   0xb   :  { %s9714_s20 = scalar_lea.vmem %s41_s10, 128  ;;  %p9719_p4 = scmp.lt.s32.totalorder %s41_s10, %s41_s10 }
   0xc   :  { %p9715_p3 = scmp.ne.s32.totalorder %s41_s10, %s9714_s20  ;;  %p9720_p5 = scmp.lt.s32.totalorder %s9714_s20, %s9714_s20 }
   0xe   :  { %p9721_p6 = por %p9720_p5, %p9719_p4 }
  0x10   :  { %p9722_p7 = pnand %p9721_p6, %p9715_p3 }
  0x12   :  { %9725 = shalt.err (!%p9722_p7)
}
  0x13   :  { %s9824_s21 = smov 64   ;;  %s9825_s22 = smov 4  }
  0x14   :  { %46 = dma.hbm_to_vmem [thread:$0]  %s13507_s3, 128, %s41_s10, [#allocation8], %s9824_s21, %s9824_s21, %s9825_s22  }
  0x15   :  { %s9726_s27 = scalar_lea.hbm %s13504_s0, 512 }
  0x16   :  { %p9727_p8 = scmp.ne.s32.totalorder %s13504_s0, %s9726_s27  ;;  %p9730_p9 = scmp.lt.u32.totalorder %s9726_s27, %s13504_s0 }
  0x18   :  { %p9732_p10 = pnand %p9730_p9, %p9727_p8 }
  0x1a   :  { %9735 = shalt.err (!%p9732_p10)
}
  0x1b   :  { %s9736_s13 = scalar_lea.vmem %s9895_s12, 512  ;;  %p9741_p12 = scmp.lt.s32.totalorder %s9895_s12, %s9895_s12 }
  0x1c   :  { %p9737_p11 = scmp.ne.s32.totalorder %s9895_s12, %s9736_s13  ;;  %p9742_p13 = scmp.lt.s32.totalorder %s9736_s13, %s9736_s13 }
  0x1e   :  { %p9743_p0 = por %p9742_p13, %p9741_p12 }
  0x20   :  { %p9744_p1 = pnand %p9743_p0, %p9737_p11 }
  0x22   :  { %9747 = shalt.err (!%p9744_p1)
}
  0x23   :  { %30 = dma.hbm_to_vmem [thread:$0]  %s13504_s0, 512, %s9895_s12, [#allocation5], %s9824_s21, %s9824_s21, %s9825_s22  }
  0x24   :  { %s9826_s14 = smov [#allocation9]   ;;  %s9748_s18 = scalar_lea.hbm %s13510_s6, 256 }
  0x25   :  { %s56_s15 = sshll.u32 %s9826_s14, 4  ;;  %p9749_p2 = scmp.ne.s32.totalorder %s13510_s6, %s9748_s18  ;;  %s57_s15 = int_to_ptr.vmem [resolvable:$true] %s56_s15 }
  0x26   :  { %p9752_p3 = scmp.lt.u32.totalorder %s9748_s18, %s13510_s6 }
  0x28   :  { %p9754_p4 = pnand %p9752_p3, %p9749_p2 }
  0x2a   :  { %9757 = shalt.err (!%p9754_p4)
}
  0x2b   :  { %s9758_s25 = scalar_lea.vmem %s57_s15, 256  ;;  %p9763_p6 = scmp.lt.s32.totalorder %s57_s15, %s57_s15 }
  0x2c   :  { %p9759_p5 = scmp.ne.s32.totalorder %s57_s15, %s9758_s25  ;;  %p9764_p7 = scmp.lt.s32.totalorder %s9758_s25, %s9758_s25 }
  0x2e   :  { %p9765_p8 = por %p9764_p7, %p9763_p6 }
  0x30   :  { %p9766_p9 = pnand %p9765_p8, %p9759_p5 }
  0x32   :  { %9769 = shalt.err (!%p9766_p9)
}
  0x33   :  { %62 = dma.hbm_to_vmem [thread:$0]  %s13510_s6, 256, %s57_s15, [#allocation8], %s9824_s21, %s9824_s21, %s9825_s22  }
  0x34   :  { %9814 = dma.done.wait [#allocation5], 512  }
  0x35   :  { %9815 = vsyncadd [#allocation5], 4294966784 }
  0x36   :  { %9816 = dma.done.wait [#allocation8], 384  }
  0x37   :  { %9817 = vsyncadd [#allocation8], 4294966912  ;;  %v13529_v0 = vmov 0   ;;  %v13530_v1 = vmov 0.0   ;;  %vm9829_vm0 = vmmov 0   ;;  %v8636_v2 = vld [vmem:[%s13506_s2] sm:$0xff]  }
  0x38   :  { %8620 = vset.pattern.permute.xlu0 %v13529_v0  ;;  %8621 = vset.pattern.permute.xlu1 %v13529_v0  ;;  %v8637_v3 = vld [vmem:[%s13506_s2 + $0x8] sm:$0xff]   ;;  %vm136_vm1 = vcmask 261120   ;;  %v8638_v4 = vld [vmem:[#allocation4] sm:$0xff]   ;;  %v8641_v7 = vld [vmem:[#allocation4 + $0x10] sm:$0xff]   ;;  %s9832_s11 = smov 32   ;;  %vm589_vm3 = vcmask 1041409  }
  0x39   :  { %8495 = vmatprep.subr.bf16.mxu1 %v13530_v1  ;;  %8497 = vmatprep.mubr.msk.bf16.mxu1 %vm9829_vm0, %v13530_v1  ;;  %v8639_v5 = vld [vmem:[#allocation4 + $0x8] sm:$0xff]   ;;  %v8640_v6 = vld [vmem:[#allocation7] sm:$0xff]   ;;  %v8642_v8 = vld [vmem:[#allocation4 + $0x18] sm:$0xff]   ;;  %vm592_vm4 = vcmask 1042434   ;;  %vm595_vm5 = vcmask 1043459   ;;  %vm598_vm6 = vcmask 1044484  }
  0x3a   :  { %8477 = vmatprep.subr.bf16.mxu0 %v8636_v2  ;;  %8481 = vmatprep.mubr.msk.bf16.mxu0 %vm136_vm1, %v8638_v4  ;;  %v8257_v17 = vld [vmem:[%s13509_s5] ss:$0 sm:$0xff]  ;;  %s9830_s5 = smov 96   ;;  %vm601_vm7 = vcmask 1045509   ;;  %vm604_vm8 = vcmask 1046534   ;;  %vm13676_vm9 = vcmask 1047559  }
  0x3b   :  { %8478 = vmatpush3.bf16.msra.mxu0 %v8636_v2  ;;  %v75_v53 = vld [vmem:[%s13505_s1] sm:$0xff]  ;;  %s9831_s1 = smov 16   ;;  %s9833_s13 = smov 112   ;;  %vm222_vm10 = vcmask 130048   ;;  %vm4042_vm11 = vcmask 130055   ;;  %vm3537_vm12 = vcmask 129030  }
  0x3c   :  { %8479 = vmatprep.subr.bf16.mxu0 %v8637_v3  ;;  %s9834_s3 = smov 80   ;;  %s9836_s10 = smov 48   ;;  %vm3032_vm13 = vcmask 128005   ;;  %vm2527_vm14 = vcmask 126980   ;;  %vm2022_vm15 = vcmask 125955  }
  0x3f   :  { %8480 = vmatpush3.bf16.msra.mxu0 %v8637_v3 }
  0x40   :  { %8489 = vmatprep.subr.bf16.mxu0 %v13530_v1 }
  0x42   :  { %8482 = vmatmul.mubr.msk.bf16.vlgmr.msra.gmra.mrb[0].mxu0 %vm136_vm1, %v8639_v5 }
  0x43   :  { %8490 = vmatpush3.bf16.msra.mxu0 %v8640_v6  ;;  %8485 = vmatprep.mubr.msk.bf16.mxu0 %vm136_vm1, %v8641_v7 }
  0x44   :  { %8507 = vmatprep.subr.bf16.mxu0 %v13530_v1 }
  0x4a   :  { %8486 = vmatmul.mubr.msk.bf16.gmra.mrb[4].mxu0 %vm136_vm1, %v8642_v8 }
  0x4b   :  { %8491 = vmatprep.mubr.msk.bf16.mxu0 %vm9829_vm0, %v13530_v1 }
  0x52   :  { %8492 = vmatmul.mubr.bf16.vlgmr.msra.gmra.mrb[8].mxu0 %v13529_v0 }
  0x53   :  { %8509 = vmatprep.mubr.msk.bf16.mxu0 %vm9829_vm0, %v13530_v1 }
 0x115   :  { %v8483_v9 = vpop.f32.mrb[0].mxu0 }
 0x116   :  { %v183_v10 = vpop.f32.mrb[1].mxu0  ;;  %v9988_v38 = vadd.f32 %v8483_v9, %v8257_v17 }
 0x117   :  { %v8484_v11 = vpop.f32.mrb[2].mxu0  ;;  %v9972_v18 = vadd.f32 %v8257_v17, %v183_v10 }
 0x118   :  { %v186_v12 = vpop.f32.mrb[3].mxu0  ;;  %v9974_v22 = vadd.f32 %v8484_v11, %v8257_v17 }
 0x119   :  { %v9983_v33 = vadd.f32 %v8257_v17, %v186_v12 }
 0x11d   :  { %v8487_v13 = vpop.f32.mrb[4].mxu0 }
 0x11e   :  { %v199_v14 = vpop.f32.mrb[5].mxu0  ;;  %v9995_v46 = vadd.f32 %v8487_v13, %v8257_v17 }
 0x11f   :  { %v8488_v15 = vpop.f32.mrb[6].mxu0  ;;  %v9992_v42 = vadd.f32 %v8257_v17, %v199_v14 }
 0x120   :  { %v202_v16 = vpop.f32.mrb[7].mxu0  ;;  %v9981_v32 = vadd.f32 %v8488_v15, %v8257_v17 }
 0x121   :  { %v9978_v28 = vadd.f32 %v8257_v17, %v202_v16 }
 0x125   :  { %v260_v19 = vpop.f32.mrb[8].mxu0 }
 0x126   :  { %v269_v20 = vrot.slane %v260_v19, 3  ;;  %v8493_v21 = vpop.f32.mrb[9].mxu0  ;;  %v282_v24 = vadd.f32 %v260_v19, %v9972_v18  ;;  %v271_v27 = vrot.slane %v260_v19, 5  ;;  %v273_v29 = vrot.slane %v260_v19, 7 }
 0x127   :  { %v263_v23 = vpop.f32.mrb[10].mxu0  ;;  %v267_v31 = vrot.slane %v260_v19, 1  ;;  %v268_v36 = vrot.slane %v260_v19, 2  ;;  %v270_v40 = vrot.slane %v260_v19, 4  ;;  %v272_v43 = vrot.slane %v260_v19, 6 }
 0x128   :  { %v8494_v25 = vpop.f32.mrb[11].mxu0  ;;  %v285_v26 = vadd.f32 %v269_v20, %v9974_v22  ;;  %8660 = vtanh.f32 %v282_v24  ;;  %v287_v30 = vadd.f32 %v271_v27, %v9978_v28  ;;  %v289_v34 = vadd.f32 %v273_v29, %v9981_v32 }
 0x129   :  { %v283_v37 = vadd.f32 %v267_v31, %v9983_v33  ;;  %v284_v41 = vadd.f32 %v268_v36, %v9988_v38  ;;  %v286_v44 = vadd.f32 %v270_v40, %v9992_v42  ;;  %v288_v47 = vadd.f32 %v272_v43, %v9995_v46 }
 0x12a   :  { %8662 = vtanh.f32 %v285_v26  ;;  %v8269_v54 = vmul.f32 -1.442695, %v282_v24  ;;  %v8272_v59 = vmul.f32 -1.442695, %v285_v26  ;;  %v8274_v61 = vmul.f32 -1.442695, %v287_v30 }
 0x12b   :  { %8664 = vtanh.f32 %v287_v30  ;;  %v8270_v56 = vmul.f32 -1.442695, %v283_v37  ;;  %v8271_v58 = vmul.f32 -1.442695, %v284_v41  ;;  %v8273_v60 = vmul.f32 -1.442695, %v286_v44 }
 0x12c   :  { %8666 = vtanh.f32 %v289_v34  ;;  %v8275_v62 = vmul.f32 -1.442695, %v288_v47  ;;  %v8276_v2 = vmul.f32 -1.442695, %v289_v34 }
 0x12d   :  { %8668 = vtanh.f32 %v283_v37 }
 0x12e   :  { %8670 = vtanh.f32 %v284_v41 }
 0x12f   :  { %8672 = vtanh.f32 %v286_v44 }
 0x130   :  { %8674 = vtanh.f32 %v288_v47 }
 0x131   :  { %8676 = vpow2.f32 %v8269_v54 }
 0x132   :  { %v8661_v35 = vpop.eup %8660  ;;  %8678 = vpow2.f32 %v8270_v56 }
 0x133   :  { %362 = vrot.lane.b32.xlu1 %v8661_v35, %s9830_s5 }
 0x134   :  { %v8663_v39 = vpop.eup %8662 }
 0x135   :  { %v8665_v45 = vpop.eup %8664 }
 0x136   :  { %v8667_v48 = vpop.eup %8666 }
 0x137   :  { %368 = vrot.lane.b32.xlu1 %v8663_v39, %s9830_s5  ;;  %v8669_v49 = vpop.eup %8668 }
 0x138   :  { %364 = vrot.lane.b32.xlu0 %v8669_v49, %s9830_s5  ;;  %v8671_v50 = vpop.eup %8670 }
 0x139   :  { %v8673_v51 = vpop.eup %8672 }
 0x13a   :  { %v8675_v52 = vpop.eup %8674 }
 0x13b   :  { %372 = vrot.lane.b32.xlu1 %v8665_v45, %s9830_s5  ;;  %v8677_v55 = vpop.eup %8676 }
 0x13c   :  { %366 = vrot.lane.b32.xlu0 %v8671_v50, %s9830_s5  ;;  %v314_v57 = vadd.f32 1.0, %v8677_v55  ;;  %v8679_v63 = vpop.eup %8678 }
 0x13d   :  { %v315_v4 = vadd.f32 1.0, %v8679_v63 }
 0x13e   :  { %8680 = vrcp.f32 %v314_v57 }
 0x13f   :  { %376 = vrot.lane.b32.xlu1 %v8667_v48, %s9830_s5  ;;  %8682 = vpow2.f32 %v8271_v58  ;;  %v13514_v48 = vlaneseq }
 0x140   :  { %370 = vrot.lane.b32.xlu0 %v8673_v51, %s9830_s5  ;;  %8684 = vpow2.f32 %v8272_v59 }
 0x141   :  { %8686 = vpow2.f32 %v8273_v60  ;;  %v10040_v49 = vand.u32 127, %v13514_v48 }
 0x142   :  { %8688 = vpow2.f32 %v8274_v61 }
 0x143   :  { %8690 = vpow2.f32 %v8275_v62  ;;  %13677 = vst [vmem:[#allocation17_spill] sm:$0xff] %v10040_v49 }
 0x144   :  { %374 = vrot.lane.b32.xlu0 %v8675_v52, %s9830_s5  ;;  %8692 = vpow2.f32 %v8276_v2 }
 0x145   :  { %8694 = vrcp.f32 %v315_v4 }
 0x148   :  { %79 = vperm.xlu0 %8620, %v75_v53   ;;  %v10007_v3 = vpop.eup %8680 }
 0x149   :  { %v8683_v6 = vpop.eup %8682  ;;  %v346_v53 = vmul.f32 0.0, %v10007_v3 }
 0x14a   :  { %v8685_v8 = vpop.eup %8684  ;;  %v316_v9 = vadd.f32 1.0, %v8683_v6 }
 0x14b   :  { %v8687_v10 = vpop.eup %8686  ;;  %v317_v11 = vadd.f32 1.0, %v8685_v8 }
 0x14c   :  { %v8689_v12 = vpop.eup %8688  ;;  %8696 = vrcp.f32 %v316_v9  ;;  %v318_v13 = vadd.f32 1.0, %v8687_v10 }
 0x14d   :  { %v8691_v14 = vpop.eup %8690  ;;  %8698 = vrcp.f32 %v317_v11  ;;  %v319_v15 = vadd.f32 1.0, %v8689_v12 }
 0x14e   :  { %8700 = vrcp.f32 %v318_v13  ;;  %v320_v16 = vadd.f32 1.0, %v8691_v14  ;;  %v8693_v17 = vpop.eup %8692 }
 0x14f   :  { %v10011_v19 = vpop.eup %8694  ;;  %8702 = vrcp.f32 %v319_v15  ;;  %v321_v24 = vadd.f32 1.0, %v8693_v17 }
 0x150   :  { %8704 = vrcp.f32 %v320_v16  ;;  %v347_v57 = vmul.f32 0.0, %v10011_v19 }
 0x151   :  { %8706 = vrcp.f32 %v321_v24 }
 0x156   :  { %v10015_v25 = vpop.eup %8696 }
 0x157   :  { %v10018_v29 = vpop.eup %8698  ;;  %v348_v60 = vmul.f32 0.0, %v10015_v25 }
 0x158   :  { %v10021_v30 = vpop.eup %8700  ;;  %v349_v63 = vmul.f32 0.0, %v10018_v29 }
 0x159   :  { %v10025_v37 = vpop.eup %8702  ;;  %v350_v2 = vmul.f32 0.0, %v10021_v30 }
 0x15a   :  { %v10029_v39 = vpop.eup %8704  ;;  %v351_v8 = vmul.f32 0.0, %v10025_v37 }
 0x15b   :  { %v10035_v45 = vpop.eup %8706  ;;  %v352_v9 = vmul.f32 0.0, %v10029_v39 }
 0x15c   :  { %v353_v15 = vmul.f32 0.0, %v10035_v45 }
 0x1a5   :  { %v363_v5 = vpop.permute.xlu1 %362 }
 0x1a6   :  { %v386_v7 = vmul.f32 %v10007_v3, %v363_v5 }
 0x1a8   :  { %402 = vrot.lane.b32.xlu0 %v386_v7, %s9831_s1 }
 0x1a9   :  { %v369_v23 = vpop.permute.xlu1 %368 }
 0x1aa   :  { %v365_v20 = vpop.permute.xlu0 %364  ;;  %v389_v35 = vmul.f32 %v10018_v29, %v369_v23 }
 0x1ab   :  { %v387_v21 = vmul.f32 %v10011_v19, %v365_v20 }
 0x1ad   :  { %404 = vrot.lane.b32.xlu1 %v387_v21, %s9831_s1  ;;  %v373_v31 = vpop.permute.xlu1 %372 }
 0x1ae   :  { %v367_v26 = vpop.permute.xlu0 %366  ;;  %v391_v41 = vmul.f32 %v10025_v37, %v373_v31 }
 0x1af   :  { %v388_v27 = vmul.f32 %v10015_v25, %v367_v26 }
 0x1b1   :  { %406 = vrot.lane.b32.xlu1 %v388_v27, %s9831_s1  ;;  %v377_v44 = vpop.permute.xlu1 %376 }
 0x1b2   :  { %v371_v34 = vpop.permute.xlu0 %370  ;;  %v393_v47 = vmul.f32 %v10035_v45, %v377_v44 }
 0x1b3   :  { %v390_v36 = vmul.f32 %v10021_v30, %v371_v34 }
 0x1b5   :  { %408 = vrot.lane.b32.xlu1 %v389_v35, %s9831_s1  ;;  %410 = vrot.lane.b32.xlu0 %v390_v36, %s9831_s1 }
 0x1b6   :  { %v375_v40 = vpop.permute.xlu0 %374 }
 0x1b7   :  { %v392_v43 = vmul.f32 %v10029_v39, %v375_v40 }
 0x1b9   :  { %412 = vrot.lane.b32.xlu1 %v391_v41, %s9831_s1  ;;  %414 = vrot.lane.b32.xlu0 %v392_v43, %s9831_s1 }
 0x1bd   :  { %416 = vrot.lane.b32.xlu1 %v393_v47, %s9831_s1 }
 0x1c7   :  { %v10042_v50 = vpop.permute.xlu0 %79 }
 0x1c8   :  { %13678 = vst [vmem:[#allocation18_spill] sm:$0xff] %v10042_v50  ;;  %vm13675_vm2 = vcmp.lt.s32.totalorder %v10040_v49, %v10042_v50 }
 0x1c9   :  { %v10050_v51 = vsel %vm13675_vm2, 1.0, %v13530_v1  ;;  %vm1012_vm2 = vcmask 123905  }
 0x1ca   :  { %v10053_v52 = vsub.f32 1.0, %v10050_v51  ;;  %484 = vperm.xlu0 %8620, %v10050_v51  }
 0x1cc   :  { %552 = vperm.xlu1 %8621, %v10053_v52  }
 0x21a   :  { %v403_v54 = vpop.permute.xlu0 %402 }
 0x21b   :  { %v426_v55 = vadd.f32 %v403_v54, %v346_v53 }
 0x21d   :  { %8708 = vtanh.f32 %v426_v55 }
 0x21f   :  { %v405_v58 = vpop.permute.xlu1 %404 }
 0x220   :  { %v427_v59 = vadd.f32 %v405_v58, %v347_v57  ;;  %v8643_v57 = vld [vmem:[#allocation7] sm:$0xff]  }
 0x221   :  { %8496 = vmatpush3.bf16.msra.mxu1 %v8643_v57 }
 0x222   :  { %8710 = vtanh.f32 %v427_v59  ;;  %v588_v21 = vrot.slane %v427_v59, 7  ;;  %8501 = vmatprep.subr.bf16.mxu1 %v13530_v1 }
 0x223   :  { %v407_v61 = vpop.permute.xlu1 %406 }
 0x224   :  { %v428_v62 = vadd.f32 %v407_v61, %v348_v60  ;;  %v590_v31 = vsel %vm589_vm3, %v588_v21, %v426_v55 }
 0x226   :  { %8712 = vtanh.f32 %v428_v62  ;;  %v591_v23 = vrot.slane %v428_v62, 6 }
 0x227   :  { %v8709_v56 = vpop.eup %8708  ;;  %v409_v4 = vpop.permute.xlu1 %408 }
 0x228   :  { %450 = vrot.lane.b32.xlu0 %v8709_v56, %s9832_s11  ;;  %v411_v5 = vpop.permute.xlu0 %410  ;;  %v429_v6 = vadd.f32 %v409_v4, %v349_v63  ;;  %v593_v34 = vsel %vm592_vm4, %v591_v23, %v590_v31 }
 0x229   :  { %v430_v7 = vadd.f32 %v411_v5, %v350_v2 }
 0x22a   :  { %8714 = vtanh.f32 %v429_v6  ;;  %v594_v26 = vrot.slane %v429_v6, 5 }
 0x22b   :  { %8716 = vtanh.f32 %v430_v7  ;;  %v413_v10 = vpop.permute.xlu1 %412  ;;  %v597_v35 = vrot.slane %v430_v7, 4 }
 0x22c   :  { %v415_v11 = vpop.permute.xlu0 %414  ;;  %v8711_v12 = vpop.eup %8710  ;;  %v431_v13 = vadd.f32 %v413_v10, %v351_v8  ;;  %v596_v40 = vsel %vm595_vm5, %v594_v26, %v593_v34 }
 0x22d   :  { %v432_v14 = vadd.f32 %v415_v11, %v352_v9  ;;  %452 = vrot.lane.b32.xlu0 %v8711_v12, %s9832_s11  ;;  %v599_v44 = vsel %vm598_vm6, %v597_v35, %v596_v40 }
 0x22e   :  { %8718 = vtanh.f32 %v431_v13  ;;  %v600_v41 = vrot.slane %v431_v13, 3 }
 0x22f   :  { %8720 = vtanh.f32 %v432_v14  ;;  %v417_v16 = vpop.permute.xlu1 %416  ;;  %v603_v47 = vrot.slane %v432_v14, 2 }
 0x230   :  { %v8713_v17 = vpop.eup %8712  ;;  %v433_v20 = vadd.f32 %v417_v16, %v353_v15  ;;  %v602_v55 = vsel %vm601_vm7, %v600_v41, %v599_v44 }
 0x231   :  { %454 = vrot.lane.b32.xlu1 %v8713_v17, %s9832_s11  ;;  %v605_v56 = vsel %vm604_vm8, %v603_v47, %v602_v55 }
 0x232   :  { %8722 = vtanh.f32 %v433_v20  ;;  %v606_v54 = vrot.slane %v433_v20, 1 }
 0x234   :  { %v8715_v24 = vpop.eup %8714  ;;  %v608_v58 = vsel %vm13676_vm9, %v606_v54, %v605_v56 }
 0x235   :  { %v8717_v27 = vpop.eup %8716  ;;  %456 = vrot.lane.b32.xlu1 %v8715_v24, %s9832_s11 }
 0x236   :  { %458 = vrot.lane.b32.xlu0 %v8717_v27, %s9832_s11 }
 0x238   :  { %v8719_v36 = vpop.eup %8718 }
 0x239   :  { %v8721_v43 = vpop.eup %8720  ;;  %460 = vrot.lane.b32.xlu1 %v8719_v36, %s9832_s11 }
 0x23a   :  { %462 = vrot.lane.b32.xlu0 %v8721_v43, %s9832_s11 }
 0x23c   :  { %v8723_v53 = vpop.eup %8722 }
 0x23d   :  { %464 = vrot.lane.b32.xlu1 %v8723_v53, %s9832_s11 }
 0x241   :  { %609 = vrot.lane.b32.xlu1 %v608_v58, %s9833_s13 }
 0x249   :  { %v10082_v59 = vpop.permute.xlu0 %484 }
 0x24a   :  { %13679 = vst [vmem:[#allocation19_spill] sm:$0xff] %v10082_v59  ;;  %v13521_v4 = vrot.slane %v10082_v59, 1  ;;  %v13520_v11 = vrot.slane %v10082_v59, 2  ;;  %v13519_v17 = vrot.slane %v10082_v59, 3  ;;  %v13518_v23 = vrot.slane %v10082_v59, 4 }
 0x24b   :  { %v553_v61 = vpop.permute.xlu1 %552  ;;  %v13517_v34 = vrot.slane %v10082_v59, 5  ;;  %v13516_v47 = vrot.slane %v10082_v59, 6 }
 0x24c   :  { %v10085_v63 = vmul.f32 0.0, %v553_v61 }
 0x24e   :  { %v557_v7 = vrot.slane %v10085_v63, 1  ;;  %v558_v12 = vrot.slane %v10085_v63, 2  ;;  %v559_v27 = vrot.slane %v10085_v63, 3  ;;  %v560_v43 = vrot.slane %v10085_v63, 4 }
 0x24f   :  { %v561_v56 = vrot.slane %v10085_v63, 5 }
 0x29a   :  { %v451_v60 = vpop.permute.xlu0 %450 }
 0x29b   :  { %v474_v62 = vmul.f32 %v10007_v3, %v451_v60 }
 0x29d   :  { %v10090_v6 = vmul.f32 %v10082_v59, %v474_v62 }
 0x29f   :  { %v453_v2 = vpop.permute.xlu0 %452  ;;  %13680 = vst [vmem:[#allocation20_spill] sm:$0xff] %v10090_v6 }
 0x2a0   :  { %v475_v5 = vmul.f32 %v10011_v19, %v453_v2  ;;  %v572_v19 = vadd.f32 %v10085_v63, %v10090_v6 }
 0x2a2   :  { %v10095_v8 = vmul.f32 %v13521_v4, %v475_v5  ;;  %v614_v35 = vpack.c.bf16 %v572_v19, %v572_v19 }
 0x2a3   :  { %v455_v9 = vpop.permute.xlu1 %454 }
 0x2a4   :  { %13681 = vst [vmem:[#allocation21_spill] sm:$0xff] %v10095_v8  ;;  %v573_v10 = vadd.f32 %v557_v7, %v10095_v8  ;;  %v476_v3 = vmul.f32 %v10015_v25, %v455_v9  ;;  %v632_v2 = vunpack.c.l.b16 %v614_v35  ;;  %v562_v9 = vrot.slane %v10085_v63, 6 }
 0x2a6   :  { %v615_v13 = vpack.c.bf16 %v573_v10, %v573_v10  ;;  %v1033_v14 = vrot.slane %v573_v10, 7  ;;  %v10105_v15 = vmul.f32 %v13520_v11, %v476_v3 }
 0x2a7   :  { %v457_v16 = vpop.permute.xlu1 %456 }
 0x2a8   :  { %13682 = vst [vmem:[#allocation22_spill] sm:$0xff] %v10105_v15  ;;  %v1034_v20 = vsel %vm589_vm3, %v1033_v14, %v572_v19  ;;  %v574_v25 = vadd.f32 %v558_v12, %v10105_v15  ;;  %v477_v21 = vmul.f32 %v10018_v29, %v457_v16  ;;  %v459_v24 = vpop.permute.xlu0 %458  ;;  %v633_v26 = vunpack.c.l.b16 %v615_v13 }
 0x2a9   :  { %v478_v31 = vmul.f32 %v10021_v30, %v459_v24  ;;  %v13515_v30 = vrot.slane %v10082_v59, 7 }
 0x2aa   :  { %v616_v36 = vpack.c.bf16 %v574_v25, %v574_v25  ;;  %v1035_v40 = vrot.slane %v574_v25, 6  ;;  %v10117_v41 = vmul.f32 %v13519_v17, %v477_v21  ;;  %v640_v58 = vrot.slane %v633_v26, 7 }
 0x2ab   :  { %v10122_v29 = vmul.f32 %v13518_v23, %v478_v31  ;;  %v461_v44 = vpop.permute.xlu1 %460 }
 0x2ac   :  { %13683 = vst [vmem:[#allocation23_spill] sm:$0xff] %v10117_v41  ;;  %v634_v53 = vunpack.c.l.b16 %v616_v36  ;;  %v1036_v54 = vsel %vm592_vm4, %v1035_v40, %v1034_v20  ;;  %v575_v55 = vadd.f32 %v559_v27, %v10117_v41  ;;  %v463_v57 = vpop.permute.xlu0 %462  ;;  %v479_v61 = vmul.f32 %v10025_v37, %v461_v44 }
 0x2ad   :  { %13684 = vst [vmem:[#allocation24_spill] sm:$0xff] %v10122_v29  ;;  %v576_v60 = vadd.f32 %v560_v43, %v10122_v29  ;;  %v480_v62 = vmul.f32 %v10029_v39, %v463_v57  ;;  %v641_v20 = vsel %vm589_vm3, %v640_v58, %v632_v2  ;;  %v563_v27 = vrot.slane %v10085_v63, 7 }
 0x2ae   :  { %v617_v5 = vpack.c.bf16 %v575_v55, %v575_v55  ;;  %v1037_v7 = vrot.slane %v575_v55, 5  ;;  %v10135_v12 = vmul.f32 %v13517_v34, %v479_v61  ;;  %v642_v14 = vrot.slane %v634_v53, 6 }
 0x2af   :  { %v618_v10 = vpack.c.bf16 %v576_v60, %v576_v60  ;;  %v1039_v3 = vrot.slane %v576_v60, 4  ;;  %v10139_v19 = vmul.f32 %v13516_v47, %v480_v62  ;;  %v465_v13 = vpop.permute.xlu1 %464 }
 0x2b0   :  { %13685 = vst [vmem:[#allocation25_spill] sm:$0xff] %v10135_v12  ;;  %v635_v37 = vunpack.c.l.b16 %v617_v5  ;;  %v481_v39 = vmul.f32 %v10035_v45, %v465_v13  ;;  %v1038_v16 = vsel %vm595_vm5, %v1037_v7, %v1036_v54  ;;  %v577_v21 = vadd.f32 %v561_v56, %v10135_v12 }
 0x2b1   :  { %13686 = vst [vmem:[#allocation26_spill] sm:$0xff] %v10139_v19  ;;  %v636_v25 = vunpack.c.l.b16 %v618_v10  ;;  %v578_v24 = vadd.f32 %v562_v9, %v10139_v19  ;;  %v1040_v35 = vsel %vm598_vm6, %v1039_v3, %v1038_v16  ;;  %v643_v43 = vsel %vm592_vm4, %v642_v14, %v641_v20 }
 0x2b2   :  { %v644_v26 = vrot.slane %v635_v37, 5  ;;  %v10149_v31 = vmul.f32 %v13515_v30, %v481_v39  ;;  %v619_v36 = vpack.c.bf16 %v577_v21, %v577_v21  ;;  %v1041_v45 = vrot.slane %v577_v21, 3 }
 0x2b3   :  { %v620_v40 = vpack.c.bf16 %v578_v24, %v578_v24  ;;  %v646_v44 = vrot.slane %v636_v25, 4  ;;  %v1043_v53 = vrot.slane %v578_v24, 2 }
 0x2b4   :  { %13687 = vst [vmem:[#allocation27_spill] sm:$0xff] %v10149_v31  ;;  %v579_v54 = vadd.f32 %v563_v27, %v10149_v31  ;;  %v637_v55 = vunpack.c.l.b16 %v619_v36  ;;  %v645_v57 = vsel %vm595_vm5, %v644_v26, %v643_v43  ;;  %v1042_v58 = vsel %vm601_vm7, %v1041_v45, %v1040_v35 }
 0x2b5   :  { %v638_v56 = vunpack.c.l.b16 %v620_v40  ;;  %v1044_v61 = vsel %vm604_vm8, %v1043_v53, %v1042_v58  ;;  %v647_v9 = vsel %vm598_vm6, %v646_v44, %v645_v57 }
 0x2b6   :  { %v621_v60 = vpack.c.bf16 %v579_v54, %v579_v54  ;;  %v1045_v62 = vrot.slane %v579_v54, 1  ;;  %v648_v2 = vrot.slane %v637_v55, 3 }
 0x2b7   :  { %v650_v5 = vrot.slane %v638_v56, 2 }
 0x2b8   :  { %v639_v7 = vunpack.c.l.b16 %v621_v60  ;;  %v649_v10 = vsel %vm601_vm7, %v648_v2, %v647_v9  ;;  %v10160_v13 = vsel %vm13676_vm9, %v1045_v62, %v1044_v61  ;;  %v9835_v9 = vmov 1  }
 0x2b9   :  { %v651_v14 = vsel %vm604_vm8, %v650_v5, %v649_v10  ;;  %v610_v5 = vpop.permute.xlu1 %609  ;;  %8623 = vset.pattern.permute.xlu1 %v9835_v9  ;;  %8622 = vset.pattern.permute.xlu0 %v9835_v9 }
 0x2ba   :  { %v652_v3 = vrot.slane %v639_v7, 1  ;;  %v612_v10 = vmul.f32 %v610_v5, %v10082_v59 }
 0x2bc   :  { %v653_v37 = vsel %vm13676_vm9, %v652_v3, %v651_v14 }
 0x2bd   :  { %v654_v39 = vpack.c.b16 %v653_v37, %v653_v37  ;;  %v10184_v37 = vadd.f32 %v612_v10, %v10085_v63 }
 0x2bf   :  { %655 = vrot.lane.b32.xlu0 %v654_v39, %s9834_s3  ;;  %v792_v63 = vrot.slane %v10184_v37, 5 }
 0x331   :  { %v656_v16 = vpop.permute.xlu0 %655 }
 0x332   :  { %8498 = vmatmul.mubr.msk.bf16.vlgmr.msra.gmra.mrb[0].mxu1 %vm222_vm10, %v656_v16 }
 0x333   :  { %8503 = vmatprep.mubr.msk.bf16.mxu1 %vm9829_vm0, %v13530_v1 }
 0x405   :  { %v700_v20 = vpop.f32.mrb[0].mxu1 }
 0x406   :  { %v8499_v25 = vpop.f32.mrb[1].mxu1  ;;  %v708_v26 = vrot.slane %v700_v20, 1  ;;  %v707_v27 = vrot.slane %v700_v20, 7  ;;  %v723_v35 = vadd.f32 %v700_v20, %v9983_v33  ;;  %v709_v36 = vrot.slane %v700_v20, 2 }
 0x407   :  { %v703_v21 = vpop.f32.mrb[2].mxu1  ;;  %v710_v40 = vrot.slane %v700_v20, 3  ;;  %v711_v44 = vrot.slane %v700_v20, 4  ;;  %v712_v54 = vrot.slane %v700_v20, 5  ;;  %v713_v56 = vrot.slane %v700_v20, 6 }
 0x408   :  { %v8500_v24 = vpop.f32.mrb[3].mxu1  ;;  %v724_v45 = vadd.f32 %v708_v26, %v9988_v38  ;;  %v722_v43 = vadd.f32 %v707_v27, %v9972_v18  ;;  %8724 = vtanh.f32 %v723_v35  ;;  %v725_v53 = vadd.f32 %v709_v36, %v9974_v22 }
 0x409   :  { %v726_v55 = vadd.f32 %v710_v40, %v9992_v42  ;;  %v727_v57 = vadd.f32 %v711_v44, %v9978_v28  ;;  %v728_v58 = vadd.f32 %v712_v54, %v9995_v46  ;;  %v729_v60 = vadd.f32 %v713_v56, %v9981_v32 }
 0x40a   :  { %8726 = vtanh.f32 %v724_v45  ;;  %v787_v20 = vrot.slane %v10184_v37, 7  ;;  %v788_v25 = vrot.slane %v10184_v37, 1  ;;  %v789_v21 = vrot.slane %v10184_v37, 2 }
 0x40b   :  { %8728 = vtanh.f32 %v722_v43  ;;  %v790_v24 = vrot.slane %v10184_v37, 3  ;;  %v793_v26 = vrot.slane %v10184_v37, 6  ;;  %v791_v27 = vrot.slane %v10184_v37, 4 }
 0x40c   :  { %8730 = vtanh.f32 %v725_v53  ;;  %v8280_v36 = vmul.f32 -1.442695, %v723_v35  ;;  %v8279_v40 = vmul.f32 -1.442695, %v722_v43  ;;  %v8282_v44 = vmul.f32 -1.442695, %v725_v53 }
 0x40d   :  { %8732 = vtanh.f32 %v726_v55  ;;  %v8281_v54 = vmul.f32 -1.442695, %v724_v45  ;;  %v8283_v56 = vmul.f32 -1.442695, %v726_v55  ;;  %v8286_v5 = vmul.f32 -1.442695, %v729_v60 }
 0x40e   :  { %8734 = vtanh.f32 %v727_v57 }
 0x40f   :  { %8736 = vtanh.f32 %v728_v58 }
 0x410   :  { %8738 = vtanh.f32 %v729_v60 }
 0x411   :  { %8740 = vpow2.f32 %v8280_v36 }
 0x412   :  { %v8725_v61 = vpop.eup %8724  ;;  %8742 = vpow2.f32 %v8279_v40 }
 0x413   :  { %836 = vrot.lane.b32.xlu0 %v8725_v61, %s9830_s5  ;;  %8744 = vpow2.f32 %v8282_v44  ;;  %v8285_v61 = vmul.f32 -1.442695, %v728_v58 }
 0x414   :  { %v8727_v62 = vpop.eup %8726  ;;  %8746 = vpow2.f32 %v8281_v54 }
 0x415   :  { %838 = vrot.lane.b32.xlu1 %v8727_v62, %s9830_s5  ;;  %v8729_v2 = vpop.eup %8728  ;;  %8748 = vpow2.f32 %v8283_v56  ;;  %v8284_v62 = vmul.f32 -1.442695, %v727_v57 }
 0x416   :  { %v8731_v7 = vpop.eup %8730  ;;  %8750 = vpow2.f32 %v8285_v61 }
 0x417   :  { %834 = vrot.lane.b32.xlu0 %v8729_v2, %s9830_s5  ;;  %v8733_v3 = vpop.eup %8732  ;;  %8752 = vpow2.f32 %v8284_v62 }
 0x418   :  { %v8735_v14 = vpop.eup %8734  ;;  %8754 = vpow2.f32 %v8286_v5 }
 0x419   :  { %840 = vrot.lane.b32.xlu1 %v8731_v7, %s9830_s5  ;;  %v8737_v39 = vpop.eup %8736 }
 0x41a   :  { %v8739_v16 = vpop.eup %8738 }
 0x41b   :  { %842 = vrot.lane.b32.xlu0 %v8733_v3, %s9830_s5  ;;  %v8741_v2 = vpop.eup %8740 }
 0x41c   :  { %v755_v7 = vadd.f32 1.0, %v8741_v2  ;;  %v8743_v9 = vpop.eup %8742 }
 0x41d   :  { %844 = vrot.lane.b32.xlu1 %v8735_v14, %s9830_s5  ;;  %v8745_v10 = vpop.eup %8744  ;;  %v754_v35 = vadd.f32 1.0, %v8743_v9 }
 0x41e   :  { %8756 = vrcp.f32 %v755_v7  ;;  %v8747_v43 = vpop.eup %8746  ;;  %v757_v53 = vadd.f32 1.0, %v8745_v10 }
 0x41f   :  { %846 = vrot.lane.b32.xlu0 %v8737_v39, %s9830_s5  ;;  %v8749_v3 = vpop.eup %8748  ;;  %v756_v45 = vadd.f32 1.0, %v8747_v43  ;;  %8758 = vrcp.f32 %v754_v35 }
 0x420   :  { %v8751_v55 = vpop.eup %8750  ;;  %8760 = vrcp.f32 %v757_v53  ;;  %v758_v58 = vadd.f32 1.0, %v8749_v3 }
 0x421   :  { %848 = vrot.lane.b32.xlu1 %v8739_v16, %s9830_s5  ;;  %v8753_v14 = vpop.eup %8752  ;;  %8762 = vrcp.f32 %v756_v45  ;;  %v760_v57 = vadd.f32 1.0, %v8751_v55 }
 0x422   :  { %v8755_v39 = vpop.eup %8754  ;;  %8764 = vrcp.f32 %v758_v58  ;;  %v759_v60 = vadd.f32 1.0, %v8753_v14 }
 0x423   :  { %794 = vrot.lane.b32.xlu0 %v787_v20, %s9831_s1  ;;  %8766 = vrcp.f32 %v760_v57 }
 0x424   :  { %8768 = vrcp.f32 %v759_v60 }
 0x425   :  { %798 = vrot.lane.b32.xlu1 %v788_v25, %s9831_s1 }
 0x427   :  { %796 = vrot.lane.b32.xlu0 %v10184_v37, %s9831_s1 }
 0x428   :  { %v10204_v16 = vpop.eup %8756 }
 0x429   :  { %800 = vrot.lane.b32.xlu1 %v789_v21, %s9831_s1 }
 0x42b   :  { %806 = vrot.lane.b32.xlu0 %v792_v63, %s9831_s1  ;;  %v761_v63 = vadd.f32 1.0, %v8755_v39 }
 0x42d   :  { %802 = vrot.lane.b32.xlu1 %v790_v24, %s9831_s1  ;;  %v10208_v24 = vpop.eup %8758  ;;  %8770 = vrcp.f32 %v761_v63 }
 0x42f   :  { %808 = vrot.lane.b32.xlu0 %v793_v26, %s9831_s1 }
 0x431   :  { %804 = vrot.lane.b32.xlu1 %v791_v27, %s9831_s1  ;;  %v10210_v27 = vpop.eup %8760 }
 0x432   :  { %v10215_v54 = vpop.eup %8762 }
 0x433   :  { %v10218_v61 = vpop.eup %8764 }
 0x434   :  { %v10223_v7 = vpop.eup %8766 }
 0x435   :  { %v10226_v10 = vpop.eup %8768 }
 0x437   :  { %v10232_v3 = vpop.eup %8770 }
 0x485   :  { %v837_v20 = vpop.permute.xlu0 %836 }
 0x486   :  { %v859_v25 = vmul.f32 %v10204_v16, %v837_v20 }
 0x487   :  { %v839_v21 = vpop.permute.xlu1 %838 }
 0x488   :  { %876 = vrot.lane.b32.xlu0 %v859_v25, %s9831_s1  ;;  %v860_v62 = vmul.f32 %v10215_v54, %v839_v21 }
 0x489   :  { %v835_v26 = vpop.permute.xlu0 %834 }
 0x48a   :  { %v858_v36 = vmul.f32 %v10208_v24, %v835_v26 }
 0x48b   :  { %v841_v40 = vpop.permute.xlu1 %840 }
 0x48c   :  { %v861_v44 = vmul.f32 %v10210_v27, %v841_v40  ;;  %874 = vrot.lane.b32.xlu0 %v858_v36, %s9831_s1 }
 0x48d   :  { %v843_v56 = vpop.permute.xlu0 %842 }
 0x48e   :  { %880 = vrot.lane.b32.xlu1 %v861_v44, %s9831_s1  ;;  %v862_v5 = vmul.f32 %v10218_v61, %v843_v56 }
 0x48f   :  { %v845_v2 = vpop.permute.xlu1 %844 }
 0x490   :  { %878 = vrot.lane.b32.xlu0 %v860_v62, %s9831_s1  ;;  %v863_v43 = vmul.f32 %v10226_v10, %v845_v2 }
 0x491   :  { %v847_v9 = vpop.permute.xlu0 %846 }
 0x492   :  { %882 = vrot.lane.b32.xlu1 %v862_v5, %s9831_s1  ;;  %v864_v35 = vmul.f32 %v10223_v7, %v847_v9 }
 0x493   :  { %v849_v53 = vpop.permute.xlu1 %848 }
 0x494   :  { %886 = vrot.lane.b32.xlu0 %v864_v35, %s9831_s1  ;;  %v865_v45 = vmul.f32 %v10232_v3, %v849_v53 }
 0x495   :  { %v795_v58 = vpop.permute.xlu0 %794 }
 0x496   :  { %884 = vrot.lane.b32.xlu1 %v863_v43, %s9831_s1  ;;  %v818_v30 = vmul.f32 %v10208_v24, %v795_v58 }
 0x497   :  { %v799_v55 = vpop.permute.xlu1 %798 }
 0x498   :  { %1022 = vperm.xlu0 %8622, %v10053_v52   ;;  %v820_v56 = vmul.f32 %v10215_v54, %v799_v55 }
 0x499   :  { %v797_v57 = vpop.permute.xlu0 %796 }
 0x49a   :  { %888 = vrot.lane.b32.xlu1 %v865_v45, %s9831_s1  ;;  %v819_v35 = vmul.f32 %v10204_v16, %v797_v57 }
 0x49b   :  { %v801_v14 = vpop.permute.xlu1 %800 }
 0x49c   :  { %v821_v2 = vmul.f32 %v10210_v27, %v801_v14 }
 0x49d   :  { %v807_v60 = vpop.permute.xlu0 %806 }
 0x49e   :  { %1047 = vrot.lane.b32.xlu1 %v10160_v13, %s9834_s3  ;;  %v824_v58 = vmul.f32 %v10223_v7, %v807_v60 }
 0x49f   :  { %v803_v39 = vpop.permute.xlu1 %802 }
 0x4a1   :  { %v809_v25 = vpop.permute.xlu0 %808 }
 0x4a2   :  { %955 = vperm.xlu1 %8623, %v10050_v51  }
 0x4a3   :  { %v805_v20 = vpop.permute.xlu1 %804 }
 0x4a4   :  { %v823_v14 = vmul.f32 %v10226_v10, %v805_v20 }
 0x4fa   :  { %v877_v63 = vpop.permute.xlu0 %876 }
 0x4fb   :  { %v899_v48 = vadd.f32 %v877_v63, %v819_v35 }
 0x4fe   :  { %v875_v36 = vpop.permute.xlu0 %874 }
 0x500   :  { %v881_v21 = vpop.permute.xlu1 %880 }
 0x501   :  { %v901_v9 = vadd.f32 %v881_v21, %v821_v2  ;;  %v898_v21 = vadd.f32 %v875_v36, %v818_v30  ;;  %v825_v36 = vmul.f32 %v10232_v3, %v809_v25 }
 0x502   :  { %v879_v44 = vpop.permute.xlu0 %878 }
 0x503   :  { %v900_v62 = vadd.f32 %v879_v44, %v820_v56  ;;  %v822_v56 = vmul.f32 %v10218_v61, %v803_v39 }
 0x504   :  { %v883_v26 = vpop.permute.xlu1 %882 }
 0x505   :  { %8772 = vtanh.f32 %v900_v62  ;;  %v902_v35 = vadd.f32 %v883_v26, %v822_v56  ;;  %v1101_v25 = vrot.slane %v900_v62, 7  ;;  %v1103_v56 = vrot.slane %v901_v9, 6 }
 0x506   :  { %v887_v5 = vpop.permute.xlu0 %886  ;;  %8774 = vtanh.f32 %v901_v9 }
 0x507   :  { %8776 = vtanh.f32 %v899_v48  ;;  %v904_v30 = vadd.f32 %v887_v5, %v824_v58 }
 0x508   :  { %v885_v40 = vpop.permute.xlu1 %884  ;;  %8778 = vtanh.f32 %v898_v21 }
 0x509   :  { %v903_v57 = vadd.f32 %v885_v40, %v823_v14 }
 0x50b   :  { %8780 = vtanh.f32 %v903_v57  ;;  %v1107_v58 = vrot.slane %v903_v57, 4 }
 0x50c   :  { %v889_v13 = vpop.permute.xlu1 %888  ;;  %8782 = vtanh.f32 %v902_v35 }
 0x50d   :  { %8784 = vtanh.f32 %v904_v30  ;;  %v905_v39 = vadd.f32 %v889_v13, %v825_v36 }
 0x50f   :  { %v8773_v2 = vpop.eup %8772  ;;  %8786 = vtanh.f32 %v905_v39 }
 0x510   :  { %v1048_v43 = vpop.permute.xlu1 %1047  ;;  %v8775_v20 = vpop.eup %8774 }
 0x511   :  { %v8777_v26 = vpop.eup %8776 }
 0x512   :  { %v8779_v40 = vpop.eup %8778 }
 0x515   :  { %v8781_v5 = vpop.eup %8780 }
 0x517   :  { %v10243_v53 = vpop.permute.xlu0 %1022 }
 0x518   :  { %13688 = vst [vmem:[#allocation28_spill] sm:$0xff] %v10243_v53  ;;  %v10246_v45 = vmul.f32 %v1048_v43, %v10243_v53  ;;  %v1099_v43 = vrot.slane %v898_v21, 1 }
 0x51a   :  { %v1054_v55 = vrot.slane %v10246_v45, 2  ;;  %v1052_v44 = vrot.slane %v10246_v45, 7  ;;  %v1053_v63 = vrot.slane %v10246_v45, 1  ;;  %v1056_v60 = vrot.slane %v10246_v45, 4 }
 0x51b   :  { %v1100_v13 = vsel %vm589_vm3, %v899_v48, %v1099_v43  ;;  %v1057_v36 = vrot.slane %v10246_v45, 5 }
 0x51c   :  { %1065 = vrot.lane.b32.xlu1 %v1054_v55, %s9836_s10  ;;  %1059 = vrot.lane.b32.xlu0 %v1052_v44, %s9836_s10  ;;  %v8783_v55 = vpop.eup %8782  ;;  %v1102_v14 = vsel %vm592_vm4, %v1101_v25, %v1100_v13 }
 0x51d   :  { %v8785_v44 = vpop.eup %8784  ;;  %v1104_v62 = vsel %vm595_vm5, %v1103_v56, %v1102_v14 }
 0x51e   :  { %v8787_v21 = vpop.eup %8786 }
 0x520   :  { %926 = vrot.lane.b32.xlu1 %v8773_v2, %s9832_s11  ;;  %1063 = vrot.lane.b32.xlu0 %v1053_v63, %s9836_s10  ;;  %v1105_v63 = vrot.slane %v902_v35, 5  ;;  %v1055_v2 = vrot.slane %v10246_v45, 3  ;;  %v8644_v35 = vld [vmem:[#allocation7] sm:$0xff]  }
 0x521   :  { %8502 = vmatpush3.bf16.msra.mxu1 %v8644_v35 }
 0x522   :  { %v1106_v48 = vsel %vm598_vm6, %v1105_v63, %v1104_v62  ;;  %8513 = vmatprep.subr.bf16.mxu1 %v13530_v1 }
 0x523   :  { %v1108_v9 = vsel %vm601_vm7, %v1107_v58, %v1106_v48 }
 0x524   :  { %928 = vrot.lane.b32.xlu1 %v8775_v20, %s9832_s11  ;;  %1061 = vrot.lane.b32.xlu0 %v10246_v45, %s9836_s10  ;;  %v1058_v20 = vrot.slane %v10246_v45, 6 }
 0x528   :  { %1069 = vrot.lane.b32.xlu1 %v1056_v60, %s9836_s10  ;;  %924 = vrot.lane.b32.xlu0 %v8777_v26, %s9832_s11  ;;  %v1111_v60 = vrot.slane %v905_v39, 2  ;;  %v1109_v26 = vrot.slane %v904_v30, 3 }
 0x52a   :  { %v1110_v57 = vsel %vm604_vm8, %v1109_v26, %v1108_v9 }
 0x52c   :  { %932 = vrot.lane.b32.xlu1 %v8781_v5, %s9832_s11  ;;  %922 = vrot.lane.b32.xlu0 %v8779_v40, %s9832_s11  ;;  %v1112_v40 = vsel %vm13676_vm9, %v1111_v60, %v1110_v57  ;;  %v10286_v5 = vpop.permute.xlu1 %955 }
 0x52d   :  { %13689 = vst [vmem:[#allocation29_spill] sm:$0xff] %v10286_v5  ;;  %v13528_v14 = vrot.slane %v10286_v5, 1  ;;  %v13527_v56 = vrot.slane %v10286_v5, 2  ;;  %v13526_v60 = vrot.slane %v10286_v5, 4  ;;  %v13525_v35 = vrot.slane %v10286_v5, 7 }
 0x530   :  { %934 = vrot.lane.b32.xlu1 %v8785_v44, %s9832_s11  ;;  %930 = vrot.lane.b32.xlu0 %v8783_v55, %s9832_s11 }
 0x534   :  { %936 = vrot.lane.b32.xlu1 %v8787_v21, %s9832_s11  ;;  %1067 = vrot.lane.b32.xlu0 %v1055_v2, %s9836_s10 }
 0x538   :  { %1073 = vrot.lane.b32.xlu1 %v1058_v20, %s9836_s10  ;;  %1071 = vrot.lane.b32.xlu0 %v1057_v36, %s9836_s10 }
 0x53c   :  { %1113 = vrot.lane.b32.xlu1 %v1112_v40, %s9833_s13 }
 0x58e   :  { %v1066_v45 = vpop.permute.xlu1 %1065  ;;  %v1060_v39 = vpop.permute.xlu0 %1059 }
 0x592   :  { %v927_v43 = vpop.permute.xlu1 %926  ;;  %v1064_v25 = vpop.permute.xlu0 %1063 }
 0x593   :  { %v948_v30 = vmul.f32 %v10215_v54, %v927_v43 }
 0x595   :  { %v10294_v63 = vmul.f32 %v13528_v14, %v948_v30 }
 0x596   :  { %v929_v55 = vpop.permute.xlu1 %928  ;;  %v1062_v44 = vpop.permute.xlu0 %1061 }
 0x597   :  { %v949_v13 = vmul.f32 %v10210_v27, %v929_v55  ;;  %13690 = vst [vmem:[#allocation30_spill] sm:$0xff] %v10294_v63  ;;  %v1085_v27 = vadd.f32 %v1064_v25, %v10294_v63  ;;  %v13524_v55 = vrot.slane %v10286_v5, 3 }
 0x599   :  { %v10298_v2 = vmul.f32 %v13527_v56, %v949_v13  ;;  %v1540_v47 = vrot.slane %v1085_v27, 7 }
 0x59a   :  { %v1070_v21 = vpop.permute.xlu1 %1069  ;;  %v925_v62 = vpop.permute.xlu0 %924 }
 0x59b   :  { %13691 = vst [vmem:[#allocation31_spill] sm:$0xff] %v10298_v2  ;;  %v947_v54 = vmul.f32 %v10204_v16, %v925_v62  ;;  %v1086_v48 = vadd.f32 %v1066_v45, %v10298_v2  ;;  %v1121_v45 = vpack.c.bf16 %v1085_v27, %v1085_v27  ;;  %v13523_v62 = vrot.slane %v10286_v5, 6 }
 0x59d   :  { %v10302_v58 = vmul.f32 %v10286_v5, %v947_v54  ;;  %v1122_v43 = vpack.c.bf16 %v1086_v48, %v1086_v48 }
 0x59e   :  { %v933_v20 = vpop.permute.xlu1 %932  ;;  %v923_v36 = vpop.permute.xlu0 %922 }
 0x59f   :  { %13692 = vst [vmem:[#allocation32_spill] sm:$0xff] %v10302_v58  ;;  %v951_v9 = vmul.f32 %v10226_v10, %v933_v20  ;;  %v946_v26 = vmul.f32 %v10208_v24, %v923_v36  ;;  %v1084_v57 = vadd.f32 %v1062_v44, %v10302_v58  ;;  %v1140_v34 = vunpack.c.l.b16 %v1122_v43 }
 0x5a1   :  { %v10313_v16 = vmul.f32 %v13526_v60, %v951_v9  ;;  %v10317_v40 = vmul.f32 %v13525_v35, %v946_v26  ;;  %v1120_v13 = vpack.c.bf16 %v1084_v57, %v1084_v57  ;;  %v13522_v9 = vrot.slane %v10286_v5, 5 }
 0x5a2   :  { %v935_v25 = vpop.permute.xlu1 %934  ;;  %v931_v30 = vpop.permute.xlu0 %930  ;;  %v1139_v26 = vunpack.c.l.b16 %v1121_v45 }
 0x5a3   :  { %13693 = vst [vmem:[#allocation33_spill] sm:$0xff] %v10313_v16  ;;  %13694 = vst [vmem:[#allocation34_spill] sm:$0xff] %v10317_v40  ;;  %v1083_v10 = vadd.f32 %v1060_v39, %v10317_v40  ;;  %v1088_v24 = vadd.f32 %v1070_v21, %v10313_v16  ;;  %v950_v44 = vmul.f32 %v10218_v61, %v931_v30  ;;  %v1542_v21 = vrot.slane %v1086_v48, 6 }
 0x5a4   :  { %v952_v36 = vmul.f32 %v10223_v7, %v935_v25 }
 0x5a5   :  { %v1119_v54 = vpack.c.bf16 %v1083_v10, %v1083_v10  ;;  %v1538_v20 = vrot.slane %v1083_v10, 1  ;;  %v10328_v39 = vmul.f32 %v13524_v55, %v950_v44  ;;  %v1138_v10 = vunpack.c.l.b16 %v1120_v13 }
 0x5a6   :  { %v937_v23 = vpop.permute.xlu1 %936  ;;  %v1068_v17 = vpop.permute.xlu0 %1067  ;;  %v1124_v4 = vpack.c.bf16 %v1088_v24, %v1088_v24  ;;  %v10341_v48 = vmul.f32 %v13522_v9, %v952_v36  ;;  %v1149_v44 = vrot.slane %v1140_v34, 6 }
 0x5a7   :  { %13695 = vst [vmem:[#allocation35_spill] sm:$0xff] %v10328_v39  ;;  %v1137_v11 = vunpack.c.l.b16 %v1119_v54  ;;  %v1539_v61 = vsel %vm589_vm3, %v1084_v57, %v1538_v20  ;;  %v953_v30 = vmul.f32 %v10232_v3, %v937_v23  ;;  %v1087_v45 = vadd.f32 %v1068_v17, %v10328_v39 }
 0x5a8   :  { %v1541_v7 = vsel %vm592_vm4, %v1540_v47, %v1539_v61  ;;  %13697 = vst [vmem:[#allocation37_spill] sm:$0xff] %v10341_v48  ;;  %v1147_v57 = vrot.slane %v1139_v26, 7  ;;  %v1546_v47 = vrot.slane %v1088_v24, 4 }
 0x5a9   :  { %v1145_v27 = vrot.slane %v1137_v11, 1  ;;  %v1543_v43 = vsel %vm595_vm5, %v1542_v21, %v1541_v7  ;;  %v10337_v25 = vmul.f32 %v13523_v62, %v953_v30  ;;  %v1123_v23 = vpack.c.bf16 %v1087_v45, %v1087_v45 }
 0x5aa   :  { %v1544_v3 = vrot.slane %v1087_v45, 5  ;;  %v1074_v13 = vpop.permute.xlu1 %1073  ;;  %v1072_v54 = vpop.permute.xlu0 %1071  ;;  %v1142_v21 = vunpack.c.l.b16 %v1124_v4 }
 0x5ab   :  { %13696 = vst [vmem:[#allocation36_spill] sm:$0xff] %v10337_v25  ;;  %v1146_v17 = vsel %vm589_vm3, %v1138_v10, %v1145_v27  ;;  %v1090_v11 = vadd.f32 %v1074_v13, %v10337_v25  ;;  %v1089_v20 = vadd.f32 %v1072_v54, %v10341_v48  ;;  %v1141_v30 = vunpack.c.l.b16 %v1123_v23 }
 0x5ac   :  { %v1148_v61 = vsel %vm592_vm4, %v1147_v57, %v1146_v17  ;;  %v1545_v36 = vsel %vm598_vm6, %v1544_v3, %v1543_v43  ;;  %v1153_v13 = vrot.slane %v1142_v21, 4 }
 0x5ad   :  { %v1150_v26 = vsel %vm595_vm5, %v1149_v44, %v1148_v61  ;;  %v1126_v34 = vpack.c.bf16 %v1090_v11, %v1090_v11  ;;  %v1125_v7 = vpack.c.bf16 %v1089_v20, %v1089_v20  ;;  %v1151_v45 = vrot.slane %v1141_v30, 5 }
 0x5ae   :  { %v1550_v9 = vrot.slane %v1090_v11, 2  ;;  %v1548_v62 = vrot.slane %v1089_v20, 3  ;;  %v1547_v24 = vsel %vm601_vm7, %v1546_v47, %v1545_v36 }
 0x5af   :  { %v1144_v10 = vunpack.c.l.b16 %v1126_v34  ;;  %v1143_v27 = vunpack.c.l.b16 %v1125_v7  ;;  %v1152_v54 = vsel %vm598_vm6, %v1151_v45, %v1150_v26 }
 0x5b0   :  { %v1549_v4 = vsel %vm604_vm8, %v1548_v62, %v1547_v24  ;;  %v1154_v43 = vsel %vm601_vm7, %v1153_v13, %v1152_v54 }
 0x5b1   :  { %v1157_v57 = vrot.slane %v1144_v10, 2  ;;  %v1155_v23 = vrot.slane %v1143_v27, 3  ;;  %v10354_v44 = vsel %vm13676_vm9, %v1550_v9, %v1549_v4 }
 0x5b3   :  { %v1156_v3 = vsel %vm604_vm8, %v1155_v23, %v1154_v43 }
 0x5b4   :  { %v1158_v17 = vsel %vm13676_vm9, %v1157_v57, %v1156_v3 }
 0x5b5   :  { %v1159_v11 = vpack.c.b16 %v1158_v17, %v1158_v17 }
 0x5b7   :  { %1160 = vrot.lane.b32.xlu0 %v1159_v11, %s9834_s3  ;;  %v1114_v11 = vpop.permute.xlu1 %1113 }
 0x629   :  { %v1161_v47 = vpop.permute.xlu0 %1160 }
 0x62a   :  { %8504 = vmatmul.mubr.msk.bf16.vlgmr.msra.gmra.mrb[4].mxu1 %vm222_vm10, %v1161_v47 }
 0x62b   :  { %8515 = vmatprep.mubr.msk.bf16.mxu1 %vm9829_vm0, %v13530_v1 }
 0x6fd   :  { %v1205_v62 = vpop.f32.mrb[4].mxu1 }
 0x6fe   :  { %v1212_v20 = vrot.slane %v1205_v62, 6  ;;  %v8505_v21 = vpop.f32.mrb[5].mxu1  ;;  %v1214_v36 = vrot.slane %v1205_v62, 1  ;;  %v1213_v26 = vrot.slane %v1205_v62, 7  ;;  %v1229_v34 = vadd.f32 %v1205_v62, %v9988_v38 }
 0x6ff   :  { %v1208_v61 = vpop.f32.mrb[6].mxu1  ;;  %v1215_v7 = vrot.slane %v1205_v62, 2  ;;  %v1216_v10 = vrot.slane %v1205_v62, 3  ;;  %v1217_v13 = vrot.slane %v1205_v62, 4  ;;  %v1218_v4 = vrot.slane %v1205_v62, 5 }
 0x700   :  { %v1227_v9 = vadd.f32 %v1212_v20, %v9972_v18  ;;  %v8506_v30 = vpop.f32.mrb[7].mxu1  ;;  %v1230_v45 = vadd.f32 %v1214_v36, %v9974_v22  ;;  %v1228_v27 = vadd.f32 %v1213_v26, %v9983_v33  ;;  %v1116_v62 = vmul.f32 %v1114_v11, %v10286_v5 }
 0x701   :  { %v1231_v54 = vadd.f32 %v1215_v7, %v9992_v42  ;;  %v1232_v57 = vadd.f32 %v1216_v10, %v9978_v28  ;;  %v1233_v23 = vadd.f32 %v1217_v13, %v9995_v46  ;;  %v1234_v43 = vadd.f32 %v1218_v4, %v9981_v32 }
 0x702   :  { %8788 = vtanh.f32 %v1227_v9  ;;  %v9837_v21 = vmov 2   ;;  %v1117_v61 = vmul.f32 %v10243_v53, %v10184_v37  ;;  %v8289_v11 = vmul.f32 -1.442695, %v1227_v9 }
 0x703   :  { %8790 = vtanh.f32 %v1229_v34  ;;  %8624 = vset.pattern.permute.xlu0 %v9837_v21  ;;  %8625 = vset.pattern.permute.xlu1 %v9837_v21  ;;  %v8293_v21 = vmul.f32 -1.442695, %v1231_v54 }
 0x704   :  { %8792 = vtanh.f32 %v1230_v45  ;;  %v10378_v36 = vadd.f32 %v1117_v61, %v1116_v62 }
 0x705   :  { %8794 = vtanh.f32 %v1228_v27 }
 0x706   :  { %8796 = vtanh.f32 %v1231_v54  ;;  %v1293_v37 = vrot.slane %v10378_v36, 7  ;;  %v1294_v10 = vrot.slane %v10378_v36, 1  ;;  %v1295_v13 = vrot.slane %v10378_v36, 2 }
 0x707   :  { %8798 = vtanh.f32 %v1232_v57  ;;  %v1296_v4 = vrot.slane %v10378_v36, 3 }
 0x708   :  { %8800 = vtanh.f32 %v1233_v23 }
 0x709   :  { %8802 = vtanh.f32 %v1234_v43 }
 0x70a   :  { %8804 = vpow2.f32 %v8289_v11 }
 0x70c   :  { %v8789_v24 = vpop.eup %8788 }
 0x70d   :  { %1339 = vrot.lane.b32.xlu0 %v8789_v24, %s9830_s5  ;;  %v8791_v3 = vpop.eup %8790  ;;  %v1292_v24 = vrot.slane %v10378_v36, 6 }
 0x70e   :  { %v8793_v17 = vpop.eup %8792  ;;  %1343 = vrot.lane.b32.xlu1 %v8791_v3, %s9830_s5  ;;  %v1298_v3 = vrot.slane %v10378_v36, 5 }
 0x70f   :  { %v8795_v47 = vpop.eup %8794 }
 0x710   :  { %v8797_v20 = vpop.eup %8796 }
 0x711   :  { %1345 = vrot.lane.b32.xlu0 %v8793_v17, %s9830_s5  ;;  %v8799_v30 = vpop.eup %8798  ;;  %v1297_v17 = vrot.slane %v10378_v36, 4 }
 0x712   :  { %1341 = vrot.lane.b32.xlu1 %v8795_v47, %s9830_s5  ;;  %v8801_v26 = vpop.eup %8800  ;;  %v8291_v47 = vmul.f32 -1.442695, %v1229_v34 }
 0x713   :  { %v8803_v7 = vpop.eup %8802 }
 0x714   :  { %v8805_v62 = vpop.eup %8804  ;;  %8806 = vpow2.f32 %v8291_v47 }
 0x715   :  { %1347 = vrot.lane.b32.xlu0 %v8797_v20, %s9830_s5  ;;  %v8290_v20 = vmul.f32 -1.442695, %v1228_v27  ;;  %v1259_v61 = vadd.f32 1.0, %v8805_v62 }
 0x716   :  { %1349 = vrot.lane.b32.xlu1 %v8799_v30, %s9830_s5  ;;  %v8292_v30 = vmul.f32 -1.442695, %v1230_v45 }
 0x717   :  { %8808 = vpow2.f32 %v8290_v20 }
 0x718   :  { %8810 = vpow2.f32 %v8293_v21 }
 0x719   :  { %1351 = vrot.lane.b32.xlu0 %v8801_v26, %s9830_s5  ;;  %v8294_v26 = vmul.f32 -1.442695, %v1232_v57  ;;  %8812 = vrcp.f32 %v1259_v61 }
 0x71a   :  { %1353 = vrot.lane.b32.xlu1 %v8803_v7, %s9830_s5  ;;  %v8295_v7 = vmul.f32 -1.442695, %v1233_v23  ;;  %8814 = vpow2.f32 %v8292_v30 }
 0x71b   :  { %8816 = vpow2.f32 %v8294_v26 }
 0x71c   :  { %8818 = vpow2.f32 %v8295_v7 }
 0x71d   :  { %1299 = vrot.lane.b32.xlu0 %v1292_v24, %s9831_s1  ;;  %v8296_v24 = vmul.f32 -1.442695, %v1234_v43 }
 0x71e   :  { %1301 = vrot.lane.b32.xlu1 %v1293_v37, %s9831_s1  ;;  %v8807_v37 = vpop.eup %8806 }
 0x71f   :  { %8820 = vpow2.f32 %v8296_v24  ;;  %v1261_v9 = vadd.f32 1.0, %v8807_v37 }
 0x721   :  { %1305 = vrot.lane.b32.xlu0 %v1294_v10, %s9831_s1  ;;  %v8809_v10 = vpop.eup %8808  ;;  %8822 = vrcp.f32 %v1261_v9 }
 0x722   :  { %1303 = vrot.lane.b32.xlu1 %v10378_v36, %s9831_s1  ;;  %v8811_v34 = vpop.eup %8810  ;;  %v1260_v54 = vadd.f32 1.0, %v8809_v10 }
 0x723   :  { %v1263_v57 = vadd.f32 1.0, %v8811_v34 }
 0x724   :  { %8824 = vrcp.f32 %v1260_v54 }
 0x725   :  { %1307 = vrot.lane.b32.xlu0 %v1295_v13, %s9831_s1  ;;  %v10399_v13 = vpop.eup %8812  ;;  %8826 = vrcp.f32 %v1263_v57 }
 0x726   :  { %1309 = vrot.lane.b32.xlu1 %v1296_v4, %s9831_s1  ;;  %v8815_v4 = vpop.eup %8814 }
 0x727   :  { %v8817_v23 = vpop.eup %8816  ;;  %v1262_v43 = vadd.f32 1.0, %v8815_v4 }
 0x729   :  { %1313 = vrot.lane.b32.xlu0 %v1298_v3, %s9831_s1  ;;  %v8819_v3 = vpop.eup %8818  ;;  %8828 = vrcp.f32 %v1262_v43 }
 0x72a   :  { %1311 = vrot.lane.b32.xlu1 %v1297_v17, %s9831_s1  ;;  %v1264_v17 = vadd.f32 1.0, %v8817_v23  ;;  %v8821_v11 = vpop.eup %8820  ;;  %v1265_v47 = vadd.f32 1.0, %v8819_v3 }
 0x72b   :  { %v1266_v62 = vadd.f32 1.0, %v8821_v11  ;;  %v10403_v20 = vpop.eup %8822 }
 0x72c   :  { %8830 = vrcp.f32 %v1264_v17 }
 0x72d   :  { %8832 = vrcp.f32 %v1265_v47 }
 0x72e   :  { %8834 = vrcp.f32 %v1266_v62  ;;  %v10407_v26 = vpop.eup %8824 }
 0x72f   :  { %v10409_v24 = vpop.eup %8826 }
 0x733   :  { %v10414_v34 = vpop.eup %8828 }
 0x736   :  { %v10417_v54 = vpop.eup %8830 }
 0x737   :  { %v10420_v57 = vpop.eup %8832 }
 0x738   :  { %v10426_v17 = vpop.eup %8834 }
 0x77f   :  { %v1340_v27 = vpop.permute.xlu0 %1339 }
 0x780   :  { %v1363_v45 = vmul.f32 %v10399_v13, %v1340_v27  ;;  %v1344_v21 = vpop.permute.xlu1 %1343 }
 0x781   :  { %v1365_v61 = vmul.f32 %v10403_v20, %v1344_v21 }
 0x782   :  { %1379 = vrot.lane.b32.xlu1 %v1363_v45, %s9831_s1 }
 0x783   :  { %v1346_v30 = vpop.permute.xlu0 %1345  ;;  %1383 = vrot.lane.b32.xlu0 %v1365_v61, %s9831_s1 }
 0x784   :  { %v1342_v7 = vpop.permute.xlu1 %1341  ;;  %v1366_v4 = vmul.f32 %v10414_v34, %v1346_v30 }
 0x785   :  { %v1364_v37 = vmul.f32 %v10407_v26, %v1342_v7 }
 0x787   :  { %v1348_v9 = vpop.permute.xlu0 %1347  ;;  %1381 = vrot.lane.b32.xlu0 %v1364_v37, %s9831_s1 }
 0x788   :  { %v1367_v10 = vmul.f32 %v10409_v24, %v1348_v9  ;;  %v1350_v27 = vpop.permute.xlu1 %1349 }
 0x789   :  { %v1368_v23 = vmul.f32 %v10417_v54, %v1350_v27 }
 0x78a   :  { %1387 = vrot.lane.b32.xlu1 %v1367_v10, %s9831_s1 }
 0x78b   :  { %v1352_v45 = vpop.permute.xlu0 %1351  ;;  %1385 = vrot.lane.b32.xlu0 %v1366_v4, %s9831_s1 }
 0x78c   :  { %v1369_v3 = vmul.f32 %v10420_v57, %v1352_v45  ;;  %v1354_v43 = vpop.permute.xlu1 %1353 }
 0x78d   :  { %v1370_v11 = vmul.f32 %v10426_v17, %v1354_v43 }
 0x78e   :  { %1389 = vrot.lane.b32.xlu1 %v1368_v23, %s9831_s1 }
 0x78f   :  { %1391 = vrot.lane.b32.xlu0 %v1369_v3, %s9831_s1  ;;  %v1300_v62 = vpop.permute.xlu0 %1299 }
 0x790   :  { %v1302_v47 = vpop.permute.xlu1 %1301 }
 0x791   :  { %v1324_v1 = vmul.f32 %v10407_v26, %v1302_v47 }
 0x792   :  { %1393 = vrot.lane.b32.xlu1 %v1370_v11, %s9831_s1 }
 0x793   :  { %1527 = vperm.xlu0 %8624, %v10053_v52   ;;  %v1306_v61 = vpop.permute.xlu0 %1305 }
 0x794   :  { %v1304_v21 = vpop.permute.xlu1 %1303  ;;  %v1326_v25 = vmul.f32 %v10414_v34, %v1306_v61 }
 0x795   :  { %v1325_v55 = vmul.f32 %v10403_v20, %v1304_v21 }
 0x796   :  { %1552 = vrot.lane.b32.xlu1 %v10354_v44, %s9834_s3  ;;  %v1323_v44 = vmul.f32 %v10399_v13, %v1300_v62 }
 0x797   :  { %v1308_v7 = vpop.permute.xlu0 %1307 }
 0x798   :  { %v1310_v30 = vpop.permute.xlu1 %1309 }
 0x799   :  { %v1328_v47 = vmul.f32 %v10417_v54, %v1310_v30 }
 0x79a   :  { %1460 = vperm.xlu1 %8625, %v10050_v51  }
 0x79b   :  { %v1314_v9 = vpop.permute.xlu0 %1313 }
 0x79c   :  { %v1312_v37 = vpop.permute.xlu1 %1311  ;;  %v1330_v61 = vmul.f32 %v10426_v17, %v1314_v9 }
 0x7f4   :  { %v1380_v10 = vpop.permute.xlu1 %1379 }
 0x7f5   :  { %v1384_v27 = vpop.permute.xlu0 %1383  ;;  %v1403_v56 = vadd.f32 %v1380_v10, %v1323_v44 }
 0x7f6   :  { %v1405_v0 = vadd.f32 %v1384_v27, %v1325_v55 }
 0x7f7   :  { %8836 = vtanh.f32 %v1403_v56  ;;  %v1604_v9 = vrot.slane %v1403_v56, 2 }
 0x7f8   :  { %8838 = vtanh.f32 %v1405_v0 }
 0x7f9   :  { %v1382_v45 = vpop.permute.xlu0 %1381 }
 0x7fa   :  { %v1404_v62 = vadd.f32 %v1382_v45, %v1324_v1 }
 0x7fc   :  { %v1388_v4 = vpop.permute.xlu1 %1387  ;;  %8840 = vtanh.f32 %v1404_v62 }
 0x7fd   :  { %v1386_v3 = vpop.permute.xlu0 %1385 }
 0x7fe   :  { %v1406_v21 = vadd.f32 %v1386_v3, %v1326_v25 }
 0x800   :  { %v1390_v23 = vpop.permute.xlu1 %1389  ;;  %8842 = vtanh.f32 %v1406_v21  ;;  %v1608_v44 = vrot.slane %v1406_v21, 7 }
 0x801   :  { %v1392_v11 = vpop.permute.xlu0 %1391  ;;  %v1408_v1 = vadd.f32 %v1390_v23, %v1328_v47  ;;  %v8837_v27 = vpop.eup %8836  ;;  %v1605_v23 = vrot.slane %v1404_v62, 1 }
 0x804   :  { %v1394_v43 = vpop.permute.xlu1 %1393 }
 0x805   :  { %v1410_v30 = vadd.f32 %v1394_v43, %v1330_v61  ;;  %v1606_v43 = vsel %vm589_vm3, %v1605_v23, %v1604_v9 }
 0x808   :  { %v1553_v35 = vpop.permute.xlu1 %1552 }
 0x812   :  { %v10437_v60 = vpop.permute.xlu0 %1527 }
 0x813   :  { %13698 = vst [vmem:[#allocation38_spill] sm:$0xff] %v10437_v60  ;;  %v10440_v14 = vmul.f32 %v1553_v35, %v10437_v60  ;;  %v1327_v35 = vmul.f32 %v10409_v24, %v1308_v7 }
 0x815   :  { %v1558_v50 = vrot.slane %v10440_v14, 7  ;;  %v1557_v49 = vrot.slane %v10440_v14, 6  ;;  %v1559_v55 = vrot.slane %v10440_v14, 1  ;;  %v1407_v10 = vadd.f32 %v1388_v4, %v1327_v35  ;;  %v8839_v4 = vpop.eup %8838 }
 0x816   :  { %v1560_v25 = vrot.slane %v10440_v14, 2  ;;  %v1563_v21 = vrot.slane %v10440_v14, 5  ;;  %v1562_v61 = vrot.slane %v10440_v14, 4 }
 0x817   :  { %1566 = vrot.lane.b32.xlu1 %v1558_v50, %s9836_s10  ;;  %1564 = vrot.lane.b32.xlu0 %v1557_v49, %s9836_s10  ;;  %v1329_v50 = vmul.f32 %v10420_v57, %v1312_v37  ;;  %v1561_v49 = vrot.slane %v10440_v14, 3  ;;  %8844 = vtanh.f32 %v1407_v10  ;;  %v8841_v37 = vpop.eup %8840  ;;  %v1610_v47 = vrot.slane %v1407_v10, 6 }
 0x818   :  { %8846 = vtanh.f32 %v1408_v1  ;;  %v8843_v45 = vpop.eup %8842 }
 0x819   :  { %v1409_v7 = vadd.f32 %v1392_v11, %v1329_v50 }
 0x81b   :  { %1568 = vrot.lane.b32.xlu1 %v10440_v14, %s9836_s10  ;;  %1570 = vrot.lane.b32.xlu0 %v1559_v55, %s9836_s10  ;;  %8848 = vtanh.f32 %v1409_v7  ;;  %v1607_v55 = vsel %vm592_vm4, %v1405_v0, %v1606_v43  ;;  %v8645_v0 = vld [vmem:[#allocation7] sm:$0xff]  }
 0x81c   :  { %8850 = vtanh.f32 %v1410_v30  ;;  %v1609_v62 = vsel %vm595_vm5, %v1608_v44, %v1607_v55  ;;  %8508 = vmatpush3.bf16.msra.mxu0 %v8645_v0 }
 0x81d   :  { %v1611_v56 = vsel %vm598_vm6, %v1610_v47, %v1609_v62 }
 0x81f   :  { %1574 = vrot.lane.b32.xlu1 %v1561_v49, %s9836_s10  ;;  %1572 = vrot.lane.b32.xlu0 %v1560_v25, %s9836_s10  ;;  %v1612_v49 = vrot.slane %v1408_v1, 5  ;;  %v1614_v25 = vrot.slane %v1409_v7, 4  ;;  %v13699_v7 = vmov 0.0  }
 0x820   :  { %8519 = vmatprep.subr.bf16.mxu0 %v13699_v7 }
 0x821   :  { %v8845_v3 = vpop.eup %8844 }
 0x822   :  { %v8847_v11 = vpop.eup %8846 }
 0x823   :  { %1431 = vrot.lane.b32.xlu1 %v8839_v4, %s9832_s11  ;;  %1427 = vrot.lane.b32.xlu0 %v8837_v27, %s9832_s11  ;;  %v1616_v27 = vrot.slane %v1410_v30, 3  ;;  %v1613_v4 = vsel %vm601_vm7, %v1612_v49, %v1611_v56 }
 0x824   :  { %v1615_v10 = vsel %vm604_vm8, %v1614_v25, %v1613_v4 }
 0x825   :  { %v8849_v35 = vpop.eup %8848  ;;  %v1617_v1 = vsel %vm13676_vm9, %v1616_v27, %v1615_v10 }
 0x826   :  { %v8851_v50 = vpop.eup %8850 }
 0x827   :  { %1429 = vrot.lane.b32.xlu1 %v8841_v37, %s9832_s11  ;;  %1433 = vrot.lane.b32.xlu0 %v8843_v45, %s9832_s11  ;;  %v10481_v37 = vpop.permute.xlu1 %1460 }
 0x828   :  { %13700 = vst [vmem:[#allocation39_spill] sm:$0xff] %v10481_v37  ;;  %v13537_v25 = vrot.slane %v10481_v37, 7  ;;  %v13539_v10 = vrot.slane %v10481_v37, 3 }
 0x82b   :  { %1437 = vrot.lane.b32.xlu1 %v8847_v11, %s9832_s11  ;;  %1435 = vrot.lane.b32.xlu0 %v8845_v3, %s9832_s11 }
 0x82f   :  { %1441 = vrot.lane.b32.xlu1 %v8851_v50, %s9832_s11  ;;  %1439 = vrot.lane.b32.xlu0 %v8849_v35, %s9832_s11  ;;  %v13538_v35 = vrot.slane %v10481_v37, 6 }
 0x833   :  { %1578 = vrot.lane.b32.xlu1 %v1563_v21, %s9836_s10  ;;  %1576 = vrot.lane.b32.xlu0 %v1562_v61, %s9836_s10 }
 0x837   :  { %1618 = vrot.lane.b32.xlu1 %v1617_v1, %s9833_s13 }
 0x889   :  { %v1565_v14 = vpop.permute.xlu0 %1564  ;;  %v1567_v30 = vpop.permute.xlu1 %1566 }
 0x88d   :  { %v1571_v45 = vpop.permute.xlu0 %1570  ;;  %v1569_v23 = vpop.permute.xlu1 %1568 }
 0x891   :  { %v1573_v9 = vpop.permute.xlu0 %1572  ;;  %v1575_v3 = vpop.permute.xlu1 %1574 }
 0x895   :  { %v1432_v11 = vpop.permute.xlu1 %1431  ;;  %v1428_v43 = vpop.permute.xlu0 %1427 }
 0x896   :  { %v1453_v44 = vmul.f32 %v10403_v20, %v1432_v11  ;;  %v1451_v55 = vmul.f32 %v10399_v13, %v1428_v43  ;;  %v13536_v13 = vrot.slane %v10481_v37, 1 }
 0x898   :  { %v10487_v47 = vmul.f32 %v10481_v37, %v1453_v44  ;;  %v10491_v50 = vmul.f32 %v13538_v35, %v1451_v55 }
 0x899   :  { %v1430_v62 = vpop.permute.xlu1 %1429  ;;  %v1434_v49 = vpop.permute.xlu0 %1433 }
 0x89a   :  { %13701 = vst [vmem:[#allocation40_spill] sm:$0xff] %v10487_v47  ;;  %13702 = vst [vmem:[#allocation41_spill] sm:$0xff] %v10491_v50  ;;  %v1588_v56 = vadd.f32 %v1565_v14, %v10491_v50  ;;  %v1452_v21 = vmul.f32 %v10407_v26, %v1430_v62  ;;  %v1454_v20 = vmul.f32 %v10414_v34, %v1434_v49  ;;  %v13540_v26 = vrot.slane %v10481_v37, 2 }
 0x89b   :  { %v1590_v61 = vadd.f32 %v1569_v23, %v10487_v47 }
 0x89c   :  { %v1624_v27 = vpack.c.bf16 %v1588_v56, %v1588_v56  ;;  %v10501_v4 = vmul.f32 %v13537_v25, %v1452_v21  ;;  %v10505_v0 = vmul.f32 %v13536_v13, %v1454_v20  ;;  %v2043_v21 = vrot.slane %v1588_v56, 2 }
 0x89d   :  { %v1438_v1 = vpop.permute.xlu1 %1437  ;;  %v1436_v14 = vpop.permute.xlu0 %1435  ;;  %v1626_v44 = vpack.c.bf16 %v1590_v61, %v1590_v61 }
 0x89e   :  { %13703 = vst [vmem:[#allocation42_spill] sm:$0xff] %v10501_v4  ;;  %13704 = vst [vmem:[#allocation43_spill] sm:$0xff] %v10505_v0  ;;  %v1642_v34 = vunpack.c.l.b16 %v1624_v27  ;;  %v1589_v23 = vadd.f32 %v1567_v30, %v10501_v4  ;;  %v1456_v11 = vmul.f32 %v10417_v54, %v1438_v1  ;;  %v1591_v55 = vadd.f32 %v1571_v45, %v10505_v0 }
 0x89f   :  { %v1455_v62 = vmul.f32 %v10409_v24, %v1436_v14  ;;  %v1644_v31 = vunpack.c.l.b16 %v1626_v44 }
 0x8a0   :  { %v1625_v20 = vpack.c.bf16 %v1589_v23, %v1589_v23  ;;  %v2044_v13 = vrot.slane %v1589_v23, 1  ;;  %v10517_v25 = vmul.f32 %v13539_v10, %v1456_v11  ;;  %v1650_v27 = vrot.slane %v1642_v34, 2 }
 0x8a1   :  { %v1627_v30 = vpack.c.bf16 %v1591_v55, %v1591_v55  ;;  %v2047_v35 = vrot.slane %v1591_v55, 7  ;;  %v10521_v54 = vmul.f32 %v13540_v26, %v1455_v62  ;;  %v1442_v1 = vpop.permute.xlu1 %1441  ;;  %v1440_v45 = vpop.permute.xlu0 %1439 }
 0x8a2   :  { %13705 = vst [vmem:[#allocation44_spill] sm:$0xff] %v10517_v25  ;;  %v1643_v43 = vunpack.c.l.b16 %v1625_v20  ;;  %v2045_v24 = vsel %vm589_vm3, %v2044_v13, %v2043_v21  ;;  %v1593_v56 = vadd.f32 %v1575_v3, %v10517_v25  ;;  %v1458_v14 = vmul.f32 %v10426_v17, %v1442_v1 }
 0x8a3   :  { %13706 = vst [vmem:[#allocation45_spill] sm:$0xff] %v10521_v54  ;;  %v2046_v23 = vsel %vm592_vm4, %v1590_v61, %v2045_v24  ;;  %v1645_v11 = vunpack.c.l.b16 %v1627_v30  ;;  %v1592_v34 = vadd.f32 %v1573_v9, %v10521_v54  ;;  %v1457_v55 = vmul.f32 %v10420_v57, %v1440_v45 }
 0x8a4   :  { %v1651_v10 = vrot.slane %v1643_v43, 1  ;;  %v2048_v62 = vsel %vm595_vm5, %v2047_v35, %v2046_v23  ;;  %v1629_v26 = vpack.c.bf16 %v1593_v56, %v1593_v56  ;;  %v2051_v49 = vrot.slane %v1593_v56, 5 }
 0x8a5   :  { %v1628_v20 = vpack.c.bf16 %v1592_v34, %v1592_v34  ;;  %v2049_v48 = vrot.slane %v1592_v34, 6  ;;  %v13707_v13 = vrot.slane %v10481_v37, 5  ;;  %v1579_v17 = vpop.permute.xlu1 %1578  ;;  %v1577_v21 = vpop.permute.xlu0 %1576  ;;  %v1654_v30 = vrot.slane %v1645_v11, 7 }
 0x8a6   :  { %v1652_v61 = vsel %vm589_vm3, %v1651_v10, %v1650_v27  ;;  %v1647_v9 = vunpack.c.l.b16 %v1629_v26  ;;  %v13709_v57 = vrot.slane %v10481_v37, 4 }
 0x8a7   :  { %v10532_v3 = vmul.f32 %v13707_v13, %v1458_v14  ;;  %v1653_v35 = vsel %vm592_vm4, %v1644_v31, %v1652_v61  ;;  %v1646_v1 = vunpack.c.l.b16 %v1628_v20  ;;  %v2050_v45 = vsel %vm598_vm6, %v2049_v48, %v2048_v62 }
 0x8a8   :  { %v10537_v43 = vmul.f32 %v13709_v57, %v1457_v55  ;;  %v2052_v56 = vsel %vm601_vm7, %v2051_v49, %v2050_v45  ;;  %v1655_v14 = vsel %vm595_vm5, %v1654_v30, %v1653_v35  ;;  %v1658_v34 = vrot.slane %v1647_v9, 5 }
 0x8a9   :  { %13708 = vst [vmem:[#allocation46_spill] sm:$0xff] %v10532_v3  ;;  %v1595_v44 = vadd.f32 %v1579_v17, %v10532_v3  ;;  %v1656_v10 = vrot.slane %v1646_v1, 6 }
 0x8aa   :  { %13710 = vst [vmem:[#allocation47_spill] sm:$0xff] %v10537_v43  ;;  %v1594_v24 = vadd.f32 %v1577_v21, %v10537_v43 }
 0x8ab   :  { %v1631_v27 = vpack.c.bf16 %v1595_v44, %v1595_v44  ;;  %v2055_v26 = vrot.slane %v1595_v44, 3  ;;  %v1657_v31 = vsel %vm598_vm6, %v1656_v10, %v1655_v14 }
 0x8ac   :  { %v1630_v23 = vpack.c.bf16 %v1594_v24, %v1594_v24  ;;  %v2053_v11 = vrot.slane %v1594_v24, 4  ;;  %v1659_v49 = vsel %vm601_vm7, %v1658_v34, %v1657_v31 }
 0x8ad   :  { %v1649_v55 = vunpack.c.l.b16 %v1631_v27 }
 0x8ae   :  { %v1648_v20 = vunpack.c.l.b16 %v1630_v23  ;;  %v2054_v13 = vsel %vm604_vm8, %v2053_v11, %v2052_v56 }
 0x8af   :  { %v1662_v17 = vrot.slane %v1649_v55, 3  ;;  %v10548_v48 = vsel %vm13676_vm9, %v2055_v26, %v2054_v13 }
 0x8b0   :  { %v1660_v62 = vrot.slane %v1648_v20, 4 }
 0x8b2   :  { %v1661_v21 = vsel %vm604_vm8, %v1660_v62, %v1659_v49 }
 0x8b3   :  { %v1663_v61 = vsel %vm13676_vm9, %v1662_v17, %v1661_v21 }
 0x8b4   :  { %v1664_v30 = vpack.c.b16 %v1663_v61, %v1663_v61  ;;  %v1619_v61 = vpop.permute.xlu1 %1618 }
 0x8b6   :  { %1665 = vrot.lane.b32.xlu0 %v1664_v30, %s9834_s3 }
 0x928   :  { %v1666_v9 = vpop.permute.xlu0 %1665 }
 0x929   :  { %8510 = vmatmul.mubr.msk.bf16.vlgmr.msra.gmra.mrb[12].mxu0 %vm222_vm10, %v1666_v9  ;;  %v1621_v9 = vmul.f32 %v1619_v61, %v10481_v37 }
 0x92a   :  { %8521 = vmatprep.mubr.msk.bf16.mxu0 %vm9829_vm0, %v13699_v7 }
 0x9fc   :  { %v1710_v57 = vpop.f32.mrb[12].mxu0 }
 0x9fd   :  { %v8511_v35 = vpop.f32.mrb[13].mxu0  ;;  %v1718_v45 = vrot.slane %v1710_v57, 6  ;;  %v1720_v24 = vrot.slane %v1710_v57, 1  ;;  %v1717_v14 = vrot.slane %v1710_v57, 5  ;;  %v1735_v10 = vadd.f32 %v1710_v57, %v9974_v22 }
 0x9fe   :  { %v1713_v1 = vpop.f32.mrb[14].mxu0  ;;  %v1721_v27 = vrot.slane %v1710_v57, 2  ;;  %v1719_v23 = vrot.slane %v1710_v57, 7  ;;  %v1723_v34 = vrot.slane %v1710_v57, 4  ;;  %v1722_v31 = vrot.slane %v1710_v57, 3 }
 0x9ff   :  { %v8512_v44 = vpop.f32.mrb[15].mxu0  ;;  %v1733_v56 = vadd.f32 %v1718_v45, %v9983_v33  ;;  %v10560_v26 = vadd.f32 %v1720_v24, %v9992_v42  ;;  %v1732_v11 = vadd.f32 %v1717_v14, %v9972_v18  ;;  %v1622_v35 = vmul.f32 %v10437_v60, %v10378_v36 }
 0xa00   :  { %v1737_v55 = vadd.f32 %v1721_v27, %v9978_v28  ;;  %v1734_v20 = vadd.f32 %v1719_v23, %v9988_v38  ;;  %v1739_v13 = vadd.f32 %v1723_v34, %v9981_v32  ;;  %v1738_v62 = vadd.f32 %v1722_v31, %v9995_v46 }
 0xa01   :  { %8852 = vtanh.f32 %v1733_v56  ;;  %v10576_v44 = vadd.f32 %v1622_v35, %v1621_v9  ;;  %v9838_v45 = vmov 3   ;;  %v8300_v61 = vmul.f32 -1.442695, %v1733_v56 }
 0xa02   :  { %8854 = vtanh.f32 %v1735_v10  ;;  %8627 = vset.pattern.permute.xlu1 %v9838_v45  ;;  %8626 = vset.pattern.permute.xlu0 %v9838_v45  ;;  %v8304_v9 = vmul.f32 -1.442695, %v1737_v55  ;;  %v8306_v35 = vmul.f32 -1.442695, %v1739_v13 }
 0xa03   :  { %8856 = vtanh.f32 %v10560_v26  ;;  %v1798_v27 = vrot.slane %v10576_v44, 6  ;;  %v1797_v36 = vrot.slane %v10576_v44, 5  ;;  %v1800_v23 = vrot.slane %v10576_v44, 1 }
 0xa04   :  { %8858 = vtanh.f32 %v1732_v11  ;;  %v1799_v34 = vrot.slane %v10576_v44, 7  ;;  %v1801_v31 = vrot.slane %v10576_v44, 2 }
 0xa05   :  { %8860 = vtanh.f32 %v1737_v55 }
 0xa06   :  { %8862 = vtanh.f32 %v1734_v20 }
 0xa07   :  { %8864 = vtanh.f32 %v1739_v13 }
 0xa08   :  { %8866 = vtanh.f32 %v1738_v62 }
 0xa0b   :  { %v8853_v17 = vpop.eup %8852 }
 0xa0c   :  { %1846 = vrot.lane.b32.xlu1 %v8853_v17, %s9830_s5  ;;  %v8855_v49 = vpop.eup %8854  ;;  %v1802_v17 = vrot.slane %v10576_v44, 3 }
 0xa0d   :  { %1850 = vrot.lane.b32.xlu0 %v8855_v49, %s9830_s5  ;;  %v8857_v21 = vpop.eup %8856  ;;  %v1803_v49 = vrot.slane %v10576_v44, 4 }
 0xa0e   :  { %v8859_v30 = vpop.eup %8858 }
 0xa0f   :  { %v8861_v57 = vpop.eup %8860 }
 0xa10   :  { %1852 = vrot.lane.b32.xlu1 %v8857_v21, %s9830_s5  ;;  %v8863_v1 = vpop.eup %8862  ;;  %v8302_v21 = vmul.f32 -1.442695, %v1735_v10 }
 0xa11   :  { %1844 = vrot.lane.b32.xlu0 %v8859_v30, %s9830_s5  ;;  %v8865_v24 = vpop.eup %8864  ;;  %v8299_v30 = vmul.f32 -1.442695, %v1732_v11 }
 0xa12   :  { %v8867_v14 = vpop.eup %8866  ;;  %8868 = vpow2.f32 %v8302_v21 }
 0xa13   :  { %8870 = vpow2.f32 %v8300_v61 }
 0xa14   :  { %1854 = vrot.lane.b32.xlu1 %v8861_v57, %s9830_s5  ;;  %8872 = vpow2.f32 %v8299_v30  ;;  %v8301_v57 = vmul.f32 -1.442695, %v1734_v20 }
 0xa15   :  { %1848 = vrot.lane.b32.xlu0 %v8863_v1, %s9830_s5  ;;  %8874 = vpow2.f32 %v8304_v9  ;;  %v8303_v1 = vmul.f32 -1.442695, %v10560_v26 }
 0xa16   :  { %8876 = vpow2.f32 %v8301_v57 }
 0xa17   :  { %8878 = vpow2.f32 %v8306_v35 }
 0xa18   :  { %1858 = vrot.lane.b32.xlu1 %v8865_v24, %s9830_s5  ;;  %8880 = vpow2.f32 %v8303_v1  ;;  %v8305_v24 = vmul.f32 -1.442695, %v1738_v62 }
 0xa19   :  { %1856 = vrot.lane.b32.xlu0 %v8867_v14, %s9830_s5 }
 0xa1a   :  { %8882 = vpow2.f32 %v8305_v24 }
 0xa1c   :  { %1806 = vrot.lane.b32.xlu1 %v1798_v27, %s9831_s1  ;;  %v8869_v45 = vpop.eup %8868 }
 0xa1d   :  { %1804 = vrot.lane.b32.xlu0 %v1797_v36, %s9831_s1  ;;  %v8871_v14 = vpop.eup %8870  ;;  %v1767_v27 = vadd.f32 1.0, %v8869_v45 }
 0xa1e   :  { %v8873_v36 = vpop.eup %8872  ;;  %v1765_v56 = vadd.f32 1.0, %v8871_v14 }
 0xa1f   :  { %v8875_v10 = vpop.eup %8874  ;;  %8884 = vrcp.f32 %v1767_v27  ;;  %v1764_v11 = vadd.f32 1.0, %v8873_v36 }
 0xa20   :  { %1812 = vrot.lane.b32.xlu1 %v1800_v23, %s9831_s1  ;;  %v8877_v55 = vpop.eup %8876  ;;  %v1769_v23 = vadd.f32 1.0, %v8875_v10  ;;  %8886 = vrcp.f32 %v1765_v56 }
 0xa21   :  { %1808 = vrot.lane.b32.xlu0 %v1799_v34, %s9831_s1  ;;  %v8879_v20 = vpop.eup %8878  ;;  %8888 = vrcp.f32 %v1764_v11  ;;  %v1766_v13 = vadd.f32 1.0, %v8877_v55 }
 0xa22   :  { %v8881_v34 = vpop.eup %8880  ;;  %8890 = vrcp.f32 %v1769_v23  ;;  %v1771_v26 = vadd.f32 1.0, %v8879_v20 }
 0xa23   :  { %8892 = vrcp.f32 %v1766_v13 }
 0xa24   :  { %1810 = vrot.lane.b32.xlu1 %v10576_v44, %s9831_s1  ;;  %v8883_v62 = vpop.eup %8882  ;;  %8894 = vrcp.f32 %v1771_v26 }
 0xa25   :  { %1814 = vrot.lane.b32.xlu0 %v1801_v31, %s9831_s1  ;;  %v1770_v9 = vadd.f32 1.0, %v8883_v62 }
 0xa28   :  { %1816 = vrot.lane.b32.xlu1 %v1802_v17, %s9831_s1  ;;  %v1768_v17 = vadd.f32 1.0, %v8881_v34 }
 0xa2a   :  { %8896 = vrcp.f32 %v1768_v17 }
 0xa2b   :  { %8898 = vrcp.f32 %v1770_v9 }
 0xa2c   :  { %1818 = vrot.lane.b32.xlu1 %v1803_v49, %s9831_s1  ;;  %v10598_v49 = vpop.eup %8884 }
 0xa2d   :  { %v10601_v57 = vpop.eup %8886 }
 0xa2e   :  { %v10604_v35 = vpop.eup %8888 }
 0xa2f   :  { %v10608_v14 = vpop.eup %8890 }
 0xa30   :  { %v10613_v10 = vpop.eup %8892 }
 0xa31   :  { %v10616_v55 = vpop.eup %8894 }
 0xa34   :  { %v10621_v13 = vpop.eup %8896 }
 0xa7e   :  { %v1847_v31 = vpop.permute.xlu1 %1846 }
 0xa7f   :  { %v1851_v21 = vpop.permute.xlu0 %1850  ;;  %v1869_v45 = vmul.f32 %v10601_v57, %v1847_v31  ;;  %v10626_v31 = vpop.eup %8898 }
 0xa80   :  { %v1871_v61 = vmul.f32 %v10598_v49, %v1851_v21 }
 0xa82   :  { %v1853_v30 = vpop.permute.xlu1 %1852  ;;  %1890 = vrot.lane.b32.xlu0 %v1871_v61, %s9831_s1 }
 0xa83   :  { %v1845_v1 = vpop.permute.xlu0 %1844  ;;  %v1872_v34 = vmul.f32 %v10621_v13, %v1853_v30 }
 0xa84   :  { %v1868_v24 = vmul.f32 %v10604_v35, %v1845_v1 }
 0xa86   :  { %v1855_v27 = vpop.permute.xlu1 %1854  ;;  %1886 = vrot.lane.b32.xlu0 %v1869_v45, %s9831_s1  ;;  %1884 = vrot.lane.b32.xlu1 %v1868_v24, %s9831_s1 }
 0xa87   :  { %v1873_v36 = vmul.f32 %v10608_v14, %v1855_v27  ;;  %v1849_v56 = vpop.permute.xlu0 %1848 }
 0xa88   :  { %v1870_v11 = vmul.f32 %v10613_v10, %v1849_v56 }
 0xa8a   :  { %v1859_v23 = vpop.permute.xlu1 %1858  ;;  %1888 = vrot.lane.b32.xlu0 %v1870_v11, %s9831_s1  ;;  %1894 = vrot.lane.b32.xlu1 %v1873_v36, %s9831_s1 }
 0xa8b   :  { %v1875_v20 = vmul.f32 %v10616_v55, %v1859_v23  ;;  %v1857_v26 = vpop.permute.xlu0 %1856 }
 0xa8c   :  { %v1874_v17 = vmul.f32 %v10626_v31, %v1857_v26 }
 0xa8e   :  { %1892 = vrot.lane.b32.xlu0 %v1872_v34, %s9831_s1  ;;  %1898 = vrot.lane.b32.xlu1 %v1875_v20, %s9831_s1  ;;  %v1807_v21 = vpop.permute.xlu1 %1806 }
 0xa8f   :  { %v1805_v62 = vpop.permute.xlu0 %1804  ;;  %v1829_v3 = vmul.f32 %v10601_v57, %v1807_v21 }
 0xa90   :  { %v1828_v43 = vmul.f32 %v10604_v35, %v1805_v62 }
 0xa92   :  { %1896 = vrot.lane.b32.xlu0 %v1874_v17, %s9831_s1  ;;  %2057 = vrot.lane.b32.xlu1 %v10548_v48, %s9834_s3  ;;  %v1813_v30 = vpop.permute.xlu1 %1812 }
 0xa93   :  { %v1809_v61 = vpop.permute.xlu0 %1808 }
 0xa94   :  { %v1830_v12 = vmul.f32 %v10613_v10, %v1809_v61 }
 0xa96   :  { %2032 = vperm.xlu0 %8626, %v10053_v52   ;;  %1965 = vperm.xlu1 %8627, %v10050_v51   ;;  %v1811_v1 = vpop.permute.xlu1 %1810 }
 0xa97   :  { %v1815_v9 = vpop.permute.xlu0 %1814  ;;  %v1831_v48 = vmul.f32 %v10598_v49, %v1811_v1  ;;  %v1832_v1 = vmul.f32 %v10621_v13, %v1813_v30 }
 0xa9a   :  { %v1817_v24 = vpop.permute.xlu1 %1816 }
 0xa9e   :  { %v1819_v36 = vpop.permute.xlu1 %1818 }
 0xaf4   :  { %v1891_v45 = vpop.permute.xlu0 %1890 }
 0xaf5   :  { %v1911_v17 = vadd.f32 %v1891_v45, %v1831_v48 }
 0xaf7   :  { %8900 = vtanh.f32 %v1911_v17 }
 0xaf8   :  { %v1887_v27 = vpop.permute.xlu0 %1886  ;;  %v1885_v56 = vpop.permute.xlu1 %1884 }
 0xaf9   :  { %v1909_v25 = vadd.f32 %v1887_v27, %v1829_v3  ;;  %v1908_v54 = vadd.f32 %v1885_v56, %v1828_v43  ;;  %v1833_v3 = vmul.f32 %v10608_v14, %v1815_v9 }
 0xafb   :  { %8902 = vtanh.f32 %v1909_v25 }
 0xafc   :  { %v1889_v11 = vpop.permute.xlu0 %1888  ;;  %v1895_v23 = vpop.permute.xlu1 %1894  ;;  %8904 = vtanh.f32 %v1908_v54 }
 0xafd   :  { %v1910_v45 = vadd.f32 %v1889_v11, %v1830_v12  ;;  %v1913_v43 = vadd.f32 %v1895_v23, %v1833_v3  ;;  %v2110_v11 = vrot.slane %v1909_v25, 2  ;;  %v2109_v23 = vrot.slane %v1908_v54, 3 }
 0xaff   :  { %8906 = vtanh.f32 %v1910_v45 }
 0xb00   :  { %v1893_v20 = vpop.permute.xlu0 %1892  ;;  %v1899_v34 = vpop.permute.xlu1 %1898 }
 0xb01   :  { %v1912_v62 = vadd.f32 %v1893_v20, %v1832_v1  ;;  %v8901_v30 = vpop.eup %8900  ;;  %v2112_v20 = vrot.slane %v1910_v45, 1 }
 0xb03   :  { %8908 = vtanh.f32 %v1912_v62  ;;  %v2115_v1 = vrot.slane %v1912_v62, 7 }
 0xb04   :  { %v1897_v26 = vpop.permute.xlu0 %1896  ;;  %v2058_v19 = vpop.permute.xlu1 %2057  ;;  %8910 = vtanh.f32 %v1913_v43 }
 0xb05   :  { %v8903_v9 = vpop.eup %8902 }
 0xb15   :  { %v10637_v59 = vpop.permute.xlu0 %2032 }
 0xb16   :  { %v2060_v16 = vmul.f32 %v2058_v19, %v10637_v59  ;;  %v1834_v19 = vmul.f32 %v10626_v31, %v1817_v24  ;;  %v8905_v24 = vpop.eup %8904 }
 0xb17   :  { %v8907_v27 = vpop.eup %8906 }
 0xb18   :  { %v2063_v39 = vrot.slane %v2060_v16, 6  ;;  %v2062_v29 = vrot.slane %v2060_v16, 5  ;;  %v2064_v21 = vrot.slane %v2060_v16, 7  ;;  %v1914_v61 = vadd.f32 %v1897_v26, %v1834_v19  ;;  %v8909_v56 = vpop.eup %8908 }
 0xb19   :  { %v2065_v12 = vrot.slane %v2060_v16, 1  ;;  %v2066_v3 = vrot.slane %v2060_v16, 2  ;;  %v2117_v19 = vrot.slane %v1913_v43, 6  ;;  %v10670_v43 = vpop.permute.xlu1 %1965 }
 0xb1a   :  { %2071 = vrot.lane.b32.xlu1 %v2063_v39, %s9836_s10  ;;  %2069 = vrot.lane.b32.xlu0 %v2062_v29, %s9836_s10  ;;  %v1835_v39 = vmul.f32 %v10616_v55, %v1819_v36  ;;  %8912 = vtanh.f32 %v1914_v61  ;;  %v8911_v36 = vpop.eup %8910  ;;  %v2119_v45 = vrot.slane %v1914_v61, 5 }
 0xb1c   :  { %v1915_v29 = vadd.f32 %v1899_v34, %v1835_v39  ;;  %v2111_v34 = vsel %vm589_vm3, %v2110_v11, %v2109_v23 }
 0xb1d   :  { %v2113_v26 = vsel %vm592_vm4, %v2112_v20, %v2111_v34  ;;  %v13560_v34 = vrot.slane %v10670_v43, 6 }
 0xb1e   :  { %2073 = vrot.lane.b32.xlu1 %v2064_v21, %s9836_s10  ;;  %2075 = vrot.lane.b32.xlu0 %v2060_v16, %s9836_s10  ;;  %8914 = vtanh.f32 %v1915_v29  ;;  %v2114_v25 = vsel %vm595_vm5, %v1911_v17, %v2113_v26  ;;  %v2121_v17 = vrot.slane %v1915_v29, 4 }
 0xb1f   :  { %v2116_v54 = vsel %vm598_vm6, %v2115_v1, %v2114_v25  ;;  %v13559_v1 = vrot.slane %v10670_v43, 5 }
 0xb20   :  { %v2118_v62 = vsel %vm601_vm7, %v2117_v19, %v2116_v54 }
 0xb21   :  { %v2120_v39 = vsel %vm604_vm8, %v2119_v45, %v2118_v62 }
 0xb22   :  { %2077 = vrot.lane.b32.xlu1 %v2065_v12, %s9836_s10  ;;  %1938 = vrot.lane.b32.xlu0 %v8901_v30, %s9832_s11  ;;  %v2068_v12 = vrot.slane %v2060_v16, 4  ;;  %v2067_v30 = vrot.slane %v2060_v16, 3  ;;  %v2122_v61 = vsel %vm13676_vm9, %v2121_v17, %v2120_v39 }
 0xb24   :  { %v8913_v48 = vpop.eup %8912 }
 0xb26   :  { %1934 = vrot.lane.b32.xlu1 %v8903_v9, %s9832_s11  ;;  %1932 = vrot.lane.b32.xlu0 %v8905_v24, %s9832_s11  ;;  %v8646_v9 = vld [vmem:[#allocation7] sm:$0xff]  }
 0xb27   :  { %8514 = vmatpush3.bf16.msra.mxu1 %v8646_v9 }
 0xb28   :  { %v8915_v21 = vpop.eup %8914  ;;  %8525 = vmatprep.subr.bf16.mxu1 %v13699_v7 }
 0xb2a   :  { %1940 = vrot.lane.b32.xlu1 %v8909_v56, %s9832_s11  ;;  %1936 = vrot.lane.b32.xlu0 %v8907_v27, %s9832_s11 }
 0xb2e   :  { %1942 = vrot.lane.b32.xlu1 %v8911_v36, %s9832_s11  ;;  %1944 = vrot.lane.b32.xlu0 %v8913_v48, %s9832_s11 }
 0xb32   :  { %2079 = vrot.lane.b32.xlu1 %v2066_v3, %s9836_s10  ;;  %1946 = vrot.lane.b32.xlu0 %v8915_v21, %s9832_s11 }
 0xb36   :  { %2083 = vrot.lane.b32.xlu1 %v2068_v12, %s9836_s10  ;;  %2081 = vrot.lane.b32.xlu0 %v2067_v30, %s9836_s10  ;;  %v13554_v30 = vrot.slane %v10670_v43, 7 }
 0xb3a   :  { %2123 = vrot.lane.b32.xlu1 %v2122_v61, %s9833_s13 }
 0xb8c   :  { %v2070_v16 = vpop.permute.xlu0 %2069  ;;  %v2072_v24 = vpop.permute.xlu1 %2071 }
 0xb90   :  { %v2076_v27 = vpop.permute.xlu0 %2075  ;;  %v2074_v56 = vpop.permute.xlu1 %2073 }
 0xb94   :  { %v1939_v11 = vpop.permute.xlu0 %1938  ;;  %v2078_v23 = vpop.permute.xlu1 %2077 }
 0xb95   :  { %v1959_v20 = vmul.f32 %v10598_v49, %v1939_v11 }
 0xb97   :  { %v10674_v36 = vmul.f32 %v10670_v43, %v1959_v20  ;;  %v13555_v20 = vrot.slane %v10670_v43, 2 }
 0xb98   :  { %v1935_v29 = vpop.permute.xlu1 %1934  ;;  %v1933_v48 = vpop.permute.xlu0 %1932 }
 0xb99   :  { %13711 = vst [vmem:[#allocation48_spill] sm:$0xff] %v10674_v36  ;;  %v1957_v26 = vmul.f32 %v10601_v57, %v1935_v29  ;;  %v1956_v3 = vmul.f32 %v10604_v35, %v1933_v48  ;;  %v2096_v25 = vadd.f32 %v2076_v27, %v10674_v36  ;;  %v13558_v35 = vrot.slane %v10670_v43, 1 }
 0xb9b   :  { %v10682_v21 = vmul.f32 %v13560_v34, %v1957_v26  ;;  %v10686_v49 = vmul.f32 %v13559_v1, %v1956_v3  ;;  %v2132_v11 = vpack.c.bf16 %v2096_v25, %v2096_v25 }
 0xb9c   :  { %v1941_v54 = vpop.permute.xlu1 %1940  ;;  %v1937_v45 = vpop.permute.xlu0 %1936 }
 0xb9d   :  { %13712 = vst [vmem:[#allocation49_spill] sm:$0xff] %v10682_v21  ;;  %13713 = vst [vmem:[#allocation50_spill] sm:$0xff] %v10686_v49  ;;  %v2094_v19 = vadd.f32 %v2072_v24, %v10682_v21  ;;  %v2093_v57 = vadd.f32 %v2070_v16, %v10686_v49  ;;  %v1960_v12 = vmul.f32 %v10621_v13, %v1941_v54 }
 0xb9e   :  { %v1958_v62 = vmul.f32 %v10613_v10, %v1937_v45 }
 0xb9f   :  { %v2130_v39 = vpack.c.bf16 %v2094_v19, %v2094_v19  ;;  %v2549_v9 = vrot.slane %v2094_v19, 2  ;;  %v2129_v17 = vpack.c.bf16 %v2093_v57, %v2093_v57  ;;  %v2548_v61 = vrot.slane %v2093_v57, 3 }
 0xba0   :  { %v10697_v27 = vmul.f32 %v13558_v35, %v1960_v12  ;;  %v10701_v16 = vmul.f32 %v13554_v30, %v1958_v62  ;;  %v1943_v13 = vpop.permute.xlu1 %1942  ;;  %v1945_v24 = vpop.permute.xlu0 %1944  ;;  %v13556_v12 = vrot.slane %v10670_v43, 3 }
 0xba1   :  { %v2148_v29 = vunpack.c.l.b16 %v2130_v39  ;;  %v2147_v48 = vunpack.c.l.b16 %v2129_v17  ;;  %v2550_v10 = vsel %vm589_vm3, %v2549_v9, %v2548_v61  ;;  %v1961_v26 = vmul.f32 %v10608_v14, %v1943_v13 }
 0xba2   :  { %13714 = vst [vmem:[#allocation51_spill] sm:$0xff] %v10697_v27  ;;  %13715 = vst [vmem:[#allocation52_spill] sm:$0xff] %v10701_v16  ;;  %v2097_v3 = vadd.f32 %v2078_v23, %v10697_v27  ;;  %v2095_v54 = vadd.f32 %v2074_v56, %v10701_v16  ;;  %v1962_v45 = vmul.f32 %v10626_v31, %v1945_v24  ;;  %v2150_v14 = vunpack.c.l.b16 %v2132_v11 }
 0xba3   :  { %v2156_v19 = vrot.slane %v2148_v29, 2  ;;  %v10711_v57 = vmul.f32 %v13555_v20, %v1961_v26  ;;  %v2155_v62 = vrot.slane %v2147_v48, 3  ;;  %v13557_v31 = vrot.slane %v10670_v43, 4 }
 0xba4   :  { %v2133_v39 = vpack.c.bf16 %v2097_v3, %v2097_v3  ;;  %v2131_v17 = vpack.c.bf16 %v2095_v54, %v2095_v54  ;;  %v2551_v30 = vrot.slane %v2095_v54, 1  ;;  %v2080_v9 = vpop.permute.xlu1 %2079  ;;  %v1947_v61 = vpop.permute.xlu0 %1946  ;;  %v2554_v13 = vrot.slane %v2097_v3, 7 }
 0xba5   :  { %13716 = vst [vmem:[#allocation53_spill] sm:$0xff] %v10711_v57  ;;  %v2098_v23 = vadd.f32 %v2080_v9, %v10711_v57  ;;  %v1963_v56 = vmul.f32 %v10616_v55, %v1947_v61  ;;  %v10720_v26 = vmul.f32 %v13556_v12, %v1962_v45  ;;  %v2157_v55 = vsel %vm589_vm3, %v2156_v19, %v2155_v62 }
 0xba6   :  { %v2149_v24 = vunpack.c.l.b16 %v2131_v17  ;;  %v2552_v29 = vsel %vm592_vm4, %v2551_v30, %v2550_v10  ;;  %v2151_v9 = vunpack.c.l.b16 %v2133_v39 }
 0xba7   :  { %13717 = vst [vmem:[#allocation54_spill] sm:$0xff] %v10720_v26  ;;  %v2134_v48 = vpack.c.bf16 %v2098_v23, %v2098_v23  ;;  %v2556_v20 = vrot.slane %v2098_v23, 6  ;;  %v10724_v54 = vmul.f32 %v13557_v31, %v1963_v56  ;;  %v2553_v11 = vsel %vm595_vm5, %v2096_v25, %v2552_v29 }
 0xba8   :  { %v2158_v61 = vrot.slane %v2149_v24, 1  ;;  %v2084_v3 = vpop.permute.xlu1 %2083  ;;  %v2082_v17 = vpop.permute.xlu0 %2081  ;;  %v2555_v30 = vsel %vm598_vm6, %v2554_v13, %v2553_v11  ;;  %v2161_v19 = vrot.slane %v2151_v9, 7 }
 0xba9   :  { %13718 = vst [vmem:[#allocation55_spill] sm:$0xff] %v10724_v54  ;;  %v2152_v10 = vunpack.c.l.b16 %v2134_v48  ;;  %v2100_v45 = vadd.f32 %v2084_v3, %v10724_v54  ;;  %v2099_v12 = vadd.f32 %v2082_v17, %v10720_v26  ;;  %v2557_v23 = vsel %vm601_vm7, %v2556_v20, %v2555_v30 }
 0xbaa   :  { %v2159_v56 = vsel %vm592_vm4, %v2158_v61, %v2157_v55 }
 0xbab   :  { %v2160_v31 = vsel %vm595_vm5, %v2150_v14, %v2159_v56  ;;  %v2136_v25 = vpack.c.bf16 %v2100_v45, %v2100_v45  ;;  %v2560_v29 = vrot.slane %v2100_v45, 4  ;;  %v2135_v62 = vpack.c.bf16 %v2099_v12, %v2099_v12 }
 0xbac   :  { %v2558_v39 = vrot.slane %v2099_v12, 5  ;;  %v2163_v24 = vrot.slane %v2152_v10, 6  ;;  %v2162_v13 = vsel %vm598_vm6, %v2161_v19, %v2160_v31 }
 0xbad   :  { %v2154_v35 = vunpack.c.l.b16 %v2136_v25  ;;  %v2153_v48 = vunpack.c.l.b16 %v2135_v62 }
 0xbae   :  { %v2559_v11 = vsel %vm604_vm8, %v2558_v39, %v2557_v23  ;;  %v2164_v55 = vsel %vm601_vm7, %v2163_v24, %v2162_v13 }
 0xbaf   :  { %v2167_v3 = vrot.slane %v2154_v35, 4  ;;  %v10737_v17 = vsel %vm13676_vm9, %v2560_v29, %v2559_v11  ;;  %v2165_v20 = vrot.slane %v2153_v48, 5 }
 0xbb1   :  { %v2166_v14 = vsel %vm604_vm8, %v2165_v20, %v2164_v55 }
 0xbb2   :  { %v2168_v9 = vsel %vm13676_vm9, %v2167_v3, %v2166_v14 }
 0xbb3   :  { %v2169_v61 = vpack.c.b16 %v2168_v9, %v2168_v9  ;;  %v2124_v9 = vpop.permute.xlu1 %2123 }
 0xbb5   :  { %2170 = vrot.lane.b32.xlu0 %v2169_v61, %s9834_s3 }
 0xc27   :  { %v2171_v12 = vpop.permute.xlu0 %2170 }
 0xc28   :  { %8516 = vmatmul.mubr.msk.bf16.vlgmr.msra.gmra.mrb[8].mxu1 %vm222_vm10, %v2171_v12 }
 0xc29   :  { %8527 = vmatprep.mubr.msk.bf16.mxu1 %vm9829_vm0, %v13699_v7 }
 0xcfb   :  { %v2215_v35 = vpop.f32.mrb[8].mxu1 }
 0xcfc   :  { %v2222_v31 = vrot.slane %v2215_v35, 4  ;;  %v8517_v30 = vpop.f32.mrb[9].mxu1  ;;  %v2224_v56 = vrot.slane %v2215_v35, 6  ;;  %v2226_v25 = vrot.slane %v2215_v35, 1  ;;  %v2223_v19 = vrot.slane %v2215_v35, 5 }
 0xcfd   :  { %v2218_v10 = vpop.f32.mrb[10].mxu1  ;;  %v2241_v62 = vadd.f32 %v2215_v35, %v9992_v42  ;;  %v2227_v24 = vrot.slane %v2215_v35, 2  ;;  %v2225_v48 = vrot.slane %v2215_v35, 7  ;;  %v2228_v20 = vrot.slane %v2215_v35, 3 }
 0xcfe   :  { %v2237_v45 = vadd.f32 %v2222_v31, %v9972_v18  ;;  %v8518_v23 = vpop.f32.mrb[11].mxu1  ;;  %v2239_v29 = vadd.f32 %v2224_v56, %v9988_v38  ;;  %v2242_v13 = vadd.f32 %v2226_v25, %v9978_v28  ;;  %v2238_v11 = vadd.f32 %v2223_v19, %v9983_v33 }
 0xcff   :  { %v2243_v3 = vadd.f32 %v2227_v24, %v9995_v46  ;;  %v2240_v55 = vadd.f32 %v2225_v48, %v9974_v22  ;;  %v2244_v61 = vadd.f32 %v2228_v20, %v9981_v32  ;;  %v2126_v31 = vmul.f32 %v2124_v9, %v10670_v43 }
 0xd00   :  { %8916 = vtanh.f32 %v2237_v45  ;;  %v2127_v35 = vmul.f32 %v10637_v59, %v10576_v44 }
 0xd01   :  { %8918 = vtanh.f32 %v2239_v29 }
 0xd02   :  { %8920 = vtanh.f32 %v2241_v62  ;;  %v10761_v23 = vadd.f32 %v2127_v35, %v2126_v31  ;;  %v8309_v31 = vmul.f32 -1.442695, %v2237_v45 }
 0xd03   :  { %8922 = vtanh.f32 %v2242_v13 }
 0xd04   :  { %8924 = vtanh.f32 %v2238_v11  ;;  %v2302_v19 = vrot.slane %v10761_v23, 4  ;;  %v2304_v24 = vrot.slane %v10761_v23, 6  ;;  %v2303_v48 = vrot.slane %v10761_v23, 5 }
 0xd05   :  { %8926 = vtanh.f32 %v2243_v3  ;;  %v2307_v20 = vrot.slane %v10761_v23, 2  ;;  %v2306_v9 = vrot.slane %v10761_v23, 1 }
 0xd06   :  { %8928 = vtanh.f32 %v2240_v55 }
 0xd07   :  { %8930 = vtanh.f32 %v2244_v61 }
 0xd08   :  { %8932 = vpow2.f32 %v8309_v31 }
 0xd0a   :  { %v8917_v39 = vpop.eup %8916 }
 0xd0b   :  { %2349 = vrot.lane.b32.xlu0 %v8917_v39, %s9830_s5  ;;  %v8919_v14 = vpop.eup %8918  ;;  %v9839_v39 = vmov 4  }
 0xd0c   :  { %v8921_v12 = vpop.eup %8920  ;;  %8628 = vset.pattern.permute.xlu0 %v9839_v39  ;;  %8629 = vset.pattern.permute.xlu1 %v9839_v39  ;;  %v8314_v39 = vmul.f32 -1.442695, %v2242_v13 }
 0xd0d   :  { %2357 = vrot.lane.b32.xlu1 %v8921_v12, %s9830_s5  ;;  %v8923_v30 = vpop.eup %8922  ;;  %v2308_v12 = vrot.slane %v10761_v23, 3 }
 0xd0e   :  { %v8925_v10 = vpop.eup %8924 }
 0xd0f   :  { %2353 = vrot.lane.b32.xlu0 %v8919_v14, %s9830_s5  ;;  %v8927_v56 = vpop.eup %8926  ;;  %v2305_v14 = vrot.slane %v10761_v23, 7 }
 0xd10   :  { %v8929_v25 = vpop.eup %8928 }
 0xd11   :  { %2351 = vrot.lane.b32.xlu1 %v8925_v10, %s9830_s5  ;;  %v8931_v44 = vpop.eup %8930  ;;  %v8310_v10 = vmul.f32 -1.442695, %v2238_v11 }
 0xd12   :  { %v8933_v35 = vpop.eup %8932 }
 0xd13   :  { %2359 = vrot.lane.b32.xlu0 %v8923_v30, %s9830_s5  ;;  %v8311_v30 = vmul.f32 -1.442695, %v2239_v29 }
 0xd15   :  { %2355 = vrot.lane.b32.xlu1 %v8929_v25, %s9830_s5  ;;  %8934 = vpow2.f32 %v8311_v30  ;;  %v8313_v25 = vmul.f32 -1.442695, %v2241_v62 }
 0xd16   :  { %8936 = vpow2.f32 %v8310_v10 }
 0xd17   :  { %2361 = vrot.lane.b32.xlu0 %v8927_v56, %s9830_s5  ;;  %v2269_v56 = vadd.f32 1.0, %v8933_v35 }
 0xd19   :  { %2363 = vrot.lane.b32.xlu1 %v8931_v44, %s9830_s5  ;;  %8938 = vrcp.f32 %v2269_v56 }
 0xd1a   :  { %8940 = vpow2.f32 %v8313_v25 }
 0xd1b   :  { %2309 = vrot.lane.b32.xlu0 %v2302_v19, %s9831_s1  ;;  %v8312_v19 = vmul.f32 -1.442695, %v2240_v55 }
 0xd1d   :  { %2311 = vrot.lane.b32.xlu1 %v2303_v48, %s9831_s1  ;;  %8942 = vpow2.f32 %v8312_v19 }
 0xd1e   :  { %8944 = vpow2.f32 %v8314_v39 }
 0xd1f   :  { %2313 = vrot.lane.b32.xlu0 %v2304_v24, %s9831_s1  ;;  %v8935_v44 = vpop.eup %8934  ;;  %v8316_v24 = vmul.f32 -1.442695, %v2244_v61 }
 0xd20   :  { %v2271_v48 = vadd.f32 1.0, %v8935_v44  ;;  %v8937_v45 = vpop.eup %8936 }
 0xd21   :  { %2315 = vrot.lane.b32.xlu1 %v2305_v14, %s9831_s1  ;;  %8946 = vpow2.f32 %v8316_v24  ;;  %v2270_v55 = vadd.f32 1.0, %v8937_v45 }
 0xd22   :  { %8948 = vrcp.f32 %v2271_v48 }
 0xd23   :  { %2321 = vrot.lane.b32.xlu0 %v2307_v20, %s9831_s1  ;;  %v8315_v20 = vmul.f32 -1.442695, %v2243_v3  ;;  %v10783_v14 = vpop.eup %8938 }
 0xd24   :  { %v8941_v11 = vpop.eup %8940 }
 0xd25   :  { %2319 = vrot.lane.b32.xlu1 %v2306_v9, %s9831_s1  ;;  %8950 = vpow2.f32 %v8315_v20  ;;  %v2273_v13 = vadd.f32 1.0, %v8941_v11 }
 0xd26   :  { %8952 = vrcp.f32 %v2270_v55 }
 0xd27   :  { %v8943_v9 = vpop.eup %8942  ;;  %8954 = vrcp.f32 %v2273_v13 }
 0xd28   :  { %v2272_v61 = vadd.f32 1.0, %v8943_v9 }
 0xd29   :  { %2317 = vrot.lane.b32.xlu1 %v10761_v23, %s9831_s1 }
 0xd2a   :  { %8956 = vrcp.f32 %v2272_v61 }
 0xd2d   :  { %2323 = vrot.lane.b32.xlu1 %v2308_v12, %s9831_s1  ;;  %v8945_v12 = vpop.eup %8944 }
 0xd2e   :  { %v8947_v31 = vpop.eup %8946  ;;  %v2274_v3 = vadd.f32 1.0, %v8945_v12 }
 0xd2f   :  { %v10787_v30 = vpop.eup %8948  ;;  %v2276_v10 = vadd.f32 1.0, %v8947_v31 }
 0xd30   :  { %v8951_v56 = vpop.eup %8950  ;;  %8958 = vrcp.f32 %v2274_v3 }
 0xd31   :  { %8960 = vrcp.f32 %v2276_v10  ;;  %v2275_v39 = vadd.f32 1.0, %v8951_v56  ;;  %v10791_v44 = vpop.eup %8952 }
 0xd32   :  { %v10794_v20 = vpop.eup %8954 }
 0xd33   :  { %8962 = vrcp.f32 %v2275_v39 }
 0xd34   :  { %v10797_v45 = vpop.eup %8956 }
 0xd3a   :  { %v10801_v9 = vpop.eup %8958 }
 0xd3b   :  { %v10805_v13 = vpop.eup %8960 }
 0xd7d   :  { %v2350_v29 = vpop.permute.xlu0 %2349 }
 0xd7e   :  { %v2373_v62 = vmul.f32 %v10783_v14, %v2350_v29 }
 0xd7f   :  { %v2358_v19 = vpop.permute.xlu1 %2357 }
 0xd80   :  { %2389 = vrot.lane.b32.xlu0 %v2373_v62, %s9831_s1  ;;  %v2377_v11 = vmul.f32 %v10794_v20, %v2358_v19 }
 0xd81   :  { %v2354_v35 = vpop.permute.xlu0 %2353 }
 0xd82   :  { %v2375_v25 = vmul.f32 %v10787_v30, %v2354_v35  ;;  %v10811_v35 = vpop.eup %8962 }
 0xd83   :  { %v2352_v24 = vpop.permute.xlu1 %2351 }
 0xd84   :  { %2393 = vrot.lane.b32.xlu0 %v2375_v25, %s9831_s1  ;;  %v2374_v48 = vmul.f32 %v10791_v44, %v2352_v24 }
 0xd85   :  { %v2360_v62 = vpop.permute.xlu0 %2359 }
 0xd86   :  { %2391 = vrot.lane.b32.xlu1 %v2374_v48, %s9831_s1  ;;  %v2378_v61 = vmul.f32 %v10801_v9, %v2360_v62 }
 0xd87   :  { %v2356_v29 = vpop.permute.xlu1 %2355 }
 0xd88   :  { %v2376_v55 = vmul.f32 %v10797_v45, %v2356_v29 }
 0xd89   :  { %v2362_v3 = vpop.permute.xlu0 %2361 }
 0xd8a   :  { %2397 = vrot.lane.b32.xlu1 %v2377_v11, %s9831_s1  ;;  %2395 = vrot.lane.b32.xlu0 %v2376_v55, %s9831_s1  ;;  %v2379_v10 = vmul.f32 %v10811_v35, %v2362_v3 }
 0xd8b   :  { %v2364_v12 = vpop.permute.xlu1 %2363 }
 0xd8c   :  { %v2380_v31 = vmul.f32 %v10805_v13, %v2364_v12 }
 0xd8d   :  { %v2310_v25 = vpop.permute.xlu0 %2309 }
 0xd8e   :  { %2403 = vrot.lane.b32.xlu1 %v2380_v31, %s9831_s1  ;;  %2399 = vrot.lane.b32.xlu0 %v2378_v61, %s9831_s1 }
 0xd8f   :  { %v2312_v56 = vpop.permute.xlu1 %2311 }
 0xd90   :  { %v2334_v2 = vmul.f32 %v10791_v44, %v2312_v56 }
 0xd91   :  { %v2314_v39 = vpop.permute.xlu0 %2313 }
 0xd92   :  { %2562 = vrot.lane.b32.xlu1 %v10737_v17, %s9834_s3  ;;  %2401 = vrot.lane.b32.xlu0 %v2379_v10, %s9831_s1  ;;  %v2333_v10 = vmul.f32 %v10783_v14, %v2310_v25  ;;  %v2335_v54 = vmul.f32 %v10787_v30, %v2314_v39 }
 0xd93   :  { %v2316_v19 = vpop.permute.xlu1 %2315 }
 0xd95   :  { %v2322_v48 = vpop.permute.xlu0 %2321 }
 0xd96   :  { %2470 = vperm.xlu1 %8629, %v10050_v51   ;;  %2537 = vperm.xlu0 %8628, %v10053_v52  }
 0xd97   :  { %v2320_v24 = vpop.permute.xlu1 %2319 }
 0xd98   :  { %v2338_v25 = vmul.f32 %v10801_v9, %v2320_v24 }
 0xd9b   :  { %v2318_v29 = vpop.permute.xlu1 %2317 }
 0xd9c   :  { %v2337_v26 = vmul.f32 %v10794_v20, %v2318_v29 }
 0xd9f   :  { %v2324_v11 = vpop.permute.xlu1 %2323 }
 0xdf2   :  { %v2390_v62 = vpop.permute.xlu0 %2389 }
 0xdf3   :  { %v2413_v34 = vadd.f32 %v2390_v62, %v2333_v10 }
 0xdf5   :  { %8964 = vtanh.f32 %v2413_v34 }
 0xdf6   :  { %v2394_v55 = vpop.permute.xlu0 %2393 }
 0xdf7   :  { %v2415_v36 = vadd.f32 %v2394_v55, %v2335_v54  ;;  %v2336_v54 = vmul.f32 %v10797_v45, %v2316_v19 }
 0xdf8   :  { %v2392_v12 = vpop.permute.xlu1 %2391 }
 0xdf9   :  { %v2414_v63 = vadd.f32 %v2392_v12, %v2334_v2  ;;  %8966 = vtanh.f32 %v2415_v36 }
 0xdfb   :  { %v2615_v12 = vrot.slane %v2414_v63, 3 }
 0xdfc   :  { %v2396_v61 = vpop.permute.xlu0 %2395  ;;  %v2398_v31 = vpop.permute.xlu1 %2397 }
 0xdfd   :  { %v2417_v16 = vadd.f32 %v2398_v31, %v2337_v26  ;;  %v2339_v26 = vmul.f32 %v10811_v35, %v2322_v48  ;;  %v2416_v56 = vadd.f32 %v2396_v61, %v2336_v54  ;;  %v2617_v31 = vrot.slane %v2415_v36, 2 }
 0xdff   :  { %8968 = vtanh.f32 %v2417_v16  ;;  %v2619_v10 = vrot.slane %v2416_v56, 1 }
 0xe00   :  { %v2400_v17 = vpop.permute.xlu0 %2399  ;;  %v2404_v3 = vpop.permute.xlu1 %2403  ;;  %8970 = vtanh.f32 %v2414_v63 }
 0xe01   :  { %v2418_v39 = vadd.f32 %v2400_v17, %v2338_v25 }
 0xe03   :  { %8972 = vtanh.f32 %v2418_v39 }
 0xe04   :  { %v2402_v1 = vpop.permute.xlu0 %2401  ;;  %v2563_v57 = vpop.permute.xlu1 %2562  ;;  %8974 = vtanh.f32 %v2416_v56 }
 0xe05   :  { %v2419_v2 = vadd.f32 %v2402_v1, %v2339_v26 }
 0xe07   :  { %8976 = vtanh.f32 %v2419_v2 }
 0xe15   :  { %v10822_v27 = vpop.permute.xlu0 %2537 }
 0xe16   :  { %v2565_v0 = vmul.f32 %v2563_v57, %v10822_v27 }
 0xe18   :  { %v2568_v47 = vrot.slane %v2565_v0, 5  ;;  %v2567_v41 = vrot.slane %v2565_v0, 4  ;;  %v2571_v29 = vrot.slane %v2565_v0, 1  ;;  %v2569_v57 = vrot.slane %v2565_v0, 6 }
 0xe19   :  { %v2570_v24 = vrot.slane %v2565_v0, 7  ;;  %v2573_v36 = vrot.slane %v2565_v0, 3 }
 0xe1a   :  { %2576 = vrot.lane.b32.xlu0 %v2568_v47, %s9836_s10  ;;  %2574 = vrot.lane.b32.xlu1 %v2567_v41, %s9836_s10  ;;  %v8965_v47 = vpop.eup %8964  ;;  %v2340_v41 = vmul.f32 %v10805_v13, %v2324_v11  ;;  %v2614_v11 = vrot.slane %v2413_v34, 4  ;;  %v2572_v34 = vrot.slane %v2565_v0, 2 }
 0xe1b   :  { %v8967_v48 = vpop.eup %8966 }
 0xe1c   :  { %v2420_v19 = vadd.f32 %v2404_v3, %v2340_v41  ;;  %v8969_v62 = vpop.eup %8968  ;;  %v2616_v3 = vsel %vm589_vm3, %v2615_v12, %v2614_v11 }
 0xe1d   :  { %v8971_v55 = vpop.eup %8970  ;;  %v2618_v25 = vsel %vm592_vm4, %v2617_v31, %v2616_v3 }
 0xe1e   :  { %2584 = vrot.lane.b32.xlu0 %v2571_v29, %s9836_s10  ;;  %2578 = vrot.lane.b32.xlu1 %v2569_v57, %s9836_s10  ;;  %8978 = vtanh.f32 %v2420_v19  ;;  %v8973_v1 = vpop.eup %8972  ;;  %v2620_v63 = vsel %vm595_vm5, %v2619_v10, %v2618_v25  ;;  %v2622_v29 = vrot.slane %v2418_v39, 7  ;;  %v2624_v57 = vrot.slane %v2419_v2, 6 }
 0xe1f   :  { %v8975_v61 = vpop.eup %8974  ;;  %v2621_v26 = vsel %vm598_vm6, %v2417_v16, %v2620_v63  ;;  %v2626_v41 = vrot.slane %v2420_v19, 5 }
 0xe20   :  { %v8977_v17 = vpop.eup %8976  ;;  %v2623_v56 = vsel %vm601_vm7, %v2622_v29, %v2621_v26 }
 0xe22   :  { %2580 = vrot.lane.b32.xlu1 %v2570_v24, %s9836_s10  ;;  %2437 = vrot.lane.b32.xlu0 %v8965_v47, %s9832_s11  ;;  %v2625_v24 = vsel %vm604_vm8, %v2624_v57, %v2623_v56  ;;  %v8647_v47 = vld [vmem:[#allocation7] sm:$0xff]  }
 0xe23   :  { %8520 = vmatpush3.bf16.msra.mxu0 %v8647_v47  ;;  %v2627_v39 = vsel %vm13676_vm9, %v2626_v41, %v2625_v24 }
 0xe24   :  { %8531 = vmatprep.subr.bf16.mxu0 %v13699_v7 }
 0xe26   :  { %2445 = vrot.lane.b32.xlu1 %v8969_v62, %s9832_s11  ;;  %2441 = vrot.lane.b32.xlu0 %v8967_v48, %s9832_s11 }
 0xe28   :  { %v8979_v54 = vpop.eup %8978 }
 0xe2a   :  { %2439 = vrot.lane.b32.xlu1 %v8971_v55, %s9832_s11  ;;  %2447 = vrot.lane.b32.xlu0 %v8973_v1, %s9832_s11 }
 0xe2e   :  { %2443 = vrot.lane.b32.xlu1 %v8975_v61, %s9832_s11  ;;  %2449 = vrot.lane.b32.xlu0 %v8977_v17, %s9832_s11 }
 0xe32   :  { %2582 = vrot.lane.b32.xlu1 %v2565_v0, %s9836_s10  ;;  %2451 = vrot.lane.b32.xlu0 %v8979_v54, %s9832_s11  ;;  %v10855_v0 = vpop.permute.xlu1 %2470 }
 0xe33   :  { %v13578_v12 = vrot.slane %v10855_v0, 4  ;;  %v13575_v17 = vrot.slane %v10855_v0, 6  ;;  %v13574_v29 = vrot.slane %v10855_v0, 5  ;;  %v13572_v26 = vrot.slane %v10855_v0, 1 }
 0xe36   :  { %2588 = vrot.lane.b32.xlu1 %v2573_v36, %s9836_s10  ;;  %2586 = vrot.lane.b32.xlu0 %v2572_v34, %s9836_s10 }
 0xe3a   :  { %2628 = vrot.lane.b32.xlu1 %v2627_v39, %s9833_s13 }
 0xe8c   :  { %v2577_v16 = vpop.permute.xlu0 %2576  ;;  %v2575_v2 = vpop.permute.xlu1 %2574 }
 0xe90   :  { %v2585_v48 = vpop.permute.xlu0 %2584  ;;  %v2579_v62 = vpop.permute.xlu1 %2578 }
 0xe94   :  { %v2581_v55 = vpop.permute.xlu1 %2580  ;;  %v2438_v1 = vpop.permute.xlu0 %2437 }
 0xe95   :  { %v2461_v11 = vmul.f32 %v10783_v14, %v2438_v1 }
 0xe97   :  { %v10861_v19 = vmul.f32 %v13578_v12, %v2461_v11  ;;  %v13577_v11 = vrot.slane %v10855_v0, 3 }
 0xe98   :  { %v2446_v61 = vpop.permute.xlu1 %2445  ;;  %v2442_v31 = vpop.permute.xlu0 %2441 }
 0xe99   :  { %13719 = vst [vmem:[#allocation56_spill] sm:$0xff] %v10861_v19  ;;  %v2463_v3 = vmul.f32 %v10787_v30, %v2442_v31  ;;  %v2598_v10 = vadd.f32 %v2575_v2, %v10861_v19  ;;  %v2465_v30 = vmul.f32 %v10794_v20, %v2446_v61 }
 0xe9b   :  { %v10868_v25 = vmul.f32 %v13575_v17, %v2463_v3  ;;  %v2634_v34 = vpack.c.bf16 %v2598_v10, %v2598_v10  ;;  %v3053_v1 = vrot.slane %v2598_v10, 4 }
 0xe9c   :  { %v2440_v54 = vpop.permute.xlu1 %2439  ;;  %v2448_v63 = vpop.permute.xlu0 %2447 }
 0xe9d   :  { %13720 = vst [vmem:[#allocation57_spill] sm:$0xff] %v10868_v25  ;;  %v2600_v14 = vadd.f32 %v2579_v62, %v10868_v25  ;;  %v2462_v57 = vmul.f32 %v10791_v44, %v2440_v54  ;;  %v2466_v36 = vmul.f32 %v10801_v9, %v2448_v63  ;;  %v13573_v9 = vrot.slane %v10855_v0, 7 }
 0xe9e   :  { %v2652_v62 = vunpack.c.l.b16 %v2634_v34  ;;  %v10894_v54 = vmul.f32 %v10855_v0, %v2465_v30 }
 0xe9f   :  { %v10878_v56 = vmul.f32 %v13574_v29, %v2462_v57  ;;  %v2636_v24 = vpack.c.bf16 %v2600_v14, %v2600_v14  ;;  %v10882_v47 = vmul.f32 %v13572_v26, %v2466_v36  ;;  %v3056_v63 = vrot.slane %v2600_v14, 2 }
 0xea0   :  { %v2444_v41 = vpop.permute.xlu1 %2443  ;;  %v2450_v39 = vpop.permute.xlu0 %2449  ;;  %13724 = vst [vmem:[#allocation61_spill] sm:$0xff] %v10894_v54  ;;  %v2660_v26 = vrot.slane %v2652_v62, 4 }
 0xea1   :  { %13721 = vst [vmem:[#allocation58_spill] sm:$0xff] %v10878_v56  ;;  %13722 = vst [vmem:[#allocation59_spill] sm:$0xff] %v10882_v47  ;;  %v2599_v44 = vadd.f32 %v2577_v16, %v10878_v56  ;;  %v2464_v2 = vmul.f32 %v10797_v45, %v2444_v41  ;;  %v2603_v20 = vadd.f32 %v2585_v48, %v10882_v47  ;;  %v2654_v16 = vunpack.c.l.b16 %v2636_v24 }
 0xea2   :  { %v2467_v45 = vmul.f32 %v10811_v35, %v2450_v39  ;;  %v13576_v24 = vrot.slane %v10855_v0, 2 }
 0xea3   :  { %v2635_v61 = vpack.c.bf16 %v2599_v44, %v2599_v44  ;;  %v3054_v31 = vrot.slane %v2599_v44, 3  ;;  %v10891_v3 = vmul.f32 %v13573_v9, %v2464_v2  ;;  %v2639_v57 = vpack.c.bf16 %v2603_v20, %v2603_v20 }
 0xea4   :  { %v2583_v36 = vpop.permute.xlu1 %2582  ;;  %v2452_v10 = vpop.permute.xlu0 %2451  ;;  %v2663_v39 = vrot.slane %v2654_v16, 2  ;;  %v3061_v17 = vrot.slane %v2603_v20, 7 }
 0xea5   :  { %13723 = vst [vmem:[#allocation60_spill] sm:$0xff] %v10891_v3  ;;  %v2653_v34 = vunpack.c.l.b16 %v2635_v61  ;;  %v3055_v48 = vsel %vm589_vm3, %v3054_v31, %v3053_v1  ;;  %v2601_v41 = vadd.f32 %v2581_v55, %v10891_v3  ;;  %v2602_v44 = vadd.f32 %v2583_v36, %v10894_v54 }
 0xea6   :  { %v3057_v2 = vsel %vm592_vm4, %v3056_v63, %v3055_v48  ;;  %v2468_v30 = vmul.f32 %v10805_v13, %v2452_v10  ;;  %v10909_v55 = vmul.f32 %v13576_v24, %v2467_v45  ;;  %v2657_v31 = vunpack.c.l.b16 %v2639_v57 }
 0xea7   :  { %v2661_v14 = vrot.slane %v2653_v34, 3  ;;  %v2637_v9 = vpack.c.bf16 %v2601_v41, %v2601_v41  ;;  %v3058_v29 = vrot.slane %v2601_v41, 1  ;;  %v2638_v35 = vpack.c.bf16 %v2602_v44, %v2602_v44 }
 0xea8   :  { %v2589_v61 = vpop.permute.xlu1 %2588  ;;  %v10905_v1 = vmul.f32 %v13577_v11, %v2468_v30  ;;  %13726 = vst [vmem:[#allocation63_spill] sm:$0xff] %v10909_v55  ;;  %v2587_v62 = vpop.permute.xlu0 %2586  ;;  %v2668_v57 = vrot.slane %v2657_v31, 7 }
 0xea9   :  { %v2662_v13 = vsel %vm589_vm3, %v2661_v14, %v2660_v26  ;;  %v2655_v63 = vunpack.c.l.b16 %v2637_v9  ;;  %v3059_v36 = vsel %vm595_vm5, %v3058_v29, %v3057_v2  ;;  %v2604_v16 = vadd.f32 %v2587_v62, %v10909_v55 }
 0xeaa   :  { %13725 = vst [vmem:[#allocation62_spill] sm:$0xff] %v10905_v1  ;;  %v3060_v10 = vsel %vm598_vm6, %v2602_v44, %v3059_v36  ;;  %v2605_v20 = vadd.f32 %v2589_v61, %v10905_v1  ;;  %v2656_v48 = vunpack.c.l.b16 %v2638_v35  ;;  %v2664_v41 = vsel %vm592_vm4, %v2663_v39, %v2662_v13 }
 0xeab   :  { %v2665_v34 = vrot.slane %v2655_v63, 1  ;;  %v3062_v45 = vsel %vm601_vm7, %v3061_v17, %v3060_v10  ;;  %v2640_v11 = vpack.c.bf16 %v2604_v16, %v2604_v16  ;;  %v3063_v26 = vrot.slane %v2604_v16, 6 }
 0xeac   :  { %v2641_v30 = vpack.c.bf16 %v2605_v20, %v2605_v20  ;;  %v3065_v24 = vrot.slane %v2605_v20, 5 }
 0xead   :  { %v2666_v9 = vsel %vm595_vm5, %v2665_v34, %v2664_v41  ;;  %v2658_v2 = vunpack.c.l.b16 %v2640_v11  ;;  %v3064_v14 = vsel %vm604_vm8, %v3063_v26, %v3062_v45 }
 0xeae   :  { %v2667_v29 = vsel %vm598_vm6, %v2656_v48, %v2666_v9  ;;  %v2659_v44 = vunpack.c.l.b16 %v2641_v30  ;;  %v10923_v35 = vsel %vm13676_vm9, %v3065_v24, %v3064_v14 }
 0xeaf   :  { %v2669_v61 = vsel %vm601_vm7, %v2668_v57, %v2667_v29  ;;  %v2670_v17 = vrot.slane %v2658_v2, 6 }
 0xeb0   :  { %v2672_v39 = vrot.slane %v2659_v44, 5 }
 0xeb1   :  { %v2671_v62 = vsel %vm604_vm8, %v2670_v17, %v2669_v61 }
 0xeb2   :  { %v2673_v13 = vsel %vm13676_vm9, %v2672_v39, %v2671_v62 }
 0xeb3   :  { %v2674_v31 = vpack.c.b16 %v2673_v13, %v2673_v13  ;;  %v2629_v13 = vpop.permute.xlu1 %2628 }
 0xeb5   :  { %2675 = vrot.lane.b32.xlu0 %v2674_v31, %s9834_s3 }
 0xf27   :  { %v2676_v63 = vpop.permute.xlu0 %2675 }
 0xf28   :  { %8522 = vmatmul.mubr.msk.bf16.vlgmr.msra.gmra.mrb[16].mxu0 %vm222_vm10, %v2676_v63  ;;  %v2631_v63 = vmul.f32 %v2629_v13, %v10855_v0 }
 0xf29   :  { %8533 = vmatprep.mubr.msk.bf16.mxu0 %vm9829_vm0, %v13699_v7 }
 0xffb   :  { %v2720_v11 = vpop.f32.mrb[16].mxu0 }
 0xffc   :  { %v2727_v36 = vrot.slane %v2720_v11, 3  ;;  %v8523_v10 = vpop.f32.mrb[17].mxu0  ;;  %v2728_v34 = vrot.slane %v2720_v11, 4  ;;  %v2729_v48 = vrot.slane %v2720_v11, 5  ;;  %v2730_v41 = vrot.slane %v2720_v11, 6 }
 0xffd   :  { %v2723_v24 = vpop.f32.mrb[18].mxu0  ;;  %v2731_v30 = vrot.slane %v2720_v11, 7  ;;  %v2732_v57 = vrot.slane %v2720_v11, 1  ;;  %v2733_v2 = vrot.slane %v2720_v11, 2  ;;  %v2747_v61 = vadd.f32 %v2720_v11, %v9978_v28 }
 0xffe   :  { %v10932_v20 = vadd.f32 %v2727_v36, %v9972_v18  ;;  %v8524_v16 = vpop.f32.mrb[19].mxu0  ;;  %v2743_v45 = vadd.f32 %v2728_v34, %v9983_v33  ;;  %v2744_v26 = vadd.f32 %v2729_v48, %v9988_v38  ;;  %v2745_v9 = vadd.f32 %v2730_v41, %v9974_v22 }
 0xfff   :  { %v10939_v44 = vadd.f32 %v2731_v30, %v9992_v42  ;;  %v2748_v14 = vadd.f32 %v2732_v57, %v9995_v46  ;;  %v2749_v39 = vadd.f32 %v2733_v2, %v9981_v32  ;;  %v2632_v11 = vmul.f32 %v10822_v27, %v10761_v23 }
0x1000   :  { %8980 = vtanh.f32 %v10932_v20  ;;  %v9840_v34 = vmov 5   ;;  %v8321_v13 = vmul.f32 -1.442695, %v2744_v26 }
0x1001   :  { %8982 = vtanh.f32 %v2743_v45  ;;  %v10953_v24 = vadd.f32 %v2632_v11, %v2631_v63  ;;  %8630 = vset.pattern.permute.xlu0 %v9840_v34  ;;  %8631 = vset.pattern.permute.xlu1 %v9840_v34  ;;  %v8324_v63 = vmul.f32 -1.442695, %v2747_v61  ;;  %v8319_v11 = vmul.f32 -1.442695, %v10932_v20 }
0x1002   :  { %8984 = vtanh.f32 %v2744_v26  ;;  %v8322_v34 = vmul.f32 -1.442695, %v2745_v9 }
0x1003   :  { %8986 = vtanh.f32 %v2745_v9  ;;  %v2807_v41 = vrot.slane %v10953_v24, 3  ;;  %v2808_v23 = vrot.slane %v10953_v24, 4  ;;  %v2809_v30 = vrot.slane %v10953_v24, 5 }
0x1004   :  { %8988 = vtanh.f32 %v10939_v44  ;;  %v2810_v57 = vrot.slane %v10953_v24, 6  ;;  %v2812_v2 = vrot.slane %v10953_v24, 1 }
0x1005   :  { %8990 = vtanh.f32 %v2748_v14 }
0x1006   :  { %8992 = vtanh.f32 %v2747_v61 }
0x1007   :  { %8994 = vtanh.f32 %v2749_v39 }
0x100a   :  { %v8981_v29 = vpop.eup %8980 }
0x100b   :  { %2854 = vrot.lane.b32.xlu0 %v8981_v29, %s9830_s5  ;;  %v8983_v17 = vpop.eup %8982  ;;  %v2811_v29 = vrot.slane %v10953_v24, 7 }
0x100c   :  { %v8985_v62 = vpop.eup %8984  ;;  %2856 = vrot.lane.b32.xlu1 %v8983_v17, %s9830_s5  ;;  %v2813_v17 = vrot.slane %v10953_v24, 2 }
0x100d   :  { %v8987_v31 = vpop.eup %8986 }
0x100e   :  { %v8989_v36 = vpop.eup %8988 }
0x100f   :  { %2858 = vrot.lane.b32.xlu0 %v8985_v62, %s9830_s5  ;;  %v8991_v10 = vpop.eup %8990  ;;  %v8320_v62 = vmul.f32 -1.442695, %v2743_v45  ;;  %v8323_v45 = vmul.f32 -1.442695, %v10939_v44 }
0x1010   :  { %2860 = vrot.lane.b32.xlu1 %v8987_v31, %s9830_s5  ;;  %v8993_v16 = vpop.eup %8992  ;;  %v8325_v31 = vmul.f32 -1.442695, %v2748_v14 }
0x1011   :  { %v8995_v48 = vpop.eup %8994  ;;  %8996 = vpow2.f32 %v8320_v62 }
0x1012   :  { %8998 = vpow2.f32 %v8321_v13 }
0x1013   :  { %2862 = vrot.lane.b32.xlu0 %v8989_v36, %s9830_s5  ;;  %9000 = vpow2.f32 %v8325_v31  ;;  %v8326_v36 = vmul.f32 -1.442695, %v2749_v39 }
0x1014   :  { %2866 = vrot.lane.b32.xlu1 %v8991_v10, %s9830_s5  ;;  %9002 = vpow2.f32 %v8324_v63 }
0x1015   :  { %9004 = vpow2.f32 %v8326_v36 }
0x1016   :  { %9006 = vpow2.f32 %v8319_v11 }
0x1017   :  { %2864 = vrot.lane.b32.xlu0 %v8993_v16, %s9830_s5  ;;  %9008 = vpow2.f32 %v8322_v34 }
0x1018   :  { %2868 = vrot.lane.b32.xlu1 %v8995_v48, %s9830_s5 }
0x101b   :  { %2814 = vrot.lane.b32.xlu0 %v2807_v41, %s9831_s1  ;;  %v8997_v10 = vpop.eup %8996 }
0x101c   :  { %2816 = vrot.lane.b32.xlu1 %v2808_v23, %s9831_s1  ;;  %v8999_v16 = vpop.eup %8998  ;;  %v2775_v48 = vadd.f32 1.0, %v8997_v10 }
0x101d   :  { %v2776_v41 = vadd.f32 1.0, %v8999_v16  ;;  %v9001_v26 = vpop.eup %9000 }
0x101e   :  { %9010 = vrcp.f32 %v2775_v48  ;;  %v9003_v23 = vpop.eup %9002  ;;  %v2780_v14 = vadd.f32 1.0, %v9001_v26 }
0x101f   :  { %2818 = vrot.lane.b32.xlu0 %v2809_v30, %s9831_s1  ;;  %9012 = vrcp.f32 %v2776_v41  ;;  %v9005_v61 = vpop.eup %9004  ;;  %v2779_v39 = vadd.f32 1.0, %v9003_v23 }
0x1020   :  { %2820 = vrot.lane.b32.xlu1 %v2810_v57, %s9831_s1  ;;  %9014 = vpow2.f32 %v8323_v45  ;;  %v9007_v30 = vpop.eup %9006  ;;  %v2781_v57 = vadd.f32 1.0, %v9005_v61 }
0x1021   :  { %9016 = vrcp.f32 %v2780_v14  ;;  %v9009_v9 = vpop.eup %9008 }
0x1022   :  { %9018 = vrcp.f32 %v2779_v39  ;;  %v2777_v31 = vadd.f32 1.0, %v9009_v9 }
0x1023   :  { %2822 = vrot.lane.b32.xlu0 %v2811_v29, %s9831_s1  ;;  %v2774_v29 = vadd.f32 1.0, %v9007_v30  ;;  %9020 = vrcp.f32 %v2781_v57 }
0x1024   :  { %2826 = vrot.lane.b32.xlu1 %v2812_v2, %s9831_s1 }
0x1025   :  { %9022 = vrcp.f32 %v2774_v29 }
0x1026   :  { %9024 = vrcp.f32 %v2777_v31 }
0x1027   :  { %2828 = vrot.lane.b32.xlu0 %v2813_v17, %s9831_s1 }
0x1028   :  { %2824 = vrot.lane.b32.xlu1 %v10953_v24, %s9831_s1  ;;  %v10976_v2 = vpop.eup %9010 }
0x1029   :  { %v10979_v13 = vpop.eup %9012 }
0x102a   :  { %v9015_v36 = vpop.eup %9014 }
0x102b   :  { %v2778_v16 = vadd.f32 1.0, %v9015_v36  ;;  %v10984_v34 = vpop.eup %9016 }
0x102c   :  { %v10986_v41 = vpop.eup %9018 }
0x102d   :  { %9026 = vrcp.f32 %v2778_v16  ;;  %v10991_v14 = vpop.eup %9020 }
0x102f   :  { %v10994_v39 = vpop.eup %9022 }
0x1030   :  { %v11000_v9 = vpop.eup %9024 }
0x107d   :  { %v2855_v20 = vpop.permute.xlu0 %2854 }
0x107e   :  { %v2857_v17 = vpop.permute.xlu1 %2856  ;;  %v2878_v57 = vmul.f32 %v10994_v39, %v2855_v20 }
0x107f   :  { %v2879_v44 = vmul.f32 %v10976_v2, %v2857_v17  ;;  %v11006_v17 = vpop.eup %9026 }
0x1081   :  { %v2859_v62 = vpop.permute.xlu0 %2858  ;;  %2896 = vrot.lane.b32.xlu1 %v2879_v44, %s9831_s1 }
0x1082   :  { %v2880_v63 = vmul.f32 %v10979_v13, %v2859_v62  ;;  %v2861_v11 = vpop.permute.xlu1 %2860 }
0x1083   :  { %v2881_v29 = vmul.f32 %v11000_v9, %v2861_v11 }
0x1085   :  { %v2863_v10 = vpop.permute.xlu0 %2862  ;;  %2898 = vrot.lane.b32.xlu1 %v2880_v63, %s9831_s1 }
0x1086   :  { %v2867_v48 = vpop.permute.xlu1 %2866  ;;  %v2882_v44 = vmul.f32 %v11006_v17, %v2863_v10 }
0x1087   :  { %v2884_v45 = vmul.f32 %v10984_v34, %v2867_v48 }
0x1089   :  { %v2865_v26 = vpop.permute.xlu0 %2864  ;;  %2906 = vrot.lane.b32.xlu1 %v2884_v45, %s9831_s1 }
0x108a   :  { %v2883_v23 = vmul.f32 %v10986_v41, %v2865_v26  ;;  %v2869_v61 = vpop.permute.xlu1 %2868 }
0x108b   :  { %v2885_v30 = vmul.f32 %v10991_v14, %v2869_v61 }
0x108c   :  { %2904 = vrot.lane.b32.xlu0 %v2883_v23, %s9831_s1 }
0x108d   :  { %2908 = vrot.lane.b32.xlu1 %v2885_v30, %s9831_s1  ;;  %v2815_v31 = vpop.permute.xlu0 %2814 }
0x108e   :  { %v2817_v20 = vpop.permute.xlu1 %2816  ;;  %v2838_v61 = vmul.f32 %v10994_v39, %v2815_v31 }
0x108f   :  { %v2839_v23 = vmul.f32 %v10976_v2, %v2817_v20 }
0x1090   :  { %2894 = vrot.lane.b32.xlu0 %v2878_v57, %s9831_s1 }
0x1091   :  { %3067 = vrot.lane.b32.xlu1 %v10923_v35, %s9834_s3  ;;  %v2819_v36 = vpop.permute.xlu0 %2818 }
0x1092   :  { %v2821_v62 = vpop.permute.xlu1 %2820  ;;  %v2840_v10 = vmul.f32 %v10979_v13, %v2819_v36 }
0x1093   :  { %v2841_v1 = vmul.f32 %v11000_v9, %v2821_v62 }
0x1094   :  { %2900 = vrot.lane.b32.xlu0 %v2881_v29, %s9831_s1 }
0x1095   :  { %2975 = vperm.xlu1 %8631, %v10050_v51   ;;  %v2823_v16 = vpop.permute.xlu0 %2822 }
0x1096   :  { %v2827_v63 = vpop.permute.xlu1 %2826  ;;  %v2842_v31 = vmul.f32 %v11006_v17, %v2823_v16 }
0x1097   :  { %v2844_v36 = vmul.f32 %v10984_v34, %v2827_v63 }
0x1098   :  { %2902 = vrot.lane.b32.xlu0 %v2882_v44, %s9831_s1 }
0x1099   :  { %v2829_v48 = vpop.permute.xlu0 %2828 }
0x109a   :  { %v2825_v11 = vpop.permute.xlu1 %2824 }
0x109b   :  { %v2843_v56 = vmul.f32 %v10986_v41, %v2825_v11 }
0x109c   :  { %3042 = vperm.xlu0 %8630, %v10053_v52  }
0x10f3   :  { %v2897_v35 = vpop.permute.xlu1 %2896 }
0x10f4   :  { %v2919_v30 = vadd.f32 %v2897_v35, %v2839_v23  ;;  %v2845_v23 = vmul.f32 %v10991_v14, %v2829_v48 }
0x10f6   :  { %v3120_v55 = vrot.slane %v2919_v30, 4 }
0x10f7   :  { %v2899_v45 = vpop.permute.xlu1 %2898 }
0x10f8   :  { %v2920_v57 = vadd.f32 %v2899_v45, %v2840_v10 }
0x10fa   :  { %v3122_v54 = vrot.slane %v2920_v57, 3 }
0x10fb   :  { %v2907_v44 = vpop.permute.xlu1 %2906 }
0x10fe   :  { %v2905_v26 = vpop.permute.xlu0 %2904 }
0x10ff   :  { %v2909_v35 = vpop.permute.xlu1 %2908 }
0x1100   :  { %v2925_v21 = vadd.f32 %v2909_v35, %v2845_v23 }
0x1102   :  { %v2895_v29 = vpop.permute.xlu0 %2894 }
0x1103   :  { %v2918_v12 = vadd.f32 %v2895_v29, %v2838_v61  ;;  %v2924_v61 = vadd.f32 %v2907_v44, %v2844_v36  ;;  %v3068_v48 = vpop.permute.xlu1 %3067 }
0x1105   :  { %v3119_v47 = vrot.slane %v2918_v12, 5 }
0x1106   :  { %v2901_v3 = vpop.permute.xlu0 %2900 }
0x1107   :  { %v3121_v25 = vsel %vm589_vm3, %v3120_v55, %v3119_v47  ;;  %v2921_v15 = vadd.f32 %v2901_v3, %v2841_v1  ;;  %v2923_v3 = vadd.f32 %v2905_v26, %v2843_v56  ;;  %v3129_v1 = vrot.slane %v2924_v61, 7 }
0x1108   :  { %v3123_v20 = vsel %vm592_vm4, %v3122_v54, %v3121_v25  ;;  %v3131_v54 = vrot.slane %v2925_v21, 6 }
0x1109   :  { %v3124_v45 = vrot.slane %v2921_v15, 2  ;;  %9028 = vtanh.f32 %v2923_v3 }
0x110a   :  { %v2903_v10 = vpop.permute.xlu0 %2902  ;;  %9030 = vtanh.f32 %v2919_v30 }
0x110b   :  { %v3125_v62 = vsel %vm595_vm5, %v3124_v45, %v3123_v20  ;;  %v2922_v29 = vadd.f32 %v2903_v10, %v2842_v31  ;;  %9032 = vtanh.f32 %v2918_v12 }
0x110c   :  { %9034 = vtanh.f32 %v2920_v57 }
0x110d   :  { %v3126_v47 = vrot.slane %v2922_v29, 1  ;;  %9036 = vtanh.f32 %v2921_v15 }
0x110e   :  { %9038 = vtanh.f32 %v2924_v61 }
0x110f   :  { %v3127_v25 = vsel %vm598_vm6, %v3126_v47, %v3125_v62  ;;  %9040 = vtanh.f32 %v2922_v29 }
0x1110   :  { %v3128_v55 = vsel %vm601_vm7, %v2923_v3, %v3127_v25  ;;  %9042 = vtanh.f32 %v2925_v21  ;;  %v8648_v21 = vld [vmem:[#allocation7] sm:$0xff]  }
0x1111   :  { %v3130_v63 = vsel %vm604_vm8, %v3129_v1, %v3128_v55  ;;  %8526 = vmatpush3.bf16.msra.mxu1 %v8648_v21 }
0x1112   :  { %v11027_v16 = vsel %vm13676_vm9, %v3131_v54, %v3130_v63  ;;  %8537 = vmatprep.subr.bf16.mxu1 %v13699_v7 }
0x1113   :  { %v9029_v35 = vpop.eup %9028 }
0x1114   :  { %v9031_v30 = vpop.eup %9030  ;;  %v11049_v29 = vpop.permute.xlu1 %2975 }
0x1115   :  { %v9033_v45 = vpop.eup %9032 }
0x1116   :  { %v9035_v12 = vpop.eup %9034 }
0x1117   :  { %v9037_v57 = vpop.eup %9036 }
0x1118   :  { %v9039_v15 = vpop.eup %9038 }
0x1119   :  { %v9041_v23 = vpop.eup %9040 }
0x111a   :  { %v9043_v61 = vpop.eup %9042 }
0x111b   :  { %v11029_v44 = vpop.permute.xlu0 %3042 }
0x111c   :  { %v3070_v20 = vmul.f32 %v3068_v48, %v11029_v44 }
0x111e   :  { %v3073_v11 = vrot.slane %v3070_v20, 4  ;;  %v3072_v36 = vrot.slane %v3070_v20, 3  ;;  %v3074_v56 = vrot.slane %v3070_v20, 5  ;;  %v3075_v26 = vrot.slane %v3070_v20, 6 }
0x111f   :  { %v3076_v31 = vrot.slane %v3070_v20, 7  ;;  %v3077_v10 = vrot.slane %v3070_v20, 1  ;;  %v3078_v62 = vrot.slane %v3070_v20, 2 }
0x1120   :  { %3081 = vrot.lane.b32.xlu0 %v3073_v11, %s9836_s10  ;;  %3079 = vrot.lane.b32.xlu1 %v3072_v36, %s9836_s10  ;;  %v13594_v11 = vrot.slane %v11049_v29, 4 }
0x1124   :  { %3083 = vrot.lane.b32.xlu0 %v3074_v56, %s9836_s10  ;;  %3085 = vrot.lane.b32.xlu1 %v3075_v26, %s9836_s10  ;;  %v13591_v56 = vrot.slane %v11049_v29, 3 }
0x1128   :  { %3087 = vrot.lane.b32.xlu0 %v3076_v31, %s9836_s10  ;;  %2952 = vrot.lane.b32.xlu1 %v9029_v35, %s9832_s11 }
0x112c   :  { %2944 = vrot.lane.b32.xlu1 %v9031_v30, %s9832_s11  ;;  %2942 = vrot.lane.b32.xlu0 %v9033_v45, %s9832_s11 }
0x1130   :  { %2948 = vrot.lane.b32.xlu1 %v9037_v57, %s9832_s11  ;;  %2946 = vrot.lane.b32.xlu0 %v9035_v12, %s9832_s11 }
0x1134   :  { %2954 = vrot.lane.b32.xlu1 %v9039_v15, %s9832_s11  ;;  %2950 = vrot.lane.b32.xlu0 %v9041_v23, %s9832_s11  ;;  %v13588_v15 = vrot.slane %v11049_v29, 5 }
0x1138   :  { %3091 = vrot.lane.b32.xlu1 %v3077_v10, %s9836_s10  ;;  %2956 = vrot.lane.b32.xlu0 %v9043_v61, %s9832_s11 }
0x113c   :  { %3093 = vrot.lane.b32.xlu1 %v3078_v62, %s9836_s10  ;;  %3089 = vrot.lane.b32.xlu0 %v3070_v20, %s9836_s10 }
0x1192   :  { %v3082_v47 = vpop.permute.xlu0 %3081  ;;  %v3080_v3 = vpop.permute.xlu1 %3079 }
0x1196   :  { %v3084_v1 = vpop.permute.xlu0 %3083  ;;  %v3086_v25 = vpop.permute.xlu1 %3085 }
0x119a   :  { %v3088_v54 = vpop.permute.xlu0 %3087  ;;  %v2953_v55 = vpop.permute.xlu1 %2952 }
0x119e   :  { %v2945_v63 = vpop.permute.xlu1 %2944  ;;  %v2943_v48 = vpop.permute.xlu0 %2942 }
0x119f   :  { %v2967_v36 = vmul.f32 %v10976_v2, %v2945_v63  ;;  %v2966_v20 = vmul.f32 %v10994_v39, %v2943_v48  ;;  %v13590_v39 = vrot.slane %v11049_v29, 6 }
0x11a1   :  { %v11057_v26 = vmul.f32 %v13594_v11, %v2967_v36  ;;  %v11061_v31 = vmul.f32 %v13591_v56, %v2966_v20  ;;  %v13589_v36 = vrot.slane %v11049_v29, 1 }
0x11a2   :  { %v2949_v35 = vpop.permute.xlu1 %2948  ;;  %v2947_v30 = vpop.permute.xlu0 %2946 }
0x11a3   :  { %13727 = vst [vmem:[#allocation64_spill] sm:$0xff] %v11057_v26  ;;  %13728 = vst [vmem:[#allocation65_spill] sm:$0xff] %v11061_v31  ;;  %v3104_v45 = vadd.f32 %v3082_v47, %v11057_v26  ;;  %v3103_v12 = vadd.f32 %v3080_v3, %v11061_v31  ;;  %v2969_v2 = vmul.f32 %v11000_v9, %v2949_v35 }
0x11a4   :  { %v2968_v57 = vmul.f32 %v10979_v13, %v2947_v30 }
0x11a5   :  { %v3140_v23 = vpack.c.bf16 %v3104_v45, %v3104_v45  ;;  %v3559_v10 = vrot.slane %v3104_v45, 4  ;;  %v3139_v61 = vpack.c.bf16 %v3103_v12, %v3103_v12  ;;  %v3558_v62 = vrot.slane %v3103_v12, 5 }
0x11a6   :  { %v11071_v21 = vmul.f32 %v13590_v39, %v2969_v2  ;;  %v11075_v47 = vmul.f32 %v13588_v15, %v2968_v57  ;;  %v2955_v3 = vpop.permute.xlu1 %2954  ;;  %v2951_v9 = vpop.permute.xlu0 %2950  ;;  %v2971_v12 = vmul.f32 %v10986_v41, %v2953_v55  ;;  %v13593_v2 = vrot.slane %v11049_v29, 7 }
0x11a7   :  { %v3158_v63 = vunpack.c.l.b16 %v3140_v23  ;;  %v3560_v13 = vsel %vm589_vm3, %v3559_v10, %v3558_v62  ;;  %v2972_v48 = vmul.f32 %v10984_v34, %v2955_v3  ;;  %v3157_v20 = vunpack.c.l.b16 %v3139_v61 }
0x11a8   :  { %13729 = vst [vmem:[#allocation66_spill] sm:$0xff] %v11071_v21  ;;  %13730 = vst [vmem:[#allocation67_spill] sm:$0xff] %v11075_v47  ;;  %v3106_v35 = vadd.f32 %v3086_v25, %v11071_v21  ;;  %v3105_v30 = vadd.f32 %v3084_v1, %v11075_v47  ;;  %v2970_v45 = vmul.f32 %v11006_v17, %v2951_v9  ;;  %v13592_v23 = vrot.slane %v11049_v29, 2 }
0x11a9   :  { %v11087_v57 = vmul.f32 %v13589_v36, %v2972_v48  ;;  %v3166_v15 = vrot.slane %v3158_v63, 4  ;;  %v3165_v55 = vrot.slane %v3157_v20, 5 }
0x11aa   :  { %v3142_v34 = vpack.c.bf16 %v3106_v35, %v3106_v35  ;;  %v3563_v10 = vrot.slane %v3106_v35, 2  ;;  %v3141_v62 = vpack.c.bf16 %v3105_v30, %v3105_v30  ;;  %v3561_v61 = vrot.slane %v3105_v30, 3  ;;  %v3092_v3 = vpop.permute.xlu1 %3091  ;;  %v2957_v25 = vpop.permute.xlu0 %2956 }
0x11ab   :  { %13731 = vst [vmem:[#allocation68_spill] sm:$0xff] %v11087_v57  ;;  %v11092_v17 = vmul.f32 %v13593_v2, %v2970_v45  ;;  %v3109_v41 = vadd.f32 %v3092_v3, %v11087_v57  ;;  %v2973_v1 = vmul.f32 %v10991_v14, %v2957_v25  ;;  %v11103_v45 = vmul.f32 %v11049_v29, %v2971_v12 }
0x11ac   :  { %v3160_v9 = vunpack.c.l.b16 %v3142_v34  ;;  %v3159_v48 = vunpack.c.l.b16 %v3141_v62  ;;  %v3562_v36 = vsel %vm592_vm4, %v3561_v61, %v3560_v13  ;;  %v3167_v13 = vsel %vm589_vm3, %v3166_v15, %v3165_v55 }
0x11ad   :  { %13732 = vst [vmem:[#allocation69_spill] sm:$0xff] %v11092_v17  ;;  %v3107_v35 = vadd.f32 %v3088_v54, %v11092_v17  ;;  %v3145_v39 = vpack.c.bf16 %v3109_v41, %v3109_v41  ;;  %v11100_v30 = vmul.f32 %v13592_v23, %v2973_v1  ;;  %13734 = vst [vmem:[#allocation71_spill] sm:$0xff] %v11103_v45  ;;  %v3568_v12 = vrot.slane %v3109_v41, 7 }
0x11ae   :  { %v3168_v63 = vrot.slane %v3159_v48, 3  ;;  %v3094_v56 = vpop.permute.xlu1 %3093  ;;  %v3564_v3 = vsel %vm595_vm5, %v3563_v10, %v3562_v36  ;;  %v3090_v14 = vpop.permute.xlu0 %3089  ;;  %v3170_v54 = vrot.slane %v3160_v9, 2 }
0x11af   :  { %13733 = vst [vmem:[#allocation70_spill] sm:$0xff] %v11100_v30  ;;  %v3143_v20 = vpack.c.bf16 %v3107_v35, %v3107_v35  ;;  %v3565_v34 = vrot.slane %v3107_v35, 1  ;;  %v3110_v62 = vadd.f32 %v3094_v56, %v11100_v30  ;;  %v3163_v61 = vunpack.c.l.b16 %v3145_v39 }
0x11b0   :  { %v3108_v25 = vadd.f32 %v3090_v14, %v11103_v45  ;;  %v3169_v1 = vsel %vm592_vm4, %v3168_v63, %v3167_v13 }
0x11b1   :  { %v3161_v48 = vunpack.c.l.b16 %v3143_v20  ;;  %v3146_v23 = vpack.c.bf16 %v3110_v62, %v3110_v62  ;;  %v3570_v2 = vrot.slane %v3110_v62, 6  ;;  %v3566_v11 = vsel %vm598_vm6, %v3565_v34, %v3564_v3 }
0x11b2   :  { %v3144_v36 = vpack.c.bf16 %v3108_v25, %v3108_v25  ;;  %v3567_v35 = vsel %vm601_vm7, %v3108_v25, %v3566_v11  ;;  %v3171_v56 = vsel %vm595_vm5, %v3170_v54, %v3169_v1  ;;  %v3175_v55 = vrot.slane %v3163_v61, 7  ;;  %v8649_v11 = vld [vmem:[%s13508_s4] sm:$0xff]  }
0x11b3   :  { %v3172_v10 = vrot.slane %v3161_v48, 1  ;;  %v3164_v57 = vunpack.c.l.b16 %v3146_v23  ;;  %v3569_v39 = vsel %vm604_vm8, %v3568_v12, %v3567_v35 }
0x11b4   :  { %v3162_v15 = vunpack.c.l.b16 %v3144_v36  ;;  %v11116_v14 = vsel %vm13676_vm9, %v3570_v2, %v3569_v39  ;;  %v13735_v2 = vmov 0  }
0x11b5   :  { %v3177_v9 = vrot.slane %v3164_v57, 6  ;;  %v3173_v63 = vsel %vm598_vm6, %v3172_v10, %v3171_v56 }
0x11b6   :  { %v3174_v41 = vsel %vm601_vm7, %v3162_v15, %v3173_v63 }
0x11b7   :  { %v3176_v3 = vsel %vm604_vm8, %v3175_v55, %v3174_v41 }
0x11b8   :  { %v3178_v23 = vsel %vm13676_vm9, %v3177_v9, %v3176_v3 }
0x11b9   :  { %v3179_v20 = vpack.c.b16 %v3178_v23, %v3178_v23 }
0x11bb   :  { %3180 = vrot.lane.b32.xlu0 %v3179_v20, %s9834_s3 }
0x122d   :  { %v3181_v34 = vpop.permute.xlu0 %3180 }
0x122e   :  { %8528 = vmatmul.mubr.msk.bf16.vlgmr.msra.gmra.mrb[12].mxu1 %vm222_vm10, %v3181_v34 }
0x122f   :  { %8538 = vmatpush3.bf16.msra.mxu1 %v8649_v11  ;;  %8539 = vmatprep.mubr.msk.bf16.mxu1 %vm9829_vm0, %v13699_v7 }
0x1230   :  { %8549 = vmatprep.subr.bf16.mxu1 %v13699_v7 }
0x1236   :  { %8540 = vmatmul.mubr.bf16.vlgmr.msra.gmra.mrb[16].mxu1 %v13735_v2 }
0x1237   :  { %8551 = vmatprep.mubr.msk.bf16.mxu1 %vm9829_vm0, %v13699_v7 }
0x1301   :  { %v3225_v57 = vpop.f32.mrb[12].mxu1 }
0x1302   :  { %v8529_v62 = vpop.f32.mrb[13].mxu1  ;;  %v3232_v61 = vrot.slane %v3225_v57, 2  ;;  %v3234_v10 = vrot.slane %v3225_v57, 4  ;;  %v3233_v55 = vrot.slane %v3225_v57, 3  ;;  %v3236_v63 = vrot.slane %v3225_v57, 6 }
0x1303   :  { %v3228_v13 = vpop.f32.mrb[14].mxu1  ;;  %v11139_v41 = vadd.f32 %v3225_v57, %v9995_v46  ;;  %v3235_v20 = vrot.slane %v3225_v57, 5  ;;  %v3238_v34 = vrot.slane %v3225_v57, 1 }
0x1304   :  { %v8530_v54 = vpop.f32.mrb[15].mxu1  ;;  %v3247_v56 = vadd.f32 %v3232_v61, %v9972_v18  ;;  %v3249_v9 = vadd.f32 %v3234_v10, %v9988_v38  ;;  %v3248_v11 = vadd.f32 %v3233_v55, %v9983_v33  ;;  %v11145_v2 = vadd.f32 %v3236_v63, %v9992_v42 }
0x1305   :  { %v3250_v13 = vadd.f32 %v3235_v20, %v9974_v22  ;;  %v3237_v54 = vrot.slane %v3225_v57, 7  ;;  %v11152_v61 = vadd.f32 %v3238_v34, %v9981_v32 }
0x1306   :  { %9044 = vtanh.f32 %v3247_v56 }
0x1307   :  { %9046 = vtanh.f32 %v3249_v9 }
0x1308   :  { %9048 = vtanh.f32 %v11139_v41 }
0x1309   :  { %v4093_v25 = vpop.f32.mrb[16].mxu1  ;;  %9050 = vtanh.f32 %v3248_v11 }
0x130a   :  { %v8541_v1 = vpop.f32.mrb[17].mxu1  ;;  %v4101_v48 = vrot.slane %v4093_v25, 2  ;;  %v4100_v12 = vrot.slane %v4093_v25, 1  ;;  %v4103_v15 = vrot.slane %v4093_v25, 4  ;;  %v4102_v39 = vrot.slane %v4093_v25, 3 }
0x130b   :  { %v4096_v36 = vpop.f32.mrb[18].mxu1  ;;  %v4105_v3 = vrot.slane %v4093_v25, 6  ;;  %v4104_v23 = vrot.slane %v4093_v25, 5  ;;  %v4106_v62 = vrot.slane %v4093_v25, 7  ;;  %9052 = vtanh.f32 %v11145_v2 }
0x130c   :  { %4109 = vrot.lane.b32.xlu0 %v4101_v48, %s9824_s21  ;;  %4107 = vrot.lane.b32.xlu1 %v4100_v12, %s9824_s21  ;;  %v8542_v35 = vpop.f32.mrb[19].mxu1  ;;  %9054 = vtanh.f32 %v3250_v13  ;;  %v11159_v48 = vadd.f32 %v3237_v54, %v9978_v28 }
0x130d   :  { %9056 = vtanh.f32 %v11152_v61 }
0x130e   :  { %9058 = vtanh.f32 %v11159_v48 }
0x1310   :  { %4113 = vrot.lane.b32.xlu0 %v4103_v15, %s9824_s21  ;;  %4111 = vrot.lane.b32.xlu1 %v4102_v39, %s9824_s21  ;;  %v9045_v1 = vpop.eup %9044  ;;  %v9841_v15 = vmov 6  }
0x1311   :  { %8632 = vset.pattern.permute.xlu1 %v9841_v15  ;;  %8633 = vset.pattern.permute.xlu0 %v9841_v15 }
0x1314   :  { %4117 = vrot.lane.b32.xlu0 %v4105_v3, %s9824_s21  ;;  %4115 = vrot.lane.b32.xlu1 %v4104_v23, %s9824_s21  ;;  %v8330_v23 = vmul.f32 -1.442695, %v3248_v11 }
0x1318   :  { %4121 = vrot.lane.b32.xlu0 %v4093_v25, %s9824_s21  ;;  %4119 = vrot.lane.b32.xlu1 %v4106_v62, %s9824_s21  ;;  %v9047_v25 = vpop.eup %9046  ;;  %v8329_v62 = vmul.f32 -1.442695, %v3247_v56 }
0x1319   :  { %v9049_v12 = vpop.eup %9048 }
0x131a   :  { %v9051_v57 = vpop.eup %9050 }
0x131b   :  { %v9053_v36 = vpop.eup %9052 }
0x131c   :  { %3359 = vrot.lane.b32.xlu0 %v9045_v1, %s9830_s5  ;;  %3133 = vrot.lane.b32.xlu1 %v11027_v16, %s9833_s13  ;;  %v9055_v16 = vpop.eup %9054 }
0x131d   :  { %v9057_v10 = vpop.eup %9056 }
0x131e   :  { %v9059_v35 = vpop.eup %9058 }
0x1320   :  { %3363 = vrot.lane.b32.xlu0 %v9047_v25, %s9830_s5  ;;  %3371 = vrot.lane.b32.xlu1 %v9049_v12, %s9830_s5  ;;  %v8331_v25 = vmul.f32 -1.442695, %v3249_v9 }
0x1324   :  { %3367 = vrot.lane.b32.xlu0 %v9053_v36, %s9830_s5  ;;  %3361 = vrot.lane.b32.xlu1 %v9051_v57, %s9830_s5  ;;  %v8332_v36 = vmul.f32 -1.442695, %v3250_v13 }
0x1328   :  { %3373 = vrot.lane.b32.xlu0 %v9057_v10, %s9830_s5  ;;  %3365 = vrot.lane.b32.xlu1 %v9055_v16, %s9830_s5 }
0x132c   :  { %3369 = vrot.lane.b32.xlu1 %v9059_v35, %s9830_s5 }
0x137e   :  { %v4110_v39 = vpop.permute.xlu0 %4109  ;;  %v4108_v55 = vpop.permute.xlu1 %4107 }
0x137f   :  { %v11171_v63 = vadd.f32 %v4110_v39, %v9983_v33  ;;  %v11174_v3 = vadd.f32 %v4108_v55, %v9972_v18 }
0x1381   :  { %9060 = vtanh.f32 %v11171_v63 }
0x1382   :  { %9062 = vtanh.f32 %v11174_v3  ;;  %v4114_v20 = vpop.permute.xlu0 %4113  ;;  %v4112_v34 = vpop.permute.xlu1 %4111 }
0x1383   :  { %v11179_v54 = vadd.f32 %v4114_v20, %v9974_v22  ;;  %v11182_v1 = vadd.f32 %v4112_v34, %v9988_v38  ;;  %9064 = vpow2.f32 %v8330_v23  ;;  %v8333_v23 = vmul.f32 -1.442695, %v11145_v2 }
0x1384   :  { %v3137_v2 = vmul.f32 %v11029_v44, %v10953_v24  ;;  %v8335_v24 = vmul.f32 -1.442695, %v11139_v41 }
0x1385   :  { %9066 = vtanh.f32 %v11179_v54 }
0x1386   :  { %9068 = vtanh.f32 %v11182_v1  ;;  %v4118_v11 = vpop.permute.xlu0 %4117  ;;  %v4116_v12 = vpop.permute.xlu1 %4115 }
0x1387   :  { %9070 = vpow2.f32 %v8329_v62  ;;  %v11187_v57 = vadd.f32 %v4118_v11, %v9978_v28  ;;  %v11190_v56 = vadd.f32 %v4116_v12, %v9992_v42  ;;  %v8334_v11 = vmul.f32 -1.442695, %v11159_v48 }
0x1388   :  { %9072 = vpow2.f32 %v8331_v25 }
0x1389   :  { %9074 = vtanh.f32 %v11187_v57 }
0x138a   :  { %9076 = vtanh.f32 %v11190_v56  ;;  %v4122_v9 = vpop.permute.xlu0 %4121  ;;  %v4120_v16 = vpop.permute.xlu1 %4119 }
0x138b   :  { %v9061_v10 = vpop.eup %9060  ;;  %v11195_v35 = vadd.f32 %v4122_v9, %v9981_v32  ;;  %v11198_v15 = vadd.f32 %v4120_v16, %v9995_v46  ;;  %9078 = vpow2.f32 %v8332_v36 }
0x138c   :  { %v9063_v39 = vpop.eup %9062  ;;  %4213 = vrot.lane.b32.xlu1 %v9061_v10, %s9830_s5 }
0x138d   :  { %9080 = vtanh.f32 %v11195_v35  ;;  %4211 = vrot.lane.b32.xlu0 %v9063_v39, %s9830_s5  ;;  %v9065_v13 = vpop.eup %9064 }
0x138e   :  { %9082 = vtanh.f32 %v11198_v15  ;;  %v3134_v20 = vpop.permute.xlu1 %3133  ;;  %v3280_v9 = vadd.f32 1.0, %v9065_v13 }
0x138f   :  { %v9067_v55 = vpop.eup %9066  ;;  %v3136_v12 = vmul.f32 %v3134_v20, %v11049_v29  ;;  %9084 = vpow2.f32 %v8333_v23 }
0x1390   :  { %v9069_v34 = vpop.eup %9068  ;;  %4217 = vrot.lane.b32.xlu1 %v9067_v55, %s9830_s5  ;;  %9086 = vpow2.f32 %v8334_v11  ;;  %v8336_v55 = vmul.f32 -1.442695, %v11152_v61 }
0x1391   :  { %v9071_v62 = vpop.eup %9070  ;;  %4215 = vrot.lane.b32.xlu0 %v9069_v34, %s9830_s5  ;;  %v11214_v34 = vadd.f32 %v3137_v2, %v3136_v12  ;;  %9088 = vrcp.f32 %v3280_v9  ;;  %v3360_v12 = vpop.permute.xlu0 %3359 }
0x1392   :  { %v9073_v25 = vpop.eup %9072  ;;  %v3279_v10 = vadd.f32 1.0, %v9071_v62  ;;  %v11217_v13 = vpop.permute.xlu1 %3371 }
0x1393   :  { %v9075_v36 = vpop.eup %9074  ;;  %13736 = vst [vmem:[#allocation72_spill] sm:$0xff] %v11214_v34  ;;  %v3281_v20 = vadd.f32 1.0, %v9073_v25  ;;  %v3313_v62 = vrot.slane %v11214_v34, 3  ;;  %v3312_v11 = vrot.slane %v11214_v34, 2  ;;  %v3314_v41 = vrot.slane %v11214_v34, 4 }
0x1394   :  { %v9077_v16 = vpop.eup %9076  ;;  %4221 = vrot.lane.b32.xlu1 %v9075_v36, %s9830_s5  ;;  %9090 = vrcp.f32 %v3279_v10  ;;  %v3315_v36 = vrot.slane %v11214_v34, 5 }
0x1395   :  { %4219 = vrot.lane.b32.xlu0 %v9077_v16, %s9830_s5  ;;  %v9079_v39 = vpop.eup %9078  ;;  %9092 = vpow2.f32 %v8336_v55 }
0x1396   :  { %9094 = vrcp.f32 %v3281_v20  ;;  %v3282_v61 = vadd.f32 1.0, %v9079_v39  ;;  %v3362_v9 = vpop.permute.xlu1 %3361  ;;  %v3364_v20 = vpop.permute.xlu0 %3363 }
0x1397   :  { %v9081_v48 = vpop.eup %9080  ;;  %9096 = vpow2.f32 %v8335_v24 }
0x1398   :  { %v9083_v23 = vpop.eup %9082  ;;  %4225 = vrot.lane.b32.xlu1 %v9081_v48, %s9830_s5  ;;  %9098 = vrcp.f32 %v3282_v61 }
0x1399   :  { %4223 = vrot.lane.b32.xlu0 %v9083_v23, %s9830_s5  ;;  %v9085_v25 = vpop.eup %9084 }
0x139a   :  { %v9087_v16 = vpop.eup %9086  ;;  %v3283_v10 = vadd.f32 1.0, %v9085_v25  ;;  %v3316_v25 = vrot.slane %v11214_v34, 6 }
0x139b   :  { %v11228_v2 = vpop.eup %9088  ;;  %v3284_v24 = vadd.f32 1.0, %v9087_v16  ;;  %v3317_v16 = vrot.slane %v11214_v34, 7 }
0x139c   :  { %3321 = vrot.lane.b32.xlu1 %v3313_v62, %s9831_s1  ;;  %v3384_v55 = vmul.f32 %v11228_v2, %v3362_v9  ;;  %9100 = vrcp.f32 %v3283_v10 }
0x139d   :  { %3319 = vrot.lane.b32.xlu0 %v3312_v11, %s9831_s1  ;;  %v3366_v11 = vpop.permute.xlu1 %3365  ;;  %9102 = vrcp.f32 %v3284_v24 }
0x139e   :  { %v11231_v39 = vpop.eup %9090 }
0x139f   :  { %v3383_v48 = vmul.f32 %v11231_v39, %v3360_v12  ;;  %v9093_v23 = vpop.eup %9092 }
0x13a0   :  { %3325 = vrot.lane.b32.xlu1 %v3315_v36, %s9831_s1  ;;  %v11236_v62 = vpop.eup %9094 }
0x13a1   :  { %3323 = vrot.lane.b32.xlu0 %v3314_v41, %s9831_s1  ;;  %v3385_v61 = vmul.f32 %v11236_v62, %v3364_v20  ;;  %v9097_v36 = vpop.eup %9096  ;;  %v3286_v41 = vadd.f32 1.0, %v9093_v23  ;;  %v3318_v20 = vrot.slane %v11214_v34, 1  ;;  %v3370_v24 = vpop.permute.xlu1 %3369 }
0x13a2   :  { %v11242_v12 = vpop.eup %9098  ;;  %v3285_v10 = vadd.f32 1.0, %v9097_v36 }
0x13a3   :  { %v3386_v9 = vmul.f32 %v11242_v12, %v3366_v11  ;;  %9104 = vrcp.f32 %v3286_v41 }
0x13a4   :  { %3401 = vrot.lane.b32.xlu1 %v3384_v55, %s9831_s1  ;;  %v3368_v55 = vpop.permute.xlu0 %3367  ;;  %9106 = vrcp.f32 %v3285_v10  ;;  %v9842_v10 = vmov 7  }
0x13a5   :  { %3399 = vrot.lane.b32.xlu0 %v3383_v48, %s9831_s1 }
0x13a6   :  { %v11249_v48 = vpop.eup %9100 }
0x13a7   :  { %v3387_v23 = vmul.f32 %v11249_v48, %v3368_v55  ;;  %v8349_v55 = vmul.f32 -1.442695, %v11171_v63 }
0x13a8   :  { %3403 = vrot.lane.b32.xlu1 %v3385_v61, %s9831_s1  ;;  %v11255_v61 = vpop.eup %9102 }
0x13a9   :  { %3327 = vrot.lane.b32.xlu0 %v3316_v25, %s9831_s1  ;;  %v3388_v11 = vmul.f32 %v11255_v61, %v3370_v24  ;;  %v3374_v25 = vpop.permute.xlu0 %3373  ;;  %9108 = vpow2.f32 %v8349_v55  ;;  %v8350_v24 = vmul.f32 -1.442695, %v11182_v1 }
0x13ac   :  { %3405 = vrot.lane.b32.xlu1 %v3386_v9, %s9831_s1 }
0x13ad   :  { %3329 = vrot.lane.b32.xlu0 %v3317_v16, %s9831_s1  ;;  %v11261_v36 = vpop.eup %9104 }
0x13ae   :  { %v3390_v41 = vmul.f32 %v11261_v36, %v3374_v25  ;;  %v11266_v9 = vpop.eup %9106  ;;  %v8354_v25 = vmul.f32 -1.442695, %v11198_v15 }
0x13af   :  { %v3389_v16 = vmul.f32 %v11266_v9, %v11217_v13  ;;  %v8352_v13 = vmul.f32 -1.442695, %v11190_v56 }
0x13b0   :  { %3333 = vrot.lane.b32.xlu1 %v3318_v20, %s9831_s1  ;;  %v8348_v20 = vmul.f32 -1.442695, %v11174_v3  ;;  %v8355_v3 = vmul.f32 -1.442695, %v11195_v35 }
0x13b1   :  { %3407 = vrot.lane.b32.xlu0 %v3387_v23, %s9831_s1  ;;  %v8351_v23 = vmul.f32 -1.442695, %v11179_v54 }
0x13b2   :  { %9110 = vpow2.f32 %v8348_v20 }
0x13b3   :  { %9112 = vpow2.f32 %v8351_v23 }
0x13b4   :  { %3331 = vrot.lane.b32.xlu1 %v11214_v34, %s9831_s1  ;;  %9114 = vpow2.f32 %v8350_v24 }
0x13b5   :  { %3409 = vrot.lane.b32.xlu0 %v3388_v11, %s9831_s1  ;;  %v8353_v11 = vmul.f32 -1.442695, %v11187_v57 }
0x13b7   :  { %9116 = vpow2.f32 %v8353_v11 }
0x13b8   :  { %3547 = vperm.xlu1 %8632, %v10053_v52   ;;  %9118 = vpow2.f32 %v8352_v13 }
0x13b9   :  { %3413 = vrot.lane.b32.xlu0 %v3390_v41, %s9831_s1  ;;  %v9109_v41 = vpop.eup %9108  ;;  %9120 = vpow2.f32 %v8354_v25 }
0x13ba   :  { %9122 = vpow2.f32 %v8355_v3 }
0x13bc   :  { %8634 = vset.pattern.permute.xlu1 %v9842_v10  ;;  %v9111_v63 = vpop.eup %9110 }
0x13bd   :  { %3411 = vrot.lane.b32.xlu0 %v3389_v16, %s9831_s1  ;;  %v4164_v16 = vadd.f32 1.0, %v9109_v41  ;;  %v9113_v54 = vpop.eup %9112  ;;  %v4163_v55 = vadd.f32 1.0, %v9111_v63 }
0x13be   :  { %v9115_v20 = vpop.eup %9114  ;;  %v4166_v1 = vadd.f32 1.0, %v9113_v54 }
0x13bf   :  { %9124 = vrcp.f32 %v4164_v16  ;;  %v4165_v23 = vadd.f32 1.0, %v9115_v20 }
0x13c0   :  { %9126 = vrcp.f32 %v4163_v55 }
0x13c1   :  { %v9117_v57 = vpop.eup %9116  ;;  %9128 = vrcp.f32 %v4166_v1 }
0x13c2   :  { %v9119_v56 = vpop.eup %9118  ;;  %v4168_v24 = vadd.f32 1.0, %v9117_v57  ;;  %9130 = vrcp.f32 %v4165_v23 }
0x13c3   :  { %v4167_v15 = vadd.f32 1.0, %v9119_v56  ;;  %v9121_v11 = vpop.eup %9120 }
0x13c4   :  { %9132 = vrcp.f32 %v4168_v24  ;;  %v9123_v13 = vpop.eup %9122  ;;  %v4169_v35 = vadd.f32 1.0, %v9121_v11 }
0x13c5   :  { %9134 = vrcp.f32 %v4167_v15  ;;  %v4170_v55 = vadd.f32 1.0, %v9123_v13 }
0x13c6   :  { %9136 = vrcp.f32 %v4169_v35 }
0x13c7   :  { %9138 = vrcp.f32 %v4170_v55 }
0x13c9   :  { %v11280_v25 = vpop.eup %9124 }
0x13ca   :  { %v11282_v63 = vpop.eup %9126 }
0x13cb   :  { %v11287_v20 = vpop.eup %9128 }
0x13cc   :  { %v11290_v57 = vpop.eup %9130 }
0x13ce   :  { %v11295_v15 = vpop.eup %9132 }
0x13cf   :  { %v11298_v13 = vpop.eup %9134 }
0x13d0   :  { %v4199_v8 = vmul.f32 0.0, %v11298_v13 }
0x13fe   :  { %v4214_v41 = vpop.permute.xlu1 %4213 }
0x13ff   :  { %v4212_v3 = vpop.permute.xlu0 %4211  ;;  %v4236_v16 = vmul.f32 %v11280_v25, %v4214_v41 }
0x1400   :  { %v4235_v54 = vmul.f32 %v11282_v63, %v4212_v3 }
0x1401   :  { %4253 = vrot.lane.b32.xlu0 %v4236_v16, %s9831_s1 }
0x1402   :  { %4251 = vrot.lane.b32.xlu1 %v4235_v54, %s9831_s1  ;;  %v4218_v1 = vpop.permute.xlu1 %4217  ;;  %v11304_v54 = vpop.eup %9136 }
0x1403   :  { %v4216_v23 = vpop.permute.xlu0 %4215  ;;  %v4238_v56 = vmul.f32 %v11287_v20, %v4218_v1 }
0x1404   :  { %v4237_v24 = vmul.f32 %v11290_v57, %v4216_v23 }
0x1405   :  { %4257 = vrot.lane.b32.xlu0 %v4238_v56, %s9831_s1  ;;  %v11310_v56 = vpop.eup %9138 }
0x1406   :  { %4255 = vrot.lane.b32.xlu1 %v4237_v24, %s9831_s1  ;;  %v4222_v11 = vpop.permute.xlu1 %4221 }
0x1407   :  { %v4220_v35 = vpop.permute.xlu0 %4219  ;;  %v4240_v41 = vmul.f32 %v11295_v15, %v4222_v11 }
0x1408   :  { %v4239_v3 = vmul.f32 %v11298_v13, %v4220_v35 }
0x1409   :  { %4261 = vrot.lane.b32.xlu0 %v4240_v41, %s9831_s1 }
0x140a   :  { %4259 = vrot.lane.b32.xlu1 %v4239_v3, %s9831_s1  ;;  %v4226_v16 = vpop.permute.xlu1 %4225 }
0x140b   :  { %v4224_v55 = vpop.permute.xlu0 %4223  ;;  %v4242_v11 = vmul.f32 %v11310_v56, %v4226_v16 }
0x140c   :  { %v4241_v1 = vmul.f32 %v11304_v54, %v4224_v55 }
0x140e   :  { %3572 = vrot.lane.b32.xlu1 %v11116_v14, %s9834_s3  ;;  %4263 = vrot.lane.b32.xlu0 %v4241_v1, %s9831_s1  ;;  %v3322_v23 = vpop.permute.xlu1 %3321 }
0x140f   :  { %v3320_v24 = vpop.permute.xlu0 %3319  ;;  %v3344_v3 = vmul.f32 %v11228_v2, %v3322_v23 }
0x1410   :  { %v3343_v55 = vmul.f32 %v11231_v39, %v3320_v24 }
0x1412   :  { %3480 = vperm.xlu0 %8633, %v10050_v51   ;;  %4265 = vrot.lane.b32.xlu1 %v4242_v11, %s9831_s1  ;;  %v3326_v35 = vpop.permute.xlu1 %3325 }
0x1413   :  { %v3324_v41 = vpop.permute.xlu0 %3323 }
0x1414   :  { %v3345_v11 = vmul.f32 %v11236_v62, %v3324_v41 }
0x1416   :  { %8635 = vset.pattern.permute.xlu0 %v9842_v10  ;;  %3985 = vperm.xlu1 %8634, %v10050_v51   ;;  %v3402_v14 = vpop.permute.xlu1 %3401  ;;  %v3346_v10 = vmul.f32 %v11242_v12, %v3326_v35 }
0x1417   :  { %v3400_v1 = vpop.permute.xlu0 %3399  ;;  %4380 = vperm.xlu0 %8635, %v10053_v52   ;;  %v11320_v30 = vadd.f32 %v3402_v14, %v3344_v3 }
0x1418   :  { %v11322_v16 = vadd.f32 %v3400_v1, %v3343_v55 }
0x1419   :  { %v3625_v45 = vrot.slane %v11320_v30, 5 }
0x141a   :  { %v3624_v23 = vrot.slane %v11322_v16, 6  ;;  %v3404_v17 = vpop.permute.xlu1 %3403  ;;  %9140 = vtanh.f32 %v11322_v16 }
0x141b   :  { %v3328_v24 = vpop.permute.xlu0 %3327  ;;  %v11327_v21 = vadd.f32 %v3404_v17, %v3345_v11 }
0x141c   :  { %v3626_v51 = vsel %vm589_vm3, %v3625_v45, %v3624_v23  ;;  %v3347_v47 = vmul.f32 %v11249_v48, %v3328_v24 }
0x141d   :  { %v3627_v52 = vrot.slane %v11327_v21, 4 }
0x141e   :  { %v3406_v3 = vpop.permute.xlu1 %3405 }
0x141f   :  { %v3628_v55 = vsel %vm592_vm4, %v3627_v52, %v3626_v51  ;;  %v3330_v14 = vpop.permute.xlu0 %3329  ;;  %v11333_v1 = vadd.f32 %v3406_v3, %v3346_v10 }
0x1420   :  { %v3348_v35 = vmul.f32 %v11255_v61, %v3330_v14 }
0x1421   :  { %v3629_v41 = vrot.slane %v11333_v1, 3 }
0x1422   :  { %v3334_v45 = vpop.permute.xlu1 %3333 }
0x1423   :  { %v3630_v26 = vsel %vm595_vm5, %v3629_v41, %v3628_v55  ;;  %v3408_v17 = vpop.permute.xlu0 %3407  ;;  %v3350_v3 = vmul.f32 %v11261_v36, %v3334_v45  ;;  %v4196_v45 = vmul.f32 0.0, %v11280_v25 }
0x1424   :  { %v11338_v11 = vadd.f32 %v3408_v17, %v3347_v47 }
0x1426   :  { %v3631_v23 = vrot.slane %v11338_v11, 2  ;;  %v3332_v24 = vpop.permute.xlu1 %3331 }
0x1427   :  { %v3410_v31 = vpop.permute.xlu0 %3409  ;;  %v3349_v41 = vmul.f32 %v11266_v9, %v3332_v24 }
0x1428   :  { %v3632_v51 = vsel %vm598_vm6, %v3631_v23, %v3630_v26  ;;  %v11343_v52 = vadd.f32 %v3410_v31, %v3348_v35 }
0x142a   :  { %v3633_v10 = vrot.slane %v11343_v52, 1 }
0x142b   :  { %v3414_v19 = vpop.permute.xlu0 %3413 }
0x142c   :  { %v3634_v55 = vsel %vm601_vm7, %v3633_v10, %v3632_v51  ;;  %v11348_v47 = vadd.f32 %v3414_v19, %v3350_v3  ;;  %v4195_v51 = vmul.f32 0.0, %v11282_v63 }
0x142e   :  { %v3636_v4 = vrot.slane %v11348_v47, 7 }
0x142f   :  { %v3412_v14 = vpop.permute.xlu0 %3411 }
0x1430   :  { %v3429_v17 = vadd.f32 %v3412_v14, %v3349_v41  ;;  %v4198_v41 = vmul.f32 0.0, %v11287_v20  ;;  %v4197_v14 = vmul.f32 0.0, %v11290_v57 }
0x1432   :  { %v3635_v26 = vsel %vm604_vm8, %v3429_v17, %v3634_v55  ;;  %9142 = vtanh.f32 %v3429_v17 }
0x1433   :  { %v11354_v31 = vsel %vm13676_vm9, %v3636_v4, %v3635_v26  ;;  %9144 = vtanh.f32 %v11320_v30 }
0x1434   :  { %13737 = vst [vmem:[#allocation73_spill] sm:$0xff] %v11354_v31  ;;  %9146 = vtanh.f32 %v11327_v21 }
0x1435   :  { %9148 = vtanh.f32 %v11333_v1 }
0x1436   :  { %9150 = vtanh.f32 %v11343_v52 }
0x1437   :  { %v11356_v35 = vpop.permute.xlu1 %3547  ;;  %9152 = vtanh.f32 %v11338_v11 }
0x1438   :  { %9154 = vtanh.f32 %v11348_v47 }
0x1473   :  { %v4254_v23 = vpop.permute.xlu0 %4253 }
0x1474   :  { %v11360_v19 = vadd.f32 %v4254_v23, %v4196_v45  ;;  %v4252_v10 = vpop.permute.xlu1 %4251  ;;  %v4200_v23 = vmul.f32 0.0, %v11295_v15 }
0x1475   :  { %v11362_v3 = vadd.f32 %v4252_v10, %v4195_v51 }
0x1476   :  { %v4417_v24 = vrot.slane %v11360_v19, 6  ;;  %9156 = vtanh.f32 %v11360_v19 }
0x1477   :  { %v4416_v55 = vrot.slane %v11362_v3, 7  ;;  %v4258_v4 = vpop.permute.xlu0 %4257  ;;  %9158 = vtanh.f32 %v11362_v3 }
0x1478   :  { %v11368_v26 = vadd.f32 %v4258_v4, %v4198_v41  ;;  %v4256_v49 = vpop.permute.xlu1 %4255 }
0x1479   :  { %v4418_v58 = vsel %vm589_vm3, %v4417_v24, %v4416_v55  ;;  %v4277_v50 = vadd.f32 %v4256_v49, %v4197_v14  ;;  %v4201_v49 = vmul.f32 0.0, %v11304_v54 }
0x147a   :  { %v4421_v45 = vrot.slane %v11368_v26, 4 }
0x147b   :  { %v4419_v51 = vrot.slane %v4277_v50, 5  ;;  %v4262_v10 = vpop.permute.xlu0 %4261  ;;  %9160 = vtanh.f32 %v4277_v50 }
0x147c   :  { %v4280_v40 = vadd.f32 %v4262_v10, %v4200_v23  ;;  %v4260_v6 = vpop.permute.xlu1 %4259 }
0x147d   :  { %v4420_v34 = vsel %vm592_vm4, %v4419_v51, %v4418_v58  ;;  %v11375_v31 = vadd.f32 %v4260_v6, %v4199_v8  ;;  %v4202_v6 = vmul.f32 0.0, %v11310_v56 }
0x147e   :  { %v4425_v41 = vrot.slane %v4280_v40, 2  ;;  %v4422_v4 = vsel %vm595_vm5, %v4421_v45, %v4420_v34  ;;  %9162 = vtanh.f32 %v4280_v40 }
0x147f   :  { %v4423_v24 = vrot.slane %v11375_v31, 3  ;;  %9164 = vtanh.f32 %v11368_v26 }
0x1480   :  { %v4264_v55 = vpop.permute.xlu0 %4263  ;;  %v3573_v14 = vpop.permute.xlu1 %3572 }
0x1481   :  { %v4424_v5 = vsel %vm598_vm6, %v4423_v24, %v4422_v4  ;;  %v4281_v53 = vadd.f32 %v4264_v55, %v4201_v49  ;;  %v3575_v37 = vmul.f32 %v3573_v14, %v11356_v35 }
0x1482   :  { %v4426_v23 = vsel %vm601_vm7, %v4425_v41, %v4424_v5 }
0x1483   :  { %v4427_v10 = vrot.slane %v4281_v53, 1  ;;  %v3578_v8 = vrot.slane %v3575_v37, 3  ;;  %v3577_v58 = vrot.slane %v3575_v37, 2  ;;  %v3582_v60 = vrot.slane %v3575_v37, 7 }
0x1484   :  { %v4266_v51 = vpop.permute.xlu1 %4265  ;;  %v3579_v4 = vrot.slane %v3575_v37, 4  ;;  %v3583_v5 = vrot.slane %v3575_v37, 1  ;;  %v3580_v41 = vrot.slane %v3575_v37, 5  ;;  %v3581_v49 = vrot.slane %v3575_v37, 6 }
0x1485   :  { %v4282_v34 = vadd.f32 %v4266_v51, %v4202_v6  ;;  %3586 = vrot.lane.b32.xlu0 %v3578_v8, %s9836_s10  ;;  %3584 = vrot.lane.b32.xlu1 %v3577_v58, %s9836_s10  ;;  %v4428_v45 = vsel %vm604_vm8, %v4427_v10, %v4426_v23 }
0x1487   :  { %v11388_v24 = vsel %vm13676_vm9, %v4282_v34, %v4428_v45  ;;  %9166 = vtanh.f32 %v4282_v34 }
0x1488   :  { %9168 = vtanh.f32 %v11375_v31  ;;  %v8650_v31 = vld [vmem:[#allocation7] sm:$0xff]  }
0x1489   :  { %3594 = vrot.lane.b32.xlu0 %v3582_v60, %s9836_s10  ;;  %3588 = vrot.lane.b32.xlu1 %v3579_v4, %s9836_s10  ;;  %v9141_v60 = vpop.eup %9140  ;;  %9170 = vtanh.f32 %v4281_v53 }
0x148a   :  { %v9143_v16 = vpop.eup %9142  ;;  %8532 = vmatpush3.bf16.msra.mxu0 %v8650_v31 }
0x148b   :  { %v9145_v21 = vpop.eup %9144  ;;  %8543 = vmatprep.subr.bf16.mxu0 %v13699_v7 }
0x148c   :  { %v9147_v30 = vpop.eup %9146 }
0x148d   :  { %3598 = vrot.lane.b32.xlu0 %v3583_v5, %s9836_s10  ;;  %3590 = vrot.lane.b32.xlu1 %v3580_v41, %s9836_s10 }
0x1491   :  { %3596 = vrot.lane.b32.xlu0 %v3575_v37, %s9836_s10  ;;  %3592 = vrot.lane.b32.xlu1 %v3581_v49, %s9836_s10  ;;  %v9149_v37 = vpop.eup %9148  ;;  %v11424_v14 = vpop.permute.xlu0 %3480 }
0x1492   :  { %v9151_v1 = vpop.eup %9150  ;;  %v13627_v49 = vrot.slane %v11424_v14, 2 }
0x1493   :  { %v9153_v11 = vpop.eup %9152 }
0x1494   :  { %v9155_v52 = vpop.eup %9154 }
0x1495   :  { %3459 = vrot.lane.b32.xlu0 %v9143_v16, %s9832_s11  ;;  %3447 = vrot.lane.b32.xlu1 %v9141_v60, %s9832_s11  ;;  %v9157_v47 = vpop.eup %9156  ;;  %v11426_v23 = vpop.permute.xlu1 %3985 }
0x1496   :  { %v9159_v17 = vpop.eup %9158  ;;  %13738 = vst [vmem:[#allocation74_spill] sm:$0xff] %v11426_v23  ;;  %v4381_v53 = vpop.permute.xlu0 %4380 }
0x1497   :  { %v9161_v50 = vpop.eup %9160 }
0x1498   :  { %v9163_v19 = vpop.eup %9162 }
0x1499   :  { %3451 = vrot.lane.b32.xlu0 %v9147_v30, %s9832_s11  ;;  %3449 = vrot.lane.b32.xlu1 %v9145_v21, %s9832_s11  ;;  %v9165_v40 = vpop.eup %9164 }
0x149a   :  { %v9167_v3 = vpop.eup %9166 }
0x149b   :  { %v9169_v26 = vpop.eup %9168 }
0x149c   :  { %v9171_v55 = vpop.eup %9170 }
0x149d   :  { %3457 = vrot.lane.b32.xlu0 %v9151_v1, %s9832_s11  ;;  %3453 = vrot.lane.b32.xlu1 %v9149_v37, %s9832_s11  ;;  %v13623_v37 = vrot.slane %v11424_v14, 4 }
0x14a1   :  { %3461 = vrot.lane.b32.xlu0 %v9155_v52, %s9832_s11  ;;  %3455 = vrot.lane.b32.xlu1 %v9153_v11, %s9832_s11  ;;  %v13633_v11 = vrot.slane %v11424_v14, 3 }
0x14a5   :  { %4301 = vrot.lane.b32.xlu0 %v9157_v47, %s9832_s11  ;;  %4299 = vrot.lane.b32.xlu1 %v9159_v17, %s9832_s11 }
0x14a9   :  { %4309 = vrot.lane.b32.xlu0 %v9163_v19, %s9832_s11  ;;  %4303 = vrot.lane.b32.xlu1 %v9161_v50, %s9832_s11 }
0x14ad   :  { %4305 = vrot.lane.b32.xlu1 %v9165_v40, %s9832_s11  ;;  %4313 = vrot.lane.b32.xlu0 %v9167_v3, %s9832_s11  ;;  %v13621_v3 = vrot.slane %v11424_v14, 7 }
0x14b1   :  { %4307 = vrot.lane.b32.xlu1 %v9169_v26, %s9832_s11 }
0x14b5   :  { %4311 = vrot.lane.b32.xlu1 %v9171_v55, %s9832_s11  ;;  %v13626_v55 = vrot.slane %v11424_v14, 5 }
0x14f7   :  { %v3587_v10 = vpop.permute.xlu0 %3586  ;;  %v3585_v6 = vpop.permute.xlu1 %3584 }
0x14fb   :  { %v3595_v8 = vpop.permute.xlu0 %3594  ;;  %v3589_v58 = vpop.permute.xlu1 %3588 }
0x14ff   :  { %v3599_v51 = vpop.permute.xlu0 %3598  ;;  %v3591_v34 = vpop.permute.xlu1 %3590 }
0x1503   :  { %v11428_v45 = vpop.permute.xlu0 %3596  ;;  %v3593_v4 = vpop.permute.xlu1 %3592 }
0x1507   :  { %v3460_v5 = vpop.permute.xlu0 %3459  ;;  %v3448_v41 = vpop.permute.xlu1 %3447 }
0x1508   :  { %v3471_v60 = vmul.f32 %v11231_v39, %v3448_v41 }
0x150a   :  { %v11434_v16 = vmul.f32 %v13627_v49, %v3471_v60  ;;  %v13620_v60 = vrot.slane %v11424_v14, 1 }
0x150b   :  { %v3452_v21 = vpop.permute.xlu0 %3451  ;;  %v3450_v30 = vpop.permute.xlu1 %3449 }
0x150c   :  { %13739 = vst [vmem:[#allocation75_spill] sm:$0xff] %v11434_v16  ;;  %v3473_v1 = vmul.f32 %v11236_v62, %v3452_v21  ;;  %v3472_v52 = vmul.f32 %v11228_v2, %v3450_v30  ;;  %v3608_v47 = vadd.f32 %v3585_v6, %v11434_v16  ;;  %v13622_v21 = vrot.slane %v11424_v14, 6 }
0x150d   :  { %v3477_v30 = vmul.f32 %v11266_v9, %v3460_v5  ;;  %v11470_v9 = vmul.f32 0.0, %v4381_v53 }
0x150e   :  { %v11443_v17 = vmul.f32 %v13623_v37, %v3473_v1  ;;  %v11447_v39 = vmul.f32 %v13633_v11, %v3472_v52  ;;  %v3644_v26 = vpack.c.bf16 %v3608_v47, %v3608_v47 }
0x150f   :  { %v3458_v50 = vpop.permute.xlu0 %3457  ;;  %v3454_v19 = vpop.permute.xlu1 %3453 }
0x1510   :  { %13740 = vst [vmem:[#allocation76_spill] sm:$0xff] %v11443_v17  ;;  %13741 = vst [vmem:[#allocation77_spill] sm:$0xff] %v11447_v39  ;;  %v3610_v40 = vadd.f32 %v3589_v58, %v11443_v17  ;;  %v3609_v62 = vadd.f32 %v3587_v10, %v11447_v39  ;;  %v3476_v2 = vmul.f32 %v11255_v61, %v3458_v50  ;;  %v3662_v5 = vunpack.c.l.b16 %v3644_v26 }
0x1511   :  { %v3474_v31 = vmul.f32 %v11242_v12, %v3454_v19  ;;  %v13624_v12 = vrot.slane %v11426_v23, 2  ;;  %v13625_v19 = vrot.slane %v11426_v23, 1 }
0x1512   :  { %v3646_v6 = vpack.c.bf16 %v3610_v40, %v3610_v40  ;;  %v3645_v41 = vpack.c.bf16 %v3609_v62, %v3609_v62  ;;  %v11460_v10 = vmul.f32 %v13621_v3, %v3476_v2 }
0x1513   :  { %v11464_v58 = vmul.f32 %v13626_v55, %v3474_v31  ;;  %v3462_v61 = vpop.permute.xlu0 %3461  ;;  %v3456_v1 = vpop.permute.xlu1 %3455 }
0x1514   :  { %13742 = vst [vmem:[#allocation78_spill] sm:$0xff] %v11460_v10  ;;  %v3663_v52 = vunpack.c.l.b16 %v3645_v41  ;;  %v3478_v47 = vmul.f32 %v11261_v36, %v3462_v61  ;;  %v3475_v50 = vmul.f32 %v11249_v48, %v3456_v1  ;;  %v3613_v40 = vadd.f32 %v3595_v8, %v11460_v10 }
0x1515   :  { %13743 = vst [vmem:[#allocation79_spill] sm:$0xff] %v11464_v58  ;;  %v3611_v62 = vadd.f32 %v3591_v34, %v11464_v58  ;;  %v3664_v2 = vunpack.c.l.b16 %v3646_v6  ;;  %v13628_v48 = vrot.slane %v11426_v23, 6  ;;  %v11484_v36 = vmul.f32 %v11424_v14, %v3477_v30 }
0x1516   :  { %v11476_v31 = vmul.f32 %v13620_v60, %v3478_v47  ;;  %v11480_v41 = vmul.f32 %v13622_v21, %v3475_v50  ;;  %v3671_v53 = vrot.slane %v3663_v52, 5  ;;  %v13632_v34 = vrot.slane %v11426_v23, 3 }
0x1517   :  { %13746 = vst [vmem:[#allocation82_spill] sm:$0xff] %v11484_v36  ;;  %v3647_v26 = vpack.c.bf16 %v3611_v62, %v3611_v62  ;;  %v4302_v61 = vpop.permute.xlu0 %4301  ;;  %v4300_v8 = vpop.permute.xlu1 %4299  ;;  %v3649_v6 = vpack.c.bf16 %v3613_v40, %v3613_v40  ;;  %v3670_v50 = vrot.slane %v3662_v5, 6  ;;  %v4386_v21 = vrot.slane %v11470_v9, 2 }
0x1518   :  { %13744 = vst [vmem:[#allocation80_spill] sm:$0xff] %v11476_v31  ;;  %13745 = vst [vmem:[#allocation81_spill] sm:$0xff] %v11480_v41  ;;  %v3615_v1 = vadd.f32 %v3599_v51, %v11476_v31  ;;  %v3612_v47 = vadd.f32 %v3593_v4, %v11480_v41  ;;  %v4324_v60 = vmul.f32 %v11280_v25, %v4302_v61  ;;  %v3673_v37 = vrot.slane %v3664_v2, 4 }
0x1519   :  { %v3665_v3 = vunpack.c.l.b16 %v3647_v26  ;;  %v4323_v30 = vmul.f32 %v11282_v63, %v4300_v8  ;;  %v4385_v40 = vrot.slane %v11470_v9, 1  ;;  %v3614_v51 = vadd.f32 %v11428_v45, %v11484_v36 }
0x151a   :  { %v3648_v52 = vpack.c.bf16 %v3612_v47, %v3612_v47  ;;  %v11494_v62 = vmul.f32 %v4324_v60, %v13624_v12  ;;  %v3672_v4 = vsel %vm589_vm3, %v3671_v53, %v3670_v50  ;;  %v3667_v2 = vunpack.c.l.b16 %v3649_v6 }
0x151b   :  { %v3675_v25 = vrot.slane %v3665_v3, 3  ;;  %v11502_v5 = vmul.f32 %v4323_v30, %v13625_v19  ;;  %v4310_v26 = vpop.permute.xlu0 %4309  ;;  %v4304_v63 = vpop.permute.xlu1 %4303  ;;  %v3651_v61 = vpack.c.bf16 %v3615_v1, %v3615_v1  ;;  %v4387_v12 = vrot.slane %v11470_v9, 3 }
0x151c   :  { %v3666_v8 = vunpack.c.l.b16 %v3648_v52  ;;  %v4401_v60 = vadd.f32 %v4386_v21, %v11494_v62  ;;  %v4325_v45 = vmul.f32 %v11290_v57, %v4304_v63  ;;  %v13629_v53 = vrot.slane %v11426_v23, 4 }
0x151d   :  { %v4400_v47 = vadd.f32 %v4385_v40, %v11502_v5  ;;  %v3674_v3 = vsel %vm592_vm4, %v3673_v37, %v3672_v4  ;;  %v4328_v19 = vmul.f32 %v11295_v15, %v4310_v26  ;;  %v3650_v55 = vpack.c.bf16 %v3614_v51, %v3614_v51 }
0x151e   :  { %v3677_v50 = vrot.slane %v3666_v8, 2  ;;  %v4848_v30 = vrot.slane %v4401_v60, 6  ;;  %v3676_v6 = vsel %vm595_vm5, %v3675_v25, %v3674_v3  ;;  %v11514_v21 = vmul.f32 %v4325_v45, %v13632_v34 }
0x151f   :  { %v4847_v1 = vrot.slane %v4400_v47, 7  ;;  %v4306_v52 = vpop.permute.xlu1 %4305  ;;  %v3679_v40 = vrot.slane %v3667_v2, 1  ;;  %v3669_v49 = vunpack.c.l.b16 %v3651_v61  ;;  %v4436_v37 = vpack.c.bf16 %v4401_v60, %v4401_v60  ;;  %v4314_v51 = vpop.permute.xlu0 %4313 }
0x1520   :  { %v3678_v57 = vsel %vm598_vm6, %v3677_v50, %v3676_v6  ;;  %v4326_v63 = vmul.f32 %v11287_v20, %v4306_v52  ;;  %v4435_v4 = vpack.c.bf16 %v4400_v47, %v4400_v47  ;;  %v4402_v15 = vadd.f32 %v4387_v12, %v11514_v21 }
0x1521   :  { %v4849_v8 = vsel %vm589_vm3, %v4848_v30, %v4847_v1  ;;  %v11522_v25 = vmul.f32 %v4328_v19, %v13628_v48  ;;  %v4388_v26 = vrot.slane %v11470_v9, 4  ;;  %v3680_v61 = vsel %vm601_vm7, %v3679_v40, %v3678_v57 }
0x1522   :  { %v11527_v2 = vmul.f32 %v4326_v63, %v13629_v53  ;;  %v3668_v20 = vunpack.c.l.b16 %v3650_v55  ;;  %v4390_v60 = vrot.slane %v11470_v9, 6  ;;  %v4437_v47 = vpack.c.bf16 %v4402_v15, %v4402_v15 }
0x1523   :  { %13747 = vst [vmem:[#allocation83_spill] sm:$0xff] %v11522_v25  ;;  %v13631_v45 = vrot.slane %v11426_v23, 5  ;;  %v4308_v12 = vpop.permute.xlu1 %4307  ;;  %v4850_v3 = vrot.slane %v4402_v15, 5  ;;  %v4330_v50 = vmul.f32 %v11310_v56, %v4314_v51  ;;  %v3682_v6 = vrot.slane %v3669_v49, 7 }
0x1524   :  { %v4403_v19 = vadd.f32 %v4388_v26, %v11527_v2  ;;  %v4327_v30 = vmul.f32 %v11298_v13, %v4308_v12  ;;  %v4454_v1 = vunpack.c.l.b16 %v4436_v37  ;;  %v4453_v52 = vunpack.c.l.b16 %v4435_v4 }
0x1525   :  { %v3681_v63 = vsel %vm604_vm8, %v3668_v20, %v3680_v61  ;;  %v4405_v55 = vadd.f32 %v4390_v60, %v11522_v25  ;;  %v4851_v40 = vsel %vm592_vm4, %v4850_v3, %v4849_v8  ;;  %v4455_v53 = vunpack.c.l.b16 %v4437_v47 }
0x1526   :  { %v4438_v57 = vpack.c.bf16 %v4403_v19, %v4403_v19  ;;  %v4852_v48 = vrot.slane %v4403_v19, 4  ;;  %v4389_v15 = vrot.slane %v11470_v9, 5  ;;  %v11541_v56 = vmul.f32 %v4327_v30, %v13631_v45 }
0x1527   :  { %v3683_v13 = vsel %vm13676_vm9, %v3682_v6, %v3681_v63  ;;  %v4312_v49 = vpop.permute.xlu1 %4311  ;;  %v11545_v37 = vmul.f32 %v4330_v50, %v11426_v23  ;;  %v13630_v61 = vrot.slane %v11426_v23, 7  ;;  %v4462_v60 = vrot.slane %v4454_v1, 6 }
0x1528   :  { %13748 = vst [vmem:[#allocation84_spill] sm:$0xff] %v11541_v56  ;;  %v4456_v4 = vunpack.c.l.b16 %v4438_v57  ;;  %v4853_v51 = vsel %vm595_vm5, %v4852_v48, %v4851_v40  ;;  %v3684_v26 = vpack.c.b16 %v3683_v13, %v3683_v13  ;;  %v4404_v8 = vadd.f32 %v4389_v15, %v11541_v56 }
0x1529   :  { %13749 = vst [vmem:[#allocation85_spill] sm:$0xff] %v11545_v37  ;;  %v4329_v20 = vmul.f32 %v11304_v54, %v4312_v49  ;;  %v4461_v47 = vrot.slane %v4453_v52, 7  ;;  %v4440_v12 = vpack.c.bf16 %v4405_v55, %v4405_v55  ;;  %v4391_v3 = vrot.slane %v11470_v9, 7 }
0x152a   :  { %3685 = vrot.lane.b32.xlu1 %v3684_v26, %s9834_s3  ;;  %v4464_v19 = vrot.slane %v4455_v53, 5  ;;  %v4439_v50 = vpack.c.bf16 %v4404_v8, %v4404_v8  ;;  %v4854_v30 = vrot.slane %v4404_v8, 3  ;;  %v4856_v6 = vrot.slane %v4405_v55, 2 }
0x152b   :  { %v11555_v48 = vmul.f32 %v4329_v20, %v13630_v61  ;;  %v4407_v63 = vadd.f32 %v11470_v9, %v11545_v37  ;;  %v4466_v40 = vrot.slane %v4456_v4, 4  ;;  %v4463_v57 = vsel %vm589_vm3, %v4462_v60, %v4461_v47 }
0x152c   :  { %v4457_v54 = vunpack.c.l.b16 %v4439_v50  ;;  %v4855_v52 = vsel %vm598_vm6, %v4854_v30, %v4853_v51  ;;  %v4458_v15 = vunpack.c.l.b16 %v4440_v12  ;;  %v4465_v13 = vsel %vm592_vm4, %v4464_v19, %v4463_v57 }
0x152d   :  { %13750 = vst [vmem:[#allocation86_spill] sm:$0xff] %v11555_v48  ;;  %v4406_v1 = vadd.f32 %v4391_v3, %v11555_v48  ;;  %v4857_v53 = vsel %vm601_vm7, %v4856_v6, %v4855_v52  ;;  %v4442_v55 = vpack.c.bf16 %v4407_v63, %v4407_v63  ;;  %v4467_v20 = vsel %vm595_vm5, %v4466_v40, %v4465_v13  ;;  %v8651_v40 = vld [vmem:[%s13508_s4] sm:$0xff]  }
0x152e   :  { %v4468_v49 = vrot.slane %v4457_v54, 3  ;;  %v4470_v61 = vrot.slane %v4458_v15, 2 }
0x152f   :  { %v4441_v26 = vpack.c.bf16 %v4406_v1, %v4406_v1  ;;  %v4858_v8 = vrot.slane %v4406_v1, 1  ;;  %v4460_v47 = vunpack.c.l.b16 %v4442_v55 }
0x1530   :  { %v4469_v4 = vsel %vm598_vm6, %v4468_v49, %v4467_v20 }
0x1531   :  { %v4459_v50 = vunpack.c.l.b16 %v4441_v26  ;;  %v4859_v3 = vsel %vm604_vm8, %v4858_v8, %v4857_v53  ;;  %v4471_v12 = vsel %vm601_vm7, %v4470_v61, %v4469_v4 }
0x1532   :  { %v11568_v51 = vsel %vm13676_vm9, %v4407_v63, %v4859_v3 }
0x1533   :  { %v4472_v60 = vrot.slane %v4459_v50, 1 }
0x1535   :  { %v4473_v19 = vsel %vm604_vm8, %v4472_v60, %v4471_v12 }
0x1536   :  { %v4474_v30 = vsel %vm13676_vm9, %v4460_v47, %v4473_v19 }
0x1537   :  { %v4475_v6 = vpack.c.b16 %v4474_v30, %v4474_v30 }
0x1539   :  { %4476 = vrot.lane.b32.xlu0 %v4475_v6, %s9831_s1 }
0x159c   :  { %v3686_v54 = vpop.permute.xlu1 %3685 }
0x159d   :  { %8534 = vmatmul.mubr.msk.bf16.vlgmr.msra.gmra.mrb[20].mxu0 %vm222_vm10, %v3686_v54 }
0x159e   :  { %8544 = vmatpush3.bf16.msra.mxu0 %v8651_v40  ;;  %8545 = vmatprep.mubr.msk.bf16.mxu0 %vm9829_vm0, %v13699_v7 }
0x159f   :  { %8555 = vmatprep.subr.bf16.mxu0 %v13699_v7 }
0x15ab   :  { %v4477_v61 = vpop.permute.xlu0 %4476 }
0x15ac   :  { %8546 = vmatmul.mubr.msk.bf16.vlgmr.msra.gmra.mrb[24].mxu0 %vm222_vm10, %v4477_v61 }
0x15ad   :  { %8557 = vmatprep.mubr.msk.bf16.mxu0 %vm9829_vm0, %v13699_v7 }
0x1670   :  { %v11584_v63 = vpop.f32.mrb[20].mxu0 }
0x1671   :  { %v8535_v1 = vpop.f32.mrb[21].mxu0 }
0x1672   :  { %v3733_v52 = vpop.f32.mrb[22].mxu0 }
0x1673   :  { %v8536_v57 = vpop.f32.mrb[23].mxu0 }
0x167f   :  { %v4521_v15 = vpop.f32.mrb[24].mxu0 }
0x1680   :  { %v8547_v53 = vpop.f32.mrb[25].mxu0  ;;  %v4529_v13 = vrot.slane %v4521_v15, 3  ;;  %v4528_v49 = vrot.slane %v4521_v15, 2  ;;  %v4531_v55 = vrot.slane %v4521_v15, 5  ;;  %v4530_v20 = vrot.slane %v4521_v15, 4 }
0x1681   :  { %v4524_v26 = vpop.f32.mrb[26].mxu0  ;;  %v4533_v4 = vrot.slane %v4521_v15, 7  ;;  %v4532_v50 = vrot.slane %v4521_v15, 6  ;;  %v4534_v3 = vrot.slane %v4521_v15, 1 }
0x1682   :  { %4537 = vrot.lane.b32.xlu0 %v4529_v13, %s9824_s21  ;;  %4535 = vrot.lane.b32.xlu1 %v4528_v49, %s9824_s21  ;;  %v8548_v8 = vpop.f32.mrb[27].mxu0 }
0x1686   :  { %4541 = vrot.lane.b32.xlu0 %v4531_v55, %s9824_s21  ;;  %4539 = vrot.lane.b32.xlu1 %v4530_v20, %s9824_s21 }
0x168a   :  { %4545 = vrot.lane.b32.xlu0 %v4533_v4, %s9824_s21  ;;  %4543 = vrot.lane.b32.xlu1 %v4532_v50, %s9824_s21 }
0x168e   :  { %4547 = vrot.lane.b32.xlu0 %v4521_v15, %s9824_s21  ;;  %4549 = vrot.lane.b32.xlu1 %v4534_v3, %s9824_s21 }
0x1692   :  { %4430 = vrot.lane.b32.xlu1 %v11388_v24, %s9836_s10 }
0x16f4   :  { %v4538_v60 = vpop.permute.xlu0 %4537  ;;  %v4536_v47 = vpop.permute.xlu1 %4535 }
0x16f5   :  { %v4560_v12 = vadd.f32 %v4538_v60, %v9983_v33  ;;  %v4559_v19 = vadd.f32 %v4536_v47, %v9972_v18 }
0x16f7   :  { %9172 = vtanh.f32 %v4560_v12 }
0x16f8   :  { %9174 = vtanh.f32 %v4559_v19  ;;  %v4542_v30 = vpop.permute.xlu0 %4541  ;;  %v4540_v6 = vpop.permute.xlu1 %4539 }
0x16f9   :  { %v4562_v40 = vadd.f32 %v4542_v30, %v9974_v22  ;;  %v4561_v54 = vadd.f32 %v4540_v6, %v9988_v38 }
0x16fb   :  { %9176 = vtanh.f32 %v4562_v40 }
0x16fc   :  { %9178 = vtanh.f32 %v4561_v54  ;;  %v4546_v61 = vpop.permute.xlu0 %4545  ;;  %v4544_v1 = vpop.permute.xlu1 %4543 }
0x16fd   :  { %v4564_v24 = vadd.f32 %v4546_v61, %v9978_v28  ;;  %v4563_v52 = vadd.f32 %v4544_v1, %v9992_v42 }
0x16ff   :  { %9180 = vtanh.f32 %v4564_v24 }
0x1700   :  { %9182 = vtanh.f32 %v4563_v52  ;;  %v4548_v57 = vpop.permute.xlu0 %4547  ;;  %v4550_v15 = vpop.permute.xlu1 %4549 }
0x1701   :  { %v9173_v53 = vpop.eup %9172  ;;  %v4565_v13 = vadd.f32 %v4548_v57, %v9995_v46  ;;  %v4566_v49 = vadd.f32 %v4550_v15, %v9981_v32 }
0x1702   :  { %v9175_v26 = vpop.eup %9174  ;;  %4673 = vrot.lane.b32.xlu1 %v9173_v53, %s9830_s5 }
0x1703   :  { %9184 = vtanh.f32 %v4565_v13  ;;  %4671 = vrot.lane.b32.xlu0 %v9175_v26, %s9830_s5  ;;  %v8359_v26 = vmul.f32 -1.442695, %v4560_v12 }
0x1704   :  { %9186 = vtanh.f32 %v4566_v49  ;;  %v4431_v55 = vpop.permute.xlu1 %4430 }
0x1705   :  { %v9177_v8 = vpop.eup %9176  ;;  %v4433_v4 = vmul.f32 %v4431_v55, %v11426_v23  ;;  %9188 = vpow2.f32 %v8359_v26  ;;  %v8360_v55 = vmul.f32 -1.442695, %v4561_v54 }
0x1706   :  { %v9179_v20 = vpop.eup %9178  ;;  %4677 = vrot.lane.b32.xlu1 %v9177_v8, %s9830_s5  ;;  %v8358_v8 = vmul.f32 -1.442695, %v4559_v19 }
0x1707   :  { %4675 = vrot.lane.b32.xlu0 %v9179_v20, %s9830_s5  ;;  %v11612_v60 = vadd.f32 %v4433_v4, %v11470_v9  ;;  %v8361_v20 = vmul.f32 -1.442695, %v4562_v40  ;;  %v8362_v4 = vmul.f32 -1.442695, %v4563_v52 }
0x1708   :  { %9190 = vpow2.f32 %v8358_v8 }
0x1709   :  { %v9181_v50 = vpop.eup %9180  ;;  %v4625_v6 = vrot.slane %v11612_v60, 3  ;;  %v4624_v61 = vrot.slane %v11612_v60, 2  ;;  %v4627_v1 = vrot.slane %v11612_v60, 5  ;;  %v4626_v57 = vrot.slane %v11612_v60, 4 }
0x170a   :  { %v9183_v3 = vpop.eup %9182  ;;  %4681 = vrot.lane.b32.xlu1 %v9181_v50, %s9830_s5  ;;  %v4630_v9 = vrot.slane %v11612_v60, 1  ;;  %v4628_v15 = vrot.slane %v11612_v60, 6  ;;  %v4629_v53 = vrot.slane %v11612_v60, 7  ;;  %9192 = vpow2.f32 %v8360_v55 }
0x170b   :  { %4679 = vrot.lane.b32.xlu0 %v9183_v3, %s9830_s5  ;;  %9194 = vpow2.f32 %v8361_v20  ;;  %v8363_v3 = vmul.f32 -1.442695, %v4564_v24 }
0x170c   :  { %9196 = vpow2.f32 %v8362_v4 }
0x170d   :  { %v9185_v47 = vpop.eup %9184  ;;  %9198 = vpow2.f32 %v8363_v3 }
0x170e   :  { %v9187_v30 = vpop.eup %9186  ;;  %4683 = vrot.lane.b32.xlu1 %v9185_v47, %s9830_s5 }
0x170f   :  { %4685 = vrot.lane.b32.xlu0 %v9187_v30, %s9830_s5  ;;  %v9189_v50 = vpop.eup %9188  ;;  %v8364_v30 = vmul.f32 -1.442695, %v4565_v13 }
0x1711   :  { %9200 = vpow2.f32 %v8364_v30 }
0x1712   :  { %4633 = vrot.lane.b32.xlu1 %v4625_v6, %s9834_s3  ;;  %v9191_v47 = vpop.eup %9190  ;;  %v4592_v6 = vadd.f32 1.0, %v9189_v50 }
0x1713   :  { %4631 = vrot.lane.b32.xlu0 %v4624_v61, %s9834_s3  ;;  %v8365_v61 = vmul.f32 -1.442695, %v4566_v49 }
0x1714   :  { %9202 = vrcp.f32 %v4592_v6 }
0x1715   :  { %9204 = vpow2.f32 %v8365_v61 }
0x1716   :  { %4637 = vrot.lane.b32.xlu1 %v4627_v1, %s9834_s3  ;;  %v4591_v1 = vadd.f32 1.0, %v9191_v47 }
0x1717   :  { %4635 = vrot.lane.b32.xlu0 %v4626_v57, %s9834_s3  ;;  %v9193_v57 = vpop.eup %9192 }
0x1718   :  { %v9195_v12 = vpop.eup %9194  ;;  %9206 = vrcp.f32 %v4591_v1  ;;  %v4593_v19 = vadd.f32 1.0, %v9193_v57 }
0x1719   :  { %v9197_v40 = vpop.eup %9196  ;;  %v4594_v54 = vadd.f32 1.0, %v9195_v12 }
0x171a   :  { %4645 = vrot.lane.b32.xlu1 %v4630_v9, %s9834_s3  ;;  %9208 = vrcp.f32 %v4593_v19  ;;  %v4595_v52 = vadd.f32 1.0, %v9197_v40  ;;  %v9199_v9 = vpop.eup %9198 }
0x171b   :  { %4639 = vrot.lane.b32.xlu0 %v4628_v15, %s9834_s3  ;;  %v9201_v24 = vpop.eup %9200  ;;  %9210 = vrcp.f32 %v4594_v54  ;;  %v4596_v13 = vadd.f32 1.0, %v9199_v9 }
0x171c   :  { %9212 = vrcp.f32 %v4595_v52  ;;  %v4597_v20 = vadd.f32 1.0, %v9201_v24 }
0x171d   :  { %9214 = vrcp.f32 %v4596_v13 }
0x171e   :  { %v11630_v15 = vpop.eup %9202  ;;  %9216 = vrcp.f32 %v4597_v20 }
0x171f   :  { %4641 = vrot.lane.b32.xlu0 %v4629_v53, %s9834_s3  ;;  %v9205_v49 = vpop.eup %9204 }
0x1720   :  { %v4598_v50 = vadd.f32 1.0, %v9205_v49 }
0x1722   :  { %v11632_v26 = vpop.eup %9206  ;;  %9218 = vrcp.f32 %v4598_v50 }
0x1724   :  { %v11638_v47 = vpop.eup %9208 }
0x1725   :  { %v11641_v61 = vpop.eup %9210 }
0x1726   :  { %v11644_v1 = vpop.eup %9212 }
0x1727   :  { %v11650_v54 = vpop.eup %9214 }
0x1728   :  { %v11653_v13 = vpop.eup %9216 }
0x172c   :  { %v11658_v49 = vpop.eup %9218 }
0x1774   :  { %v4674_v53 = vpop.permute.xlu1 %4673 }
0x1775   :  { %v4672_v8 = vpop.permute.xlu0 %4671  ;;  %v4696_v55 = vmul.f32 %v11630_v15, %v4674_v53 }
0x1776   :  { %v4695_v4 = vmul.f32 %v11632_v26, %v4672_v8 }
0x1777   :  { %4713 = vrot.lane.b32.xlu1 %v4696_v55, %s9831_s1 }
0x1778   :  { %4711 = vrot.lane.b32.xlu0 %v4695_v4, %s9831_s1  ;;  %v4678_v3 = vpop.permute.xlu1 %4677 }
0x1779   :  { %v4676_v30 = vpop.permute.xlu0 %4675  ;;  %v4698_v19 = vmul.f32 %v11641_v61, %v4678_v3 }
0x177a   :  { %v4697_v6 = vmul.f32 %v11638_v47, %v4676_v30 }
0x177c   :  { %4715 = vrot.lane.b32.xlu1 %v4697_v6, %s9831_s1  ;;  %v4682_v12 = vpop.permute.xlu1 %4681 }
0x177d   :  { %v4680_v57 = vpop.permute.xlu0 %4679  ;;  %v4700_v52 = vmul.f32 %v11650_v54, %v4682_v12 }
0x177e   :  { %v4699_v40 = vmul.f32 %v11644_v1, %v4680_v57 }
0x1780   :  { %4719 = vrot.lane.b32.xlu0 %v4699_v40, %s9831_s1  ;;  %4717 = vrot.lane.b32.xlu1 %v4698_v19, %s9831_s1  ;;  %v4684_v24 = vpop.permute.xlu1 %4683 }
0x1781   :  { %v4686_v9 = vpop.permute.xlu0 %4685  ;;  %v4701_v8 = vmul.f32 %v11653_v13, %v4684_v24 }
0x1782   :  { %v4702_v53 = vmul.f32 %v11658_v49, %v4686_v9 }
0x1784   :  { %4643 = vrot.lane.b32.xlu1 %v11612_v60, %s9834_s3  ;;  %4721 = vrot.lane.b32.xlu0 %v4700_v52, %s9831_s1  ;;  %v4634_v20 = vpop.permute.xlu1 %4633 }
0x1785   :  { %v4632_v55 = vpop.permute.xlu0 %4631  ;;  %v4656_v57 = vmul.f32 %v11630_v15, %v4634_v20 }
0x1786   :  { %v4655_v12 = vmul.f32 %v11632_v26, %v4632_v55 }
0x1788   :  { %4725 = vrot.lane.b32.xlu0 %v4702_v53, %s9831_s1  ;;  %4723 = vrot.lane.b32.xlu1 %v4701_v8, %s9831_s1  ;;  %v4638_v50 = vpop.permute.xlu1 %4637 }
0x1789   :  { %v4636_v4 = vpop.permute.xlu0 %4635  ;;  %v4658_v11 = vmul.f32 %v11641_v61, %v4638_v50 }
0x178a   :  { %v4657_v53 = vmul.f32 %v11638_v47, %v4636_v4 }
0x178c   :  { %4861 = vrot.lane.b32.xlu0 %v11568_v51, %s9831_s1  ;;  %v4646_v30 = vpop.permute.xlu1 %4645 }
0x178d   :  { %v4640_v3 = vpop.permute.xlu0 %4639 }
0x178e   :  { %v4659_v31 = vmul.f32 %v11644_v1, %v4640_v3  ;;  %v4662_v3 = vmul.f32 %v11658_v49, %v4646_v30 }
0x1791   :  { %v4642_v6 = vpop.permute.xlu0 %4641 }
0x17e9   :  { %v4714_v19 = vpop.permute.xlu1 %4713 }
0x17ea   :  { %v4712_v40 = vpop.permute.xlu0 %4711  ;;  %v4736_v52 = vadd.f32 %v4714_v19, %v4656_v57 }
0x17eb   :  { %v4735_v9 = vadd.f32 %v4712_v40, %v4655_v12  ;;  %v4660_v12 = vmul.f32 %v11650_v54, %v4642_v6 }
0x17ec   :  { %v4914_v24 = vrot.slane %v4736_v52, 5 }
0x17ed   :  { %v4913_v8 = vrot.slane %v4735_v9, 6 }
0x17ee   :  { %v4716_v51 = vpop.permute.xlu1 %4715 }
0x17ef   :  { %v4915_v45 = vsel %vm589_vm3, %v4914_v24, %v4913_v8  ;;  %v4737_v34 = vadd.f32 %v4716_v51, %v4657_v53 }
0x17f1   :  { %v4916_v36 = vrot.slane %v4737_v34, 4 }
0x17f2   :  { %v4720_v20 = vpop.permute.xlu0 %4719  ;;  %v4718_v10 = vpop.permute.xlu1 %4717 }
0x17f3   :  { %v4917_v55 = vsel %vm592_vm4, %v4916_v36, %v4915_v45  ;;  %v4739_v41 = vadd.f32 %v4720_v20, %v4659_v31  ;;  %v4738_v57 = vadd.f32 %v4718_v10, %v4658_v11 }
0x17f5   :  { %v4920_v19 = vrot.slane %v4739_v41, 2  ;;  %v4918_v4 = vrot.slane %v4738_v57, 3 }
0x17f6   :  { %v4722_v40 = vpop.permute.xlu0 %4721  ;;  %v4644_v58 = vpop.permute.xlu1 %4643 }
0x17f7   :  { %v4919_v24 = vsel %vm595_vm5, %v4918_v4, %v4917_v55  ;;  %v4740_v53 = vadd.f32 %v4722_v40, %v4660_v12  ;;  %v4661_v51 = vmul.f32 %v11653_v13, %v4644_v58 }
0x17f8   :  { %v4921_v50 = vsel %vm598_vm6, %v4920_v19, %v4919_v24 }
0x17f9   :  { %v4922_v8 = vrot.slane %v4740_v53, 1 }
0x17fa   :  { %v4726_v17 = vpop.permute.xlu0 %4725  ;;  %v4724_v36 = vpop.permute.xlu1 %4723 }
0x17fb   :  { %v4742_v31 = vadd.f32 %v4726_v17, %v4662_v3  ;;  %v4741_v11 = vadd.f32 %v4724_v36, %v4661_v51  ;;  %v4923_v10 = vsel %vm601_vm7, %v4922_v8, %v4921_v50  ;;  %v8652_v8 = vld [vmem:[%s13508_s4] sm:$0xff]  }
0x17fc   :  { %8550 = vmatpush3.bf16.msra.mxu1 %v8652_v8 }
0x17fd   :  { %v4925_v45 = vrot.slane %v4742_v31, 7  ;;  %v4924_v6 = vsel %vm604_vm8, %v4741_v11, %v4923_v10  ;;  %9220 = vtanh.f32 %v4741_v11  ;;  %8561 = vmatprep.subr.bf16.mxu1 %v13699_v7 }
0x17fe   :  { %v4862_v20 = vpop.permute.xlu0 %4861  ;;  %9222 = vtanh.f32 %v4736_v52 }
0x17ff   :  { %v4864_v55 = vmul.f32 %v4862_v20, %v11356_v35  ;;  %v11682_v12 = vsel %vm13676_vm9, %v4925_v45, %v4924_v6  ;;  %9224 = vtanh.f32 %v4735_v9 }
0x1800   :  { %9226 = vtanh.f32 %v4738_v57 }
0x1801   :  { %v4867_v30 = vrot.slane %v4864_v55, 3  ;;  %v4866_v19 = vrot.slane %v4864_v55, 2  ;;  %v4868_v17 = vrot.slane %v4864_v55, 4  ;;  %9228 = vtanh.f32 %v4737_v34 }
0x1802   :  { %v4869_v4 = vrot.slane %v4864_v55, 5  ;;  %9230 = vtanh.f32 %v4740_v53  ;;  %v4871_v50 = vrot.slane %v4864_v55, 7  ;;  %v4872_v3 = vrot.slane %v4864_v55, 1 }
0x1803   :  { %4875 = vrot.lane.b32.xlu0 %v4867_v30, %s9833_s13  ;;  %4873 = vrot.lane.b32.xlu1 %v4866_v19, %s9833_s13  ;;  %9232 = vtanh.f32 %v4739_v41  ;;  %v4870_v41 = vrot.slane %v4864_v55, 6  ;;  %v13751_v30 = vrot.slane %v11424_v14, 3 }
0x1804   :  { %9234 = vtanh.f32 %v4742_v31 }
0x1807   :  { %4877 = vrot.lane.b32.xlu1 %v4868_v17, %s9833_s13  ;;  %v9221_v58 = vpop.eup %9220 }
0x1808   :  { %4771 = vrot.lane.b32.xlu0 %v9221_v58, %s9832_s11  ;;  %v9223_v40 = vpop.eup %9222 }
0x1809   :  { %v9225_v52 = vpop.eup %9224 }
0x180a   :  { %v9227_v9 = vpop.eup %9226 }
0x180b   :  { %4879 = vrot.lane.b32.xlu1 %v4869_v4, %s9833_s13  ;;  %v9229_v57 = vpop.eup %9228  ;;  %v13752_v4 = vrot.slane %v11424_v14, 2 }
0x180c   :  { %4761 = vrot.lane.b32.xlu0 %v9223_v40, %s9832_s11  ;;  %v9231_v34 = vpop.eup %9230 }
0x180d   :  { %v9233_v24 = vpop.eup %9232 }
0x180e   :  { %v9235_v53 = vpop.eup %9234 }
0x180f   :  { %4759 = vrot.lane.b32.xlu1 %v9225_v52, %s9832_s11 }
0x1810   :  { %4765 = vrot.lane.b32.xlu0 %v9227_v9, %s9832_s11 }
0x1813   :  { %4763 = vrot.lane.b32.xlu1 %v9229_v57, %s9832_s11 }
0x1814   :  { %4769 = vrot.lane.b32.xlu0 %v9231_v34, %s9832_s11 }
0x1817   :  { %4767 = vrot.lane.b32.xlu1 %v9233_v24, %s9832_s11 }
0x1818   :  { %4773 = vrot.lane.b32.xlu0 %v9235_v53, %s9832_s11 }
0x181b   :  { %4881 = vrot.lane.b32.xlu1 %v4870_v41, %s9833_s13 }
0x181c   :  { %4883 = vrot.lane.b32.xlu0 %v4871_v50, %s9833_s13 }
0x181f   :  { %4887 = vrot.lane.b32.xlu1 %v4872_v3, %s9833_s13 }
0x1820   :  { %4885 = vrot.lane.b32.xlu0 %v4864_v55, %s9833_s13 }
0x1875   :  { %v4876_v51 = vpop.permute.xlu0 %4875  ;;  %v4874_v36 = vpop.permute.xlu1 %4873 }
0x1879   :  { %v4878_v31 = vpop.permute.xlu1 %4877 }
0x187a   :  { %v4772_v11 = vpop.permute.xlu0 %4771 }
0x187d   :  { %v4880_v10 = vpop.permute.xlu1 %4879 }
0x187e   :  { %v4762_v45 = vpop.permute.xlu0 %4761 }
0x187f   :  { %v4784_v6 = vmul.f32 %v11630_v15, %v4762_v45  ;;  %v13753_v15 = vrot.slane %v11424_v14, 5 }
0x1881   :  { %v4760_v20 = vpop.permute.xlu1 %4759  ;;  %v11707_v19 = vmul.f32 %v4784_v6, %v13751_v30 }
0x1882   :  { %v4783_v17 = vmul.f32 %v11632_v26, %v4760_v20  ;;  %v4766_v58 = vpop.permute.xlu0 %4765 }
0x1883   :  { %v4898_v55 = vadd.f32 %v4876_v51, %v11707_v19  ;;  %v4786_v52 = vmul.f32 %v11641_v61, %v4766_v58  ;;  %v13754_v51 = vrot.slane %v11424_v14, 4 }
0x1884   :  { %v11713_v40 = vmul.f32 %v4783_v17, %v13752_v4 }
0x1885   :  { %v4764_v9 = vpop.permute.xlu1 %4763  ;;  %v11719_v34 = vmul.f32 %v4786_v52, %v13753_v15  ;;  %v4934_v24 = vpack.c.bf16 %v4898_v55, %v4898_v55  ;;  %v5346_v41 = vrot.slane %v4898_v55, 5 }
0x1886   :  { %v4897_v57 = vadd.f32 %v4874_v36, %v11713_v40  ;;  %v4785_v53 = vmul.f32 %v11638_v47, %v4764_v9  ;;  %v4770_v26 = vpop.permute.xlu0 %4769  ;;  %v13755_v9 = vrot.slane %v11424_v14, 6 }
0x1887   :  { %v4900_v8 = vadd.f32 %v4880_v10, %v11719_v34  ;;  %v4788_v20 = vmul.f32 %v11650_v54, %v4770_v26  ;;  %v4952_v30 = vunpack.c.l.b16 %v4934_v24  ;;  %v13757_v24 = vrot.slane %v11424_v14, 7 }
0x1888   :  { %v4933_v50 = vpack.c.bf16 %v4897_v57, %v4897_v57  ;;  %v5345_v3 = vrot.slane %v4897_v57, 6  ;;  %v11725_v45 = vmul.f32 %v4785_v53, %v13754_v51  ;;  %v4789_v53 = vmul.f32 %v11653_v13, %v4772_v11 }
0x1889   :  { %v4768_v61 = vpop.permute.xlu1 %4767  ;;  %v4936_v55 = vpack.c.bf16 %v4900_v8, %v4900_v8  ;;  %v5350_v54 = vrot.slane %v4900_v8, 3  ;;  %v13759_v13 = vrot.slane %v11424_v14, 1 }
0x188a   :  { %v4951_v6 = vunpack.c.l.b16 %v4933_v50  ;;  %v5347_v36 = vsel %vm589_vm3, %v5346_v41, %v5345_v3  ;;  %v4899_v17 = vadd.f32 %v4878_v31, %v11725_v45  ;;  %v4787_v47 = vmul.f32 %v11644_v1, %v4768_v61  ;;  %v4774_v58 = vpop.permute.xlu0 %4773 }
0x188b   :  { %v4790_v4 = vmul.f32 %v11658_v49, %v4774_v58  ;;  %v11739_v31 = vmul.f32 %v4788_v20, %v13757_v24  ;;  %v4960_v1 = vrot.slane %v4952_v30, 5  ;;  %v4954_v51 = vunpack.c.l.b16 %v4936_v55 }
0x188c   :  { %v4935_v10 = vpack.c.bf16 %v4899_v17, %v4899_v17  ;;  %v5348_v52 = vrot.slane %v4899_v17, 4  ;;  %v11734_v57 = vmul.f32 %v4787_v47, %v13755_v9  ;;  %v4959_v41 = vrot.slane %v4951_v6, 6 }
0x188d   :  { %v4882_v15 = vpop.permute.xlu1 %4881  ;;  %13758 = vst [vmem:[#allocation88_spill] sm:$0xff] %v11739_v31  ;;  %v11747_v11 = vmul.f32 %v4790_v4, %v13759_v13 }
0x188e   :  { %13756 = vst [vmem:[#allocation87_spill] sm:$0xff] %v11734_v57  ;;  %v4953_v26 = vunpack.c.l.b16 %v4935_v10  ;;  %v5349_v50 = vsel %vm592_vm4, %v5348_v52, %v5347_v36  ;;  %v4901_v49 = vadd.f32 %v4882_v15, %v11734_v57  ;;  %v4884_v3 = vpop.permute.xlu0 %4883  ;;  %v4961_v30 = vsel %vm589_vm3, %v4960_v1, %v4959_v41 }
0x188f   :  { %v5351_v61 = vsel %vm595_vm5, %v5350_v54, %v5349_v50  ;;  %v4902_v17 = vadd.f32 %v4884_v3, %v11739_v31  ;;  %13760 = vst [vmem:[#allocation89_spill] sm:$0xff] %v11747_v11  ;;  %v11754_v15 = vmul.f32 %v4789_v53, %v11424_v14  ;;  %v4964_v54 = vrot.slane %v4954_v51, 3 }
0x1890   :  { %v4962_v8 = vrot.slane %v4953_v26, 4  ;;  %v4937_v6 = vpack.c.bf16 %v4901_v49, %v4901_v49  ;;  %v5352_v20 = vrot.slane %v4901_v49, 2 }
0x1891   :  { %v4888_v47 = vpop.permute.xlu1 %4887  ;;  %v4938_v58 = vpack.c.bf16 %v4902_v17, %v4902_v17  ;;  %v5354_v36 = vrot.slane %v4902_v17, 1  ;;  %13761 = vst [vmem:[#allocation90_spill] sm:$0xff] %v11754_v15 }
0x1892   :  { %v4904_v10 = vadd.f32 %v4888_v47, %v11747_v11  ;;  %v4963_v55 = vsel %vm592_vm4, %v4962_v8, %v4961_v30  ;;  %v4955_v52 = vunpack.c.l.b16 %v4937_v6  ;;  %v5353_v9 = vsel %vm598_vm6, %v5352_v20, %v5351_v61  ;;  %v4886_v4 = vpop.permute.xlu0 %4885 }
0x1893   :  { %v4956_v24 = vunpack.c.l.b16 %v4938_v58  ;;  %v4903_v41 = vadd.f32 %v4886_v4, %v11754_v15  ;;  %v5355_v1 = vsel %vm601_vm7, %v5354_v36, %v5353_v9  ;;  %v4965_v3 = vsel %vm595_vm5, %v4964_v54, %v4963_v55 }
0x1894   :  { %v4940_v26 = vpack.c.bf16 %v4904_v10, %v4904_v10  ;;  %v5357_v50 = vrot.slane %v4904_v10, 7  ;;  %v4966_v49 = vrot.slane %v4955_v52, 2 }
0x1895   :  { %v4968_v17 = vrot.slane %v4956_v24, 1  ;;  %v4939_v61 = vpack.c.bf16 %v4903_v41, %v4903_v41  ;;  %v5356_v53 = vsel %vm604_vm8, %v4903_v41, %v5355_v1 }
0x1896   :  { %v4958_v13 = vunpack.c.l.b16 %v4940_v26  ;;  %v4967_v8 = vsel %vm598_vm6, %v4966_v49, %v4965_v3  ;;  %v11763_v20 = vsel %vm13676_vm9, %v5357_v50, %v5356_v53 }
0x1897   :  { %v4969_v6 = vsel %vm601_vm7, %v4968_v17, %v4967_v8  ;;  %v4957_v47 = vunpack.c.l.b16 %v4939_v61 }
0x1898   :  { %v4971_v51 = vrot.slane %v4958_v13, 7 }
0x1899   :  { %v4970_v30 = vsel %vm604_vm8, %v4957_v47, %v4969_v6 }
0x189a   :  { %v4972_v58 = vsel %vm13676_vm9, %v4971_v51, %v4970_v30 }
0x189b   :  { %v4973_v36 = vpack.c.b16 %v4972_v58, %v4972_v58 }
0x189d   :  { %4974 = vrot.lane.b32.xlu1 %v4973_v36, %s9831_s1 }
0x190f   :  { %v4975_v10 = vpop.permute.xlu1 %4974 }
0x1910   :  { %8552 = vmatmul.mubr.msk.bf16.vlgmr.msra.gmra.mrb[20].mxu1 %vm222_vm10, %v4975_v10 }
0x1911   :  { %8563 = vmatprep.mubr.msk.bf16.mxu1 %vm9829_vm0, %v13699_v7 }
0x19e3   :  { %v5019_v55 = vpop.f32.mrb[20].mxu1 }
0x19e4   :  { %v8553_v52 = vpop.f32.mrb[21].mxu1  ;;  %v5027_v9 = vrot.slane %v5019_v55, 4  ;;  %v5026_v4 = vrot.slane %v5019_v55, 3  ;;  %v5029_v26 = vrot.slane %v5019_v55, 6  ;;  %v5028_v50 = vrot.slane %v5019_v55, 5 }
0x19e5   :  { %v5022_v54 = vpop.f32.mrb[22].mxu1  ;;  %v5031_v49 = vrot.slane %v5019_v55, 1  ;;  %v5030_v41 = vrot.slane %v5019_v55, 7  ;;  %v5032_v1 = vrot.slane %v5019_v55, 2 }
0x19e6   :  { %5035 = vrot.lane.b32.xlu1 %v5027_v9, %s9824_s21  ;;  %5033 = vrot.lane.b32.xlu0 %v5026_v4, %s9824_s21  ;;  %v8554_v24 = vpop.f32.mrb[23].mxu1 }
0x19ea   :  { %5039 = vrot.lane.b32.xlu1 %v5029_v26, %s9824_s21  ;;  %5037 = vrot.lane.b32.xlu0 %v5028_v50, %s9824_s21 }
0x19ee   :  { %5045 = vrot.lane.b32.xlu1 %v5031_v49, %s9824_s21  ;;  %5041 = vrot.lane.b32.xlu0 %v5030_v41, %s9824_s21 }
0x19f2   :  { %5047 = vrot.lane.b32.xlu1 %v5032_v1, %s9824_s21  ;;  %5043 = vrot.lane.b32.xlu0 %v5019_v55, %s9824_s21  ;;  %v4931_v1 = vmul.f32 %v11612_v60, %v11356_v35 }
0x19f6   :  { %4927 = vrot.lane.b32.xlu0 %v11682_v12, %s9836_s10 }
0x1a58   :  { %v5036_v3 = vpop.permute.xlu1 %5035  ;;  %v5034_v17 = vpop.permute.xlu0 %5033 }
0x1a59   :  { %v5058_v13 = vadd.f32 %v5036_v3, %v9983_v33  ;;  %v5057_v8 = vadd.f32 %v5034_v17, %v9972_v18 }
0x1a5b   :  { %9236 = vtanh.f32 %v5058_v13 }
0x1a5c   :  { %9238 = vtanh.f32 %v5057_v8  ;;  %v5040_v61 = vpop.permute.xlu1 %5039  ;;  %v5038_v53 = vpop.permute.xlu0 %5037 }
0x1a5d   :  { %v5060_v6 = vadd.f32 %v5040_v61, %v9974_v22  ;;  %v5059_v51 = vadd.f32 %v5038_v53, %v9988_v38 }
0x1a5f   :  { %9240 = vtanh.f32 %v5060_v6 }
0x1a60   :  { %9242 = vtanh.f32 %v5059_v51  ;;  %v5046_v47 = vpop.permute.xlu1 %5045  ;;  %v5042_v30 = vpop.permute.xlu0 %5041 }
0x1a61   :  { %v5063_v12 = vadd.f32 %v5046_v47, %v9995_v46  ;;  %v5061_v58 = vadd.f32 %v5042_v30, %v9992_v42 }
0x1a63   :  { %9244 = vtanh.f32 %v5063_v12 }
0x1a64   :  { %9246 = vtanh.f32 %v5061_v58  ;;  %v5048_v36 = vpop.permute.xlu1 %5047  ;;  %v5044_v10 = vpop.permute.xlu0 %5043 }
0x1a65   :  { %v9237_v55 = vpop.eup %9236  ;;  %v5064_v52 = vadd.f32 %v5048_v36, %v9981_v32  ;;  %v5062_v9 = vadd.f32 %v5044_v10, %v9978_v28 }
0x1a66   :  { %v9239_v4 = vpop.eup %9238  ;;  %5171 = vrot.lane.b32.xlu0 %v9237_v55, %s9830_s5 }
0x1a67   :  { %9248 = vtanh.f32 %v5064_v52  ;;  %5169 = vrot.lane.b32.xlu1 %v9239_v4, %s9830_s5  ;;  %v8369_v4 = vmul.f32 -1.442695, %v5058_v13 }
0x1a68   :  { %9250 = vtanh.f32 %v5062_v9  ;;  %v4928_v24 = vpop.permute.xlu0 %4927 }
0x1a69   :  { %v9241_v54 = vpop.eup %9240  ;;  %v4930_v50 = vmul.f32 %v4928_v24, %v11424_v14  ;;  %9252 = vpow2.f32 %v8369_v4  ;;  %v8371_v24 = vmul.f32 -1.442695, %v5060_v6 }
0x1a6a   :  { %v9243_v26 = vpop.eup %9242  ;;  %5175 = vrot.lane.b32.xlu0 %v9241_v54, %s9830_s5  ;;  %v8368_v54 = vmul.f32 -1.442695, %v5057_v8 }
0x1a6b   :  { %5173 = vrot.lane.b32.xlu1 %v9243_v26, %s9830_s5  ;;  %v11798_v3 = vadd.f32 %v4931_v1, %v4930_v50  ;;  %v8370_v26 = vmul.f32 -1.442695, %v5059_v51  ;;  %v8374_v50 = vmul.f32 -1.442695, %v5063_v12  ;;  %v8373_v1 = vmul.f32 -1.442695, %v5062_v9 }
0x1a6c   :  { %9254 = vpow2.f32 %v8368_v54 }
0x1a6d   :  { %v9245_v49 = vpop.eup %9244  ;;  %v5123_v53 = vrot.slane %v11798_v3, 4  ;;  %v5122_v47 = vrot.slane %v11798_v3, 3  ;;  %v5125_v60 = vrot.slane %v11798_v3, 6  ;;  %v5124_v30 = vrot.slane %v11798_v3, 5 }
0x1a6e   :  { %v9247_v41 = vpop.eup %9246  ;;  %5181 = vrot.lane.b32.xlu0 %v9245_v49, %s9830_s5  ;;  %v5127_v36 = vrot.slane %v11798_v3, 1  ;;  %v5126_v10 = vrot.slane %v11798_v3, 7  ;;  %v5128_v55 = vrot.slane %v11798_v3, 2  ;;  %9256 = vpow2.f32 %v8371_v24 }
0x1a6f   :  { %5177 = vrot.lane.b32.xlu1 %v9247_v41, %s9830_s5  ;;  %9258 = vpow2.f32 %v8370_v26  ;;  %v8372_v49 = vmul.f32 -1.442695, %v5061_v58  ;;  %v8375_v41 = vmul.f32 -1.442695, %v5064_v52 }
0x1a70   :  { %9260 = vpow2.f32 %v8374_v50 }
0x1a71   :  { %v9249_v17 = vpop.eup %9248  ;;  %9262 = vpow2.f32 %v8372_v49 }
0x1a72   :  { %v9251_v61 = vpop.eup %9250  ;;  %5183 = vrot.lane.b32.xlu0 %v9249_v17, %s9830_s5  ;;  %9264 = vpow2.f32 %v8375_v41 }
0x1a73   :  { %5179 = vrot.lane.b32.xlu1 %v9251_v61, %s9830_s5  ;;  %v9253_v17 = vpop.eup %9252  ;;  %9266 = vpow2.f32 %v8373_v1 }
0x1a76   :  { %5131 = vrot.lane.b32.xlu0 %v5123_v53, %s9834_s3  ;;  %v9255_v61 = vpop.eup %9254  ;;  %v5090_v53 = vadd.f32 1.0, %v9253_v17 }
0x1a77   :  { %5129 = vrot.lane.b32.xlu1 %v5122_v47, %s9834_s3  ;;  %v5089_v13 = vadd.f32 1.0, %v9255_v61 }
0x1a78   :  { %v9257_v47 = vpop.eup %9256  ;;  %9268 = vrcp.f32 %v5090_v53 }
0x1a79   :  { %v9259_v8 = vpop.eup %9258  ;;  %v5092_v6 = vadd.f32 1.0, %v9257_v47  ;;  %9270 = vrcp.f32 %v5089_v13 }
0x1a7a   :  { %5135 = vrot.lane.b32.xlu0 %v5125_v60, %s9834_s3  ;;  %v9261_v60 = vpop.eup %9260  ;;  %v5091_v51 = vadd.f32 1.0, %v9259_v8 }
0x1a7b   :  { %5133 = vrot.lane.b32.xlu1 %v5124_v30, %s9834_s3  ;;  %v9263_v12 = vpop.eup %9262  ;;  %9272 = vrcp.f32 %v5092_v6  ;;  %v5095_v58 = vadd.f32 1.0, %v9261_v60 }
0x1a7c   :  { %v9265_v30 = vpop.eup %9264  ;;  %9274 = vrcp.f32 %v5091_v51  ;;  %v5093_v52 = vadd.f32 1.0, %v9263_v12 }
0x1a7d   :  { %v9267_v9 = vpop.eup %9266  ;;  %9276 = vrcp.f32 %v5095_v58 }
0x1a7e   :  { %5141 = vrot.lane.b32.xlu0 %v5127_v36, %s9834_s3  ;;  %v5096_v36 = vadd.f32 1.0, %v9265_v30  ;;  %9278 = vrcp.f32 %v5093_v52 }
0x1a7f   :  { %5137 = vrot.lane.b32.xlu1 %v5126_v10, %s9834_s3  ;;  %v5094_v10 = vadd.f32 1.0, %v9267_v9 }
0x1a80   :  { %9280 = vrcp.f32 %v5096_v36 }
0x1a81   :  { %9282 = vrcp.f32 %v5094_v10 }
0x1a82   :  { %5139 = vrot.lane.b32.xlu0 %v11798_v3, %s9834_s3 }
0x1a83   :  { %5143 = vrot.lane.b32.xlu1 %v5128_v55, %s9834_s3  ;;  %v11818_v55 = vpop.eup %9268 }
0x1a84   :  { %v11820_v54 = vpop.eup %9270 }
0x1a85   :  { %v11825_v49 = vpop.eup %9272 }
0x1a86   :  { %v11828_v1 = vpop.eup %9274 }
0x1a87   :  { %v11832_v47 = vpop.eup %9276 }
0x1a88   :  { %v11836_v8 = vpop.eup %9278 }
0x1a8a   :  { %v11840_v12 = vpop.eup %9280 }
0x1a8b   :  { %v11844_v30 = vpop.eup %9282 }
0x1ad8   :  { %v5172_v4 = vpop.permute.xlu0 %5171 }
0x1ad9   :  { %v5170_v24 = vpop.permute.xlu1 %5169  ;;  %v5194_v26 = vmul.f32 %v11818_v55, %v5172_v4 }
0x1ada   :  { %v5193_v50 = vmul.f32 %v11820_v54, %v5170_v24 }
0x1adb   :  { %5211 = vrot.lane.b32.xlu0 %v5194_v26, %s9831_s1 }
0x1adc   :  { %5209 = vrot.lane.b32.xlu1 %v5193_v50, %s9831_s1  ;;  %v5176_v41 = vpop.permute.xlu0 %5175 }
0x1add   :  { %v5174_v17 = vpop.permute.xlu1 %5173  ;;  %v5196_v61 = vmul.f32 %v11825_v49, %v5176_v41 }
0x1ade   :  { %v5195_v53 = vmul.f32 %v11828_v1, %v5174_v17 }
0x1ae0   :  { %5213 = vrot.lane.b32.xlu0 %v5195_v53, %s9831_s1  ;;  %5215 = vrot.lane.b32.xlu1 %v5196_v61, %s9831_s1  ;;  %v5182_v13 = vpop.permute.xlu0 %5181 }
0x1ae1   :  { %v5178_v6 = vpop.permute.xlu1 %5177  ;;  %v5199_v60 = vmul.f32 %v11832_v47, %v5182_v13 }
0x1ae2   :  { %v5197_v51 = vmul.f32 %v11836_v8, %v5178_v6 }
0x1ae4   :  { %5217 = vrot.lane.b32.xlu1 %v5197_v51, %s9831_s1  ;;  %5221 = vrot.lane.b32.xlu0 %v5199_v60, %s9831_s1  ;;  %v5184_v58 = vpop.permute.xlu0 %5183 }
0x1ae5   :  { %v5180_v52 = vpop.permute.xlu1 %5179  ;;  %v5200_v9 = vmul.f32 %v11840_v12, %v5184_v58 }
0x1ae6   :  { %v5198_v36 = vmul.f32 %v11844_v30, %v5180_v52 }
0x1ae8   :  { %5219 = vrot.lane.b32.xlu1 %v5198_v36, %s9831_s1  ;;  %5223 = vrot.lane.b32.xlu0 %v5200_v9, %s9831_s1  ;;  %v5132_v10 = vpop.permute.xlu0 %5131 }
0x1ae9   :  { %v5130_v4 = vpop.permute.xlu1 %5129  ;;  %v5154_v53 = vmul.f32 %v11818_v55, %v5132_v10 }
0x1aea   :  { %v5153_v13 = vmul.f32 %v11820_v54, %v5130_v4 }
0x1aec   :  { %5359 = vrot.lane.b32.xlu1 %v11763_v20, %s9831_s1  ;;  %v5136_v24 = vpop.permute.xlu0 %5135 }
0x1aed   :  { %v5134_v26 = vpop.permute.xlu1 %5133  ;;  %v5156_v20 = vmul.f32 %v11825_v49, %v5136_v24 }
0x1aee   :  { %v5155_v9 = vmul.f32 %v11828_v1, %v5134_v26 }
0x1af0   :  { %v5142_v50 = vpop.permute.xlu0 %5141 }
0x1af1   :  { %v5138_v41 = vpop.permute.xlu1 %5137  ;;  %v5159_v37 = vmul.f32 %v11832_v47, %v5142_v50 }
0x1af2   :  { %v5157_v10 = vmul.f32 %v11836_v8, %v5138_v41 }
0x1af4   :  { %v5140_v17 = vpop.permute.xlu0 %5139 }
0x1af5   :  { %v5144_v61 = vpop.permute.xlu1 %5143 }
0x1af6   :  { %v5160_v57 = vmul.f32 %v11840_v12, %v5144_v61 }
0x1b4d   :  { %v5212_v6 = vpop.permute.xlu0 %5211 }
0x1b4e   :  { %v5210_v60 = vpop.permute.xlu1 %5209  ;;  %v5234_v51 = vadd.f32 %v5212_v6, %v5154_v53 }
0x1b4f   :  { %v5233_v58 = vadd.f32 %v5210_v60, %v5153_v13 }
0x1b50   :  { %v5412_v52 = vrot.slane %v5234_v51, 4 }
0x1b51   :  { %v5411_v36 = vrot.slane %v5233_v58, 5 }
0x1b52   :  { %v5216_v39 = vpop.permute.xlu1 %5215  ;;  %v5214_v23 = vpop.permute.xlu0 %5213 }
0x1b53   :  { %v5413_v16 = vsel %vm589_vm3, %v5412_v52, %v5411_v36  ;;  %v5236_v11 = vadd.f32 %v5216_v39, %v5156_v20  ;;  %v5235_v15 = vadd.f32 %v5214_v23, %v5155_v9  ;;  %v5158_v52 = vmul.f32 %v11844_v30, %v5140_v17 }
0x1b55   :  { %v5416_v48 = vrot.slane %v5236_v11, 2  ;;  %v5414_v4 = vrot.slane %v5235_v15, 3 }
0x1b56   :  { %v5218_v53 = vpop.permute.xlu1 %5217  ;;  %v5222_v13 = vpop.permute.xlu0 %5221 }
0x1b57   :  { %v5415_v6 = vsel %vm592_vm4, %v5414_v4, %v5413_v16  ;;  %v5237_v26 = vadd.f32 %v5218_v53, %v5157_v10  ;;  %v5239_v60 = vadd.f32 %v5222_v13, %v5159_v37 }
0x1b58   :  { %v5417_v24 = vsel %vm595_vm5, %v5416_v48, %v5415_v6 }
0x1b59   :  { %v5418_v39 = vrot.slane %v5237_v26, 1  ;;  %v5421_v50 = vrot.slane %v5239_v60, 7 }
0x1b5a   :  { %v5220_v23 = vpop.permute.xlu1 %5219  ;;  %v5224_v9 = vpop.permute.xlu0 %5223 }
0x1b5b   :  { %v5419_v41 = vsel %vm598_vm6, %v5418_v39, %v5417_v24  ;;  %v5238_v20 = vadd.f32 %v5220_v23, %v5158_v52  ;;  %v5240_v36 = vadd.f32 %v5224_v9, %v5160_v57 }
0x1b5d   :  { %v5420_v56 = vsel %vm601_vm7, %v5238_v20, %v5419_v41  ;;  %v5423_v31 = vrot.slane %v5240_v36, 6  ;;  %9284 = vtanh.f32 %v5238_v20 }
0x1b5e   :  { %v5360_v16 = vpop.permute.xlu1 %5359  ;;  %v5422_v10 = vsel %vm604_vm8, %v5421_v50, %v5420_v56  ;;  %9286 = vtanh.f32 %v5234_v51 }
0x1b5f   :  { %v5362_v37 = vmul.f32 %v5360_v16, %v11029_v44  ;;  %v11868_v48 = vsel %vm13676_vm9, %v5423_v31, %v5422_v10  ;;  %9288 = vtanh.f32 %v5233_v58 }
0x1b60   :  { %9290 = vtanh.f32 %v5236_v11 }
0x1b61   :  { %v5364_v17 = vrot.slane %v5362_v37, 3  ;;  %v5365_v61 = vrot.slane %v5362_v37, 4  ;;  %v5367_v57 = vrot.slane %v5362_v37, 6  ;;  %v5366_v4 = vrot.slane %v5362_v37, 5 }
0x1b62   :  { %9292 = vtanh.f32 %v5235_v15  ;;  %v5368_v56 = vrot.slane %v5362_v37, 7  ;;  %v5369_v6 = vrot.slane %v5362_v37, 1  ;;  %v5370_v24 = vrot.slane %v5362_v37, 2 }
0x1b63   :  { %5371 = vrot.lane.b32.xlu1 %v5364_v17, %s9833_s13  ;;  %5373 = vrot.lane.b32.xlu0 %v5365_v61, %s9833_s13  ;;  %9294 = vtanh.f32 %v5237_v26  ;;  %v13762_v17 = vrot.slane %v11049_v29, 4 }
0x1b64   :  { %9296 = vtanh.f32 %v5239_v60  ;;  %v8653_v60 = vld [vmem:[%s13508_s4] sm:$0xff]  }
0x1b65   :  { %9298 = vtanh.f32 %v5240_v36  ;;  %8556 = vmatpush3.bf16.msra.mxu0 %v8653_v60 }
0x1b66   :  { %8567 = vmatprep.subr.bf16.mxu0 %v13699_v7 }
0x1b67   :  { %5377 = vrot.lane.b32.xlu1 %v5367_v57, %s9833_s13  ;;  %5375 = vrot.lane.b32.xlu0 %v5366_v4, %s9833_s13  ;;  %v9285_v31 = vpop.eup %9284 }
0x1b68   :  { %v9287_v51 = vpop.eup %9286 }
0x1b69   :  { %v9289_v53 = vpop.eup %9288 }
0x1b6a   :  { %v9291_v11 = vpop.eup %9290 }
0x1b6b   :  { %5379 = vrot.lane.b32.xlu0 %v5368_v56, %s9833_s13  ;;  %5267 = vrot.lane.b32.xlu1 %v9285_v31, %s9832_s11 }
0x1b6c   :  { %v9293_v58 = vpop.eup %9292 }
0x1b6d   :  { %v9295_v15 = vpop.eup %9294 }
0x1b6e   :  { %v9297_v13 = vpop.eup %9296 }
0x1b6f   :  { %5257 = vrot.lane.b32.xlu0 %v9289_v53, %s9832_s11  ;;  %5259 = vrot.lane.b32.xlu1 %v9287_v51, %s9832_s11  ;;  %v9299_v26 = vpop.eup %9298 }
0x1b73   :  { %5263 = vrot.lane.b32.xlu1 %v9291_v11, %s9832_s11  ;;  %5261 = vrot.lane.b32.xlu0 %v9293_v58, %s9832_s11 }
0x1b77   :  { %5265 = vrot.lane.b32.xlu0 %v9295_v15, %s9832_s11  ;;  %5269 = vrot.lane.b32.xlu1 %v9297_v13, %s9832_s11  ;;  %v13764_v13 = vrot.slane %v11049_v29, 6 }
0x1b7b   :  { %5383 = vrot.lane.b32.xlu1 %v5369_v6, %s9833_s13  ;;  %5271 = vrot.lane.b32.xlu0 %v9299_v26, %s9832_s11  ;;  %v13765_v26 = vrot.slane %v11049_v29, 5 }
0x1b7f   :  { %5385 = vrot.lane.b32.xlu1 %v5370_v24, %s9833_s13  ;;  %5381 = vrot.lane.b32.xlu0 %v5362_v37, %s9833_s13  ;;  %v13763_v37 = vrot.slane %v11049_v29, 3 }
0x1bd5   :  { %v5372_v52 = vpop.permute.xlu1 %5371  ;;  %v5374_v39 = vpop.permute.xlu0 %5373 }
0x1bd9   :  { %v5378_v23 = vpop.permute.xlu1 %5377  ;;  %v5376_v9 = vpop.permute.xlu0 %5375 }
0x1bdd   :  { %v5268_v41 = vpop.permute.xlu1 %5267  ;;  %v5380_v20 = vpop.permute.xlu0 %5379 }
0x1be1   :  { %v5260_v36 = vpop.permute.xlu1 %5259  ;;  %v5258_v50 = vpop.permute.xlu0 %5257 }
0x1be2   :  { %v5282_v16 = vmul.f32 %v11818_v55, %v5260_v36  ;;  %v5281_v10 = vmul.f32 %v11820_v54, %v5258_v50 }
0x1be4   :  { %v11894_v61 = vmul.f32 %v5282_v16, %v13762_v17  ;;  %v11898_v57 = vmul.f32 %v5281_v10, %v13763_v37  ;;  %v5286_v17 = vmul.f32 %v11844_v30, %v5268_v41  ;;  %v13766_v37 = vrot.slane %v11049_v29, 1 }
0x1be5   :  { %v5264_v4 = vpop.permute.xlu1 %5263  ;;  %v5262_v56 = vpop.permute.xlu0 %5261 }
0x1be6   :  { %v5396_v31 = vadd.f32 %v5374_v39, %v11894_v61  ;;  %v5395_v51 = vadd.f32 %v5372_v52, %v11898_v57  ;;  %v5284_v53 = vmul.f32 %v11825_v49, %v5264_v4  ;;  %v5283_v55 = vmul.f32 %v11828_v1, %v5262_v56 }
0x1be8   :  { %v5432_v11 = vpack.c.bf16 %v5396_v31, %v5396_v31  ;;  %v5844_v54 = vrot.slane %v5396_v31, 4  ;;  %v5431_v58 = vpack.c.bf16 %v5395_v51, %v5395_v51  ;;  %v5843_v15 = vrot.slane %v5395_v51, 5 }
0x1be9   :  { %v11906_v6 = vmul.f32 %v5284_v53, %v13764_v13  ;;  %v11910_v24 = vmul.f32 %v5283_v55, %v13765_v26  ;;  %v5270_v60 = vpop.permute.xlu1 %5269  ;;  %v5266_v39 = vpop.permute.xlu0 %5265 }
0x1bea   :  { %v5450_v36 = vunpack.c.l.b16 %v5432_v11  ;;  %v5845_v52 = vsel %vm589_vm3, %v5844_v54, %v5843_v15  ;;  %v5287_v49 = vmul.f32 %v11832_v47, %v5270_v60  ;;  %v5449_v1 = vunpack.c.l.b16 %v5431_v58 }
0x1beb   :  { %v5398_v50 = vadd.f32 %v5378_v23, %v11906_v6  ;;  %v5397_v16 = vadd.f32 %v5376_v9, %v11910_v24  ;;  %v5285_v10 = vmul.f32 %v11836_v8, %v5266_v39  ;;  %v13768_v54 = vrot.slane %v11049_v29, 7 }
0x1bec   :  { %v11920_v4 = vmul.f32 %v5287_v49, %v13766_v37  ;;  %v5458_v47 = vrot.slane %v5450_v36, 4  ;;  %v5457_v30 = vrot.slane %v5449_v1, 5  ;;  %v13770_v60 = vrot.slane %v11049_v29, 2 }
0x1bed   :  { %v5434_v56 = vpack.c.bf16 %v5398_v50, %v5398_v50  ;;  %v5848_v31 = vrot.slane %v5398_v50, 2  ;;  %v5433_v51 = vpack.c.bf16 %v5397_v16, %v5397_v16  ;;  %v5846_v53 = vrot.slane %v5397_v16, 3  ;;  %v5384_v55 = vpop.permute.xlu1 %5383  ;;  %v5272_v11 = vpop.permute.xlu0 %5271 }
0x1bee   :  { %13767 = vst [vmem:[#allocation91_spill] sm:$0xff] %v11920_v4  ;;  %v11924_v23 = vmul.f32 %v5285_v10, %v13768_v54  ;;  %v5401_v9 = vadd.f32 %v5384_v55, %v11920_v4  ;;  %v5288_v8 = vmul.f32 %v11840_v12, %v5272_v11  ;;  %v11935_v50 = vmul.f32 %v5286_v17, %v11049_v29 }
0x1bef   :  { %v5452_v41 = vunpack.c.l.b16 %v5434_v56  ;;  %v5451_v58 = vunpack.c.l.b16 %v5433_v51  ;;  %v5847_v15 = vsel %vm592_vm4, %v5846_v53, %v5845_v52  ;;  %v5459_v52 = vsel %vm589_vm3, %v5458_v47, %v5457_v30 }
0x1bf0   :  { %13769 = vst [vmem:[#allocation92_spill] sm:$0xff] %v11924_v23  ;;  %v5399_v13 = vadd.f32 %v5380_v20, %v11924_v23  ;;  %v5437_v26 = vpack.c.bf16 %v5401_v9, %v5401_v9  ;;  %v11932_v39 = vmul.f32 %v5288_v8, %v13770_v60  ;;  %13772 = vst [vmem:[#allocation94_spill] sm:$0xff] %v11935_v50  ;;  %v5853_v17 = vrot.slane %v5401_v9, 7 }
0x1bf1   :  { %v5460_v36 = vrot.slane %v5451_v58, 3  ;;  %v5386_v49 = vpop.permute.xlu1 %5385  ;;  %v5849_v16 = vsel %vm595_vm5, %v5848_v31, %v5847_v15  ;;  %v5382_v12 = vpop.permute.xlu0 %5381  ;;  %v5462_v20 = vrot.slane %v5452_v41, 2 }
0x1bf2   :  { %13771 = vst [vmem:[#allocation93_spill] sm:$0xff] %v11932_v39  ;;  %v5435_v1 = vpack.c.bf16 %v5399_v13, %v5399_v13  ;;  %v5850_v10 = vrot.slane %v5399_v13, 1  ;;  %v5402_v37 = vadd.f32 %v5386_v49, %v11932_v39  ;;  %v5455_v56 = vunpack.c.l.b16 %v5437_v26 }
0x1bf3   :  { %v5400_v51 = vadd.f32 %v5382_v12, %v11935_v50  ;;  %v5461_v53 = vsel %vm592_vm4, %v5460_v36, %v5459_v52 }
0x1bf4   :  { %v5453_v55 = vunpack.c.l.b16 %v5435_v1  ;;  %v5438_v11 = vpack.c.bf16 %v5402_v37, %v5402_v37  ;;  %v5855_v54 = vrot.slane %v5402_v37, 6  ;;  %v5851_v8 = vsel %vm598_vm6, %v5850_v10, %v5849_v16 }
0x1bf5   :  { %v5436_v31 = vpack.c.bf16 %v5400_v51, %v5400_v51  ;;  %v5852_v13 = vsel %vm601_vm7, %v5400_v51, %v5851_v8  ;;  %v5463_v60 = vsel %vm595_vm5, %v5462_v20, %v5461_v53  ;;  %v5467_v41 = vrot.slane %v5455_v56, 7 }
0x1bf6   :  { %v5464_v58 = vrot.slane %v5453_v55, 1  ;;  %v5456_v15 = vunpack.c.l.b16 %v5438_v11  ;;  %v5854_v30 = vsel %vm604_vm8, %v5853_v17, %v5852_v13 }
0x1bf7   :  { %v5454_v47 = vunpack.c.l.b16 %v5436_v31  ;;  %v11948_v49 = vsel %vm13676_vm9, %v5855_v54, %v5854_v30 }
0x1bf8   :  { %v5469_v26 = vrot.slane %v5456_v15, 6  ;;  %v5465_v36 = vsel %vm598_vm6, %v5464_v58, %v5463_v60 }
0x1bf9   :  { %v5466_v9 = vsel %vm601_vm7, %v5454_v47, %v5465_v36 }
0x1bfa   :  { %v5468_v16 = vsel %vm604_vm8, %v5467_v41, %v5466_v9 }
0x1bfb   :  { %v5470_v12 = vsel %vm13676_vm9, %v5469_v26, %v5468_v16 }
0x1bfc   :  { %v5471_v1 = vpack.c.b16 %v5470_v12, %v5470_v12 }
0x1bfe   :  { %5472 = vrot.lane.b32.xlu0 %v5471_v1, %s9831_s1 }
0x1c70   :  { %v5473_v10 = vpop.permute.xlu0 %5472 }
0x1c71   :  { %8558 = vmatmul.mubr.msk.bf16.vlgmr.msra.gmra.mrb[28].mxu0 %vm222_vm10, %v5473_v10 }
0x1c72   :  { %8569 = vmatprep.mubr.msk.bf16.mxu0 %vm9829_vm0, %v13699_v7 }
0x1d44   :  { %v5517_v37 = vpop.f32.mrb[28].mxu0 }
0x1d45   :  { %5539 = vrot.lane.b32.xlu0 %v5517_v37, %s9824_s21  ;;  %v8559_v52 = vpop.f32.mrb[29].mxu0  ;;  %v5524_v20 = vrot.slane %v5517_v37, 4  ;;  %v5525_v53 = vrot.slane %v5517_v37, 5  ;;  %v5526_v55 = vrot.slane %v5517_v37, 6  ;;  %v5527_v11 = vrot.slane %v5517_v37, 7 }
0x1d46   :  { %v5520_v56 = vpop.f32.mrb[30].mxu0  ;;  %v5528_v54 = vrot.slane %v5517_v37, 1  ;;  %v5530_v17 = vrot.slane %v5517_v37, 3  ;;  %v5529_v8 = vrot.slane %v5517_v37, 2 }
0x1d47   :  { %5531 = vrot.lane.b32.xlu1 %v5524_v20, %s9824_s21  ;;  %v8560_v51 = vpop.f32.mrb[31].mxu0 }
0x1d49   :  { %5533 = vrot.lane.b32.xlu0 %v5525_v53, %s9824_s21 }
0x1d4b   :  { %5535 = vrot.lane.b32.xlu1 %v5526_v55, %s9824_s21 }
0x1d4d   :  { %5537 = vrot.lane.b32.xlu0 %v5527_v11, %s9824_s21  ;;  %v5429_v11 = vmul.f32 %v11798_v3, %v11029_v44 }
0x1d4f   :  { %5541 = vrot.lane.b32.xlu1 %v5528_v54, %s9824_s21 }
0x1d51   :  { %5545 = vrot.lane.b32.xlu0 %v5530_v17, %s9824_s21 }
0x1d53   :  { %5543 = vrot.lane.b32.xlu1 %v5529_v8, %s9824_s21 }
0x1d57   :  { %5425 = vrot.lane.b32.xlu1 %v11868_v48, %s9836_s10 }
0x1db7   :  { %v5540_v31 = vpop.permute.xlu0 %5539 }
0x1db8   :  { %v5559_v58 = vadd.f32 %v5540_v31, %v9992_v42 }
0x1db9   :  { %v5532_v15 = vpop.permute.xlu1 %5531 }
0x1dba   :  { %9300 = vtanh.f32 %v5559_v58  ;;  %v5555_v13 = vadd.f32 %v5532_v15, %v9972_v18 }
0x1dbb   :  { %v5534_v60 = vpop.permute.xlu0 %5533 }
0x1dbc   :  { %v5556_v47 = vadd.f32 %v5534_v60, %v9983_v33  ;;  %9302 = vtanh.f32 %v5555_v13 }
0x1dbd   :  { %v5536_v30 = vpop.permute.xlu1 %5535 }
0x1dbe   :  { %v5557_v41 = vadd.f32 %v5536_v30, %v9988_v38  ;;  %9304 = vtanh.f32 %v5556_v47 }
0x1dbf   :  { %v5538_v26 = vpop.permute.xlu0 %5537 }
0x1dc0   :  { %v5558_v36 = vadd.f32 %v5538_v26, %v9974_v22  ;;  %9306 = vtanh.f32 %v5557_v41 }
0x1dc1   :  { %v5542_v48 = vpop.permute.xlu1 %5541 }
0x1dc2   :  { %v5560_v9 = vadd.f32 %v5542_v48, %v9978_v28  ;;  %9308 = vtanh.f32 %v5558_v36  ;;  %v8378_v48 = vmul.f32 -1.442695, %v5555_v13 }
0x1dc3   :  { %v5546_v16 = vpop.permute.xlu0 %5545 }
0x1dc4   :  { %v9301_v12 = vpop.eup %9300  ;;  %v5562_v1 = vadd.f32 %v5546_v16, %v9981_v32  ;;  %9310 = vtanh.f32 %v5560_v9  ;;  %v8379_v16 = vmul.f32 -1.442695, %v5556_v47 }
0x1dc5   :  { %5675 = vrot.lane.b32.xlu1 %v9301_v12, %s9830_s5  ;;  %v5544_v10 = vpop.permute.xlu1 %5543  ;;  %v8380_v12 = vmul.f32 -1.442695, %v5557_v41 }
0x1dc6   :  { %v9303_v37 = vpop.eup %9302  ;;  %9312 = vtanh.f32 %v5562_v1  ;;  %v5561_v52 = vadd.f32 %v5544_v10, %v9995_v46  ;;  %v8382_v10 = vmul.f32 -1.442695, %v5559_v58 }
0x1dc7   :  { %5667 = vrot.lane.b32.xlu0 %v9303_v37, %s9830_s5  ;;  %v8381_v37 = vmul.f32 -1.442695, %v5558_v36 }
0x1dc8   :  { %v9305_v20 = vpop.eup %9304  ;;  %9314 = vtanh.f32 %v5561_v52 }
0x1dc9   :  { %v5426_v56 = vpop.permute.xlu1 %5425  ;;  %5669 = vrot.lane.b32.xlu1 %v9305_v20, %s9830_s5  ;;  %9316 = vpow2.f32 %v8378_v48  ;;  %v8385_v20 = vmul.f32 -1.442695, %v5562_v1 }
0x1dca   :  { %v9307_v51 = vpop.eup %9306  ;;  %v5428_v53 = vmul.f32 %v5426_v56, %v11049_v29  ;;  %9318 = vpow2.f32 %v8379_v16  ;;  %v8383_v56 = vmul.f32 -1.442695, %v5560_v9 }
0x1dcb   :  { %5671 = vrot.lane.b32.xlu0 %v9307_v51, %s9830_s5  ;;  %9320 = vpow2.f32 %v8380_v12 }
0x1dcc   :  { %v9309_v55 = vpop.eup %9308  ;;  %v11983_v17 = vadd.f32 %v5429_v11, %v5428_v53  ;;  %9322 = vpow2.f32 %v8382_v10 }
0x1dcd   :  { %5673 = vrot.lane.b32.xlu1 %v9309_v55, %s9830_s5  ;;  %9324 = vpow2.f32 %v8381_v37  ;;  %v8384_v55 = vmul.f32 -1.442695, %v5561_v52 }
0x1dce   :  { %v9311_v54 = vpop.eup %9310  ;;  %v5621_v31 = vrot.slane %v11983_v17, 5  ;;  %v5623_v29 = vrot.slane %v11983_v17, 7  ;;  %v5620_v44 = vrot.slane %v11983_v17, 4  ;;  %v5624_v3 = vrot.slane %v11983_v17, 1 }
0x1dcf   :  { %5677 = vrot.lane.b32.xlu0 %v9311_v54, %s9830_s5  ;;  %v5622_v60 = vrot.slane %v11983_v17, 6  ;;  %v5625_v30 = vrot.slane %v11983_v17, 2  ;;  %v5626_v26 = vrot.slane %v11983_v17, 3  ;;  %9326 = vpow2.f32 %v8385_v20 }
0x1dd0   :  { %v9313_v8 = vpop.eup %9312  ;;  %9328 = vpow2.f32 %v8383_v56 }
0x1dd1   :  { %5681 = vrot.lane.b32.xlu1 %v9313_v8, %s9830_s5  ;;  %9330 = vpow2.f32 %v8384_v55 }
0x1dd2   :  { %v9315_v15 = vpop.eup %9314 }
0x1dd3   :  { %5679 = vrot.lane.b32.xlu0 %v9315_v15, %s9830_s5  ;;  %v9317_v51 = vpop.eup %9316 }
0x1dd4   :  { %v9319_v53 = vpop.eup %9318  ;;  %v5587_v11 = vadd.f32 1.0, %v9317_v51 }
0x1dd5   :  { %5629 = vrot.lane.b32.xlu1 %v5621_v31, %s9834_s3  ;;  %v9321_v54 = vpop.eup %9320  ;;  %v5588_v8 = vadd.f32 1.0, %v9319_v53 }
0x1dd6   :  { %v9323_v13 = vpop.eup %9322  ;;  %9332 = vrcp.f32 %v5587_v11  ;;  %v5589_v47 = vadd.f32 1.0, %v9321_v54 }
0x1dd7   :  { %5627 = vrot.lane.b32.xlu0 %v5620_v44, %s9834_s3  ;;  %v9325_v58 = vpop.eup %9324  ;;  %v5591_v41 = vadd.f32 1.0, %v9323_v13  ;;  %9334 = vrcp.f32 %v5588_v8 }
0x1dd8   :  { %9336 = vrcp.f32 %v5589_v47  ;;  %v5590_v1 = vadd.f32 1.0, %v9325_v58 }
0x1dd9   :  { %5633 = vrot.lane.b32.xlu1 %v5623_v29, %s9834_s3  ;;  %v9327_v36 = vpop.eup %9326  ;;  %9338 = vrcp.f32 %v5591_v41 }
0x1dda   :  { %v9329_v31 = vpop.eup %9328  ;;  %v5594_v9 = vadd.f32 1.0, %v9327_v36  ;;  %9340 = vrcp.f32 %v5590_v1 }
0x1ddb   :  { %5631 = vrot.lane.b32.xlu0 %v5622_v60, %s9834_s3  ;;  %v5592_v29 = vadd.f32 1.0, %v9329_v31  ;;  %v9331_v52 = vpop.eup %9330 }
0x1ddc   :  { %9342 = vrcp.f32 %v5594_v9 }
0x1ddd   :  { %5637 = vrot.lane.b32.xlu1 %v5624_v3, %s9834_s3  ;;  %9344 = vrcp.f32 %v5592_v29 }
0x1ddf   :  { %5639 = vrot.lane.b32.xlu0 %v5625_v30, %s9834_s3 }
0x1de0   :  { %v12004_v44 = vpop.eup %9332 }
0x1de1   :  { %5635 = vrot.lane.b32.xlu1 %v11983_v17, %s9834_s3  ;;  %v12007_v30 = vpop.eup %9334 }
0x1de2   :  { %v12011_v12 = vpop.eup %9336 }
0x1de3   :  { %v12015_v20 = vpop.eup %9338 }
0x1de4   :  { %v12019_v53 = vpop.eup %9340 }
0x1de5   :  { %5641 = vrot.lane.b32.xlu1 %v5626_v26, %s9834_s3  ;;  %v5593_v26 = vadd.f32 1.0, %v9331_v52 }
0x1de6   :  { %v12023_v54 = vpop.eup %9342 }
0x1de7   :  { %9346 = vrcp.f32 %v5593_v26  ;;  %v12027_v47 = vpop.eup %9344 }
0x1df1   :  { %v12032_v36 = vpop.eup %9346 }
0x1e37   :  { %v5676_v15 = vpop.permute.xlu1 %5675 }
0x1e38   :  { %v5695_v51 = vmul.f32 %v12015_v20, %v5676_v15 }
0x1e39   :  { %v5668_v3 = vpop.permute.xlu0 %5667 }
0x1e3a   :  { %v5691_v60 = vmul.f32 %v12004_v44, %v5668_v3 }
0x1e3b   :  { %v5670_v48 = vpop.permute.xlu1 %5669 }
0x1e3c   :  { %v5692_v16 = vmul.f32 %v12007_v30, %v5670_v48  ;;  %5707 = vrot.lane.b32.xlu0 %v5691_v60, %s9831_s1 }
0x1e3d   :  { %v5672_v10 = vpop.permute.xlu0 %5671 }
0x1e3e   :  { %v5693_v37 = vmul.f32 %v12011_v12, %v5672_v10  ;;  %5709 = vrot.lane.b32.xlu1 %v5692_v16, %s9831_s1 }
0x1e3f   :  { %v5674_v56 = vpop.permute.xlu1 %5673 }
0x1e40   :  { %5711 = vrot.lane.b32.xlu0 %v5693_v37, %s9831_s1  ;;  %v5694_v55 = vmul.f32 %v12019_v53, %v5674_v56 }
0x1e41   :  { %v5678_v11 = vpop.permute.xlu0 %5677 }
0x1e42   :  { %5715 = vrot.lane.b32.xlu1 %v5695_v51, %s9831_s1  ;;  %v5696_v58 = vmul.f32 %v12027_v47, %v5678_v11 }
0x1e43   :  { %v5682_v8 = vpop.permute.xlu1 %5681 }
0x1e44   :  { %v5698_v13 = vmul.f32 %v12023_v54, %v5682_v8  ;;  %5713 = vrot.lane.b32.xlu0 %v5694_v55, %s9831_s1 }
0x1e45   :  { %v5680_v41 = vpop.permute.xlu0 %5679 }
0x1e46   :  { %5721 = vrot.lane.b32.xlu1 %v5698_v13, %s9831_s1  ;;  %v5697_v1 = vmul.f32 %v12032_v36, %v5680_v41 }
0x1e47   :  { %v5630_v31 = vpop.permute.xlu1 %5629 }
0x1e48   :  { %5717 = vrot.lane.b32.xlu0 %v5696_v58, %s9831_s1  ;;  %v5652_v10 = vmul.f32 %v12007_v30, %v5630_v31 }
0x1e49   :  { %v5628_v15 = vpop.permute.xlu0 %5627 }
0x1e4a   :  { %v5651_v48 = vmul.f32 %v12004_v44, %v5628_v15 }
0x1e4b   :  { %v5634_v9 = vpop.permute.xlu1 %5633 }
0x1e4c   :  { %5719 = vrot.lane.b32.xlu0 %v5697_v1, %s9831_s1  ;;  %v5654_v58 = vmul.f32 %v12019_v53, %v5634_v9 }
0x1e4d   :  { %v5632_v52 = vpop.permute.xlu0 %5631 }
0x1e4e   :  { %v5653_v51 = vmul.f32 %v12011_v12, %v5632_v52 }
0x1e4f   :  { %v5638_v29 = vpop.permute.xlu1 %5637 }
0x1e50   :  { %5857 = vrot.lane.b32.xlu0 %v11948_v49, %s9831_s1 }
0x1e51   :  { %v5640_v60 = vpop.permute.xlu0 %5639 }
0x1e53   :  { %v5636_v3 = vpop.permute.xlu1 %5635 }
0x1e54   :  { %v5655_v31 = vmul.f32 %v12015_v20, %v5636_v3 }
0x1e57   :  { %v5642_v26 = vpop.permute.xlu1 %5641 }
0x1e58   :  { %v5658_v9 = vmul.f32 %v12023_v54, %v5642_v26 }
0x1eae   :  { %v5708_v16 = vpop.permute.xlu0 %5707 }
0x1eaf   :  { %v5731_v37 = vadd.f32 %v5708_v16, %v5651_v48  ;;  %v5656_v48 = vmul.f32 %v12027_v47, %v5638_v29 }
0x1eb0   :  { %v5710_v56 = vpop.permute.xlu1 %5709 }
0x1eb1   :  { %v5732_v55 = vadd.f32 %v5710_v56, %v5652_v10  ;;  %v5909_v49 = vrot.slane %v5731_v37, 4  ;;  %9348 = vtanh.f32 %v5731_v37 }
0x1eb2   :  { %v5712_v11 = vpop.permute.xlu0 %5711 }
0x1eb3   :  { %v5910_v8 = vrot.slane %v5732_v55, 3  ;;  %v5733_v13 = vadd.f32 %v5712_v11, %v5653_v51 }
0x1eb4   :  { %v5716_v39 = vpop.permute.xlu1 %5715 }
0x1eb5   :  { %v5911_v41 = vsel %vm589_vm3, %v5910_v8, %v5909_v49  ;;  %v5912_v1 = vrot.slane %v5733_v13, 2  ;;  %v5735_v16 = vadd.f32 %v5716_v39, %v5655_v31  ;;  %v5657_v8 = vmul.f32 %v12032_v36, %v5640_v60 }
0x1eb6   :  { %v5714_v4 = vpop.permute.xlu0 %5713  ;;  %9350 = vtanh.f32 %v5733_v13 }
0x1eb7   :  { %v5913_v15 = vsel %vm592_vm4, %v5912_v1, %v5911_v41  ;;  %v5734_v23 = vadd.f32 %v5714_v4, %v5654_v58  ;;  %9352 = vtanh.f32 %v5735_v16 }
0x1eb8   :  { %v5722_v51 = vpop.permute.xlu1 %5721  ;;  %9354 = vtanh.f32 %v5732_v55 }
0x1eb9   :  { %v5914_v52 = vrot.slane %v5734_v23, 1  ;;  %v5738_v41 = vadd.f32 %v5722_v51, %v5658_v9 }
0x1eba   :  { %v5718_v10 = vpop.permute.xlu0 %5717 }
0x1ebb   :  { %v5915_v56 = vsel %vm595_vm5, %v5914_v52, %v5913_v15  ;;  %v5736_v11 = vadd.f32 %v5718_v10, %v5656_v48  ;;  %v5921_v1 = vrot.slane %v5738_v41, 5  ;;  %v9349_v10 = vpop.eup %9348 }
0x1ebc   :  { %v5916_v49 = vsel %vm598_vm6, %v5735_v16, %v5915_v56 }
0x1ebd   :  { %v5917_v50 = vrot.slane %v5736_v11, 7  ;;  %9356 = vtanh.f32 %v5736_v11 }
0x1ebe   :  { %v5720_v4 = vpop.permute.xlu0 %5719  ;;  %9358 = vtanh.f32 %v5734_v23 }
0x1ebf   :  { %v5737_v58 = vadd.f32 %v5720_v4, %v5657_v8  ;;  %v5918_v3 = vsel %vm601_vm7, %v5917_v50, %v5916_v49  ;;  %v8654_v8 = vld [vmem:[%s13508_s4] sm:$0xff]  }
0x1ec0   :  { %v9351_v13 = vpop.eup %9350  ;;  %8562 = vmatpush3.bf16.msra.mxu1 %v8654_v8 }
0x1ec1   :  { %v5919_v29 = vrot.slane %v5737_v58, 6  ;;  %9360 = vtanh.f32 %v5737_v58  ;;  %v9353_v56 = vpop.eup %9352  ;;  %8573 = vmatprep.subr.bf16.mxu1 %v13699_v7 }
0x1ec2   :  { %v5858_v39 = vpop.permute.xlu0 %5857  ;;  %9362 = vtanh.f32 %v5738_v41  ;;  %v9355_v55 = vpop.eup %9354 }
0x1ec3   :  { %v5860_v31 = vmul.f32 %v5858_v39, %v10822_v27  ;;  %v5920_v15 = vsel %vm604_vm8, %v5919_v29, %v5918_v3 }
0x1ec4   :  { %v12054_v26 = vsel %vm13676_vm9, %v5921_v1, %v5920_v15 }
0x1ec5   :  { %v5862_v48 = vrot.slane %v5860_v31, 4  ;;  %v5863_v52 = vrot.slane %v5860_v31, 5  ;;  %v5864_v50 = vrot.slane %v5860_v31, 6  ;;  %v5866_v60 = vrot.slane %v5860_v31, 1 }
0x1ec6   :  { %v5865_v37 = vrot.slane %v5860_v31, 7  ;;  %v5868_v9 = vrot.slane %v5860_v31, 3  ;;  %v5867_v49 = vrot.slane %v5860_v31, 2 }
0x1ec7   :  { %5869 = vrot.lane.b32.xlu0 %v5862_v48, %s9833_s13  ;;  %5871 = vrot.lane.b32.xlu1 %v5863_v52, %s9833_s13  ;;  %v9357_v16 = vpop.eup %9356 }
0x1ec8   :  { %v9359_v51 = vpop.eup %9358 }
0x1ecb   :  { %5873 = vrot.lane.b32.xlu0 %v5864_v50, %s9833_s13  ;;  %5879 = vrot.lane.b32.xlu1 %v5866_v60, %s9833_s13  ;;  %v9361_v23 = vpop.eup %9360 }
0x1ecc   :  { %v9363_v11 = vpop.eup %9362 }
0x1ecf   :  { %5875 = vrot.lane.b32.xlu0 %v5865_v37, %s9833_s13  ;;  %5755 = vrot.lane.b32.xlu1 %v9349_v10, %s9832_s11  ;;  %v13774_v37 = vrot.slane %v10855_v0, 6 }
0x1ed3   :  { %5759 = vrot.lane.b32.xlu1 %v9351_v13, %s9832_s11  ;;  %5763 = vrot.lane.b32.xlu0 %v9353_v56, %s9832_s11 }
0x1ed7   :  { %5765 = vrot.lane.b32.xlu1 %v9357_v16, %s9832_s11  ;;  %5757 = vrot.lane.b32.xlu0 %v9355_v55, %s9832_s11 }
0x1edb   :  { %5767 = vrot.lane.b32.xlu1 %v9361_v23, %s9832_s11  ;;  %5761 = vrot.lane.b32.xlu0 %v9359_v51, %s9832_s11 }
0x1edf   :  { %5877 = vrot.lane.b32.xlu0 %v5860_v31, %s9833_s13  ;;  %5769 = vrot.lane.b32.xlu1 %v9363_v11, %s9832_s11  ;;  %v13773_v31 = vrot.slane %v10855_v0, 4  ;;  %v13776_v11 = vrot.slane %v10855_v0, 5 }
0x1ee3   :  { %5883 = vrot.lane.b32.xlu0 %v5868_v9, %s9833_s13  ;;  %5881 = vrot.lane.b32.xlu1 %v5867_v49, %s9833_s13  ;;  %v13777_v49 = vrot.slane %v10855_v0, 1 }
0x1f39   :  { %v5870_v41 = vpop.permute.xlu0 %5869  ;;  %v5872_v4 = vpop.permute.xlu1 %5871 }
0x1f3d   :  { %v5874_v58 = vpop.permute.xlu0 %5873  ;;  %v5880_v3 = vpop.permute.xlu1 %5879 }
0x1f41   :  { %v5876_v29 = vpop.permute.xlu0 %5875  ;;  %v5756_v1 = vpop.permute.xlu1 %5755 }
0x1f42   :  { %v5779_v39 = vmul.f32 %v12004_v44, %v5756_v1 }
0x1f44   :  { %v12079_v15 = vmul.f32 %v5779_v39, %v13773_v31 }
0x1f45   :  { %v5764_v48 = vpop.permute.xlu0 %5763  ;;  %v5760_v52 = vpop.permute.xlu1 %5759 }
0x1f46   :  { %v5781_v50 = vmul.f32 %v12011_v12, %v5760_v52  ;;  %v5893_v60 = vadd.f32 %v5870_v41, %v12079_v15  ;;  %v5783_v23 = vmul.f32 %v12015_v20, %v5764_v48  ;;  %v13779_v52 = vrot.slane %v10855_v0, 7 }
0x1f48   :  { %v12085_v10 = vmul.f32 %v5781_v50, %v13774_v37  ;;  %v5929_v51 = vpack.c.bf16 %v5893_v60, %v5893_v60  ;;  %v12107_v37 = vmul.f32 %v5783_v23, %v10855_v0 }
0x1f49   :  { %v5758_v13 = vpop.permute.xlu0 %5757  ;;  %v5766_v56 = vpop.permute.xlu1 %5765 }
0x1f4a   :  { %13775 = vst [vmem:[#allocation95_spill] sm:$0xff] %v12085_v10  ;;  %v5895_v55 = vadd.f32 %v5874_v58, %v12085_v10  ;;  %v5780_v44 = vmul.f32 %v12007_v30, %v5758_v13  ;;  %v5784_v16 = vmul.f32 %v12027_v47, %v5766_v56  ;;  %v5947_v39 = vunpack.c.l.b16 %v5929_v51  ;;  %13781 = vst [vmem:[#allocation98_spill] sm:$0xff] %v12107_v37 }
0x1f4b   :  { %v6341_v47 = vrot.slane %v5893_v60, 4 }
0x1f4c   :  { %v12093_v12 = vmul.f32 %v5780_v44, %v13776_v11  ;;  %v5931_v9 = vpack.c.bf16 %v5895_v55, %v5895_v55  ;;  %v12097_v8 = vmul.f32 %v5784_v16, %v13777_v49  ;;  %v6344_v56 = vrot.slane %v5895_v55, 2 }
0x1f4d   :  { %v5762_v41 = vpop.permute.xlu0 %5761  ;;  %v5768_v1 = vpop.permute.xlu1 %5767  ;;  %v5955_v49 = vrot.slane %v5947_v39, 4 }
0x1f4e   :  { %13778 = vst [vmem:[#allocation96_spill] sm:$0xff] %v12097_v8  ;;  %v5894_v58 = vadd.f32 %v5872_v4, %v12093_v12  ;;  %v5782_v30 = vmul.f32 %v12019_v53, %v5762_v41  ;;  %v5898_v31 = vadd.f32 %v5880_v3, %v12097_v8  ;;  %v5949_v13 = vunpack.c.l.b16 %v5931_v9 }
0x1f4f   :  { %v5785_v4 = vmul.f32 %v12032_v36, %v5768_v1 }
0x1f50   :  { %v5930_v20 = vpack.c.bf16 %v5894_v58, %v5894_v58  ;;  %v6342_v48 = vrot.slane %v5894_v58, 3  ;;  %v12104_v50 = vmul.f32 %v5782_v30, %v13779_v52  ;;  %v5934_v44 = vpack.c.bf16 %v5898_v31, %v5898_v31 }
0x1f51   :  { %v5878_v16 = vpop.permute.xlu0 %5877  ;;  %v5770_v53 = vpop.permute.xlu1 %5769  ;;  %v5958_v52 = vrot.slane %v5949_v13, 2  ;;  %v6349_v36 = vrot.slane %v5898_v31, 7 }
0x1f52   :  { %13780 = vst [vmem:[#allocation97_spill] sm:$0xff] %v12104_v50  ;;  %v5948_v51 = vunpack.c.l.b16 %v5930_v20  ;;  %v6343_v60 = vsel %vm589_vm3, %v6342_v48, %v6341_v47  ;;  %v5896_v3 = vadd.f32 %v5876_v29, %v12104_v50  ;;  %v5897_v11 = vadd.f32 %v5878_v16, %v12107_v37 }
0x1f53   :  { %v6345_v41 = vsel %vm592_vm4, %v6344_v56, %v6343_v60  ;;  %v5786_v23 = vmul.f32 %v12023_v54, %v5770_v53  ;;  %v13782_v20 = vrot.slane %v10855_v0, 3  ;;  %v13784_v29 = vrot.slane %v10855_v0, 2 }
0x1f54   :  { %v5956_v58 = vrot.slane %v5948_v51, 3  ;;  %v5932_v9 = vpack.c.bf16 %v5896_v3, %v5896_v3  ;;  %v6346_v55 = vrot.slane %v5896_v3, 1  ;;  %v5933_v30 = vpack.c.bf16 %v5897_v11, %v5897_v11 }
0x1f55   :  { %v5884_v1 = vpop.permute.xlu0 %5883  ;;  %v12117_v8 = vmul.f32 %v5786_v23, %v13782_v20  ;;  %v12121_v47 = vmul.f32 %v5785_v4, %v13784_v29  ;;  %v5882_v39 = vpop.permute.xlu1 %5881  ;;  %v5952_v56 = vunpack.c.l.b16 %v5934_v44 }
0x1f56   :  { %v5957_v48 = vsel %vm589_vm3, %v5956_v58, %v5955_v49  ;;  %v5950_v54 = vunpack.c.l.b16 %v5932_v9  ;;  %v6347_v16 = vsel %vm595_vm5, %v6346_v55, %v6345_v41  ;;  %v5951_v60 = vunpack.c.l.b16 %v5933_v30 }
0x1f57   :  { %13783 = vst [vmem:[#allocation99_spill] sm:$0xff] %v12117_v8  ;;  %13785 = vst [vmem:[#allocation100_spill] sm:$0xff] %v12121_v47  ;;  %v6348_v53 = vsel %vm598_vm6, %v5897_v11, %v6347_v16  ;;  %v5900_v31 = vadd.f32 %v5884_v1, %v12117_v8  ;;  %v5899_v13 = vadd.f32 %v5882_v39, %v12121_v47  ;;  %v5963_v44 = vrot.slane %v5952_v56, 7 }
0x1f58   :  { %v5960_v51 = vrot.slane %v5950_v54, 1  ;;  %v5959_v3 = vsel %vm592_vm4, %v5958_v52, %v5957_v48  ;;  %v6350_v4 = vsel %vm601_vm7, %v6349_v36, %v6348_v53 }
0x1f59   :  { %v5936_v23 = vpack.c.bf16 %v5900_v31, %v5900_v31  ;;  %v6353_v20 = vrot.slane %v5900_v31, 5  ;;  %v5935_v29 = vpack.c.bf16 %v5899_v13, %v5899_v13  ;;  %v6351_v49 = vrot.slane %v5899_v13, 6 }
0x1f5a   :  { %v5961_v58 = vsel %vm595_vm5, %v5960_v51, %v5959_v3 }
0x1f5b   :  { %v5962_v41 = vsel %vm598_vm6, %v5951_v60, %v5961_v58  ;;  %v5954_v11 = vunpack.c.l.b16 %v5936_v23  ;;  %v5953_v9 = vunpack.c.l.b16 %v5935_v29  ;;  %v6352_v55 = vsel %vm604_vm8, %v6351_v49, %v6350_v4 }
0x1f5c   :  { %v5964_v1 = vsel %vm601_vm7, %v5963_v44, %v5962_v41  ;;  %v12135_v30 = vsel %vm13676_vm9, %v6353_v20, %v6352_v55 }
0x1f5d   :  { %v5967_v52 = vrot.slane %v5954_v11, 5  ;;  %v5965_v36 = vrot.slane %v5953_v9, 6 }
0x1f5f   :  { %v5966_v39 = vsel %vm604_vm8, %v5965_v36, %v5964_v1 }
0x1f60   :  { %v5968_v48 = vsel %vm13676_vm9, %v5967_v52, %v5966_v39 }
0x1f61   :  { %v5969_v56 = vpack.c.b16 %v5968_v48, %v5968_v48 }
0x1f63   :  { %5970 = vrot.lane.b32.xlu1 %v5969_v56, %s9831_s1 }
0x1fd5   :  { %v5971_v54 = vpop.permute.xlu1 %5970 }
0x1fd6   :  { %8564 = vmatmul.mubr.msk.bf16.vlgmr.msra.gmra.mrb[24].mxu1 %vm222_vm10, %v5971_v54 }
0x1fd7   :  { %8575 = vmatprep.mubr.msk.bf16.mxu1 %vm9829_vm0, %v13699_v7 }
0x20a9   :  { %v6015_v16 = vpop.f32.mrb[24].mxu1 }
0x20aa   :  { %6035 = vrot.lane.b32.xlu0 %v6015_v16, %s9824_s21  ;;  %v8565_v53 = vpop.f32.mrb[25].mxu1  ;;  %v6023_v31 = vrot.slane %v6015_v16, 6  ;;  %v6022_v60 = vrot.slane %v6015_v16, 5  ;;  %v6025_v3 = vrot.slane %v6015_v16, 1  ;;  %v6024_v4 = vrot.slane %v6015_v16, 7 }
0x20ab   :  { %v6018_v13 = vpop.f32.mrb[26].mxu1  ;;  %v6026_v23 = vrot.slane %v6015_v16, 2  ;;  %v6027_v20 = vrot.slane %v6015_v16, 3  ;;  %v6028_v29 = vrot.slane %v6015_v16, 4 }
0x20ac   :  { %6031 = vrot.lane.b32.xlu1 %v6023_v31, %s9824_s21  ;;  %v8566_v51 = vpop.f32.mrb[27].mxu1 }
0x20ae   :  { %6029 = vrot.lane.b32.xlu0 %v6022_v60, %s9824_s21 }
0x20b0   :  { %6037 = vrot.lane.b32.xlu1 %v6025_v3, %s9824_s21 }
0x20b2   :  { %6033 = vrot.lane.b32.xlu0 %v6024_v4, %s9824_s21 }
0x20b4   :  { %6039 = vrot.lane.b32.xlu1 %v6026_v23, %s9824_s21  ;;  %v5927_v23 = vmul.f32 %v11983_v17, %v10822_v27 }
0x20b6   :  { %6041 = vrot.lane.b32.xlu0 %v6027_v20, %s9824_s21 }
0x20b8   :  { %6043 = vrot.lane.b32.xlu1 %v6028_v29, %s9824_s21 }
0x20ba   :  { %5923 = vrot.lane.b32.xlu0 %v12054_v26, %s9836_s10 }
0x211c   :  { %v6036_v49 = vpop.permute.xlu0 %6035 }
0x211d   :  { %v6056_v44 = vadd.f32 %v6036_v49, %v9974_v22 }
0x211e   :  { %v6032_v58 = vpop.permute.xlu1 %6031 }
0x211f   :  { %9364 = vtanh.f32 %v6056_v44  ;;  %v6054_v41 = vadd.f32 %v6032_v58, %v9983_v33 }
0x2120   :  { %v6030_v11 = vpop.permute.xlu0 %6029 }
0x2121   :  { %v6053_v9 = vadd.f32 %v6030_v11, %v9972_v18  ;;  %9366 = vtanh.f32 %v6054_v41 }
0x2122   :  { %v6038_v55 = vpop.permute.xlu1 %6037 }
0x2123   :  { %v6057_v1 = vadd.f32 %v6038_v55, %v9992_v42  ;;  %9368 = vtanh.f32 %v6053_v9 }
0x2124   :  { %v6034_v52 = vpop.permute.xlu0 %6033 }
0x2125   :  { %v6055_v36 = vadd.f32 %v6034_v52, %v9988_v38  ;;  %9370 = vtanh.f32 %v6057_v1 }
0x2126   :  { %v6040_v26 = vpop.permute.xlu1 %6039 }
0x2127   :  { %v6058_v39 = vadd.f32 %v6040_v26, %v9978_v28  ;;  %9372 = vtanh.f32 %v6055_v36 }
0x2128   :  { %v6042_v48 = vpop.permute.xlu0 %6041 }
0x2129   :  { %v9365_v56 = vpop.eup %9364  ;;  %v6059_v54 = vadd.f32 %v6042_v48, %v9995_v46  ;;  %9374 = vtanh.f32 %v6058_v39  ;;  %v8391_v48 = vmul.f32 -1.442695, %v6056_v44 }
0x212a   :  { %6171 = vrot.lane.b32.xlu1 %v9365_v56, %s9830_s5  ;;  %v6044_v16 = vpop.permute.xlu1 %6043  ;;  %v8389_v56 = vmul.f32 -1.442695, %v6054_v41 }
0x212b   :  { %v9367_v53 = vpop.eup %9366  ;;  %9376 = vtanh.f32 %v6059_v54  ;;  %v6060_v31 = vadd.f32 %v6044_v16, %v9981_v32  ;;  %v8388_v16 = vmul.f32 -1.442695, %v6053_v9 }
0x212c   :  { %6167 = vrot.lane.b32.xlu0 %v9367_v53, %s9830_s5  ;;  %v5924_v51 = vpop.permute.xlu0 %5923  ;;  %v8390_v53 = vmul.f32 -1.442695, %v6055_v36 }
0x212d   :  { %v9369_v13 = vpop.eup %9368  ;;  %9378 = vtanh.f32 %v6060_v31  ;;  %v5926_v3 = vmul.f32 %v5924_v51, %v10855_v0  ;;  %v8392_v51 = vmul.f32 -1.442695, %v6057_v1 }
0x212e   :  { %6165 = vrot.lane.b32.xlu1 %v9369_v13, %s9830_s5  ;;  %9380 = vpow2.f32 %v8391_v48  ;;  %v8393_v13 = vmul.f32 -1.442695, %v6058_v39 }
0x212f   :  { %v9371_v60 = vpop.eup %9370  ;;  %v12169_v29 = vadd.f32 %v5927_v23, %v5926_v3  ;;  %9382 = vpow2.f32 %v8389_v56  ;;  %v8394_v3 = vmul.f32 -1.442695, %v6059_v54 }
0x2130   :  { %6173 = vrot.lane.b32.xlu0 %v9371_v60, %s9830_s5  ;;  %9384 = vpow2.f32 %v8388_v16 }
0x2131   :  { %v9373_v4 = vpop.eup %9372  ;;  %v6118_v58 = vrot.slane %v12169_v29, 5  ;;  %v6120_v0 = vrot.slane %v12169_v29, 7  ;;  %v6119_v27 = vrot.slane %v12169_v29, 6  ;;  %v6122_v17 = vrot.slane %v12169_v29, 2 }
0x2132   :  { %6169 = vrot.lane.b32.xlu1 %v9373_v4, %s9830_s5  ;;  %v6121_v55 = vrot.slane %v12169_v29, 1  ;;  %v6123_v52 = vrot.slane %v12169_v29, 3  ;;  %v6124_v26 = vrot.slane %v12169_v29, 4  ;;  %9386 = vpow2.f32 %v8390_v53 }
0x2133   :  { %v9375_v20 = vpop.eup %9374  ;;  %9388 = vpow2.f32 %v8393_v13 }
0x2134   :  { %6175 = vrot.lane.b32.xlu0 %v9375_v20, %s9830_s5  ;;  %9390 = vpow2.f32 %v8392_v51  ;;  %v8395_v20 = vmul.f32 -1.442695, %v6060_v31 }
0x2135   :  { %v9377_v49 = vpop.eup %9376  ;;  %9392 = vpow2.f32 %v8394_v3 }
0x2136   :  { %6177 = vrot.lane.b32.xlu1 %v9377_v49, %s9830_s5 }
0x2137   :  { %v9379_v11 = vpop.eup %9378 }
0x2138   :  { %6179 = vrot.lane.b32.xlu0 %v9379_v11, %s9830_s5  ;;  %v9381_v60 = vpop.eup %9380 }
0x2139   :  { %v6088_v4 = vadd.f32 1.0, %v9381_v60  ;;  %v9383_v23 = vpop.eup %9382 }
0x213a   :  { %6125 = vrot.lane.b32.xlu1 %v6118_v58, %s9834_s3  ;;  %v9385_v49 = vpop.eup %9384  ;;  %v6086_v44 = vadd.f32 1.0, %v9383_v23 }
0x213b   :  { %9394 = vrcp.f32 %v6088_v4  ;;  %v6085_v58 = vadd.f32 1.0, %v9385_v49 }
0x213c   :  { %6127 = vrot.lane.b32.xlu0 %v6119_v27, %s9834_s3  ;;  %9396 = vpow2.f32 %v8395_v20  ;;  %v9387_v41 = vpop.eup %9386 }
0x213d   :  { %v9389_v9 = vpop.eup %9388  ;;  %9398 = vrcp.f32 %v6086_v44  ;;  %v6087_v36 = vadd.f32 1.0, %v9387_v41 }
0x213e   :  { %6129 = vrot.lane.b32.xlu1 %v6120_v0, %s9834_s3  ;;  %9400 = vrcp.f32 %v6085_v58  ;;  %v9391_v1 = vpop.eup %9390  ;;  %v6090_v39 = vadd.f32 1.0, %v9389_v9 }
0x213f   :  { %v9393_v11 = vpop.eup %9392  ;;  %v6089_v0 = vadd.f32 1.0, %v9391_v1  ;;  %9402 = vrcp.f32 %v6087_v36 }
0x2140   :  { %6133 = vrot.lane.b32.xlu0 %v6121_v55, %s9834_s3  ;;  %9404 = vrcp.f32 %v6090_v39  ;;  %v6091_v55 = vadd.f32 1.0, %v9393_v11 }
0x2141   :  { %9406 = vrcp.f32 %v6089_v0 }
0x2142   :  { %6135 = vrot.lane.b32.xlu1 %v6122_v17, %s9834_s3  ;;  %9408 = vrcp.f32 %v6091_v55 }
0x2144   :  { %6131 = vrot.lane.b32.xlu0 %v12169_v29, %s9834_s3 }
0x2145   :  { %v12190_v54 = vpop.eup %9394 }
0x2146   :  { %v9397_v31 = vpop.eup %9396 }
0x2147   :  { %v6092_v48 = vadd.f32 1.0, %v9397_v31 }
0x2148   :  { %6137 = vrot.lane.b32.xlu0 %v6123_v52, %s9834_s3 }
0x2149   :  { %9410 = vrcp.f32 %v6092_v48 }
0x214c   :  { %6139 = vrot.lane.b32.xlu0 %v6124_v26, %s9834_s3  ;;  %v12194_v26 = vpop.eup %9398 }
0x214d   :  { %v12196_v56 = vpop.eup %9400 }
0x214e   :  { %v12202_v60 = vpop.eup %9402 }
0x214f   :  { %v12205_v23 = vpop.eup %9404 }
0x2150   :  { %v12209_v44 = vpop.eup %9406 }
0x2151   :  { %v12214_v9 = vpop.eup %9408 }
0x2153   :  { %v12216_v36 = vpop.eup %9410 }
0x219c   :  { %v6172_v27 = vpop.permute.xlu1 %6171 }
0x219d   :  { %v6192_v17 = vmul.f32 %v12190_v54, %v6172_v27 }
0x219e   :  { %v6168_v52 = vpop.permute.xlu0 %6167 }
0x219f   :  { %6211 = vrot.lane.b32.xlu1 %v6192_v17, %s9831_s1  ;;  %v6190_v16 = vmul.f32 %v12194_v26, %v6168_v52 }
0x21a0   :  { %v6166_v53 = vpop.permute.xlu1 %6165 }
0x21a1   :  { %v6189_v13 = vmul.f32 %v12196_v56, %v6166_v53 }
0x21a2   :  { %v6174_v51 = vpop.permute.xlu0 %6173 }
0x21a3   :  { %6207 = vrot.lane.b32.xlu1 %v6190_v16, %s9831_s1  ;;  %6205 = vrot.lane.b32.xlu0 %v6189_v13, %s9831_s1  ;;  %v6193_v58 = vmul.f32 %v12209_v44, %v6174_v51 }
0x21a4   :  { %v6170_v3 = vpop.permute.xlu1 %6169 }
0x21a5   :  { %v6191_v4 = vmul.f32 %v12202_v60, %v6170_v3 }
0x21a6   :  { %v6176_v20 = vpop.permute.xlu0 %6175 }
0x21a7   :  { %v6194_v49 = vmul.f32 %v12205_v23, %v6176_v20  ;;  %6209 = vrot.lane.b32.xlu1 %v6191_v4, %s9831_s1 }
0x21a8   :  { %v6178_v41 = vpop.permute.xlu1 %6177 }
0x21a9   :  { %6215 = vrot.lane.b32.xlu0 %v6194_v49, %s9831_s1  ;;  %v6195_v1 = vmul.f32 %v12214_v9, %v6178_v41 }
0x21aa   :  { %v6180_v39 = vpop.permute.xlu0 %6179 }
0x21ab   :  { %6213 = vrot.lane.b32.xlu1 %v6193_v58, %s9831_s1  ;;  %v6196_v11 = vmul.f32 %v12216_v36, %v6180_v39 }
0x21ac   :  { %v6126_v31 = vpop.permute.xlu1 %6125 }
0x21ad   :  { %6219 = vrot.lane.b32.xlu0 %v6196_v11, %s9831_s1  ;;  %v6149_v51 = vmul.f32 %v12196_v56, %v6126_v31 }
0x21ae   :  { %v6128_v0 = vpop.permute.xlu0 %6127 }
0x21af   :  { %6217 = vrot.lane.b32.xlu1 %v6195_v1, %s9831_s1  ;;  %v6150_v13 = vmul.f32 %v12194_v26, %v6128_v0 }
0x21b0   :  { %v6130_v55 = vpop.permute.xlu1 %6129 }
0x21b2   :  { %v6134_v27 = vpop.permute.xlu0 %6133 }
0x21b3   :  { %6355 = vrot.lane.b32.xlu1 %v12135_v30, %s9831_s1  ;;  %v6151_v30 = vmul.f32 %v12202_v60, %v6130_v55  ;;  %v6153_v0 = vmul.f32 %v12209_v44, %v6134_v27 }
0x21b4   :  { %v6136_v48 = vpop.permute.xlu1 %6135 }
0x21b5   :  { %v6154_v8 = vmul.f32 %v12205_v23, %v6136_v48 }
0x21b6   :  { %v6132_v17 = vpop.permute.xlu0 %6131 }
0x21b7   :  { %v6152_v47 = vmul.f32 %v12190_v54, %v6132_v17 }
0x21ba   :  { %v6138_v52 = vpop.permute.xlu0 %6137 }
0x21bb   :  { %v6155_v50 = vmul.f32 %v12214_v9, %v6138_v52 }
0x21be   :  { %v6140_v53 = vpop.permute.xlu0 %6139 }
0x2211   :  { %v6212_v16 = vpop.permute.xlu1 %6211 }
0x2212   :  { %v6232_v25 = vadd.f32 %v6212_v16, %v6152_v47 }
0x2214   :  { %9412 = vtanh.f32 %v6232_v25 }
0x2215   :  { %v6208_v3 = vpop.permute.xlu1 %6207  ;;  %v6206_v20 = vpop.permute.xlu0 %6205 }
0x2216   :  { %v6230_v4 = vadd.f32 %v6208_v3, %v6150_v13  ;;  %v6229_v49 = vadd.f32 %v6206_v20, %v6149_v51 }
0x2218   :  { %v6408_v58 = vrot.slane %v6230_v4, 2  ;;  %v6407_v41 = vrot.slane %v6229_v49, 3  ;;  %9414 = vtanh.f32 %v6230_v4 }
0x2219   :  { %v6210_v1 = vpop.permute.xlu1 %6209  ;;  %9416 = vtanh.f32 %v6229_v49 }
0x221a   :  { %v6409_v39 = vsel %vm589_vm3, %v6408_v58, %v6407_v41  ;;  %v6231_v11 = vadd.f32 %v6210_v1, %v6151_v30  ;;  %v6156_v30 = vmul.f32 %v12216_v36, %v6140_v53 }
0x221b   :  { %v6216_v37 = vpop.permute.xlu0 %6215 }
0x221c   :  { %v6410_v31 = vrot.slane %v6231_v11, 1  ;;  %v6234_v13 = vadd.f32 %v6216_v37, %v6154_v8  ;;  %9418 = vtanh.f32 %v6231_v11 }
0x221d   :  { %v6214_v3 = vpop.permute.xlu1 %6213 }
0x221e   :  { %v6411_v51 = vsel %vm592_vm4, %v6410_v31, %v6409_v39  ;;  %v6233_v20 = vadd.f32 %v6214_v3, %v6153_v0  ;;  %v6415_v48 = vrot.slane %v6234_v13, 6 }
0x221f   :  { %v6412_v55 = vsel %vm595_vm5, %v6232_v25, %v6411_v51  ;;  %v6220_v1 = vpop.permute.xlu0 %6219  ;;  %v9413_v25 = vpop.eup %9412 }
0x2220   :  { %v6413_v58 = vrot.slane %v6233_v20, 7  ;;  %v6236_v10 = vadd.f32 %v6220_v1, %v6156_v30  ;;  %9420 = vtanh.f32 %v6233_v20 }
0x2221   :  { %v6218_v41 = vpop.permute.xlu1 %6217  ;;  %9422 = vtanh.f32 %v6234_v13 }
0x2222   :  { %v6414_v17 = vsel %vm598_vm6, %v6413_v58, %v6412_v55  ;;  %v6235_v27 = vadd.f32 %v6218_v41, %v6155_v50  ;;  %v6419_v47 = vrot.slane %v6236_v10, 4  ;;  %v9415_v4 = vpop.eup %9414 }
0x2223   :  { %v6416_v8 = vsel %vm601_vm7, %v6415_v48, %v6414_v17  ;;  %v9417_v51 = vpop.eup %9416  ;;  %v8655_v48 = vld [vmem:[%s13508_s4] sm:$0xff]  }
0x2224   :  { %v6417_v37 = vrot.slane %v6235_v27, 5  ;;  %9424 = vtanh.f32 %v6235_v27  ;;  %8568 = vmatpush3.bf16.msra.mxu0 %v8655_v48  ;;  %v13789_v48 = vrot.slane %v10670_v43, 1 }
0x2225   :  { %v6356_v16 = vpop.permute.xlu1 %6355  ;;  %9426 = vtanh.f32 %v6236_v10  ;;  %8579 = vmatprep.subr.bf16.mxu0 %v13699_v7 }
0x2226   :  { %v6358_v39 = vmul.f32 %v6356_v16, %v10637_v59  ;;  %v6418_v0 = vsel %vm604_vm8, %v6417_v37, %v6416_v8  ;;  %v9419_v49 = vpop.eup %9418 }
0x2227   :  { %v12240_v52 = vsel %vm13676_vm9, %v6419_v47, %v6418_v0 }
0x2228   :  { %v6361_v53 = vrot.slane %v6358_v39, 6  ;;  %v6360_v31 = vrot.slane %v6358_v39, 5  ;;  %v6362_v50 = vrot.slane %v6358_v39, 7  ;;  %v6363_v3 = vrot.slane %v6358_v39, 1 }
0x2229   :  { %v6364_v55 = vrot.slane %v6358_v39, 2  ;;  %v6366_v30 = vrot.slane %v6358_v39, 4  ;;  %v6365_v10 = vrot.slane %v6358_v39, 3 }
0x222a   :  { %6369 = vrot.lane.b32.xlu1 %v6361_v53, %s9833_s13  ;;  %6367 = vrot.lane.b32.xlu0 %v6360_v31, %s9833_s13  ;;  %v9421_v11 = vpop.eup %9420 }
0x222b   :  { %v9423_v20 = vpop.eup %9422 }
0x222e   :  { %6371 = vrot.lane.b32.xlu1 %v6362_v50, %s9833_s13  ;;  %6373 = vrot.lane.b32.xlu0 %v6358_v39, %s9833_s13  ;;  %v9425_v13 = vpop.eup %9424  ;;  %v13787_v50 = vrot.slane %v10670_v43, 6 }
0x222f   :  { %v9427_v58 = vpop.eup %9426 }
0x2232   :  { %6375 = vrot.lane.b32.xlu1 %v6363_v3, %s9833_s13  ;;  %6259 = vrot.lane.b32.xlu0 %v9413_v25, %s9832_s11  ;;  %v13788_v25 = vrot.slane %v10670_v43, 5 }
0x2236   :  { %6255 = vrot.lane.b32.xlu1 %v9415_v4, %s9832_s11  ;;  %6253 = vrot.lane.b32.xlu0 %v9417_v51, %s9832_s11 }
0x223a   :  { %6261 = vrot.lane.b32.xlu1 %v9421_v11, %s9832_s11  ;;  %6257 = vrot.lane.b32.xlu0 %v9419_v49, %s9832_s11 }
0x223e   :  { %6265 = vrot.lane.b32.xlu0 %v9425_v13, %s9832_s11  ;;  %6263 = vrot.lane.b32.xlu1 %v9423_v20, %s9832_s11 }
0x2242   :  { %6377 = vrot.lane.b32.xlu1 %v6364_v55, %s9833_s13  ;;  %6267 = vrot.lane.b32.xlu0 %v9427_v58, %s9832_s11 }
0x2246   :  { %6381 = vrot.lane.b32.xlu1 %v6366_v30, %s9833_s13  ;;  %6379 = vrot.lane.b32.xlu0 %v6365_v10, %s9833_s13 }
0x229c   :  { %v6370_v41 = vpop.permute.xlu1 %6369  ;;  %v6368_v17 = vpop.permute.xlu0 %6367 }
0x22a0   :  { %v6372_v1 = vpop.permute.xlu1 %6371  ;;  %v6374_v27 = vpop.permute.xlu0 %6373 }
0x22a4   :  { %v6376_v8 = vpop.permute.xlu1 %6375  ;;  %v6260_v37 = vpop.permute.xlu0 %6259 }
0x22a5   :  { %v6280_v47 = vmul.f32 %v12190_v54, %v6260_v37 }
0x22a7   :  { %v12264_v16 = vmul.f32 %v6280_v47, %v10670_v43 }
0x22a8   :  { %v6256_v39 = vpop.permute.xlu1 %6255  ;;  %v6254_v0 = vpop.permute.xlu0 %6253 }
0x22a9   :  { %13786 = vst [vmem:[#allocation101_spill] sm:$0xff] %v12264_v16  ;;  %v6278_v53 = vmul.f32 %v12194_v26, %v6256_v39  ;;  %v6277_v31 = vmul.f32 %v12196_v56, %v6254_v0  ;;  %v6394_v51 = vadd.f32 %v6374_v27, %v12264_v16  ;;  %v13791_v27 = vrot.slane %v10670_v43, 7 }
0x22ab   :  { %v12270_v3 = vmul.f32 %v6278_v53, %v13787_v50  ;;  %v12274_v4 = vmul.f32 %v6277_v31, %v13788_v25  ;;  %v6430_v10 = vpack.c.bf16 %v6394_v51, %v6394_v51 }
0x22ac   :  { %v6262_v54 = vpop.permute.xlu1 %6261  ;;  %v6258_v49 = vpop.permute.xlu0 %6257 }
0x22ad   :  { %v6392_v11 = vadd.f32 %v6370_v41, %v12270_v3  ;;  %v6391_v20 = vadd.f32 %v6368_v17, %v12274_v4  ;;  %v6281_v26 = vmul.f32 %v12209_v44, %v6262_v54  ;;  %v6279_v56 = vmul.f32 %v12202_v60, %v6258_v49 }
0x22ae   :  { %v13792_v54 = vrot.slane %v10670_v43, 2 }
0x22af   :  { %v6428_v13 = vpack.c.bf16 %v6392_v11, %v6392_v11  ;;  %v6840_v55 = vrot.slane %v6392_v11, 2  ;;  %v6427_v58 = vpack.c.bf16 %v6391_v20, %v6391_v20  ;;  %v6839_v30 = vrot.slane %v6391_v20, 3 }
0x22b0   :  { %v12283_v37 = vmul.f32 %v6281_v26, %v13789_v48  ;;  %v12287_v47 = vmul.f32 %v6279_v56, %v13791_v27  ;;  %v6264_v41 = vpop.permute.xlu1 %6263  ;;  %v6266_v39 = vpop.permute.xlu0 %6265  ;;  %v13794_v48 = vrot.slane %v10670_v43, 3 }
0x22b1   :  { %v6446_v17 = vunpack.c.l.b16 %v6428_v13  ;;  %v6445_v0 = vunpack.c.l.b16 %v6427_v58  ;;  %v6841_v44 = vsel %vm589_vm3, %v6840_v55, %v6839_v30  ;;  %v6282_v60 = vmul.f32 %v12205_v23, %v6264_v41 }
0x22b2   :  { %13790 = vst [vmem:[#allocation102_spill] sm:$0xff] %v12283_v37  ;;  %v6395_v53 = vadd.f32 %v6376_v8, %v12283_v37  ;;  %v6393_v31 = vadd.f32 %v6372_v1, %v12287_v47  ;;  %v6283_v50 = vmul.f32 %v12214_v9, %v6266_v39  ;;  %v6448_v55 = vunpack.c.l.b16 %v6430_v10 }
0x22b3   :  { %v6454_v25 = vrot.slane %v6446_v17, 2  ;;  %v12296_v49 = vmul.f32 %v6282_v60, %v13792_v54  ;;  %v6453_v11 = vrot.slane %v6445_v0, 3  ;;  %v13796_v17 = vrot.slane %v10670_v43, 4 }
0x22b4   :  { %v6431_v20 = vpack.c.bf16 %v6395_v53, %v6395_v53  ;;  %v6429_v26 = vpack.c.bf16 %v6393_v31, %v6393_v31  ;;  %v6842_v56 = vrot.slane %v6393_v31, 1  ;;  %v6378_v13 = vpop.permute.xlu1 %6377  ;;  %v6268_v58 = vpop.permute.xlu0 %6267  ;;  %v6845_v30 = vrot.slane %v6395_v53, 7 }
0x22b5   :  { %13793 = vst [vmem:[#allocation103_spill] sm:$0xff] %v12296_v49  ;;  %v6396_v23 = vadd.f32 %v6378_v13, %v12296_v49  ;;  %v6284_v8 = vmul.f32 %v12216_v36, %v6268_v58  ;;  %v12303_v27 = vmul.f32 %v6283_v50, %v13794_v48  ;;  %v6455_v60 = vsel %vm589_vm3, %v6454_v25, %v6453_v11 }
0x22b6   :  { %v6447_v1 = vunpack.c.l.b16 %v6429_v26  ;;  %v6843_v9 = vsel %vm592_vm4, %v6842_v56, %v6841_v44  ;;  %v6449_v31 = vunpack.c.l.b16 %v6431_v20 }
0x22b7   :  { %13795 = vst [vmem:[#allocation104_spill] sm:$0xff] %v12303_v27  ;;  %v6432_v41 = vpack.c.bf16 %v6396_v23, %v6396_v23  ;;  %v6847_v39 = vrot.slane %v6396_v23, 6  ;;  %v12307_v0 = vmul.f32 %v6284_v8, %v13796_v17  ;;  %v6844_v10 = vsel %vm595_vm5, %v6394_v51, %v6843_v9 }
0x22b8   :  { %v6456_v36 = vrot.slane %v6447_v1, 1  ;;  %v6382_v53 = vpop.permute.xlu1 %6381  ;;  %v6380_v54 = vpop.permute.xlu0 %6379  ;;  %v6846_v44 = vsel %vm598_vm6, %v6845_v30, %v6844_v10  ;;  %v6459_v25 = vrot.slane %v6449_v31, 7 }
0x22b9   :  { %13797 = vst [vmem:[#allocation105_spill] sm:$0xff] %v12307_v0  ;;  %v6450_v26 = vunpack.c.l.b16 %v6432_v41  ;;  %v6398_v50 = vadd.f32 %v6382_v53, %v12307_v0  ;;  %v6397_v56 = vadd.f32 %v6380_v54, %v12303_v27  ;;  %v6848_v13 = vsel %vm601_vm7, %v6847_v39, %v6846_v44 }
0x22ba   :  { %v6457_v58 = vsel %vm592_vm4, %v6456_v36, %v6455_v60 }
0x22bb   :  { %v6458_v23 = vsel %vm595_vm5, %v6448_v55, %v6457_v58  ;;  %v6434_v51 = vpack.c.bf16 %v6398_v50, %v6398_v50  ;;  %v6851_v8 = vrot.slane %v6398_v50, 4  ;;  %v6433_v11 = vpack.c.bf16 %v6397_v56, %v6397_v56 }
0x22bc   :  { %v6849_v20 = vrot.slane %v6397_v56, 5  ;;  %v6461_v1 = vrot.slane %v6450_v26, 6  ;;  %v6460_v30 = vsel %vm598_vm6, %v6459_v25, %v6458_v23 }
0x22bd   :  { %v6452_v9 = vunpack.c.l.b16 %v6434_v51  ;;  %v6451_v48 = vunpack.c.l.b16 %v6433_v11 }
0x22be   :  { %v6850_v41 = vsel %vm604_vm8, %v6849_v20, %v6848_v13  ;;  %v6462_v60 = vsel %vm601_vm7, %v6461_v1, %v6460_v30 }
0x22bf   :  { %v6465_v17 = vrot.slane %v6452_v9, 4  ;;  %v12320_v10 = vsel %vm13676_vm9, %v6851_v8, %v6850_v41  ;;  %v6463_v39 = vrot.slane %v6451_v48, 5 }
0x22c1   :  { %v6464_v55 = vsel %vm604_vm8, %v6463_v39, %v6462_v60 }
0x22c2   :  { %v6466_v31 = vsel %vm13676_vm9, %v6465_v17, %v6464_v55 }
0x22c3   :  { %v6467_v36 = vpack.c.b16 %v6466_v31, %v6466_v31 }
0x22c5   :  { %6468 = vrot.lane.b32.xlu0 %v6467_v36, %s9831_s1 }
0x2337   :  { %v6469_v53 = vpop.permute.xlu0 %6468 }
0x2338   :  { %8570 = vmatmul.mubr.msk.bf16.vlgmr.msra.gmra.mrb[32].mxu0 %vm222_vm10, %v6469_v53 }
0x2339   :  { %8581 = vmatprep.mubr.msk.bf16.mxu0 %vm9829_vm0, %v13699_v7  ;;  %vm1517_vm0 = vcmask 124930  }
0x240b   :  { %v6513_v54 = vpop.f32.mrb[32].mxu0 }
0x240c   :  { %6531 = vrot.lane.b32.xlu0 %v6513_v54, %s9824_s21  ;;  %v8571_v44 = vpop.f32.mrb[33].mxu0  ;;  %v6520_v26 = vrot.slane %v6513_v54, 6  ;;  %v6521_v13 = vrot.slane %v6513_v54, 7  ;;  %v6522_v58 = vrot.slane %v6513_v54, 1  ;;  %v6524_v23 = vrot.slane %v6513_v54, 3 }
0x240d   :  { %v6516_v50 = vpop.f32.mrb[34].mxu0  ;;  %v6523_v51 = vrot.slane %v6513_v54, 2  ;;  %v6526_v7 = vrot.slane %v6513_v54, 5  ;;  %v6525_v8 = vrot.slane %v6513_v54, 4 }
0x240e   :  { %6527 = vrot.lane.b32.xlu1 %v6520_v26, %s9824_s21  ;;  %v8572_v56 = vpop.f32.mrb[35].mxu0 }
0x2410   :  { %6529 = vrot.lane.b32.xlu0 %v6521_v13, %s9824_s21 }
0x2412   :  { %6533 = vrot.lane.b32.xlu1 %v6522_v58, %s9824_s21 }
0x2414   :  { %6537 = vrot.lane.b32.xlu0 %v6524_v23, %s9824_s21  ;;  %v6425_v23 = vmul.f32 %v12169_v29, %v10637_v59 }
0x2416   :  { %6535 = vrot.lane.b32.xlu1 %v6523_v51, %s9824_s21 }
0x2418   :  { %6541 = vrot.lane.b32.xlu0 %v6526_v7, %s9824_s21 }
0x241a   :  { %6539 = vrot.lane.b32.xlu1 %v6525_v8, %s9824_s21 }
0x241e   :  { %6421 = vrot.lane.b32.xlu1 %v12240_v52, %s9836_s10 }
0x247e   :  { %v6532_v25 = vpop.permute.xlu0 %6531 }
0x247f   :  { %v6553_v11 = vadd.f32 %v6532_v25, %v9988_v38 }
0x2480   :  { %v6528_v20 = vpop.permute.xlu1 %6527 }
0x2481   :  { %9428 = vtanh.f32 %v6553_v11  ;;  %v6551_v1 = vadd.f32 %v6528_v20, %v9972_v18 }
0x2482   :  { %v6530_v9 = vpop.permute.xlu0 %6529 }
0x2483   :  { %v6552_v30 = vadd.f32 %v6530_v9, %v9983_v33  ;;  %9430 = vtanh.f32 %v6551_v1 }
0x2484   :  { %v6534_v48 = vpop.permute.xlu1 %6533 }
0x2485   :  { %v6554_v41 = vadd.f32 %v6534_v48, %v9974_v22  ;;  %9432 = vtanh.f32 %v6552_v30 }
0x2486   :  { %v6538_v17 = vpop.permute.xlu0 %6537 }
0x2487   :  { %v6556_v39 = vadd.f32 %v6538_v17, %v9978_v28  ;;  %9434 = vtanh.f32 %v6554_v41 }
0x2488   :  { %v6536_v52 = vpop.permute.xlu1 %6535 }
0x2489   :  { %v6555_v60 = vadd.f32 %v6536_v52, %v9992_v42  ;;  %9436 = vtanh.f32 %v6556_v39  ;;  %v8400_v52 = vmul.f32 -1.442695, %v6553_v11 }
0x248a   :  { %v6542_v55 = vpop.permute.xlu0 %6541 }
0x248b   :  { %v9429_v31 = vpop.eup %9428  ;;  %v6558_v36 = vadd.f32 %v6542_v55, %v9981_v32  ;;  %9438 = vtanh.f32 %v6555_v60  ;;  %v8398_v55 = vmul.f32 -1.442695, %v6551_v1 }
0x248c   :  { %6667 = vrot.lane.b32.xlu1 %v9429_v31, %s9830_s5  ;;  %v6540_v53 = vpop.permute.xlu1 %6539  ;;  %v8399_v31 = vmul.f32 -1.442695, %v6552_v30 }
0x248d   :  { %v9431_v54 = vpop.eup %9430  ;;  %9440 = vtanh.f32 %v6558_v36  ;;  %v6557_v44 = vadd.f32 %v6540_v53, %v9995_v46  ;;  %v8401_v53 = vmul.f32 -1.442695, %v6554_v41 }
0x248e   :  { %6663 = vrot.lane.b32.xlu0 %v9431_v54, %s9830_s5  ;;  %v8402_v54 = vmul.f32 -1.442695, %v6555_v60 }
0x248f   :  { %v9433_v26 = vpop.eup %9432  ;;  %9442 = vtanh.f32 %v6557_v44 }
0x2490   :  { %v6422_v50 = vpop.permute.xlu1 %6421  ;;  %6665 = vrot.lane.b32.xlu1 %v9433_v26, %s9830_s5  ;;  %9444 = vpow2.f32 %v8400_v52 }
0x2491   :  { %v9435_v56 = vpop.eup %9434  ;;  %v6424_v13 = vmul.f32 %v6422_v50, %v10670_v43  ;;  %9446 = vpow2.f32 %v8398_v55  ;;  %v8403_v50 = vmul.f32 -1.442695, %v6556_v39 }
0x2492   :  { %6669 = vrot.lane.b32.xlu0 %v9435_v56, %s9830_s5  ;;  %9448 = vpow2.f32 %v8399_v31 }
0x2493   :  { %v9437_v58 = vpop.eup %9436  ;;  %v12355_v7 = vadd.f32 %v6425_v23, %v6424_v13  ;;  %9450 = vpow2.f32 %v8401_v53 }
0x2494   :  { %6673 = vrot.lane.b32.xlu1 %v9437_v58, %s9830_s5  ;;  %9452 = vpow2.f32 %v8402_v54  ;;  %v8404_v58 = vmul.f32 -1.442695, %v6557_v44 }
0x2495   :  { %v9439_v51 = vpop.eup %9438  ;;  %v6617_v25 = vrot.slane %v12355_v7, 7  ;;  %v6616_v43 = vrot.slane %v12355_v7, 6  ;;  %v6620_v59 = vrot.slane %v12355_v7, 3  ;;  %v6618_v29 = vrot.slane %v12355_v7, 1 }
0x2496   :  { %6671 = vrot.lane.b32.xlu0 %v9439_v51, %s9830_s5  ;;  %v6621_v9 = vrot.slane %v12355_v7, 4  ;;  %v6619_v48 = vrot.slane %v12355_v7, 2  ;;  %v6622_v17 = vrot.slane %v12355_v7, 5  ;;  %9454 = vpow2.f32 %v8403_v50 }
0x2497   :  { %v9441_v8 = vpop.eup %9440  ;;  %v8405_v51 = vmul.f32 -1.442695, %v6558_v36 }
0x2498   :  { %6677 = vrot.lane.b32.xlu1 %v9441_v8, %s9830_s5 }
0x2499   :  { %v9443_v20 = vpop.eup %9442 }
0x249a   :  { %6675 = vrot.lane.b32.xlu0 %v9443_v20, %s9830_s5  ;;  %v9445_v26 = vpop.eup %9444 }
0x249b   :  { %v9447_v56 = vpop.eup %9446  ;;  %v6585_v13 = vadd.f32 1.0, %v9445_v26 }
0x249c   :  { %6625 = vrot.lane.b32.xlu1 %v6617_v25, %s9834_s3  ;;  %v9449_v23 = vpop.eup %9448  ;;  %v6583_v8 = vadd.f32 1.0, %v9447_v56 }
0x249d   :  { %9456 = vrcp.f32 %v6585_v13  ;;  %v6584_v11 = vadd.f32 1.0, %v9449_v23  ;;  %v9451_v1 = vpop.eup %9450 }
0x249e   :  { %6623 = vrot.lane.b32.xlu0 %v6616_v43, %s9834_s3  ;;  %9458 = vpow2.f32 %v8404_v58  ;;  %v9453_v30 = vpop.eup %9452  ;;  %v6586_v41 = vadd.f32 1.0, %v9451_v1 }
0x249f   :  { %9460 = vpow2.f32 %v8405_v51  ;;  %v6587_v60 = vadd.f32 1.0, %v9453_v30 }
0x24a0   :  { %6627 = vrot.lane.b32.xlu1 %v12355_v7, %s9834_s3  ;;  %9462 = vrcp.f32 %v6583_v8  ;;  %v9455_v25 = vpop.eup %9454 }
0x24a1   :  { %9464 = vrcp.f32 %v6584_v11  ;;  %v6588_v43 = vadd.f32 1.0, %v9455_v25 }
0x24a2   :  { %6629 = vrot.lane.b32.xlu0 %v6618_v29, %s9834_s3  ;;  %9466 = vrcp.f32 %v6586_v41 }
0x24a3   :  { %9468 = vrcp.f32 %v6587_v60 }
0x24a4   :  { %6633 = vrot.lane.b32.xlu1 %v6620_v59, %s9834_s3  ;;  %9470 = vrcp.f32 %v6588_v43 }
0x24a6   :  { %6631 = vrot.lane.b32.xlu0 %v6619_v48, %s9834_s3 }
0x24a7   :  { %v12376_v39 = vpop.eup %9456 }
0x24a8   :  { %6635 = vrot.lane.b32.xlu1 %v6621_v9, %s9834_s3  ;;  %v9459_v44 = vpop.eup %9458 }
0x24a9   :  { %v9461_v59 = vpop.eup %9460  ;;  %v6589_v48 = vadd.f32 1.0, %v9459_v44 }
0x24aa   :  { %6637 = vrot.lane.b32.xlu0 %v6622_v17, %s9834_s3  ;;  %v12379_v29 = vpop.eup %9462  ;;  %v6590_v55 = vadd.f32 1.0, %v9461_v59 }
0x24ab   :  { %v12383_v52 = vpop.eup %9464  ;;  %9472 = vrcp.f32 %v6589_v48 }
0x24ac   :  { %v12388_v26 = vpop.eup %9466  ;;  %9474 = vrcp.f32 %v6590_v55 }
0x24ad   :  { %v12391_v56 = vpop.eup %9468 }
0x24ae   :  { %v12396_v51 = vpop.eup %9470 }
0x24b5   :  { %v12399_v1 = vpop.eup %9472 }
0x24b6   :  { %v12402_v41 = vpop.eup %9474 }
0x24fe   :  { %v6668_v20 = vpop.permute.xlu1 %6667 }
0x24ff   :  { %v6689_v36 = vmul.f32 %v12376_v39, %v6668_v20 }
0x2500   :  { %v6664_v9 = vpop.permute.xlu0 %6663 }
0x2501   :  { %6707 = vrot.lane.b32.xlu0 %v6689_v36, %s9831_s1  ;;  %v6687_v17 = vmul.f32 %v12379_v29, %v6664_v9 }
0x2502   :  { %v6666_v31 = vpop.permute.xlu1 %6665 }
0x2503   :  { %v6688_v53 = vmul.f32 %v12383_v52, %v6666_v31  ;;  %6703 = vrot.lane.b32.xlu1 %v6687_v17, %s9831_s1 }
0x2504   :  { %v6670_v54 = vpop.permute.xlu0 %6669 }
0x2505   :  { %6705 = vrot.lane.b32.xlu0 %v6688_v53, %s9831_s1  ;;  %v6690_v50 = vmul.f32 %v12388_v26, %v6670_v54 }
0x2506   :  { %v6674_v13 = vpop.permute.xlu1 %6673 }
0x2507   :  { %v6692_v8 = vmul.f32 %v12396_v51, %v6674_v13 }
0x2508   :  { %v6672_v58 = vpop.permute.xlu0 %6671 }
0x2509   :  { %v6691_v23 = vmul.f32 %v12391_v56, %v6672_v58  ;;  %6709 = vrot.lane.b32.xlu0 %v6690_v50, %s9831_s1 }
0x250a   :  { %v6678_v11 = vpop.permute.xlu1 %6677 }
0x250b   :  { %6711 = vrot.lane.b32.xlu1 %v6691_v23, %s9831_s1  ;;  %v6694_v25 = vmul.f32 %v12402_v41, %v6678_v11 }
0x250c   :  { %v6676_v30 = vpop.permute.xlu0 %6675 }
0x250d   :  { %v6693_v60 = vmul.f32 %v12399_v1, %v6676_v30 }
0x250e   :  { %v6626_v44 = vpop.permute.xlu1 %6625 }
0x250f   :  { %6713 = vrot.lane.b32.xlu1 %v6692_v8, %s9831_s1  ;;  %6715 = vrot.lane.b32.xlu0 %v6693_v60, %s9831_s1  ;;  %v6648_v54 = vmul.f32 %v12383_v52, %v6626_v44 }
0x2510   :  { %v6624_v20 = vpop.permute.xlu0 %6623 }
0x2511   :  { %v6647_v31 = vmul.f32 %v12379_v29, %v6624_v20 }
0x2512   :  { %v6628_v36 = vpop.permute.xlu1 %6627 }
0x2513   :  { %6717 = vrot.lane.b32.xlu1 %v6694_v25, %s9831_s1  ;;  %6853 = vrot.lane.b32.xlu0 %v12320_v10, %s9831_s1  ;;  %v6649_v23 = vmul.f32 %v12376_v39, %v6628_v36 }
0x2514   :  { %v6630_v43 = vpop.permute.xlu0 %6629 }
0x2515   :  { %v6650_v10 = vmul.f32 %v12388_v26, %v6630_v43 }
0x2516   :  { %v6634_v9 = vpop.permute.xlu1 %6633 }
0x2518   :  { %v6632_v59 = vpop.permute.xlu0 %6631 }
0x2519   :  { %v6651_v25 = vmul.f32 %v12391_v56, %v6632_v59 }
0x251a   :  { %v6636_v17 = vpop.permute.xlu1 %6635 }
0x251c   :  { %v6638_v48 = vpop.permute.xlu0 %6637 }
0x251d   :  { %v6654_v59 = vmul.f32 %v12402_v41, %v6638_v48 }
0x2573   :  { %v6708_v55 = vpop.permute.xlu0 %6707 }
0x2574   :  { %v6729_v30 = vadd.f32 %v6708_v55, %v6649_v23  ;;  %v6653_v23 = vmul.f32 %v12399_v1, %v6636_v17 }
0x2575   :  { %v6704_v53 = vpop.permute.xlu1 %6703 }
0x2576   :  { %v6727_v50 = vadd.f32 %v6704_v53, %v6647_v31  ;;  %v6652_v53 = vmul.f32 %v12396_v51, %v6634_v9  ;;  %9476 = vtanh.f32 %v6729_v30 }
0x2577   :  { %v6706_v13 = vpop.permute.xlu0 %6705 }
0x2578   :  { %v6728_v58 = vadd.f32 %v6706_v13, %v6648_v54  ;;  %v6905_v8 = vrot.slane %v6727_v50, 2  ;;  %9478 = vtanh.f32 %v6727_v50 }
0x257a   :  { %v6906_v11 = vrot.slane %v6728_v58, 1  ;;  %9480 = vtanh.f32 %v6728_v58 }
0x257b   :  { %v6710_v60 = vpop.permute.xlu0 %6709 }
0x257c   :  { %v6907_v0 = vsel %vm589_vm3, %v6906_v11, %v6905_v8  ;;  %v6730_v27 = vadd.f32 %v6710_v60, %v6650_v10 }
0x257d   :  { %v6908_v20 = vsel %vm592_vm4, %v6729_v30, %v6907_v0  ;;  %v6712_v37 = vpop.permute.xlu1 %6711 }
0x257e   :  { %v6909_v44 = vrot.slane %v6730_v27, 7  ;;  %v6731_v31 = vadd.f32 %v6712_v37, %v6651_v25  ;;  %9482 = vtanh.f32 %v6730_v27 }
0x2580   :  { %v6910_v36 = vsel %vm595_vm5, %v6909_v44, %v6908_v20  ;;  %v6911_v54 = vrot.slane %v6731_v31, 6  ;;  %v13798_v20 = vld [vmem:[#allocation38_spill] sm:$0xff]  ;;  %9484 = vtanh.f32 %v6731_v31 }
0x2581   :  { %v6714_v43 = vpop.permute.xlu1 %6713  ;;  %v6716_v8 = vpop.permute.xlu0 %6715 }
0x2582   :  { %v6912_v13 = vsel %vm598_vm6, %v6911_v54, %v6910_v36  ;;  %v6732_v55 = vadd.f32 %v6714_v43, %v6652_v53  ;;  %v6733_v11 = vadd.f32 %v6716_v8, %v6653_v23 }
0x2584   :  { %v6913_v10 = vrot.slane %v6732_v55, 5  ;;  %v6915_v25 = vrot.slane %v6733_v11, 4  ;;  %9486 = vtanh.f32 %v6732_v55 }
0x2585   :  { %v6718_v0 = vpop.permute.xlu1 %6717  ;;  %v6854_v9 = vpop.permute.xlu0 %6853  ;;  %9488 = vtanh.f32 %v6733_v11 }
0x2586   :  { %v6734_v60 = vadd.f32 %v6718_v0, %v6654_v59  ;;  %v6914_v37 = vsel %vm601_vm7, %v6913_v10, %v6912_v13  ;;  %v6856_v44 = vmul.f32 %v6854_v9, %v13798_v20  ;;  %v8656_v59 = vld [vmem:[%s13508_s4] sm:$0xff]  }
0x2587   :  { %v6916_v16 = vsel %vm604_vm8, %v6915_v25, %v6914_v37  ;;  %8574 = vmatpush3.bf16.msra.mxu1 %v8656_v59 }
0x2588   :  { %v6917_v49 = vrot.slane %v6734_v60, 3  ;;  %v6859_v17 = vrot.slane %v6856_v44, 7  ;;  %v6858_v36 = vrot.slane %v6856_v44, 6  ;;  %v6860_v48 = vrot.slane %v6856_v44, 1 }
0x2589   :  { %v6862_v54 = vrot.slane %v6856_v44, 3  ;;  %v6861_v43 = vrot.slane %v6856_v44, 2  ;;  %9490 = vtanh.f32 %v6734_v60  ;;  %v6863_v55 = vrot.slane %v6856_v44, 4 }
0x258a   :  { %v12426_v53 = vsel %vm13676_vm9, %v6917_v49, %v6916_v16  ;;  %6867 = vrot.lane.b32.xlu0 %v6859_v17, %s9833_s13  ;;  %6865 = vrot.lane.b32.xlu1 %v6858_v36, %s9833_s13  ;;  %v9477_v16 = vpop.eup %9476  ;;  %v6864_v23 = vrot.slane %v6856_v44, 5  ;;  %v13799_v36 = vld [vmem:[#allocation39_spill] sm:$0xff] }
0x258b   :  { %v9479_v49 = vpop.eup %9478 }
0x258c   :  { %v9481_v50 = vpop.eup %9480 }
0x258d   :  { %v9483_v58 = vpop.eup %9482 }
0x258e   :  { %6869 = vrot.lane.b32.xlu0 %v6856_v44, %s9833_s13  ;;  %6871 = vrot.lane.b32.xlu1 %v6860_v48, %s9833_s13  ;;  %v9485_v27 = vpop.eup %9484 }
0x258f   :  { %v9487_v30 = vpop.eup %9486 }
0x2590   :  { %v9489_v31 = vpop.eup %9488 }
0x2592   :  { %6875 = vrot.lane.b32.xlu0 %v6862_v54, %s9833_s13  ;;  %6873 = vrot.lane.b32.xlu1 %v6861_v43, %s9833_s13  ;;  %v13801_v54 = vrot.slane %v13799_v36, 6 }
0x2593   :  { %v9491_v13 = vpop.eup %9490 }
0x2596   :  { %6755 = vrot.lane.b32.xlu0 %v9477_v16, %s9832_s11  ;;  %6751 = vrot.lane.b32.xlu1 %v9479_v49, %s9832_s11 }
0x259a   :  { %6753 = vrot.lane.b32.xlu0 %v9481_v50, %s9832_s11  ;;  %6757 = vrot.lane.b32.xlu1 %v9483_v58, %s9832_s11 }
0x259e   :  { %6759 = vrot.lane.b32.xlu1 %v9485_v27, %s9832_s11  ;;  %6761 = vrot.lane.b32.xlu0 %v9487_v30, %s9832_s11 }
0x25a2   :  { %6763 = vrot.lane.b32.xlu1 %v9489_v31, %s9832_s11  ;;  %6765 = vrot.lane.b32.xlu0 %v9491_v13, %s9832_s11  ;;  %v13803_v13 = vrot.slane %v13799_v36, 1 }
0x25a6   :  { %6877 = vrot.lane.b32.xlu1 %v6863_v55, %s9833_s13  ;;  %6879 = vrot.lane.b32.xlu0 %v6864_v23, %s9833_s13 }
0x25fc   :  { %v6868_v8 = vpop.permute.xlu0 %6867  ;;  %v6866_v10 = vpop.permute.xlu1 %6865 }
0x2600   :  { %v6870_v11 = vpop.permute.xlu0 %6869  ;;  %v6872_v0 = vpop.permute.xlu1 %6871 }
0x2604   :  { %v6876_v60 = vpop.permute.xlu0 %6875  ;;  %v6874_v37 = vpop.permute.xlu1 %6873 }
0x2608   :  { %v6756_v25 = vpop.permute.xlu0 %6755  ;;  %v6752_v9 = vpop.permute.xlu1 %6751 }
0x2609   :  { %v6777_v17 = vmul.f32 %v12376_v39, %v6756_v25  ;;  %v6775_v44 = vmul.f32 %v12379_v29, %v6752_v9  ;;  %v13802_v29 = vrot.slane %v13799_v36, 7 }
0x260b   :  { %v12450_v48 = vmul.f32 %v6777_v17, %v13799_v36  ;;  %v12454_v43 = vmul.f32 %v6775_v44, %v13801_v54 }
0x260c   :  { %v6754_v16 = vpop.permute.xlu0 %6753  ;;  %v6758_v49 = vpop.permute.xlu1 %6757 }
0x260d   :  { %13800 = vst [vmem:[#allocation38_spill] sm:$0xff] %v12450_v48  ;;  %v6889_v50 = vadd.f32 %v6866_v10, %v12454_v43  ;;  %v6776_v58 = vmul.f32 %v12383_v52, %v6754_v16  ;;  %v6778_v27 = vmul.f32 %v12388_v26, %v6758_v49  ;;  %v6891_v30 = vadd.f32 %v6870_v11, %v12450_v48 }
0x260e   :  { %v13805_v16 = vrot.slane %v13799_v36, 3 }
0x260f   :  { %v6925_v39 = vpack.c.bf16 %v6889_v50, %v6889_v50  ;;  %v12462_v31 = vmul.f32 %v6776_v58, %v13802_v29  ;;  %v12466_v55 = vmul.f32 %v6778_v27, %v13803_v13  ;;  %v6927_v9 = vpack.c.bf16 %v6891_v30, %v6891_v30 }
0x2610   :  { %v6762_v23 = vpop.permute.xlu0 %6761  ;;  %v6760_v59 = vpop.permute.xlu1 %6759  ;;  %v7337_v17 = vrot.slane %v6889_v50, 2 }
0x2611   :  { %13804 = vst [vmem:[#allocation39_spill] sm:$0xff] %v12466_v55  ;;  %v6943_v25 = vunpack.c.l.b16 %v6925_v39  ;;  %v6890_v10 = vadd.f32 %v6868_v8, %v12462_v31  ;;  %v6780_v52 = vmul.f32 %v12396_v51, %v6762_v23  ;;  %v6892_v26 = vadd.f32 %v6872_v0, %v12466_v55 }
0x2612   :  { %v6779_v11 = vmul.f32 %v12391_v56, %v6760_v59  ;;  %v13807_v39 = vrot.slane %v13799_v36, 2  ;;  %v6945_v55 = vunpack.c.l.b16 %v6927_v9 }
0x2613   :  { %v6926_v44 = vpack.c.bf16 %v6890_v10, %v6890_v10  ;;  %v7338_v54 = vrot.slane %v6890_v10, 1  ;;  %v12474_v49 = vmul.f32 %v6780_v52, %v13805_v16  ;;  %v6951_v58 = vrot.slane %v6943_v25, 2 }
0x2614   :  { %v6928_v27 = vpack.c.bf16 %v6892_v26, %v6892_v26  ;;  %v7341_v29 = vrot.slane %v6892_v26, 7  ;;  %v12478_v8 = vmul.f32 %v6779_v11, %v13807_v39  ;;  %v6766_v51 = vpop.permute.xlu0 %6765  ;;  %v6764_v13 = vpop.permute.xlu1 %6763 }
0x2615   :  { %13806 = vst [vmem:[#allocation106_spill] sm:$0xff] %v12474_v49  ;;  %v6944_v23 = vunpack.c.l.b16 %v6926_v44  ;;  %v7339_v0 = vsel %vm589_vm3, %v7338_v54, %v7337_v17  ;;  %v6894_v56 = vadd.f32 %v6876_v60, %v12474_v49  ;;  %v6782_v50 = vmul.f32 %v12402_v41, %v6766_v51 }
0x2616   :  { %13808 = vst [vmem:[#allocation107_spill] sm:$0xff] %v12478_v8  ;;  %v7340_v59 = vsel %vm592_vm4, %v6891_v30, %v7339_v0  ;;  %v6946_v10 = vunpack.c.l.b16 %v6928_v27  ;;  %v6893_v25 = vadd.f32 %v6874_v37, %v12478_v8  ;;  %v6781_v52 = vmul.f32 %v12399_v1, %v6764_v13 }
0x2617   :  { %v6952_v26 = vrot.slane %v6944_v23, 1  ;;  %v7342_v11 = vsel %vm595_vm5, %v7341_v29, %v7340_v59  ;;  %v6930_v16 = vpack.c.bf16 %v6894_v56, %v6894_v56  ;;  %v7345_v39 = vrot.slane %v6894_v56, 5 }
0x2618   :  { %v6929_v44 = vpack.c.bf16 %v6893_v25, %v6893_v25  ;;  %v7343_v48 = vrot.slane %v6893_v25, 6  ;;  %v13809_v17 = vrot.slane %v13799_v36, 5  ;;  %v6880_v41 = vpop.permute.xlu0 %6879  ;;  %v6878_v54 = vpop.permute.xlu1 %6877  ;;  %v6955_v27 = vrot.slane %v6946_v10, 7 }
0x2619   :  { %v6953_v30 = vsel %vm589_vm3, %v6952_v26, %v6951_v58  ;;  %v6948_v37 = vunpack.c.l.b16 %v6930_v16  ;;  %v13811_v1 = vrot.slane %v13799_v36, 4 }
0x261a   :  { %v12489_v60 = vmul.f32 %v6782_v50, %v13809_v17  ;;  %v6954_v29 = vsel %vm592_vm4, %v6945_v55, %v6953_v30  ;;  %v6947_v13 = vunpack.c.l.b16 %v6929_v44  ;;  %v7344_v23 = vsel %vm598_vm6, %v7343_v48, %v7342_v11 }
0x261b   :  { %v12494_v51 = vmul.f32 %v6781_v52, %v13811_v1  ;;  %v7346_v56 = vsel %vm601_vm7, %v7345_v39, %v7344_v23  ;;  %v6956_v50 = vsel %vm595_vm5, %v6955_v27, %v6954_v29  ;;  %v6959_v52 = vrot.slane %v6948_v37, 5 }
0x261c   :  { %13810 = vst [vmem:[#allocation108_spill] sm:$0xff] %v12489_v60  ;;  %v6896_v9 = vadd.f32 %v6880_v41, %v12489_v60  ;;  %v6957_v58 = vrot.slane %v6947_v13, 6 }
0x261d   :  { %13812 = vst [vmem:[#allocation109_spill] sm:$0xff] %v12494_v51  ;;  %v6895_v0 = vadd.f32 %v6878_v54, %v12494_v51 }
0x261e   :  { %v6932_v59 = vpack.c.bf16 %v6896_v9, %v6896_v9  ;;  %v7349_v10 = vrot.slane %v6896_v9, 3  ;;  %v6958_v55 = vsel %vm598_vm6, %v6957_v58, %v6956_v50 }
0x261f   :  { %v6931_v25 = vpack.c.bf16 %v6895_v0, %v6895_v0  ;;  %v7347_v26 = vrot.slane %v6895_v0, 4  ;;  %v6960_v39 = vsel %vm601_vm7, %v6959_v52, %v6958_v55 }
0x2620   :  { %v6950_v16 = vunpack.c.l.b16 %v6932_v59 }
0x2621   :  { %v6949_v44 = vunpack.c.l.b16 %v6931_v25  ;;  %v7348_v17 = vsel %vm604_vm8, %v7347_v26, %v7346_v56 }
0x2622   :  { %v6963_v41 = vrot.slane %v6950_v16, 3  ;;  %v12505_v48 = vsel %vm13676_vm9, %v7349_v10, %v7348_v17 }
0x2623   :  { %v6961_v11 = vrot.slane %v6949_v44, 4 }
0x2625   :  { %v6962_v54 = vsel %vm604_vm8, %v6961_v11, %v6960_v39 }
0x2626   :  { %v6964_v30 = vsel %vm13676_vm9, %v6963_v41, %v6962_v54 }
0x2627   :  { %v6965_v27 = vpack.c.b16 %v6964_v30, %v6964_v30 }
0x2629   :  { %6966 = vrot.lane.b32.xlu1 %v6965_v27, %s9831_s1 }
0x269b   :  { %v6967_v37 = vpop.permute.xlu1 %6966 }
0x269c   :  { %8576 = vmatmul.mubr.msk.bf16.vlgmr.msra.gmra.mrb[28].mxu1 %vm222_vm10, %v6967_v37 }
0x276f   :  { %v7011_v1 = vpop.f32.mrb[28].mxu1 }
0x2770   :  { %7027 = vrot.lane.b32.xlu0 %v7011_v1, %s9824_s21  ;;  %v8577_v29 = vpop.f32.mrb[29].mxu1  ;;  %v7019_v13 = vrot.slane %v7011_v1, 1  ;;  %v7018_v0 = vrot.slane %v7011_v1, 7  ;;  %v7020_v56 = vrot.slane %v7011_v1, 2  ;;  %v7021_v50 = vrot.slane %v7011_v1, 3 }
0x2771   :  { %v7014_v9 = vpop.f32.mrb[30].mxu1  ;;  %v7022_v58 = vrot.slane %v7011_v1, 4  ;;  %v7023_v59 = vrot.slane %v7011_v1, 5  ;;  %v7024_v10 = vrot.slane %v7011_v1, 6 }
0x2772   :  { %7029 = vrot.lane.b32.xlu1 %v7019_v13, %s9824_s21  ;;  %v8578_v23 = vpop.f32.mrb[31].mxu1 }
0x2774   :  { %7025 = vrot.lane.b32.xlu0 %v7018_v0, %s9824_s21 }
0x2776   :  { %7031 = vrot.lane.b32.xlu1 %v7020_v56, %s9824_s21 }
0x2778   :  { %7033 = vrot.lane.b32.xlu0 %v7021_v50, %s9824_s21 }
0x277a   :  { %7035 = vrot.lane.b32.xlu1 %v7022_v58, %s9824_s21  ;;  %v6923_v58 = vmul.f32 %v12355_v7, %v13798_v20 }
0x277c   :  { %7037 = vrot.lane.b32.xlu0 %v7023_v59, %s9824_s21 }
0x277e   :  { %7039 = vrot.lane.b32.xlu1 %v7024_v10, %s9824_s21 }
0x2780   :  { %6919 = vrot.lane.b32.xlu0 %v12426_v53, %s9836_s10 }
0x27e2   :  { %v7028_v25 = vpop.permute.xlu0 %7027 }
0x27e3   :  { %v7050_v26 = vadd.f32 %v7028_v25, %v9983_v33 }
0x27e4   :  { %v7030_v52 = vpop.permute.xlu1 %7029 }
0x27e5   :  { %9492 = vtanh.f32 %v7050_v26  ;;  %v7051_v16 = vadd.f32 %v7030_v52, %v9988_v38 }
0x27e6   :  { %v7026_v55 = vpop.permute.xlu0 %7025 }
0x27e7   :  { %v7049_v44 = vadd.f32 %v7026_v55, %v9972_v18  ;;  %9494 = vtanh.f32 %v7051_v16 }
0x27e8   :  { %v7032_v17 = vpop.permute.xlu1 %7031 }
0x27e9   :  { %v7052_v41 = vadd.f32 %v7032_v17, %v9974_v22  ;;  %9496 = vtanh.f32 %v7049_v44 }
0x27ea   :  { %v7034_v11 = vpop.permute.xlu0 %7033 }
0x27eb   :  { %v7053_v39 = vadd.f32 %v7034_v11, %v9992_v42  ;;  %9498 = vtanh.f32 %v7052_v41 }
0x27ec   :  { %v7036_v53 = vpop.permute.xlu1 %7035 }
0x27ed   :  { %v7054_v54 = vadd.f32 %v7036_v53, %v9978_v28  ;;  %9500 = vtanh.f32 %v7053_v39 }
0x27ee   :  { %v7038_v30 = vpop.permute.xlu0 %7037 }
0x27ef   :  { %v9493_v27 = vpop.eup %9492  ;;  %v7055_v37 = vadd.f32 %v7038_v30, %v9995_v46  ;;  %9502 = vtanh.f32 %v7054_v54  ;;  %v8409_v30 = vmul.f32 -1.442695, %v7050_v26 }
0x27f0   :  { %7163 = vrot.lane.b32.xlu1 %v9493_v27, %s9830_s5  ;;  %v7040_v1 = vpop.permute.xlu1 %7039  ;;  %v8408_v27 = vmul.f32 -1.442695, %v7049_v44 }
0x27f1   :  { %v9495_v29 = vpop.eup %9494  ;;  %9504 = vtanh.f32 %v7055_v37  ;;  %v7056_v13 = vadd.f32 %v7040_v1, %v9981_v32  ;;  %v8411_v1 = vmul.f32 -1.442695, %v7052_v41 }
0x27f2   :  { %7165 = vrot.lane.b32.xlu0 %v9495_v29, %s9830_s5  ;;  %v6920_v23 = vpop.permute.xlu0 %6919  ;;  %v8410_v29 = vmul.f32 -1.442695, %v7051_v16 }
0x27f3   :  { %v9497_v9 = vpop.eup %9496  ;;  %9506 = vtanh.f32 %v7056_v13  ;;  %v6922_v56 = vmul.f32 %v6920_v23, %v13799_v36  ;;  %v8414_v23 = vmul.f32 -1.442695, %v7055_v37 }
0x27f4   :  { %7161 = vrot.lane.b32.xlu1 %v9497_v9, %s9830_s5  ;;  %9508 = vpow2.f32 %v8409_v30  ;;  %v8412_v9 = vmul.f32 -1.442695, %v7053_v39 }
0x27f5   :  { %v9499_v0 = vpop.eup %9498  ;;  %v12538_v10 = vadd.f32 %v6923_v58, %v6922_v56  ;;  %9510 = vpow2.f32 %v8408_v27  ;;  %v8413_v56 = vmul.f32 -1.442695, %v7054_v54 }
0x27f6   :  { %7167 = vrot.lane.b32.xlu0 %v9499_v0, %s9830_s5  ;;  %9512 = vpow2.f32 %v8411_v1 }
0x27f7   :  { %v9501_v50 = vpop.eup %9500  ;;  %v7114_v52 = vrot.slane %v12538_v10, 7  ;;  %v7115_v36 = vrot.slane %v12538_v10, 1  ;;  %v7119_v7 = vrot.slane %v12538_v10, 5  ;;  %v7116_v20 = vrot.slane %v12538_v10, 2 }
0x27f8   :  { %7169 = vrot.lane.b32.xlu1 %v9501_v50, %s9830_s5  ;;  %v7120_v17 = vrot.slane %v12538_v10, 6  ;;  %v7117_v11 = vrot.slane %v12538_v10, 3  ;;  %v7118_v53 = vrot.slane %v12538_v10, 4  ;;  %9514 = vpow2.f32 %v8410_v29 }
0x27f9   :  { %v9503_v59 = vpop.eup %9502  ;;  %9516 = vpow2.f32 %v8412_v9 }
0x27fa   :  { %7171 = vrot.lane.b32.xlu0 %v9503_v59, %s9830_s5  ;;  %9518 = vpow2.f32 %v8414_v23  ;;  %v8415_v59 = vmul.f32 -1.442695, %v7056_v13 }
0x27fb   :  { %v9505_v25 = vpop.eup %9504  ;;  %9520 = vpow2.f32 %v8413_v56 }
0x27fc   :  { %7173 = vrot.lane.b32.xlu1 %v9505_v25, %s9830_s5 }
0x27fd   :  { %v9507_v55 = vpop.eup %9506 }
0x27fe   :  { %7175 = vrot.lane.b32.xlu0 %v9507_v55, %s9830_s5  ;;  %v9509_v0 = vpop.eup %9508 }
0x27ff   :  { %v7082_v50 = vadd.f32 1.0, %v9509_v0  ;;  %v9511_v58 = vpop.eup %9510 }
0x2800   :  { %7121 = vrot.lane.b32.xlu1 %v7114_v52, %s9834_s3  ;;  %v9513_v25 = vpop.eup %9512  ;;  %v7081_v26 = vadd.f32 1.0, %v9511_v58 }
0x2801   :  { %9522 = vrcp.f32 %v7082_v50  ;;  %v7084_v44 = vadd.f32 1.0, %v9513_v25 }
0x2802   :  { %7125 = vrot.lane.b32.xlu0 %v7115_v36, %s9834_s3  ;;  %v9515_v52 = vpop.eup %9514  ;;  %9524 = vpow2.f32 %v8415_v59 }
0x2803   :  { %v9517_v16 = vpop.eup %9516  ;;  %v7083_v41 = vadd.f32 1.0, %v9515_v52  ;;  %9526 = vrcp.f32 %v7081_v26 }
0x2804   :  { %7123 = vrot.lane.b32.xlu1 %v12538_v10, %s9834_s3  ;;  %v9519_v39 = vpop.eup %9518  ;;  %9528 = vrcp.f32 %v7084_v44  ;;  %v7085_v37 = vadd.f32 1.0, %v9517_v16 }
0x2805   :  { %v9521_v55 = vpop.eup %9520  ;;  %9530 = vrcp.f32 %v7083_v41  ;;  %v7087_v54 = vadd.f32 1.0, %v9519_v39 }
0x2806   :  { %7127 = vrot.lane.b32.xlu0 %v7116_v20, %s9834_s3  ;;  %9532 = vrcp.f32 %v7085_v37  ;;  %v7086_v13 = vadd.f32 1.0, %v9521_v55 }
0x2807   :  { %9534 = vrcp.f32 %v7087_v54 }
0x2808   :  { %7133 = vrot.lane.b32.xlu1 %v7119_v7, %s9834_s3  ;;  %9536 = vrcp.f32 %v7086_v13 }
0x280a   :  { %7129 = vrot.lane.b32.xlu0 %v7117_v11, %s9834_s3 }
0x280b   :  { %v12559_v36 = vpop.eup %9522 }
0x280c   :  { %7135 = vrot.lane.b32.xlu1 %v7120_v17, %s9834_s3  ;;  %v9525_v17 = vpop.eup %9524 }
0x280d   :  { %v7088_v30 = vadd.f32 1.0, %v9525_v17 }
0x280e   :  { %7131 = vrot.lane.b32.xlu0 %v7118_v53, %s9834_s3  ;;  %v12563_v53 = vpop.eup %9526 }
0x280f   :  { %v12566_v29 = vpop.eup %9528  ;;  %9538 = vrcp.f32 %v7088_v30 }
0x2810   :  { %v12570_v0 = vpop.eup %9530 }
0x2811   :  { %v12574_v58 = vpop.eup %9532 }
0x2812   :  { %v12578_v26 = vpop.eup %9534 }
0x2813   :  { %v12582_v16 = vpop.eup %9536 }
0x2819   :  { %v12587_v37 = vpop.eup %9538 }
0x2862   :  { %v7164_v7 = vpop.permute.xlu1 %7163 }
0x2863   :  { %v7186_v20 = vmul.f32 %v12559_v36, %v7164_v7 }
0x2864   :  { %v7166_v11 = vpop.permute.xlu0 %7165 }
0x2865   :  { %7203 = vrot.lane.b32.xlu1 %v7186_v20, %s9831_s1  ;;  %v7187_v50 = vmul.f32 %v12570_v0, %v7166_v11 }
0x2866   :  { %v7162_v27 = vpop.permute.xlu1 %7161 }
0x2867   :  { %v7185_v1 = vmul.f32 %v12563_v53, %v7162_v27 }
0x2868   :  { %v7168_v9 = vpop.permute.xlu0 %7167 }
0x2869   :  { %v7188_v23 = vmul.f32 %v12566_v29, %v7168_v9  ;;  %7201 = vrot.lane.b32.xlu1 %v7185_v1, %s9831_s1 }
0x286a   :  { %v7170_v56 = vpop.permute.xlu1 %7169 }
0x286b   :  { %7207 = vrot.lane.b32.xlu0 %v7188_v23, %s9831_s1  ;;  %v7189_v59 = vmul.f32 %v12574_v58, %v7170_v56 }
0x286c   :  { %v7172_v25 = vpop.permute.xlu0 %7171 }
0x286d   :  { %7205 = vrot.lane.b32.xlu1 %v7187_v50, %s9831_s1  ;;  %v7190_v41 = vmul.f32 %v12582_v16, %v7172_v25 }
0x286e   :  { %v7174_v52 = vpop.permute.xlu1 %7173 }
0x286f   :  { %v7191_v44 = vmul.f32 %v12578_v26, %v7174_v52  ;;  %7209 = vrot.lane.b32.xlu0 %v7189_v59, %s9831_s1 }
0x2870   :  { %v7176_v39 = vpop.permute.xlu0 %7175 }
0x2871   :  { %7213 = vrot.lane.b32.xlu1 %v7191_v44, %s9831_s1  ;;  %v7192_v55 = vmul.f32 %v12587_v37, %v7176_v39 }
0x2872   :  { %v7122_v54 = vpop.permute.xlu1 %7121 }
0x2873   :  { %7211 = vrot.lane.b32.xlu0 %v7190_v41, %s9831_s1  ;;  %v7145_v8 = vmul.f32 %v12563_v53, %v7122_v54 }
0x2874   :  { %v7126_v13 = vpop.permute.xlu0 %7125 }
0x2875   :  { %7351 = vrot.lane.b32.xlu1 %v12505_v48, %s9831_s1  ;;  %v7147_v56 = vmul.f32 %v12570_v0, %v7126_v13 }
0x2876   :  { %v7124_v7 = vpop.permute.xlu1 %7123 }
0x2877   :  { %7215 = vrot.lane.b32.xlu0 %v7192_v55, %s9831_s1  ;;  %v7146_v41 = vmul.f32 %v12559_v36, %v7124_v7  ;;  %v13813_v55 = vld [vmem:[#allocation28_spill] sm:$0xff] }
0x2878   :  { %v7128_v17 = vpop.permute.xlu0 %7127 }
0x2879   :  { %v7148_v25 = vmul.f32 %v12566_v29, %v7128_v17 }
0x287a   :  { %v7134_v20 = vpop.permute.xlu1 %7133 }
0x287b   :  { %v7151_v54 = vmul.f32 %v12578_v26, %v7134_v20 }
0x287c   :  { %v7130_v30 = vpop.permute.xlu0 %7129 }
0x287e   :  { %v7136_v11 = vpop.permute.xlu1 %7135 }
0x2880   :  { %v7132_v1 = vpop.permute.xlu0 %7131 }
0x2881   :  { %v7150_v17 = vmul.f32 %v12582_v16, %v7132_v1 }
0x28d7   :  { %v7204_v27 = vpop.permute.xlu1 %7203 }
0x28d8   :  { %v7226_v51 = vadd.f32 %v7204_v27, %v7146_v41 }
0x28db   :  { %v7202_v9 = vpop.permute.xlu1 %7201 }
0x28dd   :  { %v7208_v23 = vpop.permute.xlu0 %7207 }
0x28de   :  { %v7228_v44 = vadd.f32 %v7208_v23, %v7148_v25  ;;  %v7149_v23 = vmul.f32 %v12574_v58, %v7130_v30 }
0x28df   :  { %v7206_v50 = vpop.permute.xlu1 %7205 }
0x28e0   :  { %v7227_v59 = vadd.f32 %v7206_v50, %v7147_v56  ;;  %v7225_v50 = vadd.f32 %v7202_v9, %v7145_v8 }
0x28e1   :  { %v7210_v52 = vpop.permute.xlu0 %7209 }
0x28e2   :  { %9540 = vtanh.f32 %v7227_v59  ;;  %v7229_v41 = vadd.f32 %v7210_v52, %v7149_v23 }
0x28e3   :  { %v7214_v48 = vpop.permute.xlu1 %7213  ;;  %9542 = vtanh.f32 %v7228_v44 }
0x28e4   :  { %9544 = vtanh.f32 %v7226_v51  ;;  %v7231_v8 = vadd.f32 %v7214_v48, %v7151_v54 }
0x28e5   :  { %v7212_v49 = vpop.permute.xlu0 %7211  ;;  %9546 = vtanh.f32 %v7225_v50 }
0x28e6   :  { %v7230_v7 = vadd.f32 %v7212_v49, %v7150_v17 }
0x28e7   :  { %v7352_v39 = vpop.permute.xlu1 %7351 }
0x28e8   :  { %v12597_v60 = vmul.f32 %v7352_v39, %v13813_v55  ;;  %9548 = vtanh.f32 %v7230_v7  ;;  %v7152_v39 = vmul.f32 %v12587_v37, %v7136_v11  ;;  %v7405_v11 = vrot.slane %v7227_v59, 7 }
0x28e9   :  { %v7216_v1 = vpop.permute.xlu0 %7215  ;;  %9550 = vtanh.f32 %v7229_v41  ;;  %v7407_v59 = vrot.slane %v7228_v44, 6 }
0x28ea   :  { %v7358_v13 = vrot.slane %v12597_v60, 2  ;;  %v7356_v56 = vrot.slane %v12597_v60, 7  ;;  %v7357_v27 = vrot.slane %v12597_v60, 1  ;;  %9552 = vtanh.f32 %v7231_v8 }
0x28eb   :  { %v7232_v49 = vadd.f32 %v7216_v1, %v7152_v39  ;;  %v7360_v20 = vrot.slane %v12597_v60, 4  ;;  %v7359_v1 = vrot.slane %v12597_v60, 3 }
0x28ec   :  { %7369 = vrot.lane.b32.xlu1 %v7358_v13, %s9833_s13  ;;  %7363 = vrot.lane.b32.xlu0 %v7356_v56, %s9833_s13  ;;  %v9541_v25 = vpop.eup %9540  ;;  %v7403_v13 = vrot.slane %v7225_v50, 1  ;;  %v3737_v56 = vrot.slane %v11584_v63, 1  ;;  %v7409_v50 = vrot.slane %v7229_v41, 5 }
0x28ed   :  { %v9543_v9 = vpop.eup %9542  ;;  %9554 = vtanh.f32 %v7232_v49  ;;  %v7415_v44 = vrot.slane %v7232_v49, 2 }
0x28ee   :  { %v9545_v30 = vpop.eup %9544  ;;  %v12625_v54 = vadd.f32 %v3737_v56, %v9972_v18 }
0x28ef   :  { %v9547_v48 = vpop.eup %9546 }
0x28f0   :  { %7367 = vrot.lane.b32.xlu0 %v7357_v27, %s9833_s13  ;;  %7253 = vrot.lane.b32.xlu1 %v9541_v25, %s9832_s11  ;;  %v7404_v27 = vsel %vm589_vm3, %v7226_v51, %v7403_v13  ;;  %9556 = vtanh.f32 %v12625_v54 }
0x28f1   :  { %v7406_v25 = vsel %vm592_vm4, %v7405_v11, %v7404_v27 }
0x28f2   :  { %v9549_v52 = vpop.eup %9548  ;;  %v7408_v39 = vsel %vm595_vm5, %v7407_v59, %v7406_v25 }
0x28f3   :  { %v9551_v17 = vpop.eup %9550  ;;  %v7410_v51 = vsel %vm598_vm6, %v7409_v50, %v7408_v39  ;;  %v13814_v50 = vld [vmem:[#allocation29_spill] sm:$0xff] }
0x28f4   :  { %7365 = vrot.lane.b32.xlu0 %v12597_v60, %s9833_s13  ;;  %7255 = vrot.lane.b32.xlu1 %v9543_v9, %s9832_s11  ;;  %v9553_v23 = vpop.eup %9552 }
0x28f7   :  { %v9555_v9 = vpop.eup %9554 }
0x28f8   :  { %7251 = vrot.lane.b32.xlu0 %v9545_v30, %s9832_s11  ;;  %7373 = vrot.lane.b32.xlu1 %v7360_v20, %s9833_s13  ;;  %v7411_v20 = vrot.slane %v7230_v7, 4  ;;  %v7361_v30 = vrot.slane %v12597_v60, 5 }
0x28fa   :  { %v7412_v41 = vsel %vm601_vm7, %v7411_v20, %v7410_v51  ;;  %v9557_v11 = vpop.eup %9556  ;;  %v13816_v51 = vrot.slane %v13814_v50, 2 }
0x28fc   :  { %7249 = vrot.lane.b32.xlu0 %v9547_v48, %s9832_s11  ;;  %7259 = vrot.lane.b32.xlu1 %v9549_v52, %s9832_s11  ;;  %v7362_v48 = vrot.slane %v12597_v60, 6  ;;  %v7413_v52 = vrot.slane %v7231_v8, 3  ;;  %v8657_v60 = vld [vmem:[%s13508_s4] sm:$0xff]  }
0x28fd   :  { %8580 = vmatpush3.bf16.msra.mxu0 %v8657_v60  ;;  %v13817_v60 = vrot.slane %v13814_v50, 4 }
0x28fe   :  { %v7414_v7 = vsel %vm604_vm8, %v7413_v52, %v7412_v41 }
0x28ff   :  { %v7416_v13 = vsel %vm13676_vm9, %v7415_v44, %v7414_v7 }
0x2900   :  { %7257 = vrot.lane.b32.xlu0 %v9551_v17, %s9832_s11  ;;  %7261 = vrot.lane.b32.xlu1 %v9553_v23, %s9832_s11 }
0x2904   :  { %7371 = vrot.lane.b32.xlu0 %v7359_v1, %s9833_s13  ;;  %7263 = vrot.lane.b32.xlu1 %v9555_v9, %s9832_s11  ;;  %v13815_v1 = vrot.slane %v13814_v50, 1 }
0x2908   :  { %7375 = vrot.lane.b32.xlu0 %v7361_v30, %s9833_s13  ;;  %7377 = vrot.lane.b32.xlu1 %v7362_v48, %s9833_s13 }
0x290c   :  { %7417 = vrot.lane.b32.xlu1 %v7416_v13, %s9836_s10 }
0x2910   :  { %3864 = vrot.lane.b32.xlu1 %v9557_v11, %s9830_s5 }
0x295e   :  { %v7370_v49 = vpop.permute.xlu1 %7369  ;;  %v7364_v8 = vpop.permute.xlu0 %7363 }
0x2962   :  { %v7254_v56 = vpop.permute.xlu1 %7253  ;;  %v7368_v17 = vpop.permute.xlu0 %7367 }
0x2963   :  { %v7275_v23 = vmul.f32 %v12570_v0, %v7254_v56 }
0x2965   :  { %v12649_v9 = vmul.f32 %v7275_v23, %v13815_v1 }
0x2966   :  { %v7256_v27 = vpop.permute.xlu1 %7255  ;;  %v7366_v25 = vpop.permute.xlu0 %7365 }
0x2967   :  { %v7276_v59 = vmul.f32 %v12566_v29, %v7256_v27  ;;  %v7389_v0 = vadd.f32 %v7368_v17, %v12649_v9 }
0x2969   :  { %v12653_v30 = vmul.f32 %v7276_v59, %v13816_v51  ;;  %v7425_v27 = vpack.c.bf16 %v7389_v0, %v7389_v0 }
0x296a   :  { %v7374_v39 = vpop.permute.xlu1 %7373  ;;  %v7252_v20 = vpop.permute.xlu0 %7251 }
0x296b   :  { %v7274_v48 = vmul.f32 %v12559_v36, %v7252_v20  ;;  %v7390_v29 = vadd.f32 %v7370_v49, %v12653_v30  ;;  %v13819_v36 = vrot.slane %v13814_v50, 7 }
0x296d   :  { %v12657_v44 = vmul.f32 %v7274_v48, %v13814_v50  ;;  %v7426_v1 = vpack.c.bf16 %v7390_v29, %v7390_v29 }
0x296e   :  { %v7260_v41 = vpop.permute.xlu1 %7259  ;;  %v7250_v52 = vpop.permute.xlu0 %7249 }
0x296f   :  { %v7278_v7 = vmul.f32 %v12582_v16, %v7260_v41  ;;  %v7273_v13 = vmul.f32 %v12563_v53, %v7250_v52  ;;  %v7388_v11 = vadd.f32 %v7366_v25, %v12657_v44  ;;  %v3739_v16 = vrot.slane %v11584_v63, 3 }
0x2970   :  { %v7443_v41 = vunpack.c.l.b16 %v7425_v27  ;;  %v7444_v29 = vunpack.c.l.b16 %v7426_v1  ;;  %v3738_v1 = vrot.slane %v11584_v63, 2 }
0x2971   :  { %v12666_v56 = vmul.f32 %v7278_v7, %v13817_v60  ;;  %v12670_v23 = vmul.f32 %v7273_v13, %v13819_v36  ;;  %v7424_v20 = vpack.c.bf16 %v7388_v11, %v7388_v11  ;;  %v13820_v7 = vrot.slane %v13814_v50, 3 }
0x2972   :  { %v7262_v17 = vpop.permute.xlu1 %7261  ;;  %v7258_v59 = vpop.permute.xlu0 %7257  ;;  %v12683_v36 = vadd.f32 %v3739_v16, %v9988_v38 }
0x2973   :  { %13818 = vst [vmem:[#allocation28_spill] sm:$0xff] %v12666_v56  ;;  %v7387_v49 = vadd.f32 %v7364_v8, %v12670_v23  ;;  %v7392_v53 = vadd.f32 %v7374_v39, %v12666_v56  ;;  %v7277_v25 = vmul.f32 %v12574_v58, %v7258_v59  ;;  %v7279_v48 = vmul.f32 %v12578_v26, %v7262_v17 }
0x2974   :  { %v7442_v11 = vunpack.c.l.b16 %v7424_v20  ;;  %v13822_v26 = vrot.slane %v13814_v50, 6  ;;  %v13823_v17 = vrot.slane %v13814_v50, 5  ;;  %9558 = vtanh.f32 %v12683_v36 }
0x2975   :  { %v7423_v51 = vpack.c.bf16 %v7387_v49, %v7387_v49  ;;  %v12679_v0 = vmul.f32 %v7277_v25, %v13820_v7  ;;  %v7428_v39 = vpack.c.bf16 %v7392_v53, %v7392_v53  ;;  %v7451_v25 = vrot.slane %v7443_v41, 7 }
0x2976   :  { %v7264_v52 = vpop.permute.xlu1 %7263  ;;  %v7372_v13 = vpop.permute.xlu0 %7371  ;;  %v12692_v49 = vmul.f32 %v7279_v48, %v13823_v17 }
0x2977   :  { %13821 = vst [vmem:[#allocation29_spill] sm:$0xff] %v12679_v0  ;;  %v7441_v60 = vunpack.c.l.b16 %v7423_v51  ;;  %v7280_v8 = vmul.f32 %v12587_v37, %v7264_v52  ;;  %v7391_v58 = vadd.f32 %v7372_v13, %v12679_v0  ;;  %v3741_v37 = vrot.slane %v11584_v63, 5 }
0x2978   :  { %v7453_v52 = vrot.slane %v7444_v29, 6 }
0x2979   :  { %v7449_v59 = vrot.slane %v7441_v60, 1  ;;  %v12688_v27 = vmul.f32 %v7280_v8, %v13822_v26  ;;  %v7427_v16 = vpack.c.bf16 %v7391_v58, %v7391_v58  ;;  %v7446_v60 = vunpack.c.l.b16 %v7428_v39 }
0x297a   :  { %v7378_v51 = vpop.permute.xlu1 %7377  ;;  %v7376_v53 = vpop.permute.xlu0 %7375  ;;  %v3753_v58 = vadd.f32 %v3738_v1, %v9983_v33  ;;  %v12707_v39 = vadd.f32 %v3741_v37, %v9992_v42 }
0x297b   :  { %v7450_v20 = vsel %vm589_vm3, %v7442_v11, %v7449_v59  ;;  %v7394_v7 = vadd.f32 %v7378_v51, %v12688_v27  ;;  %v7393_v13 = vadd.f32 %v7376_v53, %v12692_v49  ;;  %v7445_v8 = vunpack.c.l.b16 %v7427_v16 }
0x297c   :  { %v7452_v48 = vsel %vm592_vm4, %v7451_v25, %v7450_v20  ;;  %v7421_v59 = vmul.f32 %v12538_v10, %v13813_v55  ;;  %v7457_v25 = vrot.slane %v7446_v60, 4  ;;  %9560 = vtanh.f32 %v3753_v58 }
0x297d   :  { %v7454_v26 = vsel %vm595_vm5, %v7453_v52, %v7452_v48  ;;  %v7430_v17 = vpack.c.bf16 %v7394_v7, %v7394_v7  ;;  %v7429_v41 = vpack.c.bf16 %v7393_v13, %v7393_v13  ;;  %v7455_v0 = vrot.slane %v7445_v8, 5  ;;  %v13824_v48 = vld [vmem:[#allocation73_spill] sm:$0xff] }
0x297e   :  { %v7418_v29 = vpop.permute.xlu1 %7417  ;;  %v3740_v7 = vrot.slane %v11584_v63, 4  ;;  %v3743_v10 = vrot.slane %v11584_v63, 7  ;;  %9562 = vtanh.f32 %v12707_v39  ;;  %v3742_v8 = vrot.slane %v11584_v63, 6 }
0x297f   :  { %v7448_v56 = vunpack.c.l.b16 %v7430_v17  ;;  %v7447_v11 = vunpack.c.l.b16 %v7429_v41  ;;  %v7420_v51 = vmul.f32 %v7418_v29, %v13814_v50  ;;  %v7456_v16 = vsel %vm598_vm6, %v7455_v0, %v7454_v26  ;;  %v9559_v0 = vpop.eup %9558 }
0x2980   :  { %v7458_v1 = vsel %vm601_vm7, %v7457_v25, %v7456_v16  ;;  %v3758_v37 = vadd.f32 %v3743_v10, %v9995_v46  ;;  %v3757_v41 = vadd.f32 %v3742_v8, %v9978_v28  ;;  %v3759_v25 = vadd.f32 %v11584_v63, %v9981_v32 }
0x2981   :  { %v7461_v53 = vrot.slane %v7448_v56, 2  ;;  %v7459_v52 = vrot.slane %v7447_v11, 3  ;;  %v7422_v20 = vadd.f32 %v7421_v59, %v7420_v51  ;;  %v3755_v56 = vadd.f32 %v3740_v7, %v9974_v22 }
0x2982   :  { %v8339_v63 = vmul.f32 -1.442695, %v12625_v54  ;;  %v8340_v10 = vmul.f32 -1.442695, %v3753_v58  ;;  %v8344_v8 = vmul.f32 -1.442695, %v3757_v41 }
0x2983   :  { %v7460_v13 = vsel %vm604_vm8, %v7459_v52, %v7458_v1  ;;  %7619 = vrot.lane.b32.xlu1 %v7422_v20, %s9834_s3  ;;  %v7613_v60 = vrot.slane %v7422_v20, 2  ;;  %9564 = vtanh.f32 %v3755_v56  ;;  %v7615_v29 = vrot.slane %v7422_v20, 4 }
0x2984   :  { %v7462_v55 = vsel %vm13676_vm9, %v7461_v53, %v7460_v13  ;;  %9566 = vtanh.f32 %v3758_v37  ;;  %v7612_v11 = vrot.slane %v7422_v20, 1  ;;  %v7617_v16 = vrot.slane %v7422_v20, 6 }
0x2985   :  { %v7463_v50 = vpack.c.b16 %v7462_v55, %v7462_v55  ;;  %9568 = vtanh.f32 %v3757_v41  ;;  %v7614_v53 = vrot.slane %v7422_v20, 3  ;;  %v7616_v1 = vrot.slane %v7422_v20, 5 }
0x2986   :  { %v9561_v26 = vpop.eup %9560  ;;  %9570 = vtanh.f32 %v3759_v25  ;;  %v7618_v13 = vrot.slane %v7422_v20, 7  ;;  %v8341_v55 = vmul.f32 -1.442695, %v12683_v36  ;;  %v8345_v36 = vmul.f32 -1.442695, %v3758_v37 }
0x2987   :  { %3868 = vrot.lane.b32.xlu1 %v9559_v0, %s9830_s5  ;;  %7464 = vrot.lane.b32.xlu0 %v7463_v50, %s9831_s1  ;;  %9572 = vpow2.f32 %v8339_v63  ;;  %v8342_v50 = vmul.f32 -1.442695, %v3755_v56  ;;  %vm541_vm9 = vcmask 122880  }
0x2988   :  { %v9563_v17 = vpop.eup %9562  ;;  %9574 = vpow2.f32 %v8340_v10 }
0x2989   :  { %9576 = vpow2.f32 %v8341_v55 }
0x298a   :  { %9578 = vpow2.f32 %v8342_v50 }
0x298b   :  { %7623 = vrot.lane.b32.xlu1 %v7613_v60, %s9834_s3  ;;  %3638 = vrot.lane.b32.xlu0 %v13824_v48, %s9833_s13  ;;  %v8343_v48 = vmul.f32 -1.442695, %v12707_v39 }
0x298d   :  { %v9565_v59 = vpop.eup %9564  ;;  %9580 = vpow2.f32 %v8343_v48 }
0x298e   :  { %v9567_v51 = vpop.eup %9566  ;;  %9582 = vpow2.f32 %v8344_v8 }
0x298f   :  { %3872 = vrot.lane.b32.xlu1 %v9563_v17, %s9830_s5  ;;  %3866 = vrot.lane.b32.xlu0 %v9561_v26, %s9830_s5  ;;  %v9569_v52 = vpop.eup %9568  ;;  %v3865_v26 = vpop.permute.xlu1 %3864 }
0x2990   :  { %v9571_v7 = vpop.eup %9570 }
0x2991   :  { %v9573_v0 = vpop.eup %9572 }
0x2992   :  { %v9575_v60 = vpop.eup %9574  ;;  %v3784_v20 = vadd.f32 1.0, %v9573_v0 }
0x2993   :  { %7627 = vrot.lane.b32.xlu1 %v7615_v29, %s9834_s3  ;;  %7621 = vrot.lane.b32.xlu0 %v7612_v11, %s9834_s3  ;;  %v9577_v29 = vpop.eup %9576  ;;  %v3785_v54 = vadd.f32 1.0, %v9575_v60  ;;  %v8346_v11 = vmul.f32 -1.442695, %v3759_v25 }
0x2994   :  { %v9579_v58 = vpop.eup %9578  ;;  %9584 = vrcp.f32 %v3784_v20 }
0x2995   :  { %9586 = vrcp.f32 %v3785_v54 }
0x2996   :  { %9588 = vpow2.f32 %v8346_v11 }
0x2997   :  { %3876 = vrot.lane.b32.xlu1 %v9567_v51, %s9830_s5  ;;  %3870 = vrot.lane.b32.xlu0 %v9565_v59, %s9830_s5  ;;  %v3786_v51 = vadd.f32 1.0, %v9577_v29  ;;  %9590 = vpow2.f32 %v8345_v36 }
0x2999   :  { %9592 = vrcp.f32 %v3786_v51 }
0x299b   :  { %7631 = vrot.lane.b32.xlu1 %v7617_v16, %s9834_s3  ;;  %7625 = vrot.lane.b32.xlu0 %v7614_v53, %s9834_s3  ;;  %v13825_v16 = vld [vmem:[#allocation72_spill] sm:$0xff]  ;;  %v3787_v53 = vadd.f32 1.0, %v9579_v58 }
0x299c   :  { %v3642_v39 = vmul.f32 %v11356_v35, %v13825_v16  ;;  %v9581_v35 = vpop.eup %9580 }
0x299d   :  { %9594 = vrcp.f32 %v3787_v53  ;;  %v9583_v10 = vpop.eup %9582 }
0x299e   :  { %v12753_v55 = vpop.eup %9584  ;;  %v3789_v54 = vadd.f32 1.0, %v9583_v10 }
0x299f   :  { %3874 = vrot.lane.b32.xlu0 %v9569_v52, %s9830_s5  ;;  %v12757_v50 = vpop.eup %9586  ;;  %v3888_v8 = vmul.f32 %v12753_v55, %v3865_v26 }
0x29a0   :  { %v9589_v48 = vpop.eup %9588 }
0x29a1   :  { %v9591_v29 = vpop.eup %9590 }
0x29a3   :  { %7629 = vrot.lane.b32.xlu0 %v7616_v1, %s9834_s3  ;;  %v12763_v58 = vpop.eup %9592 }
0x29a7   :  { %3878 = vrot.lane.b32.xlu0 %v9571_v7, %s9830_s5  ;;  %v12767_v11 = vpop.eup %9594 }
0x29ab   :  { %7633 = vrot.lane.b32.xlu0 %v7618_v13, %s9834_s3 }
0x29f5   :  { %v12744_v56 = vpop.permute.xlu1 %7619 }
0x29f9   :  { %v7465_v17 = vpop.permute.xlu0 %7464  ;;  %v3869_v37 = vpop.permute.xlu1 %3868 }
0x29fa   :  { %8582 = vmatmul.mubr.msk.bf16.vlgmr.msra.gmra.mrb[36].mxu0 %vm222_vm10, %v7465_v17  ;;  %v3788_v17 = vadd.f32 1.0, %v9581_v35  ;;  %v3890_v51 = vmul.f32 %v12763_v58, %v3869_v37 }
0x29fc   :  { %9596 = vrcp.f32 %v3788_v17 }
0x29fd   :  { %v3639_v59 = vpop.permute.xlu0 %3638  ;;  %v12759_v0 = vpop.permute.xlu1 %7623  ;;  %9598 = vrcp.f32 %v3789_v54 }
0x29fe   :  { %v3641_v41 = vmul.f32 %v3639_v59, %v11424_v14  ;;  %v3791_v59 = vadd.f32 1.0, %v9589_v48 }
0x2a00   :  { %v3643_v52 = vadd.f32 %v3642_v39, %v3641_v41  ;;  %v3790_v39 = vadd.f32 1.0, %v9591_v29  ;;  %9600 = vrcp.f32 %v3791_v59 }
0x2a01   :  { %v3867_v1 = vpop.permute.xlu0 %3866  ;;  %v3873_v16 = vpop.permute.xlu1 %3872 }
0x2a02   :  { %v3818_v25 = vrot.slane %v3643_v52, 2  ;;  %v3817_v7 = vrot.slane %v3643_v52, 1  ;;  %v3820_v63 = vrot.slane %v3643_v52, 4  ;;  %v3819_v14 = vrot.slane %v3643_v52, 3 }
0x2a03   :  { %v3889_v20 = vmul.f32 %v12757_v50, %v3867_v1  ;;  %v3821_v53 = vrot.slane %v3643_v52, 5  ;;  %v3822_v1 = vrot.slane %v3643_v52, 6  ;;  %9602 = vrcp.f32 %v3790_v39 }
0x2a04   :  { %3826 = vrot.lane.b32.xlu0 %v3818_v25, %s9831_s1  ;;  %3824 = vrot.lane.b32.xlu1 %v3817_v7, %s9831_s1  ;;  %v3823_v37 = vrot.slane %v3643_v52, 7 }
0x2a05   :  { %v12751_v13 = vpop.permute.xlu0 %7621  ;;  %v12777_v25 = vpop.permute.xlu1 %7627 }
0x2a06   :  { %v12781_v35 = vpop.eup %9596 }
0x2a08   :  { %3830 = vrot.lane.b32.xlu0 %v3820_v63, %s9831_s1  ;;  %3828 = vrot.lane.b32.xlu1 %v3819_v14, %s9831_s1  ;;  %v12785_v63 = vpop.eup %9598  ;;  %v3892_v14 = vmul.f32 %v12781_v35, %v3873_v16 }
0x2a09   :  { %v3871_v60 = vpop.permute.xlu0 %3870 }
0x2a0a   :  { %v3891_v26 = vmul.f32 %v12767_v11, %v3871_v60  ;;  %v3877_v60 = vpop.permute.xlu1 %3876 }
0x2a0c   :  { %3904 = vrot.lane.b32.xlu1 %v3888_v8, %s9831_s1  ;;  %3906 = vrot.lane.b32.xlu0 %v3889_v20, %s9831_s1  ;;  %v12789_v8 = vpop.eup %9600 }
0x2a0d   :  { %v12769_v36 = vpop.permute.xlu0 %7625  ;;  %v12793_v17 = vpop.eup %9602 }
0x2a0e   :  { %v3894_v20 = vmul.f32 %v12793_v17, %v3877_v60  ;;  %v12799_v29 = vpop.permute.xlu1 %7631 }
0x2a10   :  { %3908 = vrot.lane.b32.xlu1 %v3890_v51, %s9831_s1  ;;  %3910 = vrot.lane.b32.xlu0 %v3891_v26, %s9831_s1 }
0x2a11   :  { %v3875_v41 = vpop.permute.xlu0 %3874 }
0x2a12   :  { %v3893_v10 = vmul.f32 %v12785_v63, %v3875_v41 }
0x2a14   :  { %3832 = vrot.lane.b32.xlu1 %v3821_v53, %s9831_s1  ;;  %3834 = vrot.lane.b32.xlu0 %v3822_v1, %s9831_s1 }
0x2a15   :  { %v12779_v7 = vpop.permute.xlu0 %7629 }
0x2a18   :  { %3836 = vrot.lane.b32.xlu1 %v3823_v37, %s9831_s1  ;;  %3838 = vrot.lane.b32.xlu0 %v3643_v52, %s9831_s1 }
0x2a19   :  { %v3879_v48 = vpop.permute.xlu0 %3878 }
0x2a1a   :  { %v3895_v52 = vmul.f32 %v12789_v8, %v3879_v48 }
0x2a1c   :  { %3912 = vrot.lane.b32.xlu1 %v3892_v14, %s9831_s1  ;;  %3914 = vrot.lane.b32.xlu0 %v3893_v10, %s9831_s1 }
0x2a1d   :  { %v12801_v54 = vpop.permute.xlu0 %7633 }
0x2a1e   :  { %13826 = vst [vmem:[#allocation73_spill] sm:$0xff] %v12801_v54 }
0x2a20   :  { %3916 = vrot.lane.b32.xlu1 %v3894_v20, %s9831_s1  ;;  %3918 = vrot.lane.b32.xlu0 %v3895_v52, %s9831_s1 }
0x2a76   :  { %v3825_v59 = vpop.permute.xlu1 %3824  ;;  %v3827_v51 = vpop.permute.xlu0 %3826 }
0x2a77   :  { %v3848_v39 = vmul.f32 %v12753_v55, %v3825_v59  ;;  %v3849_v41 = vmul.f32 %v12757_v50, %v3827_v51 }
0x2a7a   :  { %v3829_v26 = vpop.permute.xlu1 %3828  ;;  %v3831_v16 = vpop.permute.xlu0 %3830 }
0x2a7b   :  { %v3850_v20 = vmul.f32 %v12763_v58, %v3829_v26 }
0x2a7e   :  { %v3905_v53 = vpop.permute.xlu1 %3904  ;;  %v3907_v1 = vpop.permute.xlu0 %3906 }
0x2a7f   :  { %v3928_v37 = vadd.f32 %v3905_v53, %v3848_v39  ;;  %v3929_v14 = vadd.f32 %v3907_v1, %v3849_v41  ;;  %v3851_v39 = vmul.f32 %v12767_v11, %v3831_v16 }
0x2a81   :  { %9604 = vtanh.f32 %v3928_v37 }
0x2a82   :  { %9606 = vtanh.f32 %v3929_v14  ;;  %v3909_v48 = vpop.permute.xlu1 %3908  ;;  %v3911_v54 = vpop.permute.xlu0 %3910 }
0x2a83   :  { %v3930_v41 = vadd.f32 %v3909_v48, %v3850_v20  ;;  %v3931_v14 = vadd.f32 %v3911_v54, %v3851_v39 }
0x2a85   :  { %9608 = vtanh.f32 %v3930_v41 }
0x2a86   :  { %9610 = vtanh.f32 %v3931_v14 }
0x2a8b   :  { %v9605_v10 = vpop.eup %9604 }
0x2a8c   :  { %v9607_v60 = vpop.eup %9606  ;;  %3952 = vrot.lane.b32.xlu1 %v9605_v10, %s9832_s11 }
0x2a8d   :  { %3954 = vrot.lane.b32.xlu0 %v9607_v60, %s9832_s11 }
0x2a8f   :  { %v9609_v54 = vpop.eup %9608 }
0x2a90   :  { %v9611_v20 = vpop.eup %9610 }
0x2acd   :  { %v7509_v52 = vpop.f32.mrb[36].mxu0 }
0x2ace   :  { %v8583_v59 = vpop.f32.mrb[37].mxu0  ;;  %7523 = vrot.lane.b32.xlu1 %v7509_v52, %s9824_s21  ;;  %v7516_v51 = vrot.slane %v7509_v52, 1  ;;  %v7517_v37 = vrot.slane %v7509_v52, 2  ;;  %v7518_v10 = vrot.slane %v7509_v52, 3  ;;  %v7519_v26 = vrot.slane %v7509_v52, 4 }
0x2acf   :  { %v7512_v53 = vpop.f32.mrb[38].mxu0  ;;  %v7520_v60 = vrot.slane %v7509_v52, 5  ;;  %v7521_v16 = vrot.slane %v7509_v52, 6  ;;  %v7522_v48 = vrot.slane %v7509_v52, 7 }
0x2ad0   :  { %v8584_v1 = vpop.f32.mrb[39].mxu0  ;;  %7525 = vrot.lane.b32.xlu0 %v7516_v51, %s9824_s21 }
0x2ad2   :  { %7527 = vrot.lane.b32.xlu1 %v7517_v37, %s9824_s21 }
0x2ad4   :  { %7529 = vrot.lane.b32.xlu0 %v7518_v10, %s9824_s21 }
0x2ad6   :  { %7531 = vrot.lane.b32.xlu1 %v7519_v26, %s9824_s21 }
0x2ad8   :  { %7533 = vrot.lane.b32.xlu0 %v7520_v60, %s9824_s21 }
0x2ada   :  { %7535 = vrot.lane.b32.xlu1 %v7521_v16, %s9824_s21 }
0x2adc   :  { %7537 = vrot.lane.b32.xlu0 %v7522_v48, %s9824_s21 }
0x2ade   :  { %3956 = vrot.lane.b32.xlu1 %v9609_v54, %s9832_s11 }
0x2ae0   :  { %3958 = vrot.lane.b32.xlu0 %v9611_v20, %s9832_s11 }
0x2ae2   :  { %4347 = vrot.lane.b32.xlu1 %v11502_v5, %s9831_s1  ;;  %v13828_v5 = vld [vmem:[#allocation97_spill] sm:$0xff] }
0x2ae4   :  { %4349 = vrot.lane.b32.xlu0 %v11494_v62, %s9831_s1  ;;  %v13827_v62 = vld [vmem:[#allocation95_spill] sm:$0xff] }
0x2ae6   :  { %4807 = vrot.lane.b32.xlu1 %v11713_v40, %s9831_s1  ;;  %v3833_v40 = vpop.permute.xlu1 %3832 }
0x2ae7   :  { %v3852_v54 = vmul.f32 %v12781_v35, %v3833_v40 }
0x2ae8   :  { %4809 = vrot.lane.b32.xlu0 %v11707_v19, %s9831_s1  ;;  %v13831_v19 = vld [vmem:[#allocation39_spill] sm:$0xff] }
0x2aea   :  { %5305 = vrot.lane.b32.xlu1 %v11898_v57, %s9831_s1 }
0x2aec   :  { %5307 = vrot.lane.b32.xlu0 %v11894_v61, %s9831_s1 }
0x2aee   :  { %5803 = vrot.lane.b32.xlu1 %v12079_v15, %s9831_s1 }
0x2af0   :  { %5805 = vrot.lane.b32.xlu0 %v12093_v12, %s9831_s1 }
0x2af2   :  { %6301 = vrot.lane.b32.xlu1 %v12274_v4, %s9831_s1 }
0x2af4   :  { %6303 = vrot.lane.b32.xlu0 %v12270_v3, %s9831_s1 }
0x2af6   :  { %6799 = vrot.lane.b32.xlu1 %v12454_v43, %s9831_s1 }
0x2af8   :  { %6801 = vrot.lane.b32.xlu0 %v12462_v31, %s9831_s1 }
0x2afa   :  { %7297 = vrot.lane.b32.xlu1 %v12670_v23, %s9831_s1 }
0x2afc   :  { %7299 = vrot.lane.b32.xlu0 %v12657_v44, %s9831_s1 }
0x2afe   :  { %4351 = vrot.lane.b32.xlu1 %v11514_v21, %s9831_s1  ;;  %v13829_v21 = vld [vmem:[#allocation101_spill] sm:$0xff] }
0x2b00   :  { %4353 = vrot.lane.b32.xlu0 %v11527_v2, %s9831_s1  ;;  %v13830_v2 = vld [vmem:[#allocation38_spill] sm:$0xff] }
0x2b02   :  { %4811 = vrot.lane.b32.xlu1 %v11725_v45, %s9831_s1  ;;  %v12871_v45 = vpop.permute.xlu1 %3836 }
0x2b04   :  { %4813 = vrot.lane.b32.xlu0 %v11719_v34, %s9831_s1  ;;  %v3835_v34 = vpop.permute.xlu0 %3834 }
0x2b05   :  { %v3853_v14 = vmul.f32 %v12785_v63, %v3835_v34  ;;  %v3854_v34 = vmul.f32 %v12793_v17, %v12871_v45 }
0x2b06   :  { %5309 = vrot.lane.b32.xlu1 %v11910_v24, %s9831_s1  ;;  %v3913_v57 = vpop.permute.xlu1 %3912 }
0x2b08   :  { %5311 = vrot.lane.b32.xlu0 %v11906_v6, %s9831_s1  ;;  %v3839_v61 = vpop.permute.xlu0 %3838 }
0x2b09   :  { %v3855_v16 = vmul.f32 %v12789_v8, %v3839_v61 }
0x2b0a   :  { %5807 = vrot.lane.b32.xlu1 %v13827_v62, %s9831_s1  ;;  %v12873_v24 = vpop.permute.xlu1 %3916 }
0x2b0b   :  { %v3934_v61 = vadd.f32 %v12873_v24, %v3854_v34  ;;  %v13842_v34 = vld [vmem:[#allocation102_spill] sm:$0xff] }
0x2b0c   :  { %5809 = vrot.lane.b32.xlu0 %v13828_v5, %s9831_s1  ;;  %v3915_v6 = vpop.permute.xlu0 %3914 }
0x2b0d   :  { %v3933_v26 = vadd.f32 %v3915_v6, %v3853_v14 }
0x2b0e   :  { %6305 = vrot.lane.b32.xlu1 %v12287_v47, %s9831_s1  ;;  %v12875_v12 = vpop.permute.xlu1 %3952 }
0x2b10   :  { %6307 = vrot.lane.b32.xlu0 %v13829_v21, %s9831_s1  ;;  %v3919_v15 = vpop.permute.xlu0 %3918  ;;  %v3932_v21 = vadd.f32 %v3913_v57, %v3852_v54 }
0x2b11   :  { %v3935_v62 = vadd.f32 %v3919_v15, %v3855_v16  ;;  %v13837_v16 = vld [vmem:[#allocation96_spill] sm:$0xff] }
0x2b12   :  { %6803 = vrot.lane.b32.xlu1 %v13830_v2, %s9831_s1 }
0x2b14   :  { %6805 = vrot.lane.b32.xlu0 %v13831_v19, %s9831_s1  ;;  %v12877_v3 = vpop.permute.xlu0 %3954 }
0x2b40   :  { %v7524_v4 = vpop.permute.xlu1 %7523 }
0x2b41   :  { %v12880_v47 = vadd.f32 %v7524_v4, %v9972_v18 }
0x2b42   :  { %v7526_v43 = vpop.permute.xlu0 %7525 }
0x2b43   :  { %9612 = vtanh.f32 %v12880_v47  ;;  %v12884_v31 = vadd.f32 %v7526_v43, %v9983_v33 }
0x2b44   :  { %v7528_v44 = vpop.permute.xlu1 %7527 }
0x2b45   :  { %v12887_v23 = vadd.f32 %v7528_v44, %v9988_v38  ;;  %9614 = vtanh.f32 %v12884_v31 }
0x2b46   :  { %v7530_v52 = vpop.permute.xlu0 %7529 }
0x2b47   :  { %v12891_v59 = vadd.f32 %v7530_v52, %v9974_v22  ;;  %9616 = vtanh.f32 %v12887_v23 }
0x2b48   :  { %v7532_v18 = vpop.permute.xlu1 %7531 }
0x2b49   :  { %v12895_v51 = vadd.f32 %v7532_v18, %v9992_v42  ;;  %9618 = vtanh.f32 %v12891_v59 }
0x2b4a   :  { %v7534_v33 = vpop.permute.xlu0 %7533 }
0x2b4b   :  { %v12899_v39 = vadd.f32 %v7534_v33, %v9978_v28  ;;  %9620 = vtanh.f32 %v12895_v51 }
0x2b4c   :  { %v7536_v38 = vpop.permute.xlu1 %7535 }
0x2b4d   :  { %v9613_v41 = vpop.eup %9612  ;;  %v12903_v53 = vadd.f32 %v7536_v38, %v9995_v46  ;;  %9622 = vtanh.f32 %v12899_v39 }
0x2b4e   :  { %7659 = vrot.lane.b32.xlu0 %v9613_v41, %s9830_s5  ;;  %v7538_v22 = vpop.permute.xlu0 %7537 }
0x2b4f   :  { %v9615_v42 = vpop.eup %9614  ;;  %9624 = vtanh.f32 %v12903_v53  ;;  %v12911_v28 = vadd.f32 %v7538_v22, %v9981_v32  ;;  %v13833_v22 = vld [vmem:[#allocation88_spill] sm:$0xff] }
0x2b50   :  { %v12908_v1 = vpop.permute.xlu1 %3956  ;;  %7661 = vrot.lane.b32.xlu1 %v9615_v42, %s9830_s5  ;;  %v13834_v42 = vld [vmem:[#allocation84_spill] sm:$0xff] }
0x2b51   :  { %v9617_v37 = vpop.eup %9616  ;;  %9626 = vtanh.f32 %v12911_v28 }
0x2b52   :  { %v12915_v46 = vpop.permute.xlu0 %3958  ;;  %7663 = vrot.lane.b32.xlu0 %v9617_v37, %s9830_s5  ;;  %9628 = vtanh.f32 %v3933_v26  ;;  %v13836_v26 = vld [vmem:[#allocation87_spill] sm:$0xff] }
0x2b53   :  { %v9619_v10 = vpop.eup %9618  ;;  %9630 = vtanh.f32 %v3935_v62  ;;  %v13839_v62 = vld [vmem:[#allocation103_spill] sm:$0xff] }
0x2b54   :  { %v4348_v60 = vpop.permute.xlu1 %4347  ;;  %7665 = vrot.lane.b32.xlu1 %v9619_v10, %s9830_s5  ;;  %9632 = vtanh.f32 %v3932_v21  ;;  %v13835_v10 = vld [vmem:[#allocation94_spill] sm:$0xff] }
0x2b55   :  { %4371 = vst.msk [vmem:[#allocation3] sm:$0x80] %vm4042_vm11, %v4348_v60  ;;  %v9621_v32 = vpop.eup %9620  ;;  %9634 = vtanh.f32 %v3934_v61 }
0x2b56   :  { %v4350_v48 = vpop.permute.xlu0 %4349  ;;  %7667 = vrot.lane.b32.xlu0 %v9621_v32, %s9830_s5 }
0x2b57   :  { %4372 = vst.msk [vmem:[#allocation3 + $0x8] sm:$0x80] %vm4042_vm11, %v4350_v48  ;;  %v9623_v20 = vpop.eup %9622  ;;  %v13838_v48 = vld [vmem:[#allocation92_spill] sm:$0xff] }
0x2b58   :  { %v4808_v5 = vpop.permute.xlu1 %4807  ;;  %7669 = vrot.lane.b32.xlu1 %v9623_v20, %s9830_s5 }
0x2b59   :  { %4831 = vst.msk [vmem:[#allocation3] sm:$0x40] %vm3537_vm12, %v4808_v5  ;;  %v9625_v2 = vpop.eup %9624  ;;  %v13840_v5 = vld [vmem:[#allocation98_spill] sm:$0xff] }
0x2b5a   :  { %v4810_v19 = vpop.permute.xlu0 %4809  ;;  %7671 = vrot.lane.b32.xlu0 %v9625_v2, %s9830_s5 }
0x2b5b   :  { %4832 = vst.msk [vmem:[#allocation3 + $0x8] sm:$0x40] %vm3537_vm12, %v4810_v19  ;;  %v9627_v6 = vpop.eup %9626  ;;  %v13841_v19 = vld [vmem:[#allocation106_spill] sm:$0xff] }
0x2b5c   :  { %v5306_v40 = vpop.permute.xlu1 %5305  ;;  %7673 = vrot.lane.b32.xlu1 %v9627_v6, %s9830_s5  ;;  %v9629_v15 = vpop.eup %9628  ;;  %v13844_v6 = vld [vmem:[#allocation107_spill] sm:$0xff] }
0x2b5d   :  { %5329 = vst.msk [vmem:[#allocation3] sm:$0x20] %vm3032_vm13, %v5306_v40 }
0x2b5e   :  { %v5308_v57 = vpop.permute.xlu0 %5307  ;;  %7303 = vrot.lane.b32.xlu0 %v12653_v30, %s9831_s1  ;;  %v9631_v30 = vpop.eup %9630 }
0x2b5f   :  { %5330 = vst.msk [vmem:[#allocation3 + $0x8] sm:$0x20] %vm3032_vm13, %v5308_v57  ;;  %v9633_v44 = vpop.eup %9632  ;;  %v13843_v57 = vld [vmem:[#allocation28_spill] sm:$0xff] }
0x2b60   :  { %v5804_v45 = vpop.permute.xlu1 %5803  ;;  %7301 = vrot.lane.b32.xlu1 %v12649_v9, %s9831_s1  ;;  %v9635_v33 = vpop.eup %9634  ;;  %v13832_v9 = vld [vmem:[#allocation83_spill] sm:$0xff] }
0x2b61   :  { %5827 = vst.msk [vmem:[#allocation3] sm:$0x10] %vm2527_vm14, %v5804_v45 }
0x2b62   :  { %v5806_v4 = vpop.permute.xlu0 %5805  ;;  %3962 = vrot.lane.b32.xlu0 %v9629_v15, %s9832_s11 }
0x2b63   :  { %5828 = vst.msk [vmem:[#allocation3 + $0x8] sm:$0x10] %vm2527_vm14, %v5806_v4  ;;  %v13845_v4 = vld [vmem:[#allocation85_spill] sm:$0xff] }
0x2b64   :  { %v6302_v24 = vpop.permute.xlu1 %6301  ;;  %3960 = vrot.lane.b32.xlu1 %v9633_v44, %s9832_s11  ;;  %v8419_v44 = vmul.f32 -1.442695, %v12884_v31  ;;  %v8425_v31 = vmul.f32 -1.442695, %v12911_v28 }
0x2b65   :  { %6325 = vst.msk [vmem:[#allocation3] sm:$0x8] %vm2022_vm15, %v6302_v24  ;;  %v13846_v24 = vld [vmem:[#allocation29_spill] sm:$0xff] }
0x2b66   :  { %v6304_v43 = vpop.permute.xlu0 %6303  ;;  %3966 = vrot.lane.b32.xlu0 %v9631_v30, %s9832_s11  ;;  %v13847_v30 = vld [vmem:[#allocation86_spill] sm:$0xff] }
0x2b67   :  { %6326 = vst.msk [vmem:[#allocation3 + $0x8] sm:$0x8] %vm2022_vm15, %v6304_v43  ;;  %v8418_v43 = vmul.f32 -1.442695, %v12880_v47 }
0x2b68   :  { %v6800_v52 = vpop.permute.xlu1 %6799  ;;  %3964 = vrot.lane.b32.xlu1 %v9635_v33, %s9832_s11  ;;  %v8422_v33 = vmul.f32 -1.442695, %v12895_v51 }
0x2b69   :  { %6823 = vst.msk [vmem:[#allocation3] sm:$0x4] %vm1517_vm0, %v6800_v52  ;;  %9636 = vpow2.f32 %v8418_v43  ;;  %v8420_v52 = vmul.f32 -1.442695, %v12887_v23 }
0x2b6a   :  { %v6802_v18 = vpop.permute.xlu0 %6801  ;;  %4357 = vrot.lane.b32.xlu0 %v13832_v9, %s9831_s1  ;;  %9638 = vpow2.f32 %v8419_v44  ;;  %v8423_v9 = vmul.f32 -1.442695, %v12899_v39 }
0x2b6b   :  { %6824 = vst.msk [vmem:[#allocation3 + $0x8] sm:$0x4] %vm1517_vm0, %v6802_v18  ;;  %v8421_v18 = vmul.f32 -1.442695, %v12891_v59  ;;  %9640 = vpow2.f32 %v8420_v52 }
0x2b6c   :  { %v7298_v38 = vpop.permute.xlu1 %7297  ;;  %4355 = vrot.lane.b32.xlu1 %v13834_v42, %s9831_s1 }
0x2b6d   :  { %7321 = vst.msk [vmem:[#allocation3] sm:$0x2] %vm1012_vm2, %v7298_v38  ;;  %9642 = vpow2.f32 %v8421_v18  ;;  %v8424_v38 = vmul.f32 -1.442695, %v12903_v53 }
0x2b6e   :  { %v7300_v41 = vpop.permute.xlu0 %7299  ;;  %4817 = vrot.lane.b32.xlu0 %v13833_v22, %s9831_s1  ;;  %9644 = vpow2.f32 %v8422_v33 }
0x2b6f   :  { %7322 = vst.msk [vmem:[#allocation3 + $0x8] sm:$0x2] %vm1012_vm2, %v7300_v41  ;;  %9646 = vpow2.f32 %v8423_v9 }
0x2b70   :  { %v4352_v37 = vpop.permute.xlu1 %4351  ;;  %4815 = vrot.lane.b32.xlu1 %v13836_v26, %s9831_s1  ;;  %9648 = vpow2.f32 %v8424_v38  ;;  %v13848_v38 = vld [vmem:[#allocation90_spill] sm:$0xff] }
0x2b71   :  { %4373 = vst.msk [vmem:[#allocation3 + $0x10] sm:$0x80] %vm4042_vm11, %v4352_v37 }
0x2b72   :  { %v4354_v14 = vpop.permute.xlu0 %4353  ;;  %5315 = vrot.lane.b32.xlu0 %v13835_v10, %s9831_s1 }
0x2b73   :  { %4374 = vst.msk [vmem:[#allocation3 + $0x18] sm:$0x80] %vm4042_vm11, %v4354_v14  ;;  %v9637_v41 = vpop.eup %9636 }
0x2b74   :  { %v4812_v60 = vpop.permute.xlu1 %4811  ;;  %5313 = vrot.lane.b32.xlu1 %v13838_v48, %s9831_s1  ;;  %v9639_v47 = vpop.eup %9638  ;;  %v7579_v22 = vadd.f32 1.0, %v9637_v41 }
0x2b75   :  { %4833 = vst.msk [vmem:[#allocation3 + $0x10] sm:$0x40] %vm3537_vm12, %v4812_v60  ;;  %v9641_v23 = vpop.eup %9640  ;;  %v7580_v42 = vadd.f32 1.0, %v9639_v47 }
0x2b76   :  { %v4814_v32 = vpop.permute.xlu0 %4813  ;;  %5813 = vrot.lane.b32.xlu0 %v13837_v16, %s9831_s1  ;;  %9650 = vrcp.f32 %v7579_v22  ;;  %v7581_v59 = vadd.f32 1.0, %v9641_v23  ;;  %v13849_v22 = vld [vmem:[#allocation91_spill] sm:$0xff] }
0x2b77   :  { %4834 = vst.msk [vmem:[#allocation3 + $0x18] sm:$0x40] %vm3537_vm12, %v4814_v32  ;;  %v9643_v37 = vpop.eup %9642  ;;  %9652 = vpow2.f32 %v8425_v31  ;;  %v13850_v31 = vld [vmem:[#allocation89_spill] sm:$0xff] }
0x2b78   :  { %v5310_v54 = vpop.permute.xlu1 %5309  ;;  %5811 = vrot.lane.b32.xlu1 %v13840_v5, %s9831_s1  ;;  %v9645_v51 = vpop.eup %9644  ;;  %9654 = vrcp.f32 %v7580_v42  ;;  %v7582_v14 = vadd.f32 1.0, %v9643_v37  ;;  %v13851_v37 = vld [vmem:[#allocation100_spill] sm:$0xff] }
0x2b79   :  { %5331 = vst.msk [vmem:[#allocation3 + $0x10] sm:$0x20] %vm3032_vm13, %v5310_v54  ;;  %v9647_v39 = vpop.eup %9646  ;;  %9656 = vrcp.f32 %v7581_v59  ;;  %v7583_v10 = vadd.f32 1.0, %v9645_v51  ;;  %v13852_v59 = vld [vmem:[#allocation93_spill] sm:$0xff] }
0x2b7a   :  { %v5312_v20 = vpop.permute.xlu0 %5311  ;;  %6311 = vrot.lane.b32.xlu0 %v13839_v62, %s9831_s1  ;;  %v9649_v53 = vpop.eup %9648  ;;  %9658 = vrcp.f32 %v7582_v14  ;;  %v7584_v26 = vadd.f32 1.0, %v9647_v39  ;;  %v13853_v39 = vld [vmem:[#allocation104_spill] sm:$0xff] }
0x2b7b   :  { %5332 = vst.msk [vmem:[#allocation3 + $0x18] sm:$0x20] %vm3032_vm13, %v5312_v20  ;;  %9660 = vrcp.f32 %v7583_v10  ;;  %v7585_v60 = vadd.f32 1.0, %v9649_v53  ;;  %v13854_v10 = vld [vmem:[#allocation99_spill] sm:$0xff] }
0x2b7c   :  { %v5808_v21 = vpop.permute.xlu1 %5807  ;;  %6309 = vrot.lane.b32.xlu1 %v13842_v34, %s9831_s1  ;;  %9662 = vrcp.f32 %v7584_v26 }
0x2b7d   :  { %5829 = vst.msk [vmem:[#allocation3 + $0x10] sm:$0x10] %vm2527_vm14, %v5808_v21  ;;  %9664 = vrcp.f32 %v7585_v60  ;;  %v13855_v60 = vld [vmem:[#allocation109_spill] sm:$0xff] }
0x2b7e   :  { %v5810_v2 = vpop.permute.xlu0 %5809  ;;  %6809 = vrot.lane.b32.xlu0 %v13841_v19, %s9831_s1 }
0x2b7f   :  { %5830 = vst.msk [vmem:[#allocation3 + $0x18] sm:$0x10] %vm2527_vm14, %v5810_v2 }
0x2b80   :  { %v6306_v40 = vpop.permute.xlu1 %6305  ;;  %6807 = vrot.lane.b32.xlu1 %v13844_v6, %s9831_s1  ;;  %v13003_v32 = vpop.eup %9650 }
0x2b81   :  { %6327 = vst.msk [vmem:[#allocation3 + $0x10] sm:$0x8] %vm2022_vm15, %v6306_v40  ;;  %v9653_v16 = vpop.eup %9652 }
0x2b82   :  { %v6308_v61 = vpop.permute.xlu0 %6307  ;;  %7307 = vrot.lane.b32.xlu0 %v13843_v57, %s9831_s1  ;;  %v13006_v54 = vpop.eup %9654  ;;  %v7586_v62 = vadd.f32 1.0, %v9653_v16 }
0x2b83   :  { %6328 = vst.msk [vmem:[#allocation3 + $0x18] sm:$0x8] %vm2022_vm15, %v6308_v61  ;;  %v13010_v21 = vpop.eup %9656 }
0x2b84   :  { %v6804_v45 = vpop.permute.xlu1 %6803  ;;  %7305 = vrot.lane.b32.xlu1 %v13846_v24, %s9831_s1  ;;  %v13014_v34 = vpop.eup %9658  ;;  %9666 = vrcp.f32 %v7586_v62 }
0x2b85   :  { %6825 = vst.msk [vmem:[#allocation3 + $0x10] sm:$0x4] %vm1517_vm0, %v6804_v45  ;;  %v13018_v57 = vpop.eup %9660 }
0x2b86   :  { %v6806_v15 = vpop.permute.xlu0 %6805  ;;  %4361 = vrot.lane.b32.xlu0 %v13845_v4, %s9831_s1 }
0x2b87   :  { %6826 = vst.msk [vmem:[#allocation3 + $0x18] sm:$0x4] %vm1517_vm0, %v6806_v15  ;;  %v13022_v15 = vpop.eup %9662 }
0x2b88   :  { %4359 = vrot.lane.b32.xlu1 %v13847_v30, %s9831_s1  ;;  %v13026_v30 = vpop.eup %9664 }
0x2b8e   :  { %v13031_v18 = vpop.eup %9666 }
0x2bc0   :  { %v7660_v28 = vpop.permute.xlu0 %7659 }
0x2bc1   :  { %v7683_v48 = vmul.f32 %v13003_v32, %v7660_v28  ;;  %v13856_v28 = vld [vmem:[#allocation105_spill] sm:$0xff] }
0x2bc2   :  { %v7662_v20 = vpop.permute.xlu1 %7661 }
0x2bc3   :  { %7699 = vrot.lane.b32.xlu1 %v7683_v48, %s9831_s1  ;;  %v7684_v5 = vmul.f32 %v13006_v54, %v7662_v20  ;;  %v13857_v20 = vld [vmem:[#allocation108_spill] sm:$0xff] }
0x2bc4   :  { %v7664_v2 = vpop.permute.xlu0 %7663 }
0x2bc5   :  { %v7685_v19 = vmul.f32 %v13010_v21, %v7664_v2  ;;  %7701 = vrot.lane.b32.xlu0 %v7684_v5, %s9831_s1  ;;  %v13858_v2 = vld [vmem:[#allocation20_spill] sm:$0xff] }
0x2bc6   :  { %v7666_v40 = vpop.permute.xlu1 %7665 }
0x2bc7   :  { %v7686_v61 = vmul.f32 %v13014_v34, %v7666_v40  ;;  %7703 = vrot.lane.b32.xlu1 %v7685_v19, %s9831_s1 }
0x2bc8   :  { %v7668_v6 = vpop.permute.xlu0 %7667 }
0x2bc9   :  { %v7687_v45 = vmul.f32 %v13018_v57, %v7668_v6  ;;  %7705 = vrot.lane.b32.xlu0 %v7686_v61, %s9831_s1  ;;  %v13860_v61 = vld [vmem:[#allocation21_spill] sm:$0xff] }
0x2bca   :  { %v7670_v4 = vpop.permute.xlu1 %7669 }
0x2bcb   :  { %v7688_v24 = vmul.f32 %v13022_v15, %v7670_v4  ;;  %7707 = vrot.lane.b32.xlu1 %v7687_v45, %s9831_s1  ;;  %v13862_v4 = vld [vmem:[#allocation32_spill] sm:$0xff] }
0x2bcc   :  { %v7672_v43 = vpop.permute.xlu0 %7671 }
0x2bcd   :  { %v7689_v44 = vmul.f32 %v13026_v30, %v7672_v43  ;;  %7709 = vrot.lane.b32.xlu0 %v7688_v24, %s9831_s1 }
0x2bce   :  { %v7674_v33 = vpop.permute.xlu1 %7673 }
0x2bcf   :  { %7711 = vrot.lane.b32.xlu1 %v7689_v44, %s9831_s1  ;;  %v7690_v9 = vmul.f32 %v13031_v18, %v7674_v33  ;;  %v13863_v44 = vld [vmem:[#allocation50_spill] sm:$0xff] }
0x2bd0   :  { %v7304_v52 = vpop.permute.xlu0 %7303 }
0x2bd1   :  { %7324 = vst.msk [vmem:[#allocation3 + $0x18] sm:$0x2] %vm1012_vm2, %v7304_v52  ;;  %7713 = vrot.lane.b32.xlu0 %v7690_v9, %s9831_s1  ;;  %v13864_v52 = vld [vmem:[#allocation42_spill] sm:$0xff] }
0x2bd2   :  { %v7302_v47 = vpop.permute.xlu1 %7301 }
0x2bd3   :  { %4819 = vrot.lane.b32.xlu1 %v13848_v38, %s9831_s1  ;;  %7323 = vst.msk [vmem:[#allocation3 + $0x10] sm:$0x2] %vm1012_vm2, %v7302_v47  ;;  %v13865_v38 = vld [vmem:[#allocation56_spill] sm:$0xff]  ;;  %v13866_v47 = vld [vmem:[#allocation49_spill] sm:$0xff] }
0x2bd4   :  { %v13038_v41 = vpop.permute.xlu0 %3962 }
0x2bd5   :  { %4821 = vrot.lane.b32.xlu0 %v13850_v31, %s9831_s1  ;;  %v13867_v31 = vld [vmem:[#allocation65_spill] sm:$0xff] }
0x2bd6   :  { %v13047_v42 = vpop.permute.xlu1 %3960 }
0x2bd7   :  { %5317 = vrot.lane.b32.xlu1 %v13849_v22, %s9831_s1 }
0x2bd8   :  { %v13045_v23 = vpop.permute.xlu0 %3966 }
0x2bd9   :  { %5319 = vrot.lane.b32.xlu0 %v13852_v59, %s9831_s1  ;;  %v3976_v59 = vmul.f32 %v12753_v55, %v12875_v12  ;;  %v7643_v12 = vmul.f32 %v13003_v32, %v12744_v56 }
0x2bda   :  { %v13053_v14 = vpop.permute.xlu1 %3964 }
0x2bdb   :  { %5815 = vrot.lane.b32.xlu1 %v13851_v37, %s9831_s1  ;;  %v13868_v37 = vld [vmem:[#allocation58_spill] sm:$0xff] }
0x2bdc   :  { %v4358_v51 = vpop.permute.xlu0 %4357 }
0x2bdd   :  { %4376 = vst.msk [vmem:[#allocation3 + $0x28] sm:$0x80] %vm4042_vm11, %v4358_v51  ;;  %5817 = vrot.lane.b32.xlu0 %v13854_v10, %s9831_s1  ;;  %v13869_v51 = vld [vmem:[#allocation75_spill] sm:$0xff]  ;;  %v13871_v10 = vld [vmem:[#allocation74_spill] sm:$0xff] }
0x2bde   :  { %v4356_v26 = vpop.permute.xlu1 %4355 }
0x2bdf   :  { %6313 = vrot.lane.b32.xlu1 %v13853_v39, %s9831_s1  ;;  %4375 = vst.msk [vmem:[#allocation3 + $0x20] sm:$0x80] %vm4042_vm11, %v4356_v26  ;;  %v13870_v39 = vld [vmem:[#allocation64_spill] sm:$0xff] }
0x2be0   :  { %v4818_v53 = vpop.permute.xlu0 %4817 }
0x2be1   :  { %4836 = vst.msk [vmem:[#allocation3 + $0x28] sm:$0x40] %vm3537_vm12, %v4818_v53  ;;  %6315 = vrot.lane.b32.xlu0 %v13856_v28, %s9831_s1  ;;  %v13872_v53 = vrot.slane %v13871_v10, 1  ;;  %v13873_v28 = vld [vmem:[#allocation77_spill] sm:$0xff] }
0x2be2   :  { %v4816_v48 = vpop.permute.xlu1 %4815 }
0x2be3   :  { %6811 = vrot.lane.b32.xlu1 %v13855_v60, %s9831_s1  ;;  %4835 = vst.msk [vmem:[#allocation3 + $0x20] sm:$0x40] %vm3537_vm12, %v4816_v48  ;;  %v4002_v26 = vmul.f32 %v13872_v53, %v3976_v59  ;;  %v3977_v60 = vmul.f32 %v12757_v50, %v12877_v3 }
0x2be4   :  { %v5316_v16 = vpop.permute.xlu0 %5315 }
0x2be5   :  { %5334 = vst.msk [vmem:[#allocation3 + $0x28] sm:$0x20] %vm3032_vm13, %v5316_v16  ;;  %6813 = vrot.lane.b32.xlu0 %v13857_v20, %s9831_s1  ;;  %v13874_v16 = vrot.slane %v13871_v10, 2 }
0x2be6   :  { %v5314_v5 = vpop.permute.xlu1 %5313 }
0x2be7   :  { %7309 = vrot.lane.b32.xlu1 %v12692_v49, %s9831_s1  ;;  %5333 = vst.msk [vmem:[#allocation3 + $0x20] sm:$0x20] %vm3032_vm13, %v5314_v5  ;;  %v13859_v49 = vld [vmem:[#allocation34_spill] sm:$0xff]  ;;  %v4003_v55 = vmul.f32 %v13874_v16, %v3977_v60  ;;  %v7645_v5 = vmul.f32 %v13010_v21, %v12759_v0 }
0x2be8   :  { %v5814_v62 = vpop.permute.xlu0 %5813 }
0x2be9   :  { %5832 = vst.msk [vmem:[#allocation3 + $0x28] sm:$0x10] %vm2527_vm14, %v5814_v62  ;;  %7311 = vrot.lane.b32.xlu0 %v12688_v27, %s9831_s1  ;;  %v13861_v27 = vld [vmem:[#allocation41_spill] sm:$0xff]  ;;  %v7644_v62 = vmul.f32 %v13006_v54, %v12751_v13 }
0x2bea   :  { %v5812_v40 = vpop.permute.xlu1 %5811 }
0x2beb   :  { %517 = vrot.lane.b32.xlu1 %v13858_v2, %s9834_s3  ;;  %5831 = vst.msk [vmem:[#allocation3 + $0x20] sm:$0x10] %vm2527_vm14, %v5812_v40  ;;  %v7646_v40 = vmul.f32 %v13014_v34, %v12769_v36 }
0x2bec   :  { %v6312_v19 = vpop.permute.xlu0 %6311 }
0x2bed   :  { %6330 = vst.msk [vmem:[#allocation3 + $0x28] sm:$0x8] %vm2022_vm15, %v6312_v19  ;;  %519 = vrot.lane.b32.xlu0 %v13860_v61, %s9834_s3  ;;  %v7647_v61 = vmul.f32 %v13018_v57, %v12777_v25  ;;  %v13875_v25 = vld [vmem:[#allocation73_spill] sm:$0xff] }
0x2bee   :  { %v6310_v45 = vpop.permute.xlu1 %6309 }
0x2bef   :  { %988 = vrot.lane.b32.xlu1 %v13859_v49, %s9834_s3  ;;  %6329 = vst.msk [vmem:[#allocation3 + $0x20] sm:$0x8] %vm2022_vm15, %v6310_v45  ;;  %v7648_v45 = vmul.f32 %v13022_v15, %v12779_v7 }
0x2bf0   :  { %v6810_v6 = vpop.permute.xlu0 %6809 }
0x2bf1   :  { %6828 = vst.msk [vmem:[#allocation3 + $0x28] sm:$0x4] %vm1517_vm0, %v6810_v6  ;;  %990 = vrot.lane.b32.xlu0 %v13862_v4, %s9834_s3  ;;  %v7649_v4 = vmul.f32 %v13026_v30, %v12799_v29 }
0x2bf2   :  { %v6808_v43 = vpop.permute.xlu1 %6807 }
0x2bf3   :  { %1493 = vrot.lane.b32.xlu1 %v13861_v27, %s9834_s3  ;;  %6827 = vst.msk [vmem:[#allocation3 + $0x20] sm:$0x4] %vm1517_vm0, %v6808_v43 }
0x2bf4   :  { %v7308_v24 = vpop.permute.xlu0 %7307 }
0x2bf5   :  { %7326 = vst.msk [vmem:[#allocation3 + $0x28] sm:$0x2] %vm1012_vm2, %v7308_v24  ;;  %1495 = vrot.lane.b32.xlu0 %v13864_v52, %s9834_s3  ;;  %v7650_v52 = vmul.f32 %v13031_v18, %v13875_v25  ;;  %v13889_v25 = vrot.slane %v13871_v10, 3 }
0x2bf6   :  { %v7306_v9 = vpop.permute.xlu1 %7305 }
0x2bf7   :  { %1998 = vrot.lane.b32.xlu1 %v13863_v44, %s9834_s3  ;;  %7325 = vst.msk [vmem:[#allocation3 + $0x20] sm:$0x2] %vm1012_vm2, %v7306_v9 }
0x2bf8   :  { %v4362_v33 = vpop.permute.xlu0 %4361 }
0x2bf9   :  { %4378 = vst.msk [vmem:[#allocation3 + $0x38] sm:$0x80] %vm4042_vm11, %v4362_v33  ;;  %2000 = vrot.lane.b32.xlu0 %v13866_v47, %s9834_s3 }
0x2bfa   :  { %v4360_v22 = vpop.permute.xlu1 %4359 }
0x2bfb   :  { %2503 = vrot.lane.b32.xlu1 %v13865_v38, %s9834_s3  ;;  %4377 = vst.msk [vmem:[#allocation3 + $0x30] sm:$0x80] %vm4042_vm11, %v4360_v22 }
0x2bfd   :  { %2505 = vrot.lane.b32.xlu0 %v13868_v37, %s9834_s3 }
0x2bff   :  { %3008 = vrot.lane.b32.xlu1 %v13867_v31, %s9834_s3 }
0x2c01   :  { %3010 = vrot.lane.b32.xlu0 %v13870_v39, %s9834_s3 }
0x2c03   :  { %3513 = vrot.lane.b32.xlu1 %v13869_v51, %s9834_s3 }
0x2c05   :  { %3515 = vrot.lane.b32.xlu0 %v13873_v28, %s9834_s3  ;;  %v13876_v28 = vld [vmem:[#allocation22_spill] sm:$0xff] }
0x2c07   :  { %4018 = vrot.lane.b32.xlu1 %v4002_v26, %s9834_s3 }
0x2c09   :  { %4020 = vrot.lane.b32.xlu0 %v4003_v55, %s9834_s3 }
0x2c35   :  { %v7700_v48 = vpop.permute.xlu1 %7699 }
0x2c36   :  { %v7723_v20 = vadd.f32 %v7700_v48, %v7643_v12  ;;  %v13877_v12 = vld [vmem:[#allocation30_spill] sm:$0xff]  ;;  %v13878_v48 = vld [vmem:[#allocation23_spill] sm:$0xff] }
0x2c37   :  { %v7702_v50 = vpop.permute.xlu0 %7701 }
0x2c38   :  { %9668 = vtanh.f32 %v7723_v20  ;;  %v7724_v3 = vadd.f32 %v7702_v50, %v7644_v62  ;;  %v13879_v50 = vld [vmem:[#allocation40_spill] sm:$0xff] }
0x2c39   :  { %v7704_v2 = vpop.permute.xlu1 %7703 }
0x2c3a   :  { %9670 = vtanh.f32 %v7724_v3  ;;  %v7725_v19 = vadd.f32 %v7704_v2, %v7645_v5  ;;  %v13880_v3 = vld [vmem:[#allocation31_spill] sm:$0xff] }
0x2c3b   :  { %v7706_v49 = vpop.permute.xlu0 %7705 }
0x2c3c   :  { %9672 = vtanh.f32 %v7725_v19  ;;  %v7726_v56 = vadd.f32 %v7706_v49, %v7646_v40  ;;  %v13881_v19 = vld [vmem:[#allocation52_spill] sm:$0xff]  ;;  %v13882_v40 = vld [vmem:[#allocation43_spill] sm:$0xff] }
0x2c3d   :  { %v7708_v6 = vpop.permute.xlu1 %7707 }
0x2c3e   :  { %9674 = vtanh.f32 %v7726_v56  ;;  %v7727_v13 = vadd.f32 %v7708_v6, %v7647_v61  ;;  %v13883_v61 = vld [vmem:[#allocation57_spill] sm:$0xff]  ;;  %v13884_v6 = vld [vmem:[#allocation48_spill] sm:$0xff] }
0x2c3f   :  { %v7710_v27 = vpop.permute.xlu0 %7709 }
0x2c40   :  { %9676 = vtanh.f32 %v7727_v13  ;;  %v7728_v0 = vadd.f32 %v7710_v27, %v7648_v45  ;;  %v13885_v27 = vld [vmem:[#allocation67_spill] sm:$0xff] }
0x2c41   :  { %v7712_v36 = vpop.permute.xlu1 %7711 }
0x2c42   :  { %v9669_v24 = vpop.eup %9668  ;;  %9678 = vtanh.f32 %v7728_v0  ;;  %v7729_v43 = vadd.f32 %v7712_v36, %v7649_v4  ;;  %v13886_v0 = vld [vmem:[#allocation60_spill] sm:$0xff]  ;;  %v3978_v4 = vmul.f32 %v12763_v58, %v12908_v1  ;;  %v13890_v1 = vld [vmem:[#allocation79_spill] sm:$0xff] }
0x2c43   :  { %7747 = vrot.lane.b32.xlu1 %v9669_v24, %s9832_s11  ;;  %v7714_v9 = vpop.permute.xlu0 %7713 }
0x2c44   :  { %v9671_v44 = vpop.eup %9670  ;;  %9680 = vtanh.f32 %v7729_v43  ;;  %v7730_v38 = vadd.f32 %v7714_v9, %v7650_v52  ;;  %v13887_v43 = vld [vmem:[#allocation76_spill] sm:$0xff]  ;;  %v4004_v52 = vmul.f32 %v13889_v25, %v3978_v4 }
0x2c45   :  { %v4820_v33 = vpop.permute.xlu1 %4819  ;;  %7749 = vrot.lane.b32.xlu0 %v9671_v44, %s9832_s11  ;;  %v13888_v44 = vld [vmem:[#allocation66_spill] sm:$0xff] }
0x2c46   :  { %v9673_v7 = vpop.eup %9672  ;;  %4837 = vst.msk [vmem:[#allocation3 + $0x30] sm:$0x40] %vm3537_vm12, %v4820_v33  ;;  %9682 = vtanh.f32 %v7730_v38  ;;  %v13891_v38 = vrot.slane %v13871_v10, 4 }
0x2c47   :  { %7751 = vrot.lane.b32.xlu1 %v9673_v7, %s9832_s11  ;;  %v4822_v31 = vpop.permute.xlu0 %4821  ;;  %v3979_v7 = vmul.f32 %v12767_v11, %v12915_v46  ;;  %v13892_v11 = vld [vmem:[#allocation24_spill] sm:$0xff] }
0x2c48   :  { %v9675_v29 = vpop.eup %9674  ;;  %4838 = vst.msk [vmem:[#allocation3 + $0x38] sm:$0x40] %vm3537_vm12, %v4822_v31  ;;  %v13893_v31 = vld [vmem:[#allocation35_spill] sm:$0xff] }
0x2c49   :  { %v5318_v47 = vpop.permute.xlu1 %5317  ;;  %7753 = vrot.lane.b32.xlu0 %v9675_v29, %s9832_s11  ;;  %v4005_v29 = vmul.f32 %v13891_v38, %v3979_v7 }
0x2c4a   :  { %v9677_v22 = vpop.eup %9676  ;;  %5335 = vst.msk [vmem:[#allocation3 + $0x30] sm:$0x20] %vm3032_vm13, %v5318_v47 }
0x2c4b   :  { %7755 = vrot.lane.b32.xlu1 %v9677_v22, %s9832_s11  ;;  %v5320_v39 = vpop.permute.xlu0 %5319 }
0x2c4c   :  { %v9679_v37 = vpop.eup %9678  ;;  %5336 = vst.msk [vmem:[#allocation3 + $0x38] sm:$0x20] %vm3032_vm13, %v5320_v39  ;;  %v13895_v39 = vld [vmem:[#allocation45_spill] sm:$0xff] }
0x2c4d   :  { %v5816_v59 = vpop.permute.xlu1 %5815  ;;  %7757 = vrot.lane.b32.xlu0 %v9679_v37, %s9832_s11  ;;  %v13894_v37 = vld [vmem:[#allocation25_spill] sm:$0xff] }
0x2c4e   :  { %v9681_v51 = vpop.eup %9680  ;;  %5833 = vst.msk [vmem:[#allocation3 + $0x30] sm:$0x10] %vm2527_vm14, %v5816_v59 }
0x2c4f   :  { %7759 = vrot.lane.b32.xlu1 %v9681_v51, %s9832_s11  ;;  %v5818_v26 = vpop.permute.xlu0 %5817 }
0x2c50   :  { %v9683_v60 = vpop.eup %9682  ;;  %5834 = vst.msk [vmem:[#allocation3 + $0x38] sm:$0x10] %vm2527_vm14, %v5818_v26 }
0x2c51   :  { %v6314_v53 = vpop.permute.xlu1 %6313  ;;  %7761 = vrot.lane.b32.xlu0 %v9683_v60, %s9832_s11  ;;  %v13897_v60 = vld [vmem:[#allocation44_spill] sm:$0xff] }
0x2c52   :  { %6331 = vst.msk [vmem:[#allocation3 + $0x30] sm:$0x8] %vm2022_vm15, %v6314_v53  ;;  %v13896_v53 = vld [vmem:[#allocation33_spill] sm:$0xff] }
0x2c53   :  { %521 = vrot.lane.b32.xlu1 %v13876_v28, %s9834_s3  ;;  %v6316_v55 = vpop.permute.xlu0 %6315 }
0x2c54   :  { %6332 = vst.msk [vmem:[#allocation3 + $0x38] sm:$0x8] %vm2022_vm15, %v6316_v55  ;;  %v13898_v55 = vld [vmem:[#allocation19_spill] sm:$0xff] }
0x2c55   :  { %v6812_v16 = vpop.permute.xlu1 %6811  ;;  %523 = vrot.lane.b32.xlu0 %v13878_v48, %s9834_s3 }
0x2c56   :  { %6829 = vst.msk [vmem:[#allocation3 + $0x30] sm:$0x4] %vm1517_vm0, %v6812_v16 }
0x2c57   :  { %992 = vrot.lane.b32.xlu1 %v13877_v12, %s9834_s3  ;;  %v6814_v62 = vpop.permute.xlu0 %6813 }
0x2c58   :  { %6830 = vst.msk [vmem:[#allocation3 + $0x38] sm:$0x4] %vm1517_vm0, %v6814_v62 }
0x2c59   :  { %v7310_v20 = vpop.permute.xlu1 %7309  ;;  %994 = vrot.lane.b32.xlu0 %v13880_v3, %s9834_s3 }
0x2c5a   :  { %7327 = vst.msk [vmem:[#allocation3 + $0x30] sm:$0x2] %vm1012_vm2, %v7310_v20 }
0x2c5b   :  { %1497 = vrot.lane.b32.xlu1 %v13879_v50, %s9834_s3  ;;  %v7312_v2 = vpop.permute.xlu0 %7311  ;;  %v13899_v50 = vrot.slane %v13898_v55, 1 }
0x2c5c   :  { %7328 = vst.msk [vmem:[#allocation3 + $0x38] sm:$0x2] %vm1012_vm2, %v7312_v2 }
0x2c5d   :  { %v518_v5 = vpop.permute.xlu1 %517  ;;  %1499 = vrot.lane.b32.xlu0 %v13882_v40, %s9834_s3 }
0x2c5e   :  { %542 = vst.msk [vmem:[#allocation2] sm:$0x1] %vm541_vm9, %v518_v5 }
0x2c5f   :  { %2002 = vrot.lane.b32.xlu1 %v13881_v19, %s9834_s3  ;;  %v520_v56 = vpop.permute.xlu0 %519  ;;  %v13900_v19 = vrot.slane %v13898_v55, 2 }
0x2c60   :  { %543 = vst.msk [vmem:[#allocation2 + $0x8] sm:$0x1] %vm541_vm9, %v520_v56  ;;  %v13901_v56 = vrot.slane %v13898_v55, 3 }
0x2c61   :  { %v989_v49 = vpop.permute.xlu1 %988  ;;  %2004 = vrot.lane.b32.xlu0 %v13884_v6, %s9834_s3 }
0x2c62   :  { %1013 = vst.msk [vmem:[#allocation2] sm:$0x2] %vm1012_vm2, %v989_v49 }
0x2c63   :  { %2507 = vrot.lane.b32.xlu1 %v13883_v61, %s9834_s3  ;;  %v991_v45 = vpop.permute.xlu0 %990 }
0x2c64   :  { %1014 = vst.msk [vmem:[#allocation2 + $0x8] sm:$0x2] %vm1012_vm2, %v991_v45 }
0x2c65   :  { %v1494_v13 = vpop.permute.xlu1 %1493  ;;  %2509 = vrot.lane.b32.xlu0 %v13886_v0, %s9834_s3 }
0x2c66   :  { %1518 = vst.msk [vmem:[#allocation2] sm:$0x4] %vm1517_vm0, %v1494_v13  ;;  %v13902_v13 = vrot.slane %v13898_v55, 4 }
0x2c67   :  { %3012 = vrot.lane.b32.xlu1 %v13885_v27, %s9834_s3  ;;  %v1496_v36 = vpop.permute.xlu0 %1495 }
0x2c68   :  { %1519 = vst.msk [vmem:[#allocation2 + $0x8] sm:$0x4] %vm1517_vm0, %v1496_v36 }
0x2c69   :  { %v1999_v24 = vpop.permute.xlu1 %1998  ;;  %3014 = vrot.lane.b32.xlu0 %v13888_v44, %s9834_s3  ;;  %v13905_v44 = vrot.slane %v13898_v55, 7 }
0x2c6a   :  { %2023 = vst.msk [vmem:[#allocation2] sm:$0x8] %vm2022_vm15, %v1999_v24 }
0x2c6b   :  { %3517 = vrot.lane.b32.xlu1 %v13887_v43, %s9834_s3  ;;  %v2001_v58 = vpop.permute.xlu0 %2000 }
0x2c6c   :  { %2024 = vst.msk [vmem:[#allocation2 + $0x8] sm:$0x8] %vm2022_vm15, %v2001_v58 }
0x2c6d   :  { %v2504_v33 = vpop.permute.xlu1 %2503  ;;  %3519 = vrot.lane.b32.xlu0 %v13890_v1, %s9834_s3  ;;  %v13908_v1 = vld [vmem:[#allocation53_spill] sm:$0xff] }
0x2c6e   :  { %2528 = vst.msk [vmem:[#allocation2] sm:$0x10] %vm2527_vm14, %v2504_v33  ;;  %v13906_v33 = vld [vmem:[#allocation51_spill] sm:$0xff] }
0x2c6f   :  { %4022 = vrot.lane.b32.xlu1 %v4004_v52, %s9834_s3  ;;  %v2506_v47 = vpop.permute.xlu0 %2505 }
0x2c70   :  { %2529 = vst.msk [vmem:[#allocation2 + $0x8] sm:$0x10] %vm2527_vm14, %v2506_v47  ;;  %v13910_v47 = vld [vmem:[#allocation59_spill] sm:$0xff] }
0x2c71   :  { %v3009_v9 = vpop.permute.xlu1 %3008  ;;  %4024 = vrot.lane.b32.xlu0 %v4005_v29, %s9834_s3  ;;  %v13909_v29 = vld [vmem:[#allocation69_spill] sm:$0xff] }
0x2c72   :  { %3033 = vst.msk [vmem:[#allocation2] sm:$0x20] %vm3032_vm13, %v3009_v9 }
0x2c73   :  { %525 = vrot.lane.b32.xlu1 %v13892_v11, %s9834_s3  ;;  %v3011_v22 = vpop.permute.xlu0 %3010  ;;  %v3980_v11 = vmul.f32 %v12781_v35, %v13047_v42  ;;  %v13914_v42 = vld [vmem:[#allocation78_spill] sm:$0xff] }
0x2c74   :  { %3034 = vst.msk [vmem:[#allocation2 + $0x8] sm:$0x20] %vm3032_vm13, %v3011_v22 }
0x2c75   :  { %v3514_v46 = vpop.permute.xlu1 %3513  ;;  %527 = vrot.lane.b32.xlu0 %v13894_v37, %s9834_s3  ;;  %v13912_v37 = vld [vmem:[#allocation71_spill] sm:$0xff] }
0x2c76   :  { %3538 = vst.msk [vmem:[#allocation2] sm:$0x40] %vm3537_vm12, %v3514_v46 }
0x2c77   :  { %996 = vrot.lane.b32.xlu1 %v13893_v31, %s9834_s3  ;;  %v3516_v51 = vpop.permute.xlu0 %3515  ;;  %v13911_v31 = vld [vmem:[#allocation81_spill] sm:$0xff] }
0x2c78   :  { %3539 = vst.msk [vmem:[#allocation2 + $0x8] sm:$0x40] %vm3537_vm12, %v3516_v51 }
0x2c79   :  { %v4019_v59 = vpop.permute.xlu1 %4018  ;;  %998 = vrot.lane.b32.xlu0 %v13896_v53, %s9834_s3 }
0x2c7a   :  { %4043 = vst.msk [vmem:[#allocation2] sm:$0x80] %vm4042_vm11, %v4019_v59  ;;  %v13913_v59 = vrot.slane %v13871_v10, 5 }
0x2c7b   :  { %1501 = vrot.lane.b32.xlu1 %v13895_v39, %s9834_s3  ;;  %v4021_v26 = vpop.permute.xlu0 %4020  ;;  %v3981_v39 = vmul.f32 %v12785_v63, %v13038_v41  ;;  %v13916_v63 = vld [vmem:[#allocation26_spill] sm:$0xff] }
0x2c7c   :  { %4044 = vst.msk [vmem:[#allocation2 + $0x8] sm:$0x80] %vm4042_vm11, %v4021_v26  ;;  %v4006_v51 = vmul.f32 %v13913_v59, %v3980_v11  ;;  %v13915_v26 = vrot.slane %v13871_v10, 6 }
0x2c7d   :  { %1503 = vrot.lane.b32.xlu0 %v13897_v60, %s9834_s3 }
0x2c7e   :  { %v4007_v60 = vmul.f32 %v13915_v26, %v3981_v39 }
0x2cb5   :  { %v7748_v28 = vpop.permute.xlu1 %7747 }
0x2cb6   :  { %v7771_v16 = vmul.f32 %v13003_v32, %v7748_v28 }
0x2cb7   :  { %v7750_v48 = vpop.permute.xlu0 %7749 }
0x2cb8   :  { %v7779_v12 = vmul.f32 %v7771_v16, %v13898_v55  ;;  %v7772_v20 = vmul.f32 %v13006_v54, %v7750_v48  ;;  %v13918_v48 = vld [vmem:[#allocation27_spill] sm:$0xff] }
0x2cb9   :  { %v7752_v62 = vpop.permute.xlu1 %7751 }
0x2cba   :  { %7795 = vrot.lane.b32.xlu1 %v7779_v12, %s9831_s1  ;;  %v7780_v3 = vmul.f32 %v7772_v20, %v13899_v50  ;;  %v7773_v5 = vmul.f32 %v13010_v21, %v7752_v62  ;;  %v13917_v12 = vld [vmem:[#allocation37_spill] sm:$0xff]  ;;  %v13919_v50 = vld [vmem:[#allocation47_spill] sm:$0xff] }
0x2cbb   :  { %v7754_v2 = vpop.permute.xlu0 %7753 }
0x2cbc   :  { %v7781_v40 = vmul.f32 %v7773_v5, %v13900_v19  ;;  %v7774_v49 = vmul.f32 %v13014_v34, %v7754_v2  ;;  %7797 = vrot.lane.b32.xlu0 %v7780_v3, %s9831_s1  ;;  %v13903_v34 = vrot.slane %v13898_v55, 5  ;;  %v13920_v3 = vld [vmem:[#allocation36_spill] sm:$0xff]  ;;  %v13921_v19 = vld [vmem:[#allocation54_spill] sm:$0xff] }
0x2cbd   :  { %v7756_v32 = vpop.permute.xlu1 %7755 }
0x2cbe   :  { %v7782_v54 = vmul.f32 %v7774_v49, %v13901_v56  ;;  %v7775_v61 = vmul.f32 %v13018_v57, %v7756_v32  ;;  %7799 = vrot.lane.b32.xlu1 %v7781_v40, %s9831_s1  ;;  %v13904_v57 = vrot.slane %v13898_v55, 6  ;;  %v13922_v40 = vld [vmem:[#allocation46_spill] sm:$0xff]  ;;  %v13923_v56 = vld [vmem:[#allocation63_spill] sm:$0xff] }
0x2cbf   :  { %v7758_v6 = vpop.permute.xlu0 %7757 }
0x2cc0   :  { %v7783_v21 = vmul.f32 %v7775_v61, %v13902_v13  ;;  %v7776_v45 = vmul.f32 %v13022_v15, %v7758_v6  ;;  %7801 = vrot.lane.b32.xlu0 %v7782_v54, %s9831_s1  ;;  %v13924_v54 = vld [vmem:[#allocation55_spill] sm:$0xff]  ;;  %v13925_v6 = vld [vmem:[#allocation68_spill] sm:$0xff]  ;;  %v13926_v13 = vld [vmem:[#allocation62_spill] sm:$0xff] }
0x2cc1   :  { %v7760_v27 = vpop.permute.xlu1 %7759 }
0x2cc2   :  { %v7784_v0 = vmul.f32 %v7776_v45, %v13903_v34  ;;  %v7777_v4 = vmul.f32 %v13026_v30, %v7760_v27  ;;  %7803 = vrot.lane.b32.xlu1 %v7783_v21, %s9831_s1  ;;  %v3982_v21 = vmul.f32 %v12793_v17, %v13053_v14  ;;  %v13927_v45 = vld [vmem:[#allocation82_spill] sm:$0xff]  ;;  %v13929_v34 = vrot.slane %v13871_v10, 7  ;;  %v8658_v17 = vld [vmem:[#allocation9] sm:$0xff]  }
0x2cc3   :  { %v7762_v43 = vpop.permute.xlu0 %7761  ;;  %v13928_v27 = vld [vmem:[#allocation70_spill] sm:$0xff]  ;;  %8585 = vmatprep.subr.bf16.mxu1 %v8658_v17 }
0x2cc4   :  { %v7785_v24 = vmul.f32 %v7777_v4, %v13904_v57  ;;  %7805 = vrot.lane.b32.xlu0 %v7784_v0, %s9831_s1  ;;  %v7778_v15 = vmul.f32 %v13031_v18, %v7762_v43  ;;  %v13907_v18 = vld [vmem:[#allocation61_spill] sm:$0xff]  ;;  %v4008_v0 = vmul.f32 %v13929_v34, %v3982_v21  ;;  %v3983_v4 = vmul.f32 %v12789_v8, %v13045_v23  ;;  %v13930_v57 = vld [vmem:[#allocation80_spill] sm:$0xff] }
0x2cc5   :  { %v522_v36 = vpop.permute.xlu1 %521  ;;  %8586 = vmatpush3.bf16.msra.mxu1 %v8658_v17 }
0x2cc6   :  { %544 = vst.msk [vmem:[#allocation2 + $0x10] sm:$0x1] %vm541_vm9, %v522_v36  ;;  %7807 = vrot.lane.b32.xlu1 %v7785_v24, %s9831_s1  ;;  %v7786_v25 = vmul.f32 %v7778_v15, %v13905_v44  ;;  %v4009_v24 = vmul.f32 %v13871_v10, %v3983_v4  ;;  %v8659_v36 = vld [vmem:[#allocation9 + $0x8] sm:$0xff]  }
0x2cc7   :  { %v524_v30 = vpop.permute.xlu0 %523  ;;  %8587 = vmatprep.subr.bf16.mxu1 %v8659_v36 }
0x2cc8   :  { %545 = vst.msk [vmem:[#allocation2 + $0x18] sm:$0x1] %vm541_vm9, %v524_v30  ;;  %7809 = vrot.lane.b32.xlu0 %v7786_v25, %s9831_s1 }
0x2cc9   :  { %v993_v52 = vpop.permute.xlu1 %992  ;;  %8588 = vmatpush3.bf16.msra.mxu1 %v8659_v36 }
0x2cca   :  { %1015 = vst.msk [vmem:[#allocation2 + $0x10] sm:$0x2] %vm1012_vm2, %v993_v52  ;;  %2006 = vrot.lane.b32.xlu1 %v13906_v33, %s9834_s3 }
0x2ccb   :  { %v995_v58 = vpop.permute.xlu0 %994 }
0x2ccc   :  { %1016 = vst.msk [vmem:[#allocation2 + $0x18] sm:$0x2] %vm1012_vm2, %v995_v58  ;;  %2008 = vrot.lane.b32.xlu0 %v13908_v1, %s9834_s3 }
0x2ccd   :  { %v1498_v7 = vpop.permute.xlu1 %1497 }
0x2cce   :  { %1520 = vst.msk [vmem:[#allocation2 + $0x10] sm:$0x4] %vm1517_vm0, %v1498_v7  ;;  %2511 = vrot.lane.b32.xlu1 %v13907_v18, %s9834_s3 }
0x2ccf   :  { %v1500_v38 = vpop.permute.xlu0 %1499 }
0x2cd0   :  { %1521 = vst.msk [vmem:[#allocation2 + $0x18] sm:$0x4] %vm1517_vm0, %v1500_v38  ;;  %2513 = vrot.lane.b32.xlu0 %v13910_v47, %s9834_s3 }
0x2cd1   :  { %v2003_v9 = vpop.permute.xlu1 %2002 }
0x2cd2   :  { %2025 = vst.msk [vmem:[#allocation2 + $0x10] sm:$0x8] %vm2022_vm15, %v2003_v9  ;;  %3016 = vrot.lane.b32.xlu1 %v13909_v29, %s9834_s3 }
0x2cd3   :  { %v2005_v22 = vpop.permute.xlu0 %2004 }
0x2cd4   :  { %2026 = vst.msk [vmem:[#allocation2 + $0x18] sm:$0x8] %vm2022_vm15, %v2005_v22  ;;  %3018 = vrot.lane.b32.xlu0 %v13912_v37, %s9834_s3 }
0x2cd5   :  { %v2508_v46 = vpop.permute.xlu1 %2507 }
0x2cd6   :  { %2530 = vst.msk [vmem:[#allocation2 + $0x10] sm:$0x10] %vm2527_vm14, %v2508_v46  ;;  %3521 = vrot.lane.b32.xlu1 %v13911_v31, %s9834_s3 }
0x2cd7   :  { %v2510_v35 = vpop.permute.xlu0 %2509 }
0x2cd8   :  { %2531 = vst.msk [vmem:[#allocation2 + $0x18] sm:$0x10] %vm2527_vm14, %v2510_v35  ;;  %3523 = vrot.lane.b32.xlu0 %v13914_v42, %s9834_s3 }
0x2cd9   :  { %v3013_v53 = vpop.permute.xlu1 %3012 }
0x2cda   :  { %3035 = vst.msk [vmem:[#allocation2 + $0x10] sm:$0x20] %vm3032_vm13, %v3013_v53  ;;  %4026 = vrot.lane.b32.xlu1 %v4006_v51, %s9834_s3 }
0x2cdb   :  { %v3015_v16 = vpop.permute.xlu0 %3014 }
0x2cdc   :  { %3036 = vst.msk [vmem:[#allocation2 + $0x18] sm:$0x20] %vm3032_vm13, %v3015_v16  ;;  %4028 = vrot.lane.b32.xlu0 %v4007_v60, %s9834_s3 }
0x2cdd   :  { %v3518_v28 = vpop.permute.xlu1 %3517 }
0x2cde   :  { %3540 = vst.msk [vmem:[#allocation2 + $0x10] sm:$0x40] %vm3537_vm12, %v3518_v28  ;;  %529 = vrot.lane.b32.xlu1 %v13916_v63, %s9834_s3 }
0x2cdf   :  { %v3520_v55 = vpop.permute.xlu0 %3519 }
0x2ce0   :  { %3541 = vst.msk [vmem:[#allocation2 + $0x18] sm:$0x40] %vm3537_vm12, %v3520_v55  ;;  %531 = vrot.lane.b32.xlu0 %v13918_v48, %s9834_s3 }
0x2ce1   :  { %v4023_v41 = vpop.permute.xlu1 %4022 }
0x2ce2   :  { %4045 = vst.msk [vmem:[#allocation2 + $0x10] sm:$0x80] %vm4042_vm11, %v4023_v41  ;;  %1000 = vrot.lane.b32.xlu1 %v13917_v12, %s9834_s3 }
0x2ce3   :  { %v4025_v62 = vpop.permute.xlu0 %4024 }
0x2ce4   :  { %4046 = vst.msk [vmem:[#allocation2 + $0x18] sm:$0x80] %vm4042_vm11, %v4025_v62  ;;  %1002 = vrot.lane.b32.xlu0 %v13920_v3, %s9834_s3 }
0x2ce5   :  { %v526_v20 = vpop.permute.xlu1 %525 }
0x2ce6   :  { %546 = vst.msk [vmem:[#allocation2 + $0x20] sm:$0x1] %vm541_vm9, %v526_v20  ;;  %1505 = vrot.lane.b32.xlu1 %v13919_v50, %s9834_s3 }
0x2ce7   :  { %v528_v2 = vpop.permute.xlu0 %527 }
0x2ce8   :  { %547 = vst.msk [vmem:[#allocation2 + $0x28] sm:$0x1] %vm541_vm9, %v528_v2  ;;  %1507 = vrot.lane.b32.xlu0 %v13922_v40, %s9834_s3  ;;  %v7828_v2 = vld [vmem:[#allocation2 + $0x8] sm:$0xff] }
0x2ce9   :  { %v997_v5 = vpop.permute.xlu1 %996 }
0x2cea   :  { %1017 = vst.msk [vmem:[#allocation2 + $0x20] sm:$0x2] %vm1012_vm2, %v997_v5  ;;  %2010 = vrot.lane.b32.xlu1 %v13921_v19, %s9834_s3  ;;  %v7827_v5 = vld [vmem:[#allocation2] sm:$0xff] }
0x2ceb   :  { %v999_v32 = vpop.permute.xlu0 %998 }
0x2cec   :  { %1018 = vst.msk [vmem:[#allocation2 + $0x28] sm:$0x2] %vm1012_vm2, %v999_v32  ;;  %2012 = vrot.lane.b32.xlu0 %v13924_v54, %s9834_s3  ;;  %v7829_v54 = vld [vmem:[#allocation2 + $0x10] sm:$0xff] }
0x2ced   :  { %v1502_v49 = vpop.permute.xlu1 %1501 }
0x2cee   :  { %1522 = vst.msk [vmem:[#allocation2 + $0x20] sm:$0x4] %vm1517_vm0, %v1502_v49  ;;  %2515 = vrot.lane.b32.xlu1 %v13923_v56, %s9834_s3 }
0x2cef   :  { %v1504_v61 = vpop.permute.xlu0 %1503 }
0x2cf0   :  { %1523 = vst.msk [vmem:[#allocation2 + $0x28] sm:$0x4] %vm1517_vm0, %v1504_v61  ;;  %2517 = vrot.lane.b32.xlu0 %v13926_v13, %s9834_s3  ;;  %v7830_v61 = vld [vmem:[#allocation2 + $0x18] sm:$0xff] }
0x2cf2   :  { %3020 = vrot.lane.b32.xlu1 %v13925_v6, %s9834_s3 }
0x2cf4   :  { %3022 = vrot.lane.b32.xlu0 %v13928_v27, %s9834_s3 }
0x2cf6   :  { %3525 = vrot.lane.b32.xlu1 %v13927_v45, %s9834_s3 }
0x2cf8   :  { %3527 = vrot.lane.b32.xlu0 %v13930_v57, %s9834_s3 }
0x2cfa   :  { %4030 = vrot.lane.b32.xlu1 %v4008_v0, %s9834_s3 }
0x2cfc   :  { %4032 = vrot.lane.b32.xlu0 %v4009_v24, %s9834_s3 }
0x2d2c   :  { %v7796_v14 = vpop.permute.xlu1 %7795 }
0x2d2d   :  { %7819 = vst.msk [vmem:[#allocation3] sm:$0x1] %vm541_vm9, %v7796_v14 }
0x2d2e   :  { %v7798_v43 = vpop.permute.xlu0 %7797 }
0x2d2f   :  { %7820 = vst.msk [vmem:[#allocation3 + $0x8] sm:$0x1] %vm541_vm9, %v7798_v43 }
0x2d30   :  { %v7800_v8 = vpop.permute.xlu1 %7799 }
0x2d31   :  { %7821 = vst.msk [vmem:[#allocation3 + $0x10] sm:$0x1] %vm541_vm9, %v7800_v8 }
0x2d32   :  { %v7802_v23 = vpop.permute.xlu0 %7801 }
0x2d33   :  { %7822 = vst.msk [vmem:[#allocation3 + $0x18] sm:$0x1] %vm541_vm9, %v7802_v23 }
0x2d34   :  { %v7835_v10 = vld [vmem:[#allocation3] sm:$0xff]  ;;  %v7804_v15 = vpop.permute.xlu1 %7803 }
0x2d35   :  { %7851 = vrot.lane.b32.xlu1 %v7835_v10, %s9831_s1  ;;  %7823 = vst.msk [vmem:[#allocation3 + $0x20] sm:$0x1] %vm541_vm9, %v7804_v15 }
0x2d36   :  { %v7806_v44 = vpop.permute.xlu0 %7805  ;;  %v7836_v25 = vld [vmem:[#allocation3 + $0x8] sm:$0xff] }
0x2d37   :  { %7824 = vst.msk [vmem:[#allocation3 + $0x28] sm:$0x1] %vm541_vm9, %v7806_v44  ;;  %7853 = vrot.lane.b32.xlu0 %v7836_v25, %s9831_s1 }
0x2d38   :  { %v7808_v52 = vpop.permute.xlu1 %7807  ;;  %v7837_v30 = vld [vmem:[#allocation3 + $0x10] sm:$0xff] }
0x2d39   :  { %7825 = vst.msk [vmem:[#allocation3 + $0x30] sm:$0x1] %vm541_vm9, %v7808_v52  ;;  %7855 = vrot.lane.b32.xlu1 %v7837_v30, %s9831_s1 }
0x2d3a   :  { %v7838_v33 = vld [vmem:[#allocation3 + $0x18] sm:$0xff]  ;;  %v7810_v18 = vpop.permute.xlu0 %7809 }
0x2d3b   :  { %7857 = vrot.lane.b32.xlu0 %v7838_v33, %s9831_s1  ;;  %7826 = vst.msk [vmem:[#allocation3 + $0x38] sm:$0x1] %vm541_vm9, %v7810_v18  ;;  %v8432_v33 = vld [vmem:[%s13511_s7] ss:$0 sm:$0xff]  ;;  %s9843_s7 = smov [#allocation11]  }
0x2d3c   :  { %v2007_v7 = vpop.permute.xlu1 %2006  ;;  %v7839_v58 = vld [vmem:[#allocation3 + $0x20] sm:$0xff]  ;;  %s8242_s2 = sshll.u32 %s9843_s7, 4  ;;  %s8243_s2 = int_to_ptr.vmem [resolvable:$true] %s8242_s2 }
0x2d3d   :  { %2027 = vst.msk [vmem:[#allocation2 + $0x20] sm:$0x8] %vm2022_vm15, %v2007_v7  ;;  %7859 = vrot.lane.b32.xlu1 %v7839_v58, %s9831_s1  ;;  %s9770_s28 = scalar_lea.vmem %s8243_s2, 128  ;;  %p9775_p11 = scmp.lt.s32.totalorder %s8243_s2, %s8243_s2 }
0x2d3e   :  { %v7840_v1 = vld [vmem:[#allocation3 + $0x28] sm:$0xff]  ;;  %v2009_v29 = vpop.permute.xlu0 %2008  ;;  %p9771_p10 = scmp.ne.s32.totalorder %s8243_s2, %s9770_s28  ;;  %p9776_p12 = scmp.lt.s32.totalorder %s9770_s28, %s9770_s28 }
0x2d3f   :  { %7861 = vrot.lane.b32.xlu0 %v7840_v1, %s9831_s1  ;;  %2028 = vst.msk [vmem:[#allocation2 + $0x28] sm:$0x8] %vm2022_vm15, %v2009_v29 }
0x2d40   :  { %v2512_v9 = vpop.permute.xlu1 %2511  ;;  %v7841_v38 = vld [vmem:[#allocation3 + $0x30] sm:$0xff]  ;;  %p9777_p13 = por %p9776_p12, %p9775_p11 }
0x2d41   :  { %2532 = vst.msk [vmem:[#allocation2 + $0x20] sm:$0x10] %vm2527_vm14, %v2512_v9  ;;  %7863 = vrot.lane.b32.xlu1 %v7841_v38, %s9831_s1 }
0x2d42   :  { %v2514_v11 = vpop.permute.xlu0 %2513  ;;  %v7842_v46 = vld [vmem:[#allocation3 + $0x38] sm:$0xff]  ;;  %p9778_p0 = pnand %p9777_p13, %p9771_p10 }
0x2d43   :  { %2533 = vst.msk [vmem:[#allocation2 + $0x28] sm:$0x10] %vm2527_vm14, %v2514_v11  ;;  %7865 = vrot.lane.b32.xlu0 %v7842_v46, %s9831_s1 }
0x2d44   :  { %v3017_v47 = vpop.permute.xlu1 %3016 }
0x2d45   :  { %3037 = vst.msk [vmem:[#allocation2 + $0x20] sm:$0x20] %vm3032_vm13, %v3017_v47 }
0x2d46   :  { %v3019_v31 = vpop.permute.xlu0 %3018 }
0x2d47   :  { %3038 = vst.msk [vmem:[#allocation2 + $0x28] sm:$0x20] %vm3032_vm13, %v3019_v31 }
0x2d48   :  { %v3522_v22 = vpop.permute.xlu1 %3521 }
0x2d49   :  { %3542 = vst.msk [vmem:[#allocation2 + $0x20] sm:$0x40] %vm3537_vm12, %v3522_v22 }
0x2d4a   :  { %v3524_v59 = vpop.permute.xlu0 %3523 }
0x2d4b   :  { %3543 = vst.msk [vmem:[#allocation2 + $0x28] sm:$0x40] %vm3537_vm12, %v3524_v59 }
0x2d4c   :  { %v4027_v37 = vpop.permute.xlu1 %4026 }
0x2d4d   :  { %4047 = vst.msk [vmem:[#allocation2 + $0x20] sm:$0x80] %vm4042_vm11, %v4027_v37 }
0x2d4e   :  { %v4029_v39 = vpop.permute.xlu0 %4028 }
0x2d4f   :  { %4048 = vst.msk [vmem:[#allocation2 + $0x28] sm:$0x80] %vm4042_vm11, %v4029_v39 }
0x2d50   :  { %v530_v51 = vpop.permute.xlu1 %529 }
0x2d51   :  { %548 = vst.msk [vmem:[#allocation2 + $0x30] sm:$0x1] %vm541_vm9, %v530_v51 }
0x2d52   :  { %v532_v35 = vpop.permute.xlu0 %531 }
0x2d53   :  { %549 = vst.msk [vmem:[#allocation2 + $0x38] sm:$0x1] %vm541_vm9, %v532_v35  ;;  %vm13933_vm9 = vcmask 1047559  }
0x2d54   :  { %v1001_v53 = vpop.permute.xlu1 %1000  ;;  %v7831_v34 = vld [vmem:[#allocation2 + $0x20] sm:$0xff] }
0x2d55   :  { %1019 = vst.msk [vmem:[#allocation2 + $0x30] sm:$0x2] %vm1012_vm2, %v1001_v53 }
0x2d56   :  { %v1003_v26 = vpop.permute.xlu0 %1002  ;;  %v7832_v0 = vld [vmem:[#allocation2 + $0x28] sm:$0xff] }
0x2d57   :  { %1020 = vst.msk [vmem:[#allocation2 + $0x38] sm:$0x2] %vm1012_vm2, %v1003_v26  ;;  %vm8076_vm2 = vcmask 64512  }
0x2d58   :  { %v1506_v42 = vpop.permute.xlu1 %1505 }
0x2d59   :  { %1524 = vst.msk [vmem:[#allocation2 + $0x30] sm:$0x4] %vm1517_vm0, %v1506_v42 }
0x2d5a   :  { %v1508_v28 = vpop.permute.xlu0 %1507 }
0x2d5b   :  { %1525 = vst.msk [vmem:[#allocation2 + $0x38] sm:$0x4] %vm1517_vm0, %v1508_v28 }
0x2d5c   :  { %v2011_v60 = vpop.permute.xlu1 %2010 }
0x2d5d   :  { %2029 = vst.msk [vmem:[#allocation2 + $0x30] sm:$0x8] %vm2022_vm15, %v2011_v60 }
0x2d5e   :  { %v2013_v63 = vpop.permute.xlu0 %2012 }
0x2d5f   :  { %2030 = vst.msk [vmem:[#allocation2 + $0x38] sm:$0x8] %vm2022_vm15, %v2013_v63 }
0x2d60   :  { %v2516_v16 = vpop.permute.xlu1 %2515 }
0x2d61   :  { %2534 = vst.msk [vmem:[#allocation2 + $0x30] sm:$0x10] %vm2527_vm14, %v2516_v16 }
0x2d62   :  { %v2518_v55 = vpop.permute.xlu0 %2517 }
0x2d63   :  { %2535 = vst.msk [vmem:[#allocation2 + $0x38] sm:$0x10] %vm2527_vm14, %v2518_v55 }
0x2d64   :  { %v3021_v41 = vpop.permute.xlu1 %3020 }
0x2d65   :  { %3039 = vst.msk [vmem:[#allocation2 + $0x30] sm:$0x20] %vm3032_vm13, %v3021_v41 }
0x2d66   :  { %v3023_v48 = vpop.permute.xlu0 %3022 }
0x2d67   :  { %3040 = vst.msk [vmem:[#allocation2 + $0x38] sm:$0x20] %vm3032_vm13, %v3023_v48 }
0x2d68   :  { %v3526_v12 = vpop.permute.xlu1 %3525 }
0x2d69   :  { %3544 = vst.msk [vmem:[#allocation2 + $0x30] sm:$0x40] %vm3537_vm12, %v3526_v12 }
0x2d6a   :  { %v3528_v62 = vpop.permute.xlu0 %3527 }
0x2d6b   :  { %3545 = vst.msk [vmem:[#allocation2 + $0x38] sm:$0x40] %vm3537_vm12, %v3528_v62 }
0x2d6c   :  { %v4031_v20 = vpop.permute.xlu1 %4030 }
0x2d6d   :  { %4049 = vst.msk [vmem:[#allocation2 + $0x30] sm:$0x80] %vm4042_vm11, %v4031_v20  ;;  %v13931_v20 = vlaneseq }
0x2d6e   :  { %v4033_v50 = vpop.permute.xlu0 %4032 }
0x2d6f   :  { %4050 = vst.msk [vmem:[#allocation2 + $0x38] sm:$0x80] %vm4042_vm11, %v4033_v50  ;;  %v13431_v62 = vshrl.u32 %v13931_v20, 7 }
0x2d74   :  { %v7833_v36 = vld [vmem:[#allocation2 + $0x30] sm:$0xff] }
0x2d76   :  { %v7834_v43 = vld [vmem:[#allocation2 + $0x38] sm:$0xff] }
0x2da7   :  { %v7852_v3 = vpop.permute.xlu1 %7851 }
0x2da8   :  { %v13384_v40 = vsel %vm222_vm10, %v7827_v5, %v7852_v3  ;;  %v13932_v5 = vld [vmem:[#allocation17_spill] sm:$0xff] }
0x2da9   :  { %v7854_v19 = vpop.permute.xlu0 %7853 }
0x2daa   :  { %v13387_v49 = vsel %vm222_vm10, %v7828_v2, %v7854_v19  ;;  %v8037_v2 = vsub.s32 %v13932_v5, %v13431_v62 }
0x2dab   :  { %v7883_v32 = vpack.c.bf16 %v13387_v49, %v13384_v40  ;;  %v7856_v56 = vpop.permute.xlu1 %7855 }
0x2dac   :  { %v13393_v13 = vsel %vm222_vm10, %v7829_v54, %v7856_v56 }
0x2dad   :  { %8589 = vmatprep.mubr.msk.bf16.mxu1 %vm136_vm1, %v7883_v32  ;;  %v7858_v6 = vpop.permute.xlu0 %7857 }
0x2dae   :  { %v13396_v21 = vsel %vm222_vm10, %v7830_v61, %v7858_v6 }
0x2daf   :  { %v7884_v45 = vpack.c.bf16 %v13396_v21, %v13393_v13  ;;  %v7860_v27 = vpop.permute.xlu1 %7859 }
0x2db0   :  { %v13402_v57 = vsel %vm222_vm10, %v7831_v34, %v7860_v27 }
0x2db1   :  { %8590 = vmatmul.mubr.msk.bf16.vlgmr.msra.gmra.mrb[32].mxu1 %vm136_vm1, %v7884_v45  ;;  %v7862_v4 = vpop.permute.xlu0 %7861 }
0x2db2   :  { %v13405_v24 = vsel %vm222_vm10, %v7832_v0, %v7862_v4 }
0x2db3   :  { %v7885_v17 = vpack.c.bf16 %v13405_v24, %v13402_v57  ;;  %v7864_v14 = vpop.permute.xlu1 %7863 }
0x2db4   :  { %v13411_v23 = vsel %vm222_vm10, %v7833_v36, %v7864_v14 }
0x2db5   :  { %8593 = vmatprep.mubr.msk.bf16.mxu1 %vm136_vm1, %v7885_v17  ;;  %v7866_v8 = vpop.permute.xlu0 %7865 }
0x2db6   :  { %v13414_v10 = vsel %vm222_vm10, %v7834_v43, %v7866_v8 }
0x2db7   :  { %v7886_v15 = vpack.c.bf16 %v13414_v10, %v13411_v23 }
0x2db9   :  { %8594 = vmatmul.mubr.msk.bf16.gmra.mrb[36].mxu1 %vm136_vm1, %v7886_v15 }
0x2e84   :  { %v8591_v44 = vpop.f32.mrb[32].mxu1 }
0x2e85   :  { %9684 = vtanh.f32 %v8591_v44  ;;  %v7949_v25 = vpop.f32.mrb[33].mxu1 }
0x2e86   :  { %9686 = vtanh.f32 %v7949_v25  ;;  %v8592_v52 = vpop.f32.mrb[34].mxu1 }
0x2e87   :  { %9688 = vtanh.f32 %v8592_v52  ;;  %v7952_v30 = vpop.f32.mrb[35].mxu1 }
0x2e88   :  { %9690 = vtanh.f32 %v7952_v30 }
0x2e8c   :  { %v8595_v58 = vpop.f32.mrb[36].mxu1 }
0x2e8d   :  { %9692 = vtanh.f32 %v8595_v58  ;;  %v7965_v1 = vpop.f32.mrb[37].mxu1 }
0x2e8e   :  { %9694 = vtanh.f32 %v7965_v1  ;;  %v8596_v29 = vpop.f32.mrb[38].mxu1 }
0x2e8f   :  { %v9685_v7 = vpop.eup %9684  ;;  %9696 = vtanh.f32 %v8596_v29  ;;  %v7968_v46 = vpop.f32.mrb[39].mxu1 }
0x2e90   :  { %v9687_v18 = vpop.eup %9686  ;;  %v7997_v9 = vmul.f32 %v9685_v7, %v8432_v33  ;;  %9698 = vtanh.f32 %v7968_v46  ;;  %v8091_v46 = vsub.s32 0, %v13431_v62 }
0x2e91   :  { %v9689_v38 = vpop.eup %9688  ;;  %v7995_v47 = vmul.f32 %v9687_v18, %v8432_v33 }
0x2e92   :  { %v9691_v11 = vpop.eup %9690  ;;  %v8009_v22 = vsel %vm136_vm1, %v7997_v9, 0.0  ;;  %v7998_v59 = vmul.f32 %v9689_v38, %v8432_v33 }
0x2e93   :  { %8010 = vadd.xlane.f32.xlu0 %v8009_v22  ;;  %v8003_v31 = vsel %vm136_vm1, %v7995_v47, 0.0  ;;  %v7996_v37 = vmul.f32 %v9691_v11, %v8432_v33  ;;  %v8098_v11 = vsub.s32 1, %v13431_v62 }
0x2e94   :  { %8004 = vadd.xlane.f32.xlu1 %v8003_v31  ;;  %v8012_v39 = vsel %vm136_vm1, %v7998_v59, 0.0 }
0x2e95   :  { %v8006_v51 = vsel %vm136_vm1, %v7996_v37, 0.0 }
0x2e97   :  { %8007 = vadd.xlane.f32.xlu0 %v8006_v51  ;;  %v9693_v53 = vpop.eup %9692  ;;  %v8105_v51 = vsub.s32 2, %v13431_v62 }
0x2e98   :  { %8013 = vadd.xlane.f32.xlu1 %v8012_v39  ;;  %v9695_v35 = vpop.eup %9694  ;;  %v8001_v63 = vmul.f32 %v9693_v53, %v8432_v33  ;;  %v8112_v39 = vsub.s32 3, %v13431_v62 }
0x2e99   :  { %v9697_v42 = vpop.eup %9696  ;;  %v7999_v26 = vmul.f32 %v9695_v35, %v8432_v33 }
0x2e9a   :  { %v9699_v60 = vpop.eup %9698  ;;  %v8002_v55 = vmul.f32 %v9697_v42, %v8432_v33  ;;  %v8021_v12 = vsel %vm136_vm1, %v8001_v63, 0.0  ;;  %v8119_v42 = vsub.s32 4, %v13431_v62  ;;  %v8140_v63 = vsub.s32 7, %v13431_v62 }
0x2e9b   :  { %v8015_v28 = vsel %vm136_vm1, %v7999_v26, 0.0  ;;  %v8000_v16 = vmul.f32 %v9699_v60, %v8432_v33  ;;  %v13934_v33 = vld [vmem:[#allocation18_spill] sm:$0xff]  ;;  %v8126_v26 = vsub.s32 5, %v13431_v62 }
0x2e9c   :  { %8016 = vadd.xlane.f32.xlu0 %v8015_v28  ;;  %v8024_v48 = vsel %vm136_vm1, %v8002_v55, 0.0  ;;  %vm13935_vm10 = vcmp.lt.s32.totalorder %v13932_v5, %v13934_v33 }
0x2e9d   :  { %v8018_v41 = vsel %vm136_vm1, %v8000_v16, 0.0  ;;  %v8133_v16 = vsub.s32 6, %v13431_v62 }
0x2e9e   :  { %8019 = vadd.xlane.f32.xlu1 %v8018_v41 }
0x2ea0   :  { %8022 = vadd.xlane.f32.xlu0 %v8021_v12 }
0x2ea2   :  { %8025 = vadd.xlane.f32.xlu1 %v8024_v48 }
0x2f20   :  { %v8011_v50 = vpop.xlane.xlu0 %8010 }
0x2f21   :  { %v8005_v3 = vpop.xlane.xlu1 %8004  ;;  %v8046_v6 = vrot.slane %v8011_v50, %v8037_v2 }
0x2f22   :  { %v8038_v56 = vrot.slane %v8005_v3, %v8037_v2 }
0x2f24   :  { %v8008_v19 = vpop.xlane.xlu0 %8007 }
0x2f25   :  { %v8042_v32 = vrot.slane %v8008_v19, %v8037_v2  ;;  %v8014_v54 = vpop.xlane.xlu1 %8013 }
0x2f26   :  { %v8050_v45 = vrot.slane %v8014_v54, %v8037_v2 }
0x2f27   :  { %v8067_v61 = vsel %vm589_vm3, %v8042_v32, %v8038_v56 }
0x2f28   :  { %v8068_v27 = vsel %vm592_vm4, %v8046_v6, %v8067_v61 }
0x2f29   :  { %v8017_v34 = vpop.xlane.xlu0 %8016  ;;  %v8069_v4 = vsel %vm595_vm5, %v8050_v45, %v8068_v27 }
0x2f2a   :  { %v8054_v0 = vrot.slane %v8017_v34, %v8037_v2 }
0x2f2b   :  { %v8020_v17 = vpop.xlane.xlu1 %8019 }
0x2f2c   :  { %v8070_v14 = vsel %vm598_vm6, %v8054_v0, %v8069_v4  ;;  %v8058_v36 = vrot.slane %v8020_v17, %v8037_v2 }
0x2f2d   :  { %v8023_v43 = vpop.xlane.xlu0 %8022 }
0x2f2e   :  { %v8071_v8 = vsel %vm601_vm7, %v8058_v36, %v8070_v14  ;;  %v8062_v15 = vrot.slane %v8023_v43, %v8037_v2 }
0x2f2f   :  { %v8026_v44 = vpop.xlane.xlu1 %8025 }
0x2f30   :  { %v8072_v25 = vsel %vm604_vm8, %v8062_v15, %v8071_v8  ;;  %v8066_v52 = vrot.slane %v8026_v44, %v8037_v2 }
0x2f32   :  { %v8073_v30 = vsel %vm13933_vm9, %v8066_v52, %v8072_v25 }
0x2f33   :  { %v8075_v7 = vsel %vm13935_vm10, %v8073_v30, -1e+30 }
0x2f34   :  { %v8077_v58 = vsel %vm8076_vm2, %v8075_v7, -inf }
0x2f35   :  { %8078 = vmax.xlane.f32.xlu0 %v8077_v58 }
0x2fc2   :  { %v8079_v18 = vpop.xlane.xlu0 %8078 }
0x2fc3   :  { %v8080_v1 = vsub.f32 %v8075_v7, %v8079_v18 }
0x2fc5   :  { %v8081_v9 = vmul.f32 1.442695, %v8080_v1 }
0x2fc7   :  { %9700 = vpow2.f32 %v8081_v9 }
0x2fd1   :  { %v9701_v38 = vpop.eup %9700 }
0x2fd2   :  { %v8083_v29 = vsel %vm8076_vm2, %v9701_v38, 0.0 }
0x2fd3   :  { %8084 = vadd.xlane.f32.xlu1 %v8083_v29 }
0x3060   :  { %v8085_v47 = vpop.xlane.xlu1 %8084 }
0x3061   :  { %9702 = vrcp.f32 %v8085_v47 }
0x306b   :  { %v9703_v22 = vpop.eup %9702 }
0x306c   :  { %v8087_v31 = vmul.f32 %v9703_v22, %v9701_v38 }
0x306e   :  { %8088 = vst.msk [vmem:[#allocation11] sm:$0xff] %vm8076_vm2, %v8087_v31  ;;  %v8099_v37 = vrot.slane %v8087_v31, %v8098_v11  ;;  %v8092_v59 = vrot.slane %v8087_v31, %v8091_v46  ;;  %v8106_v53 = vrot.slane %v8087_v31, %v8105_v51  ;;  %v8113_v35 = vrot.slane %v8087_v31, %v8112_v39 }
0x306f   :  { %v8120_v60 = vrot.slane %v8087_v31, %v8119_v42  ;;  %v8127_v28 = vrot.slane %v8087_v31, %v8126_v26  ;;  %v8134_v41 = vrot.slane %v8087_v31, %v8133_v16  ;;  %v8141_v55 = vrot.slane %v8087_v31, %v8140_v63 }
0x3070   :  { %8101 = vbcast.lane.b32.xlu1 %v8099_v37, 256  ;;  %8094 = vbcast.lane.b32.xlu0 %v8092_v59, 256 }
0x3074   :  { %8108 = vbcast.lane.b32.xlu1 %v8106_v53, 256  ;;  %8115 = vbcast.lane.b32.xlu0 %v8113_v35, 256 }
0x3078   :  { %8122 = vbcast.lane.b32.xlu1 %v8120_v60, 256  ;;  %8129 = vbcast.lane.b32.xlu0 %v8127_v28, 256 }
0x307c   :  { %8136 = vbcast.lane.b32.xlu1 %v8134_v41, 256  ;;  %8143 = vbcast.lane.b32.xlu0 %v8141_v55, 256 }
0x307d   :  { %9781 = shalt.err (!%p9778_p0)
}
0x307e   :  { %s9782_s30 = scalar_lea.hbm %s13513_s9, 128 }
0x307f   :  { %p9783_p1 = scmp.ne.s32.totalorder %s13513_s9, %s9782_s30  ;;  %p9786_p2 = scmp.lt.u32.totalorder %s9782_s30, %s13513_s9 }
0x3081   :  { %p9788_p3 = pnand %p9786_p2, %p9783_p1 }
0x3083   :  { %9791 = shalt.err (!%p9788_p3)
}
0x3084   :  { %8245 = dma.vmem_to_hbm [thread:$0]  %s8243_s2, 128, %s13513_s9, [#allocation12]  }
0x3085   :  { %s9844_s9 = smov [#allocation10]  }
0x3086   :  { %s8232_s15 = sshll.u32 %s9844_s9, 4  ;;  %s8233_s15 = int_to_ptr.vmem [resolvable:$true] %s8232_s15 }
0x3087   :  { %s9792_s16 = scalar_lea.vmem %s8233_s15, 128  ;;  %p9797_p5 = scmp.lt.s32.totalorder %s8233_s15, %s8233_s15 }
0x3088   :  { %p9793_p4 = scmp.ne.s32.totalorder %s8233_s15, %s9792_s16  ;;  %p9798_p6 = scmp.lt.s32.totalorder %s9792_s16, %s9792_s16 }
0x308a   :  { %p9799_p7 = por %p9798_p6, %p9797_p5 }
0x308c   :  { %p9800_p8 = pnand %p9799_p7, %p9793_p4 }
0x30e2   :  { %v8102_v12 = vpop.permute.xlu1 %8101  ;;  %v8095_v48 = vpop.permute.xlu0 %8094 }
0x30e3   :  { %v8146_v20 = vmul.f32 %v8102_v12, %v13387_v49  ;;  %v8145_v62 = vmul.f32 %v8095_v48, %v13384_v40 }
0x30e5   :  { %v8160_v50 = vsel %vm136_vm1, %v8146_v20, 0.0  ;;  %v8153_v3 = vsel %vm136_vm1, %v8145_v62, 0.0 }
0x30e6   :  { %v8161_v5 = vrot.slane %v8160_v50, 4  ;;  %v8154_v2 = vrot.slane %v8153_v3, 4  ;;  %v8109_v19 = vpop.permute.xlu1 %8108  ;;  %v8116_v32 = vpop.permute.xlu0 %8115 }
0x30e7   :  { %v8147_v56 = vmul.f32 %v8109_v19, %v13393_v13  ;;  %v8148_v54 = vmul.f32 %v8116_v32, %v13396_v21 }
0x30e8   :  { %v8162_v61 = vadd.f32 %v8161_v5, %v8160_v50  ;;  %v8155_v6 = vadd.f32 %v8154_v2, %v8153_v3 }
0x30e9   :  { %v8167_v45 = vsel %vm136_vm1, %v8147_v56, 0.0  ;;  %v8174_v49 = vsel %vm136_vm1, %v8148_v54, 0.0 }
0x30ea   :  { %v8163_v27 = vrot.slane %v8162_v61, 2  ;;  %v8156_v40 = vrot.slane %v8155_v6, 2  ;;  %v8168_v34 = vrot.slane %v8167_v45, 4  ;;  %v8175_v0 = vrot.slane %v8174_v49, 4  ;;  %v8123_v4 = vpop.permute.xlu1 %8122  ;;  %v8130_v17 = vpop.permute.xlu0 %8129 }
0x30eb   :  { %v8149_v14 = vmul.f32 %v8123_v4, %v13402_v57  ;;  %v8150_v36 = vmul.f32 %v8130_v17, %v13405_v24 }
0x30ec   :  { %v8164_v43 = vadd.f32 %v8163_v27, %v8162_v61  ;;  %v8157_v13 = vadd.f32 %v8156_v40, %v8155_v6  ;;  %v8169_v8 = vadd.f32 %v8168_v34, %v8167_v45  ;;  %v8176_v21 = vadd.f32 %v8175_v0, %v8174_v49 }
0x30ed   :  { %v8181_v15 = vsel %vm136_vm1, %v8149_v14, 0.0  ;;  %v8188_v44 = vsel %vm136_vm1, %v8150_v36, 0.0 }
0x30ee   :  { %v8165_v25 = vrot.slane %v8164_v43, 1  ;;  %v8158_v52 = vrot.slane %v8157_v13, 1  ;;  %v8170_v30 = vrot.slane %v8169_v8, 2  ;;  %v8177_v33 = vrot.slane %v8176_v21, 2  ;;  %v8137_v7 = vpop.permute.xlu1 %8136  ;;  %v8144_v58 = vpop.permute.xlu0 %8143 }
0x30ef   :  { %v8182_v18 = vrot.slane %v8181_v15, 4  ;;  %v8189_v1 = vrot.slane %v8188_v44, 4  ;;  %v8151_v57 = vmul.f32 %v8137_v7, %v13411_v23  ;;  %v8152_v24 = vmul.f32 %v8144_v58, %v13414_v10 }
0x30f0   :  { %v8166_v9 = vadd.f32 %v8165_v25, %v8164_v43  ;;  %v8171_v38 = vadd.f32 %v8170_v30, %v8169_v8  ;;  %v8178_v29 = vadd.f32 %v8177_v33, %v8176_v21  ;;  %v8159_v31 = vadd.f32 %v8158_v52, %v8157_v13 }
0x30f1   :  { %v8183_v47 = vadd.f32 %v8182_v18, %v8181_v15  ;;  %v8190_v11 = vadd.f32 %v8189_v1, %v8188_v44  ;;  %v8195_v46 = vsel %vm136_vm1, %v8151_v57, 0.0  ;;  %v8202_v22 = vsel %vm136_vm1, %v8152_v24, 0.0 }
0x30f2   :  { %v8172_v37 = vrot.slane %v8171_v38, 1  ;;  %v8179_v59 = vrot.slane %v8178_v29, 1  ;;  %v8196_v51 = vrot.slane %v8195_v46, 4  ;;  %v8203_v35 = vrot.slane %v8202_v22, 4 }
0x30f3   :  { %v8184_v39 = vrot.slane %v8183_v47, 2  ;;  %v8191_v53 = vrot.slane %v8190_v11, 2  ;;  %v8217_v28 = vsel %vm589_vm3, %v8166_v9, %v8159_v31  ;;  %vm13936_vm3 = vmmov %vm13933_vm9 }
0x30f4   :  { %v8173_v42 = vadd.f32 %v8172_v37, %v8171_v38  ;;  %v8197_v23 = vadd.f32 %v8196_v51, %v8195_v46  ;;  %v8204_v60 = vadd.f32 %v8203_v35, %v8202_v22  ;;  %v8180_v16 = vadd.f32 %v8179_v59, %v8178_v29 }
0x30f5   :  { %v8185_v26 = vadd.f32 %v8184_v39, %v8183_v47  ;;  %v8192_v10 = vadd.f32 %v8191_v53, %v8190_v11 }
0x30f6   :  { %v8198_v63 = vrot.slane %v8197_v23, 2  ;;  %v8218_v41 = vsel %vm592_vm4, %v8173_v42, %v8217_v28  ;;  %v8205_v48 = vrot.slane %v8204_v60, 2 }
0x30f7   :  { %v8186_v55 = vrot.slane %v8185_v26, 1  ;;  %v8193_v12 = vrot.slane %v8192_v10, 1  ;;  %v8219_v5 = vsel %vm595_vm5, %v8180_v16, %v8218_v41 }
0x30f8   :  { %v8199_v20 = vadd.f32 %v8198_v63, %v8197_v23  ;;  %v8206_v3 = vadd.f32 %v8205_v48, %v8204_v60 }
0x30f9   :  { %v8187_v62 = vadd.f32 %v8186_v55, %v8185_v26  ;;  %v8194_v50 = vadd.f32 %v8193_v12, %v8192_v10 }
0x30fa   :  { %v8200_v2 = vrot.slane %v8199_v20, 1  ;;  %v8207_v19 = vrot.slane %v8206_v3, 1 }
0x30fb   :  { %v8220_v32 = vsel %vm598_vm6, %v8187_v62, %v8219_v5 }
0x30fc   :  { %v8201_v56 = vadd.f32 %v8200_v2, %v8199_v20  ;;  %v8208_v54 = vadd.f32 %v8207_v19, %v8206_v3  ;;  %v8221_v61 = vsel %vm601_vm7, %v8194_v50, %v8220_v32 }
0x30fe   :  { %v8222_v6 = vsel %vm604_vm8, %v8201_v56, %v8221_v61 }
0x30ff   :  { %v8223_v45 = vsel %vm13936_vm3, %v8208_v54, %v8222_v6 }
0x3100   :  { %8225 = vst.msk [vmem:[#allocation10] sm:$0xff] %vm136_vm1, %v8223_v45 }
0x3101   :  { %9803 = shalt.err (!%p9800_p8)
}
0x3102   :  { %s9804_s19 = scalar_lea.hbm %s13512_s8, 128 }
0x3103   :  { %p9805_p9 = scmp.ne.s32.totalorder %s13512_s8, %s9804_s19  ;;  %p9808_p10 = scmp.lt.u32.totalorder %s9804_s19, %s13512_s8 }
0x3105   :  { %p9810_p11 = pnand %p9808_p10, %p9805_p9 }
0x3107   :  { %9813 = shalt.err (!%p9810_p11)
}
0x3108   :  { %8235 = dma.vmem_to_hbm [thread:$0]  %s8233_s15, 128, %s13512_s8, [#allocation6]  }
0x3109   :  { %9818 = dma.done.wait [#allocation6], 128  }
0x310a   :  { %9819 = vsyncadd [#allocation6], 4294967168 }
0x310b   :  { %9820 = dma.done.wait [#allocation12], 128  }
0x310c   :  { %9821 = vsyncadd [#allocation12], 4294967168 }
0x310d   :  { %8252 = vsyncpa [#allocation5], 1 }
0x310e   :  { %8253 = vsyncpa [#allocation8], 1 }
0x310f   :  { %8254 = vsyncpa [#allocation6], 1 }
0x3110   :  { %8255 = vsyncpa [#allocation12], 1 }

</bundles_post_ra>
